<compile_context>
chip_gen: v6e
topology: v6e:2x2x1
jax: 0.10.0
libtpu: 0.0.40
codegen_flags: <defaults>
</compile_context>

<pallas_src>
import functools
import math

import jax
import jax.numpy as jnp
from jax.experimental import pallas as pl
from jax.experimental.pallas import tpu as pltpu


# ----------------------------- helpers ------------------------------------

def _ru(x, m):
    return (x + m - 1) // m * m


def _pad_2d(a, mp, np_, val=0.0):
    return jnp.pad(a, ((0, mp - a.shape[0]), (0, np_ - a.shape[1])),
                   constant_values=val)


# ----------------------------- Pallas kernels ------------------------------

def _fused_mm_kernel(*refs, relu, has_res):
    """Tiled matmul with f32 VMEM accumulator and fused epilogue:
    out = [relu]( A@B + bias [+ residual] ), written on the last K step."""
    if has_res:
        a_ref, b_ref, bias_ref, res_ref, o_ref, acc_ref = refs
    else:
        a_ref, b_ref, bias_ref, o_ref, acc_ref = refs
        res_ref = None
    k = pl.program_id(2)

    @pl.when(k == 0)
    def _init():
        acc_ref[...] = jnp.zeros_like(acc_ref)

    acc_ref[...] += jnp.dot(a_ref[...], b_ref[...],
                            preferred_element_type=jnp.float32)

    @pl.when(k == pl.num_programs(2) - 1)
    def _finalize():
        y = acc_ref[...] + bias_ref[...]
        if has_res:
            y = y + res_ref[...].astype(jnp.float32)
        if relu:
            y = jnp.maximum(y, 0.0)
        o_ref[...] = y.astype(o_ref.dtype)


def _max_reduce_kernel(x_ref, o_ref):
    # (tm, taps, C) -> (tm, C): sublane-axis max reduction (XLU), lane-dense C.
    o_ref[...] = jnp.max(x_ref[...], axis=1)


def _mean_reduce_kernel(x_ref, o_ref):
    # (bn, H*W, C) -> (bn, C) in f32.
    o_ref[...] = jnp.mean(x_ref[...].astype(jnp.float32), axis=1)


# ----------------------------- Pallas wrappers ------------------------------

def _pick_k_tile(K, target=512):
    """Choose a K tile (multiple of 128, <= target) that divides the padded K
    exactly (avoids wasted MXU cycles / DMA)."""
    kp0 = _ru(K, 128)
    if kp0 <= target:
        return kp0, kp0, 1
    for tk in range(target, 127, -128):
        if kp0 % tk == 0:
            return tk, kp0, kp0 // tk
    # unreachable (tk=128 always divides kp0), kept for safety
    kp = _ru(K, target)
    return target, kp, kp // target


def fused_matmul(a, b, bias, residual=None, relu=False,
                 out_dtype=jnp.bfloat16):
    """(M,K) @ (K,N) with bf16 MXU inputs, f32 accumulation, fused
    bias / residual / ReLU epilogue. M/N/K tiled, M & N parallel."""
    M, K = a.shape
    K2, N = b.shape
    assert K == K2
    tm = min(256, _ru(M, 8))
    Mp = _ru(M, tm)
    tn = min(256, _ru(N, 128))
    Np = _ru(N, tn)
    tk, Kp, nk = _pick_k_tile(K)
    nm, nn = Mp // tm, Np // tn

    a_p = _pad_2d(a, Mp, Kp).astype(jnp.bfloat16)
    b_p = _pad_2d(b.astype(jnp.float32), Kp, Np).astype(jnp.bfloat16)
    bias_p = _pad_2d(bias.astype(jnp.float32).reshape(1, -1), 1, Np)

    in_specs = [
        pl.BlockSpec((tm, tk), lambda i, j, k: (i, k)),
        pl.BlockSpec((tk, tn), lambda i, j, k: (k, j)),
        pl.BlockSpec((1, tn), lambda i, j, k: (0, j)),
    ]
    inputs = [a_p, b_p, bias_p]
    if residual is not None:
        in_specs.append(pl.BlockSpec((tm, tn), lambda i, j, k: (i, j)))
        inputs.append(_pad_2d(residual, Mp, Np).astype(jnp.bfloat16))

    out = pl.pallas_call(
        functools.partial(_fused_mm_kernel, relu=relu,
                          has_res=residual is not None),
        grid=(nm, nn, nk),
        in_specs=in_specs,
        out_specs=pl.BlockSpec((tm, tn), lambda i, j, k: (i, j)),
        out_shape=jax.ShapeDtypeStruct((Mp, Np), out_dtype),
        scratch_shapes=[pltpu.VMEM((tm, tn), jnp.float32)],
        compiler_params=pltpu.CompilerParams(
            dimension_semantics=("parallel", "parallel", "arbitrary")),
    )(*inputs)
    return out[:M, :N]


def pallas_maxpool_3x3_s2(x_nhwc):
    """MaxPool2d(kernel=3, stride=2, padding=1), row-tiled max-reduction."""
    # TODO(synk): the 9-tap stack is still a 9x data expansion in HBM; an
    # implicit (in-kernel strided DMA) version would remove it.
    N, H, W, C = x_nhwc.shape
    kh = kw = 3
    stride, pad = 2, 1
    neg = -3.0e38
    xp = jnp.pad(x_nhwc, ((0, 0), (pad, pad), (pad, pad), (0, 0)),
                 constant_values=neg)
    Ho = (H + 2 * pad - kh) // stride + 1
    Wo = (W + 2 * pad - kw) // stride + 1
    views = [xp[:, i:i + stride * Ho:stride, j:j + stride * Wo:stride, :]
             for i in range(kh) for j in range(kw)]
    stacked = jnp.stack(views, axis=3).reshape(N * Ho * Wo, kh * kw, C)
    M = N * Ho * Wo
    tm = min(512, _ru(M, 8))
    Mp = _ru(M, tm)
    Cp = _ru(C, 128)
    stacked_p = jnp.pad(stacked, ((0, Mp - M), (0, 0), (0, Cp - C)),
                        constant_values=neg)
    out = pl.pallas_call(
        _max_reduce_kernel,
        grid=(Mp // tm,),
        in_specs=[pl.BlockSpec((tm, kh * kw, Cp), lambda i: (i, 0, 0))],
        out_specs=pl.BlockSpec((tm, Cp), lambda i: (i, 0)),
        out_shape=jax.ShapeDtypeStruct((Mp, Cp), x_nhwc.dtype),
        compiler_params=pltpu.CompilerParams(
            dimension_semantics=("parallel",)),
    )(stacked_p)
    return out[:M, :C].reshape(N, Ho, Wo, C)


def pallas_global_avgpool(x_nhwc):
    """AdaptiveAvgPool2d(1) -> (N, C) in f32, batch-tiled mean reduction."""
    N, H, W, C = x_nhwc.shape
    x3 = x_nhwc.reshape(N, H * W, C)
    bn = min(64, _ru(N, 8))
    Nb = _ru(N, bn)
    Cp = _ru(C, 128)
    x3p = jnp.pad(x3, ((0, Nb - N), (0, 0), (0, Cp - C)))
    out = pl.pallas_call(
        _mean_reduce_kernel,
        grid=(Nb // bn,),
        in_specs=[pl.BlockSpec((bn, H * W, Cp), lambda i: (i, 0, 0))],
        out_specs=pl.BlockSpec((bn, Cp), lambda i: (i, 0)),
        out_shape=jax.ShapeDtypeStruct((Nb, Cp), jnp.float32),
        compiler_params=pltpu.CompilerParams(
            dimension_semantics=("parallel",)),
    )(x3p)
    return out[:N, :C]


# ----------------------------- ResNet building blocks ----------------------

def _im2col(x_nhwc, kh, kw, stride, pad):
    # TODO(synk): explicit im2col materializes kh*kw x the input in HBM; an
    # implicit in-kernel gather would cut that traffic further.
    N, H, W, C = x_nhwc.shape
    xp = jnp.pad(x_nhwc, ((0, 0), (pad, pad), (pad, pad), (0, 0)))
    Ho = (H + 2 * pad - kh) // stride + 1
    Wo = (W + 2 * pad - kw) // stride + 1
    views = [xp[:, i:i + stride * Ho:stride, j:j + stride * Wo:stride, :]
             for i in range(kh) for j in range(kw)]
    cols = jnp.stack(views, axis=3).reshape(N * Ho * Wo, kh * kw * C)
    return cols, Ho, Wo


def conv_bn(x_nhwc, w_oihw, bn, stride, pad, relu, residual=None):
    """conv + frozen (eval-mode) BN folded into the weights, with bias /
    optional residual add / optional ReLU fused in the matmul epilogue."""
    g, b, m, v = bn
    scale = g / jnp.sqrt(v + 1e-5)            # fold in f32 before the bf16 cast
    shift = b - m * scale
    Cout, Cin, kh, kw = w_oihw.shape
    N = x_nhwc.shape[0]
    cols, Ho, Wo = _im2col(x_nhwc, kh, kw, stride, pad)
    w_mat = jnp.transpose(w_oihw, (2, 3, 1, 0)).reshape(kh * kw * Cin, Cout)
    w_mat = w_mat * scale[None, :]
    res2d = None
    if residual is not None:
        res2d = residual.reshape(N * Ho * Wo, Cout)
    y = fused_matmul(cols, w_mat, shift, residual=res2d, relu=relu)
    return y.reshape(N, Ho, Wo, Cout)


def basic_block(x, p, stride):
    if 'down_conv' in p:
        identity = conv_bn(x, p['down_conv'], p['down_bn'], stride, 0,
                           relu=False)
    else:
        identity = x
    out = conv_bn(x, p['conv1'], p['bn1'], stride, 1, relu=True)
    # conv2 + bn2 + residual add + ReLU, all in one fused kernel
    out = conv_bn(out, p['conv2'], p['bn2'], 1, 1, relu=True,
                  residual=identity)
    return out


def resnet18_forward(params, x_nchw):
    # NCHW (PyTorch) -> NHWC (kernel layout), bf16 activations / f32 accum
    x = jnp.transpose(x_nchw, (0, 2, 3, 1)).astype(jnp.bfloat16)
    x = conv_bn(x, params['conv1'], params['bn1'], stride=2, pad=3, relu=True)
    x = pallas_maxpool_3x3_s2(x)
    for name, s0 in (('layer1', 1), ('layer2', 2), ('layer3', 2),
                     ('layer4', 2)):
        b0, b1 = params[name]
        x = basic_block(x, b0, s0)
        x = basic_block(x, b1, 1)
    feat = pallas_global_avgpool(x)            # (N, 512); network.fc = Identity
    # self.dropout has p=0.0 -> identity (no-op even in training mode)
    # final Linear: bias fused into the matmul epilogue
    logits = fused_matmul(feat, params['out_w'].T.astype(jnp.float32),
                          params['out_b'], relu=False, out_dtype=jnp.float32)
    return logits


# ----------------------------- deterministic parameter init ----------------
# TODO(synk): torchvision pretrained ImageNet weights are not loadable here;
# parameters are synthesized deterministically with the same shapes instead.

def init_params(key, in_ch=3, num_classes=10):
    keys = iter([jax.random.fold_in(key, i) for i in range(256)])

    def conv_w(cout, cin, k):
        fan = cin * k * k
        return jax.random.normal(next(keys), (cout, cin, k, k),
                                 jnp.float32) / math.sqrt(fan)

    def bn_p(c):
        g = 1.0 + 0.1 * jax.random.normal(next(keys), (c,), jnp.float32)
        b = 0.1 * jax.random.normal(next(keys), (c,), jnp.float32)
        m = 0.1 * jax.random.normal(next(keys), (c,), jnp.float32)
        v = 1.0 + 0.1 * jnp.abs(jax.random.normal(next(keys), (c,), jnp.float32))
        return (g, b, m, v)

    params = {'conv1': conv_w(64, in_ch, 7), 'bn1': bn_p(64)}
    stages = [(64, 64, 1), (64, 128, 2), (128, 256, 2), (256, 512, 2)]
    for li, (cin, cout, stride) in enumerate(stages, start=1):
        b0 = {'conv1': conv_w(cout, cin, 3), 'bn1': bn_p(cout),
              'conv2': conv_w(cout, cout, 3), 'bn2': bn_p(cout)}
        if stride != 1 or cin != cout:
            b0['down_conv'] = conv_w(cout, cin, 1)
            b0['down_bn'] = bn_p(cout)
        b1 = {'conv1': conv_w(cout, cout, 3), 'bn1': bn_p(cout),
              'conv2': conv_w(cout, cout, 3), 'bn2': bn_p(cout)}
        params[f'layer{li}'] = [b0, b1]
    params['out_w'] = jax.random.normal(next(keys), (num_classes, 512),
                                        jnp.float32) / math.sqrt(512)
    params['out_b'] = 0.01 * jax.random.normal(next(keys), (num_classes,),
                                               jnp.float32)
    return params


# ----------------------------- main ----------------------------------------

if __name__ == "__main__":
    key = jax.random.PRNGKey(0)
    params = init_params(jax.random.fold_in(key, 1),
                         in_ch=3, num_classes=10)
    # small input consistent with the module (NCHW, 3 channels)
    x = jax.random.normal(jax.random.fold_in(key, 2), (2, 3, 32, 32),
                          jnp.float32)
    fwd = jax.jit(resnet18_forward)
    out = fwd(params, x)
    jax.block_until_ready(out)
    assert out.shape == (2, 10), out.shape
    assert jnp.all(jnp.isfinite(out))
    print("KERNEL_OK")
</pallas_src>

<mosaic_0001>
module attributes {stable_mosaic.version = 11 : i64} {
  func.func @_fused_mm_kernel(%arg0: i32, %arg1: i32, %arg2: i32, %arg3: memref<256x256xbf16, #tpu.memory_space<vmem>>, %arg4: memref<256x128xbf16, #tpu.memory_space<vmem>>, %arg5: memref<1x128xf32, #tpu.memory_space<vmem>>, %arg6: memref<256x128xbf16, #tpu.memory_space<vmem>>, %arg7: memref<256x128xf32, #tpu.memory_space<vmem>>) attributes {dimension_semantics = [#tpu.dimension_semantics<parallel>, #tpu.dimension_semantics<parallel>, #tpu.dimension_semantics<arbitrary>], iteration_bounds = array<i64: 2, 1, 1>, scalar_prefetch = 0 : i64, scratch_operands = 1 : i64, tpu.core_type = #tpu.core_type<tc>, window_params = [{transform_indices = @transform_0, window_bounds = array<i64: 256, 256>}, {transform_indices = @transform_1, window_bounds = array<i64: 256, 128>}, {transform_indices = @transform_2, window_bounds = array<i64: 1, 128>}, {transform_indices = @transform_3, window_bounds = array<i64: 256, 128>}]} {
    %c0_i32 = arith.constant 0 : i32
    %0 = arith.cmpi eq, %arg2, %c0_i32 : i32
    %1 = arith.extui %0 : i1 to i32
    %c0_i32_0 = arith.constant 0 : i32
    %2 = arith.cmpi ne, %1, %c0_i32_0 : i32
    scf.if %2 {
      %cst_10 = arith.constant 0.000000e+00 : f32
      %12 = vector.broadcast %cst_10 : f32 to vector<256x128xf32>
      %c0_11 = arith.constant 0 : index
      %c0_12 = arith.constant 0 : index
      %13 = vector.load %arg7[%c0_11, %c0_12] : memref<256x128xf32, #tpu.memory_space<vmem>>, vector<256x128xf32>
      tpu.vector_store %arg7[%c0_11, %c0_12], %12 {strides = array<i32>} : memref<256x128xf32, #tpu.memory_space<vmem>>, vector<256x128xf32>,
    } else {
    }
    %c0 = arith.constant 0 : index
    %c0_1 = arith.constant 0 : index
    %3 = vector.load %arg7[%c0, %c0_1] : memref<256x128xf32, #tpu.memory_space<vmem>>, vector<256x128xf32>
    %c0_2 = arith.constant 0 : index
    %c0_3 = arith.constant 0 : index
    %4 = vector.load %arg3[%c0_2, %c0_3] : memref<256x256xbf16, #tpu.memory_space<vmem>>, vector<256x256xbf16>
    %c0_4 = arith.constant 0 : index
    %c0_5 = arith.constant 0 : index
    %5 = vector.load %arg4[%c0_4, %c0_5] : memref<256x128xbf16, #tpu.memory_space<vmem>>, vector<256x128xbf16>
    %cst = arith.constant dense<0.000000e+00> : vector<256x128xf32>
    %6 = tpu.matmul %4, %5, %cst {dimension_numbers = #tpu.dot_dimension_numbers<[1], [0], [0], [1], [0, 0, 1, 1], [], []>} : vector<256x256xbf16>, vector<256x128xbf16>, vector<256x128xf32> -> vector<256x128xf32>
    %7 = arith.addf %3, %6 : vector<256x128xf32>
    %c0_6 = arith.constant 0 : index
    %c0_7 = arith.constant 0 : index
    %8 = vector.load %arg7[%c0_6, %c0_7] : memref<256x128xf32, #tpu.memory_space<vmem>>, vector<256x128xf32>
    tpu.vector_store %arg7[%c0_6, %c0_7], %7 {strides = array<i32>} : memref<256x128xf32, #tpu.memory_space<vmem>>, vector<256x128xf32>,
    %c0_i32_8 = arith.constant 0 : i32
    %9 = arith.cmpi eq, %arg2, %c0_i32_8 : i32
    %10 = arith.extui %9 : i1 to i32
    %c0_i32_9 = arith.constant 0 : i32
    %11 = arith.cmpi ne, %10, %c0_i32_9 : i32
    scf.if %11 {
      %c0_10 = arith.constant 0 : index
      %c0_11 = arith.constant 0 : index
      %12 = vector.load %arg7[%c0_10, %c0_11] : memref<256x128xf32, #tpu.memory_space<vmem>>, vector<256x128xf32>
      %c0_12 = arith.constant 0 : index
      %c0_13 = arith.constant 0 : index
      %13 = vector.load %arg5[%c0_12, %c0_13] : memref<1x128xf32, #tpu.memory_space<vmem>>, vector<1x128xf32>
      %14 = vector.broadcast %13 : vector<1x128xf32> to vector<256x128xf32>
      %15 = arith.addf %12, %14 : vector<256x128xf32>
      %cst_14 = arith.constant 0.000000e+00 : f32
      %16 = vector.broadcast %cst_14 : f32 to vector<256x128xf32>
      %17 = arith.maximumf %15, %16 : vector<256x128xf32>
      %18 = arith.truncf %17 : vector<256x128xf32> to vector<256x128xbf16>
      %c0_15 = arith.constant 0 : index
      %c0_16 = arith.constant 0 : index
      %19 = vector.load %arg6[%c0_15, %c0_16] : memref<256x128xbf16, #tpu.memory_space<vmem>>, vector<256x128xbf16>
      tpu.vector_store %arg6[%c0_15, %c0_16], %18 {strides = array<i32>} : memref<256x128xbf16, #tpu.memory_space<vmem>>, vector<256x128xbf16>,
    } else {
    }
    return
  }
  func.func @transform_0(%arg0: i32, %arg1: i32, %arg2: i32) -> (i32, i32) {
    %c0_i32 = arith.constant 0 : i32
    return %arg0, %arg2 : i32, i32
  }
  func.func @transform_1(%arg0: i32, %arg1: i32, %arg2: i32) -> (i32, i32) {
    %c0_i32 = arith.constant 0 : i32
    return %arg2, %arg1 : i32, i32
  }
  func.func @transform_2(%arg0: i32, %arg1: i32, %arg2: i32) -> (i32, i32) {
    %c0_i32 = arith.constant 0 : i32
    %c0_i32_0 = arith.constant 0 : i32
    return %c0_i32, %arg1 : i32, i32
  }
  func.func @transform_3(%arg0: i32, %arg1: i32, %arg2: i32) -> (i32, i32) {
    %c0_i32 = arith.constant 0 : i32
    return %arg0, %arg1 : i32, i32
  }
}

module attributes {stable_mosaic.version = 11 : i64} {
  func.func @_max_reduce_kernel(%arg0: i32, %arg1: memref<128x9x128xbf16, #tpu.memory_space<vmem>>, %arg2: memref<128x128xbf16, #tpu.memory_space<vmem>>) attributes {dimension_semantics = [#tpu.dimension_semantics<parallel>], iteration_bounds = array<i64: 1>, scalar_prefetch = 0 : i64, scratch_operands = 0 : i64, tpu.core_type = #tpu.core_type<tc>, window_params = [{transform_indices = @transform_0, window_bounds = array<i64: 128, 9, 128>}, {transform_indices = @transform_1, window_bounds = array<i64: 128, 128>}]} {
    %c0 = arith.constant 0 : index
    %c0_0 = arith.constant 0 : index
    %c0_1 = arith.constant 0 : index
    %0 = vector.load %arg1[%c0, %c0_0, %c0_1] : memref<128x9x128xbf16, #tpu.memory_space<vmem>>, vector<128x9x128xbf16>
    %cst = arith.constant dense<0xFF80> : vector<128x128xbf16>
    %1 = vector.multi_reduction <maximumf>, %0, %cst [1] : vector<128x9x128xbf16> to vector<128x128xbf16>
    %c0_2 = arith.constant 0 : index
    %c0_3 = arith.constant 0 : index
    %2 = vector.load %arg2[%c0_2, %c0_3] : memref<128x128xbf16, #tpu.memory_space<vmem>>, vector<128x128xbf16>
    tpu.vector_store %arg2[%c0_2, %c0_3], %1 {strides = array<i32>} : memref<128x128xbf16, #tpu.memory_space<vmem>>, vector<128x128xbf16>,
    return
  }
  func.func @transform_0(%arg0: i32) -> (i32, i32, i32) {
    %c0_i32 = arith.constant 0 : i32
    %c0_i32_0 = arith.constant 0 : i32
    %c0_i32_1 = arith.constant 0 : i32
    return %arg0, %c0_i32, %c0_i32_0 : i32, i32, i32
  }
  func.func @transform_1(%arg0: i32) -> (i32, i32) {
    %c0_i32 = arith.constant 0 : i32
    %c0_i32_0 = arith.constant 0 : i32
    return %arg0, %c0_i32 : i32, i32
  }
}

module attributes {stable_mosaic.version = 11 : i64} {
  func.func @_fused_mm_kernel(%arg0: i32, %arg1: i32, %arg2: i32, %arg3: memref<128x128xbf16, #tpu.memory_space<vmem>>, %arg4: memref<128x128xbf16, #tpu.memory_space<vmem>>, %arg5: memref<1x128xf32, #tpu.memory_space<vmem>>, %arg6: memref<128x128xbf16, #tpu.memory_space<vmem>>, %arg7: memref<128x128xf32, #tpu.memory_space<vmem>>) attributes {dimension_semantics = [#tpu.dimension_semantics<parallel>, #tpu.dimension_semantics<parallel>, #tpu.dimension_semantics<arbitrary>], iteration_bounds = array<i64: 1, 1, 5>, scalar_prefetch = 0 : i64, scratch_operands = 1 : i64, tpu.core_type = #tpu.core_type<tc>, window_params = [{transform_indices = @transform_0, window_bounds = array<i64: 128, 128>}, {transform_indices = @transform_1, window_bounds = array<i64: 128, 128>}, {transform_indices = @transform_2, window_bounds = array<i64: 1, 128>}, {transform_indices = @transform_3, window_bounds = array<i64: 128, 128>}]} {
    %c0_i32 = arith.constant 0 : i32
    %0 = arith.cmpi eq, %arg2, %c0_i32 : i32
    %1 = arith.extui %0 : i1 to i32
    %c0_i32_0 = arith.constant 0 : i32
    %2 = arith.cmpi ne, %1, %c0_i32_0 : i32
    scf.if %2 {
      %cst_9 = arith.constant 0.000000e+00 : f32
      %12 = vector.broadcast %cst_9 : f32 to vector<128x128xf32>
      %c0_10 = arith.constant 0 : index
      %c0_11 = arith.constant 0 : index
      %13 = vector.load %arg7[%c0_10, %c0_11] : memref<128x128xf32, #tpu.memory_space<vmem>>, vector<128x128xf32>
      tpu.vector_store %arg7[%c0_10, %c0_11], %12 {strides = array<i32>} : memref<128x128xf32, #tpu.memory_space<vmem>>, vector<128x128xf32>,
    } else {
    }
    %c0 = arith.constant 0 : index
    %c0_1 = arith.constant 0 : index
    %3 = vector.load %arg7[%c0, %c0_1] : memref<128x128xf32, #tpu.memory_space<vmem>>, vector<128x128xf32>
    %c0_2 = arith.constant 0 : index
    %c0_3 = arith.constant 0 : index
    %4 = vector.load %arg3[%c0_2, %c0_3] : memref<128x128xbf16, #tpu.memory_space<vmem>>, vector<128x128xbf16>
    %c0_4 = arith.constant 0 : index
    %c0_5 = arith.constant 0 : index
    %5 = vector.load %arg4[%c0_4, %c0_5] : memref<128x128xbf16, #tpu.memory_space<vmem>>, vector<128x128xbf16>
    %cst = arith.constant dense<0.000000e+00> : vector<128x128xf32>
    %6 = tpu.matmul %4, %5, %cst {dimension_numbers = #tpu.dot_dimension_numbers<[1], [0], [0], [1], [0, 0, 1, 1], [], []>} : vector<128x128xbf16>, vector<128x128xbf16>, vector<128x128xf32> -> vector<128x128xf32>
    %7 = arith.addf %3, %6 : vector<128x128xf32>
    %c0_6 = arith.constant 0 : index
    %c0_7 = arith.constant 0 : index
    %8 = vector.load %arg7[%c0_6, %c0_7] : memref<128x128xf32, #tpu.memory_space<vmem>>, vector<128x128xf32>
    tpu.vector_store %arg7[%c0_6, %c0_7], %7 {strides = array<i32>} : memref<128x128xf32, #tpu.memory_space<vmem>>, vector<128x128xf32>,
    %c4_i32 = arith.constant 4 : i32
    %9 = arith.cmpi eq, %arg2, %c4_i32 : i32
    %10 = arith.extui %9 : i1 to i32
    %c0_i32_8 = arith.constant 0 : i32
    %11 = arith.cmpi ne, %10, %c0_i32_8 : i32
    scf.if %11 {
      %c0_9 = arith.constant 0 : index
      %c0_10 = arith.constant 0 : index
      %12 = vector.load %arg7[%c0_9, %c0_10] : memref<128x128xf32, #tpu.memory_space<vmem>>, vector<128x128xf32>
      %c0_11 = arith.constant 0 : index
      %c0_12 = arith.constant 0 : index
      %13 = vector.load %arg5[%c0_11, %c0_12] : memref<1x128xf32, #tpu.memory_space<vmem>>, vector<1x128xf32>
      %14 = vector.broadcast %13 : vector<1x128xf32> to vector<128x128xf32>
      %15 = arith.addf %12, %14 : vector<128x128xf32>
      %cst_13 = arith.constant 0.000000e+00 : f32
      %16 = vector.broadcast %cst_13 : f32 to vector<128x128xf32>
      %17 = arith.maximumf %15, %16 : vector<128x128xf32>
      %18 = arith.truncf %17 : vector<128x128xf32> to vector<128x128xbf16>
      %c0_14 = arith.constant 0 : index
      %c0_15 = arith.constant 0 : index
      %19 = vector.load %arg6[%c0_14, %c0_15] : memref<128x128xbf16, #tpu.memory_space<vmem>>, vector<128x128xbf16>
      tpu.vector_store %arg6[%c0_14, %c0_15], %18 {strides = array<i32>} : memref<128x128xbf16, #tpu.memory_space<vmem>>, vector<128x128xbf16>,
    } else {
    }
    return
  }
  func.func @transform_0(%arg0: i32, %arg1: i32, %arg2: i32) -> (i32, i32) {
    %c0_i32 = arith.constant 0 : i32
    return %arg0, %arg2 : i32, i32
  }
  func.func @transform_1(%arg0: i32, %arg1: i32, %arg2: i32) -> (i32, i32) {
    %c0_i32 = arith.constant 0 : i32
    return %arg2, %arg1 : i32, i32
  }
  func.func @transform_2(%arg0: i32, %arg1: i32, %arg2: i32) -> (i32, i32) {
    %c0_i32 = arith.constant 0 : i32
    %c0_i32_0 = arith.constant 0 : i32
    return %c0_i32, %arg1 : i32, i32
  }
  func.func @transform_3(%arg0: i32, %arg1: i32, %arg2: i32) -> (i32, i32) {
    %c0_i32 = arith.constant 0 : i32
    return %arg0, %arg1 : i32, i32
  }
}

module attributes {stable_mosaic.version = 11 : i64} {
  func.func @_fused_mm_kernel(%arg0: i32, %arg1: i32, %arg2: i32, %arg3: memref<128x128xbf16, #tpu.memory_space<vmem>>, %arg4: memref<128x128xbf16, #tpu.memory_space<vmem>>, %arg5: memref<1x128xf32, #tpu.memory_space<vmem>>, %arg6: memref<128x128xbf16, #tpu.memory_space<vmem>>, %arg7: memref<128x128xbf16, #tpu.memory_space<vmem>>, %arg8: memref<128x128xf32, #tpu.memory_space<vmem>>) attributes {dimension_semantics = [#tpu.dimension_semantics<parallel>, #tpu.dimension_semantics<parallel>, #tpu.dimension_semantics<arbitrary>], iteration_bounds = array<i64: 1, 1, 5>, scalar_prefetch = 0 : i64, scratch_operands = 1 : i64, tpu.core_type = #tpu.core_type<tc>, window_params = [{transform_indices = @transform_0, window_bounds = array<i64: 128, 128>}, {transform_indices = @transform_1, window_bounds = array<i64: 128, 128>}, {transform_indices = @transform_2, window_bounds = array<i64: 1, 128>}, {transform_indices = @transform_3, window_bounds = array<i64: 128, 128>}, {transform_indices = @transform_4, window_bounds = array<i64: 128, 128>}]} {
    %c0_i32 = arith.constant 0 : i32
    %0 = arith.cmpi eq, %arg2, %c0_i32 : i32
    %1 = arith.extui %0 : i1 to i32
    %c0_i32_0 = arith.constant 0 : i32
    %2 = arith.cmpi ne, %1, %c0_i32_0 : i32
    scf.if %2 {
      %cst_9 = arith.constant 0.000000e+00 : f32
      %12 = vector.broadcast %cst_9 : f32 to vector<128x128xf32>
      %c0_10 = arith.constant 0 : index
      %c0_11 = arith.constant 0 : index
      %13 = vector.load %arg8[%c0_10, %c0_11] : memref<128x128xf32, #tpu.memory_space<vmem>>, vector<128x128xf32>
      tpu.vector_store %arg8[%c0_10, %c0_11], %12 {strides = array<i32>} : memref<128x128xf32, #tpu.memory_space<vmem>>, vector<128x128xf32>,
    } else {
    }
    %c0 = arith.constant 0 : index
    %c0_1 = arith.constant 0 : index
    %3 = vector.load %arg8[%c0, %c0_1] : memref<128x128xf32, #tpu.memory_space<vmem>>, vector<128x128xf32>
    %c0_2 = arith.constant 0 : index
    %c0_3 = arith.constant 0 : index
    %4 = vector.load %arg3[%c0_2, %c0_3] : memref<128x128xbf16, #tpu.memory_space<vmem>>, vector<128x128xbf16>
    %c0_4 = arith.constant 0 : index
    %c0_5 = arith.constant 0 : index
    %5 = vector.load %arg4[%c0_4, %c0_5] : memref<128x128xbf16, #tpu.memory_space<vmem>>, vector<128x128xbf16>
    %cst = arith.constant dense<0.000000e+00> : vector<128x128xf32>
    %6 = tpu.matmul %4, %5, %cst {dimension_numbers = #tpu.dot_dimension_numbers<[1], [0], [0], [1], [0, 0, 1, 1], [], []>} : vector<128x128xbf16>, vector<128x128xbf16>, vector<128x128xf32> -> vector<128x128xf32>
    %7 = arith.addf %3, %6 : vector<128x128xf32>
    %c0_6 = arith.constant 0 : index
    %c0_7 = arith.constant 0 : index
    %8 = vector.load %arg8[%c0_6, %c0_7] : memref<128x128xf32, #tpu.memory_space<vmem>>, vector<128x128xf32>
    tpu.vector_store %arg8[%c0_6, %c0_7], %7 {strides = array<i32>} : memref<128x128xf32, #tpu.memory_space<vmem>>, vector<128x128xf32>,
    %c4_i32 = arith.constant 4 : i32
    %9 = arith.cmpi eq, %arg2, %c4_i32 : i32
    %10 = arith.extui %9 : i1 to i32
    %c0_i32_8 = arith.constant 0 : i32
    %11 = arith.cmpi ne, %10, %c0_i32_8 : i32
    scf.if %11 {
      %c0_9 = arith.constant 0 : index
      %c0_10 = arith.constant 0 : index
      %12 = vector.load %arg8[%c0_9, %c0_10] : memref<128x128xf32, #tpu.memory_space<vmem>>, vector<128x128xf32>
      %c0_11 = arith.constant 0 : index
      %c0_12 = arith.constant 0 : index
      %13 = vector.load %arg5[%c0_11, %c0_12] : memref<1x128xf32, #tpu.memory_space<vmem>>, vector<1x128xf32>
      %14 = vector.broadcast %13 : vector<1x128xf32> to vector<128x128xf32>
      %15 = arith.addf %12, %14 : vector<128x128xf32>
      %c0_13 = arith.constant 0 : index
      %c0_14 = arith.constant 0 : index
      %16 = vector.load %arg6[%c0_13, %c0_14] : memref<128x128xbf16, #tpu.memory_space<vmem>>, vector<128x128xbf16>
      %17 = arith.extf %16 : vector<128x128xbf16> to vector<128x128xf32>
      %18 = arith.addf %15, %17 : vector<128x128xf32>
      %cst_15 = arith.constant 0.000000e+00 : f32
      %19 = vector.broadcast %cst_15 : f32 to vector<128x128xf32>
      %20 = arith.maximumf %18, %19 : vector<128x128xf32>
      %21 = arith.truncf %20 : vector<128x128xf32> to vector<128x128xbf16>
      %c0_16 = arith.constant 0 : index
      %c0_17 = arith.constant 0 : index
      %22 = vector.load %arg7[%c0_16, %c0_17] : memref<128x128xbf16, #tpu.memory_space<vmem>>, vector<128x128xbf16>
      tpu.vector_store %arg7[%c0_16, %c0_17], %21 {strides = array<i32>} : memref<128x128xbf16, #tpu.memory_space<vmem>>, vector<128x128xbf16>,
    } else {
    }
    return
  }
  func.func @transform_0(%arg0: i32, %arg1: i32, %arg2: i32) -> (i32, i32) {
    %c0_i32 = arith.constant 0 : i32
    return %arg0, %arg2 : i32, i32
  }
  func.func @transform_1(%arg0: i32, %arg1: i32, %arg2: i32) -> (i32, i32) {
    %c0_i32 = arith.constant 0 : i32
    return %arg2, %arg1 : i32, i32
  }
  func.func @transform_2(%arg0: i32, %arg1: i32, %arg2: i32) -> (i32, i32) {
    %c0_i32 = arith.constant 0 : i32
    %c0_i32_0 = arith.constant 0 : i32
    return %c0_i32, %arg1 : i32, i32
  }
  func.func @transform_3(%arg0: i32, %arg1: i32, %arg2: i32) -> (i32, i32) {
    %c0_i32 = arith.constant 0 : i32
    return %arg0, %arg1 : i32, i32
  }
  func.func @transform_4(%arg0: i32, %arg1: i32, %arg2: i32) -> (i32, i32) {
    %c0_i32 = arith.constant 0 : i32
    return %arg0, %arg1 : i32, i32
  }
}

module attributes {stable_mosaic.version = 11 : i64} {
  func.func @_fused_mm_kernel(%arg0: i32, %arg1: i32, %arg2: i32, %arg3: memref<32x128xbf16, #tpu.memory_space<vmem>>, %arg4: memref<128x128xbf16, #tpu.memory_space<vmem>>, %arg5: memref<1x128xf32, #tpu.memory_space<vmem>>, %arg6: memref<32x128xbf16, #tpu.memory_space<vmem>>, %arg7: memref<32x128xf32, #tpu.memory_space<vmem>>) attributes {dimension_semantics = [#tpu.dimension_semantics<parallel>, #tpu.dimension_semantics<parallel>, #tpu.dimension_semantics<arbitrary>], iteration_bounds = array<i64: 1, 1, 5>, scalar_prefetch = 0 : i64, scratch_operands = 1 : i64, tpu.core_type = #tpu.core_type<tc>, window_params = [{transform_indices = @transform_0, window_bounds = array<i64: 32, 128>}, {transform_indices = @transform_1, window_bounds = array<i64: 128, 128>}, {transform_indices = @transform_2, window_bounds = array<i64: 1, 128>}, {transform_indices = @transform_3, window_bounds = array<i64: 32, 128>}]} {
    %c0_i32 = arith.constant 0 : i32
    %0 = arith.cmpi eq, %arg2, %c0_i32 : i32
    %1 = arith.extui %0 : i1 to i32
    %c0_i32_0 = arith.constant 0 : i32
    %2 = arith.cmpi ne, %1, %c0_i32_0 : i32
    scf.if %2 {
      %cst_9 = arith.constant 0.000000e+00 : f32
      %12 = vector.broadcast %cst_9 : f32 to vector<32x128xf32>
      %c0_10 = arith.constant 0 : index
      %c0_11 = arith.constant 0 : index
      %13 = vector.load %arg7[%c0_10, %c0_11] : memref<32x128xf32, #tpu.memory_space<vmem>>, vector<32x128xf32>
      tpu.vector_store %arg7[%c0_10, %c0_11], %12 {strides = array<i32>} : memref<32x128xf32, #tpu.memory_space<vmem>>, vector<32x128xf32>,
    } else {
    }
    %c0 = arith.constant 0 : index
    %c0_1 = arith.constant 0 : index
    %3 = vector.load %arg7[%c0, %c0_1] : memref<32x128xf32, #tpu.memory_space<vmem>>, vector<32x128xf32>
    %c0_2 = arith.constant 0 : index
    %c0_3 = arith.constant 0 : index
    %4 = vector.load %arg3[%c0_2, %c0_3] : memref<32x128xbf16, #tpu.memory_space<vmem>>, vector<32x128xbf16>
    %c0_4 = arith.constant 0 : index
    %c0_5 = arith.constant 0 : index
    %5 = vector.load %arg4[%c0_4, %c0_5] : memref<128x128xbf16, #tpu.memory_space<vmem>>, vector<128x128xbf16>
    %cst = arith.constant dense<0.000000e+00> : vector<32x128xf32>
    %6 = tpu.matmul %4, %5, %cst {dimension_numbers = #tpu.dot_dimension_numbers<[1], [0], [0], [1], [0, 0, 1, 1], [], []>} : vector<32x128xbf16>, vector<128x128xbf16>, vector<32x128xf32> -> vector<32x128xf32>
    %7 = arith.addf %3, %6 : vector<32x128xf32>
    %c0_6 = arith.constant 0 : index
    %c0_7 = arith.constant 0 : index
    %8 = vector.load %arg7[%c0_6, %c0_7] : memref<32x128xf32, #tpu.memory_space<vmem>>, vector<32x128xf32>
    tpu.vector_store %arg7[%c0_6, %c0_7], %7 {strides = array<i32>} : memref<32x128xf32, #tpu.memory_space<vmem>>, vector<32x128xf32>,
    %c4_i32 = arith.constant 4 : i32
    %9 = arith.cmpi eq, %arg2, %c4_i32 : i32
    %10 = arith.extui %9 : i1 to i32
    %c0_i32_8 = arith.constant 0 : i32
    %11 = arith.cmpi ne, %10, %c0_i32_8 : i32
    scf.if %11 {
      %c0_9 = arith.constant 0 : index
      %c0_10 = arith.constant 0 : index
      %12 = vector.load %arg7[%c0_9, %c0_10] : memref<32x128xf32, #tpu.memory_space<vmem>>, vector<32x128xf32>
      %c0_11 = arith.constant 0 : index
      %c0_12 = arith.constant 0 : index
      %13 = vector.load %arg5[%c0_11, %c0_12] : memref<1x128xf32, #tpu.memory_space<vmem>>, vector<1x128xf32>
      %14 = vector.broadcast %13 : vector<1x128xf32> to vector<32x128xf32>
      %15 = arith.addf %12, %14 : vector<32x128xf32>
      %cst_13 = arith.constant 0.000000e+00 : f32
      %16 = vector.broadcast %cst_13 : f32 to vector<32x128xf32>
      %17 = arith.maximumf %15, %16 : vector<32x128xf32>
      %18 = arith.truncf %17 : vector<32x128xf32> to vector<32x128xbf16>
      %c0_14 = arith.constant 0 : index
      %c0_15 = arith.constant 0 : index
      %19 = vector.load %arg6[%c0_14, %c0_15] : memref<32x128xbf16, #tpu.memory_space<vmem>>, vector<32x128xbf16>
      tpu.vector_store %arg6[%c0_14, %c0_15], %18 {strides = array<i32>} : memref<32x128xbf16, #tpu.memory_space<vmem>>, vector<32x128xbf16>,
    } else {
    }
    return
  }
  func.func @transform_0(%arg0: i32, %arg1: i32, %arg2: i32) -> (i32, i32) {
    %c0_i32 = arith.constant 0 : i32
    return %arg0, %arg2 : i32, i32
  }
  func.func @transform_1(%arg0: i32, %arg1: i32, %arg2: i32) -> (i32, i32) {
    %c0_i32 = arith.constant 0 : i32
    return %arg2, %arg1 : i32, i32
  }
  func.func @transform_2(%arg0: i32, %arg1: i32, %arg2: i32) -> (i32, i32) {
    %c0_i32 = arith.constant 0 : i32
    %c0_i32_0 = arith.constant 0 : i32
    return %c0_i32, %arg1 : i32, i32
  }
  func.func @transform_3(%arg0: i32, %arg1: i32, %arg2: i32) -> (i32, i32) {
    %c0_i32 = arith.constant 0 : i32
    return %arg0, %arg1 : i32, i32
  }
}

module attributes {stable_mosaic.version = 11 : i64} {
  func.func @_fused_mm_kernel(%arg0: i32, %arg1: i32, %arg2: i32, %arg3: memref<32x128xbf16, #tpu.memory_space<vmem>>, %arg4: memref<128x128xbf16, #tpu.memory_space<vmem>>, %arg5: memref<1x128xf32, #tpu.memory_space<vmem>>, %arg6: memref<32x128xbf16, #tpu.memory_space<vmem>>, %arg7: memref<32x128xf32, #tpu.memory_space<vmem>>) attributes {dimension_semantics = [#tpu.dimension_semantics<parallel>, #tpu.dimension_semantics<parallel>, #tpu.dimension_semantics<arbitrary>], iteration_bounds = array<i64: 1, 1, 1>, scalar_prefetch = 0 : i64, scratch_operands = 1 : i64, tpu.core_type = #tpu.core_type<tc>, window_params = [{transform_indices = @transform_0, window_bounds = array<i64: 32, 128>}, {transform_indices = @transform_1, window_bounds = array<i64: 128, 128>}, {transform_indices = @transform_2, window_bounds = array<i64: 1, 128>}, {transform_indices = @transform_3, window_bounds = array<i64: 32, 128>}]} {
    %c0_i32 = arith.constant 0 : i32
    %0 = arith.cmpi eq, %arg2, %c0_i32 : i32
    %1 = arith.extui %0 : i1 to i32
    %c0_i32_0 = arith.constant 0 : i32
    %2 = arith.cmpi ne, %1, %c0_i32_0 : i32
    scf.if %2 {
      %cst_10 = arith.constant 0.000000e+00 : f32
      %12 = vector.broadcast %cst_10 : f32 to vector<32x128xf32>
      %c0_11 = arith.constant 0 : index
      %c0_12 = arith.constant 0 : index
      %13 = vector.load %arg7[%c0_11, %c0_12] : memref<32x128xf32, #tpu.memory_space<vmem>>, vector<32x128xf32>
      tpu.vector_store %arg7[%c0_11, %c0_12], %12 {strides = array<i32>} : memref<32x128xf32, #tpu.memory_space<vmem>>, vector<32x128xf32>,
    } else {
    }
    %c0 = arith.constant 0 : index
    %c0_1 = arith.constant 0 : index
    %3 = vector.load %arg7[%c0, %c0_1] : memref<32x128xf32, #tpu.memory_space<vmem>>, vector<32x128xf32>
    %c0_2 = arith.constant 0 : index
    %c0_3 = arith.constant 0 : index
    %4 = vector.load %arg3[%c0_2, %c0_3] : memref<32x128xbf16, #tpu.memory_space<vmem>>, vector<32x128xbf16>
    %c0_4 = arith.constant 0 : index
    %c0_5 = arith.constant 0 : index
    %5 = vector.load %arg4[%c0_4, %c0_5] : memref<128x128xbf16, #tpu.memory_space<vmem>>, vector<128x128xbf16>
    %cst = arith.constant dense<0.000000e+00> : vector<32x128xf32>
    %6 = tpu.matmul %4, %5, %cst {dimension_numbers = #tpu.dot_dimension_numbers<[1], [0], [0], [1], [0, 0, 1, 1], [], []>} : vector<32x128xbf16>, vector<128x128xbf16>, vector<32x128xf32> -> vector<32x128xf32>
    %7 = arith.addf %3, %6 : vector<32x128xf32>
    %c0_6 = arith.constant 0 : index
    %c0_7 = arith.constant 0 : index
    %8 = vector.load %arg7[%c0_6, %c0_7] : memref<32x128xf32, #tpu.memory_space<vmem>>, vector<32x128xf32>
    tpu.vector_store %arg7[%c0_6, %c0_7], %7 {strides = array<i32>} : memref<32x128xf32, #tpu.memory_space<vmem>>, vector<32x128xf32>,
    %c0_i32_8 = arith.constant 0 : i32
    %9 = arith.cmpi eq, %arg2, %c0_i32_8 : i32
    %10 = arith.extui %9 : i1 to i32
    %c0_i32_9 = arith.constant 0 : i32
    %11 = arith.cmpi ne, %10, %c0_i32_9 : i32
    scf.if %11 {
      %c0_10 = arith.constant 0 : index
      %c0_11 = arith.constant 0 : index
      %12 = vector.load %arg7[%c0_10, %c0_11] : memref<32x128xf32, #tpu.memory_space<vmem>>, vector<32x128xf32>
      %c0_12 = arith.constant 0 : index
      %c0_13 = arith.constant 0 : index
      %13 = vector.load %arg5[%c0_12, %c0_13] : memref<1x128xf32, #tpu.memory_space<vmem>>, vector<1x128xf32>
      %14 = vector.broadcast %13 : vector<1x128xf32> to vector<32x128xf32>
      %15 = arith.addf %12, %14 : vector<32x128xf32>
      %16 = arith.truncf %15 : vector<32x128xf32> to vector<32x128xbf16>
      %c0_14 = arith.constant 0 : index
      %c0_15 = arith.constant 0 : index
      %17 = vector.load %arg6[%c0_14, %c0_15] : memref<32x128xbf16, #tpu.memory_space<vmem>>, vector<32x128xbf16>
      tpu.vector_store %arg6[%c0_14, %c0_15], %16 {strides = array<i32>} : memref<32x128xbf16, #tpu.memory_space<vmem>>, vector<32x128xbf16>,
    } else {
    }
    return
  }
  func.func @transform_0(%arg0: i32, %arg1: i32, %arg2: i32) -> (i32, i32) {
    %c0_i32 = arith.constant 0 : i32
    return %arg0, %arg2 : i32, i32
  }
  func.func @transform_1(%arg0: i32, %arg1: i32, %arg2: i32) -> (i32, i32) {
    %c0_i32 = arith.constant 0 : i32
    return %arg2, %arg1 : i32, i32
  }
  func.func @transform_2(%arg0: i32, %arg1: i32, %arg2: i32) -> (i32, i32) {
    %c0_i32 = arith.constant 0 : i32
    %c0_i32_0 = arith.constant 0 : i32
    return %c0_i32, %arg1 : i32, i32
  }
  func.func @transform_3(%arg0: i32, %arg1: i32, %arg2: i32) -> (i32, i32) {
    %c0_i32 = arith.constant 0 : i32
    return %arg0, %arg1 : i32, i32
  }
}

module attributes {stable_mosaic.version = 11 : i64} {
  func.func @_fused_mm_kernel(%arg0: i32, %arg1: i32, %arg2: i32, %arg3: memref<32x384xbf16, #tpu.memory_space<vmem>>, %arg4: memref<384x128xbf16, #tpu.memory_space<vmem>>, %arg5: memref<1x128xf32, #tpu.memory_space<vmem>>, %arg6: memref<32x128xbf16, #tpu.memory_space<vmem>>, %arg7: memref<32x128xbf16, #tpu.memory_space<vmem>>, %arg8: memref<32x128xf32, #tpu.memory_space<vmem>>) attributes {dimension_semantics = [#tpu.dimension_semantics<parallel>, #tpu.dimension_semantics<parallel>, #tpu.dimension_semantics<arbitrary>], iteration_bounds = array<i64: 1, 1, 3>, scalar_prefetch = 0 : i64, scratch_operands = 1 : i64, tpu.core_type = #tpu.core_type<tc>, window_params = [{transform_indices = @transform_0, window_bounds = array<i64: 32, 384>}, {transform_indices = @transform_1, window_bounds = array<i64: 384, 128>}, {transform_indices = @transform_2, window_bounds = array<i64: 1, 128>}, {transform_indices = @transform_3, window_bounds = array<i64: 32, 128>}, {transform_indices = @transform_4, window_bounds = array<i64: 32, 128>}]} {
    %c0_i32 = arith.constant 0 : i32
    %0 = arith.cmpi eq, %arg2, %c0_i32 : i32
    %1 = arith.extui %0 : i1 to i32
    %c0_i32_0 = arith.constant 0 : i32
    %2 = arith.cmpi ne, %1, %c0_i32_0 : i32
    scf.if %2 {
      %cst_9 = arith.constant 0.000000e+00 : f32
      %12 = vector.broadcast %cst_9 : f32 to vector<32x128xf32>
      %c0_10 = arith.constant 0 : index
      %c0_11 = arith.constant 0 : index
      %13 = vector.load %arg8[%c0_10, %c0_11] : memref<32x128xf32, #tpu.memory_space<vmem>>, vector<32x128xf32>
      tpu.vector_store %arg8[%c0_10, %c0_11], %12 {strides = array<i32>} : memref<32x128xf32, #tpu.memory_space<vmem>>, vector<32x128xf32>,
    } else {
    }
    %c0 = arith.constant 0 : index
    %c0_1 = arith.constant 0 : index
    %3 = vector.load %arg8[%c0, %c0_1] : memref<32x128xf32, #tpu.memory_space<vmem>>, vector<32x128xf32>
    %c0_2 = arith.constant 0 : index
    %c0_3 = arith.constant 0 : index
    %4 = vector.load %arg3[%c0_2, %c0_3] : memref<32x384xbf16, #tpu.memory_space<vmem>>, vector<32x384xbf16>
    %c0_4 = arith.constant 0 : index
    %c0_5 = arith.constant 0 : index
    %5 = vector.load %arg4[%c0_4, %c0_5] : memref<384x128xbf16, #tpu.memory_space<vmem>>, vector<384x128xbf16>
    %cst = arith.constant dense<0.000000e+00> : vector<32x128xf32>
    %6 = tpu.matmul %4, %5, %cst {dimension_numbers = #tpu.dot_dimension_numbers<[1], [0], [0], [1], [0, 0, 1, 1], [], []>} : vector<32x384xbf16>, vector<384x128xbf16>, vector<32x128xf32> -> vector<32x128xf32>
    %7 = arith.addf %3, %6 : vector<32x128xf32>
    %c0_6 = arith.constant 0 : index
    %c0_7 = arith.constant 0 : index
    %8 = vector.load %arg8[%c0_6, %c0_7] : memref<32x128xf32, #tpu.memory_space<vmem>>, vector<32x128xf32>
    tpu.vector_store %arg8[%c0_6, %c0_7], %7 {strides = array<i32>} : memref<32x128xf32, #tpu.memory_space<vmem>>, vector<32x128xf32>,
    %c2_i32 = arith.constant 2 : i32
    %9 = arith.cmpi eq, %arg2, %c2_i32 : i32
    %10 = arith.extui %9 : i1 to i32
    %c0_i32_8 = arith.constant 0 : i32
    %11 = arith.cmpi ne, %10, %c0_i32_8 : i32
    scf.if %11 {
      %c0_9 = arith.constant 0 : index
      %c0_10 = arith.constant 0 : index
      %12 = vector.load %arg8[%c0_9, %c0_10] : memref<32x128xf32, #tpu.memory_space<vmem>>, vector<32x128xf32>
      %c0_11 = arith.constant 0 : index
      %c0_12 = arith.constant 0 : index
      %13 = vector.load %arg5[%c0_11, %c0_12] : memref<1x128xf32, #tpu.memory_space<vmem>>, vector<1x128xf32>
      %14 = vector.broadcast %13 : vector<1x128xf32> to vector<32x128xf32>
      %15 = arith.addf %12, %14 : vector<32x128xf32>
      %c0_13 = arith.constant 0 : index
      %c0_14 = arith.constant 0 : index
      %16 = vector.load %arg6[%c0_13, %c0_14] : memref<32x128xbf16, #tpu.memory_space<vmem>>, vector<32x128xbf16>
      %17 = arith.extf %16 : vector<32x128xbf16> to vector<32x128xf32>
      %18 = arith.addf %15, %17 : vector<32x128xf32>
      %cst_15 = arith.constant 0.000000e+00 : f32
      %19 = vector.broadcast %cst_15 : f32 to vector<32x128xf32>
      %20 = arith.maximumf %18, %19 : vector<32x128xf32>
      %21 = arith.truncf %20 : vector<32x128xf32> to vector<32x128xbf16>
      %c0_16 = arith.constant 0 : index
      %c0_17 = arith.constant 0 : index
      %22 = vector.load %arg7[%c0_16, %c0_17] : memref<32x128xbf16, #tpu.memory_space<vmem>>, vector<32x128xbf16>
      tpu.vector_store %arg7[%c0_16, %c0_17], %21 {strides = array<i32>} : memref<32x128xbf16, #tpu.memory_space<vmem>>, vector<32x128xbf16>,
    } else {
    }
    return
  }
  func.func @transform_0(%arg0: i32, %arg1: i32, %arg2: i32) -> (i32, i32) {
    %c0_i32 = arith.constant 0 : i32
    return %arg0, %arg2 : i32, i32
  }
  func.func @transform_1(%arg0: i32, %arg1: i32, %arg2: i32) -> (i32, i32) {
    %c0_i32 = arith.constant 0 : i32
    return %arg2, %arg1 : i32, i32
  }
  func.func @transform_2(%arg0: i32, %arg1: i32, %arg2: i32) -> (i32, i32) {
    %c0_i32 = arith.constant 0 : i32
    %c0_i32_0 = arith.constant 0 : i32
    return %c0_i32, %arg1 : i32, i32
  }
  func.func @transform_3(%arg0: i32, %arg1: i32, %arg2: i32) -> (i32, i32) {
    %c0_i32 = arith.constant 0 : i32
    return %arg0, %arg1 : i32, i32
  }
  func.func @transform_4(%arg0: i32, %arg1: i32, %arg2: i32) -> (i32, i32) {
    %c0_i32 = arith.constant 0 : i32
    return %arg0, %arg1 : i32, i32
  }
}

module attributes {stable_mosaic.version = 11 : i64} {
  func.func @_fused_mm_kernel(%arg0: i32, %arg1: i32, %arg2: i32, %arg3: memref<32x384xbf16, #tpu.memory_space<vmem>>, %arg4: memref<384x128xbf16, #tpu.memory_space<vmem>>, %arg5: memref<1x128xf32, #tpu.memory_space<vmem>>, %arg6: memref<32x128xbf16, #tpu.memory_space<vmem>>, %arg7: memref<32x128xf32, #tpu.memory_space<vmem>>) attributes {dimension_semantics = [#tpu.dimension_semantics<parallel>, #tpu.dimension_semantics<parallel>, #tpu.dimension_semantics<arbitrary>], iteration_bounds = array<i64: 1, 1, 3>, scalar_prefetch = 0 : i64, scratch_operands = 1 : i64, tpu.core_type = #tpu.core_type<tc>, window_params = [{transform_indices = @transform_0, window_bounds = array<i64: 32, 384>}, {transform_indices = @transform_1, window_bounds = array<i64: 384, 128>}, {transform_indices = @transform_2, window_bounds = array<i64: 1, 128>}, {transform_indices = @transform_3, window_bounds = array<i64: 32, 128>}]} {
    %c0_i32 = arith.constant 0 : i32
    %0 = arith.cmpi eq, %arg2, %c0_i32 : i32
    %1 = arith.extui %0 : i1 to i32
    %c0_i32_0 = arith.constant 0 : i32
    %2 = arith.cmpi ne, %1, %c0_i32_0 : i32
    scf.if %2 {
      %cst_9 = arith.constant 0.000000e+00 : f32
      %12 = vector.broadcast %cst_9 : f32 to vector<32x128xf32>
      %c0_10 = arith.constant 0 : index
      %c0_11 = arith.constant 0 : index
      %13 = vector.load %arg7[%c0_10, %c0_11] : memref<32x128xf32, #tpu.memory_space<vmem>>, vector<32x128xf32>
      tpu.vector_store %arg7[%c0_10, %c0_11], %12 {strides = array<i32>} : memref<32x128xf32, #tpu.memory_space<vmem>>, vector<32x128xf32>,
    } else {
    }
    %c0 = arith.constant 0 : index
    %c0_1 = arith.constant 0 : index
    %3 = vector.load %arg7[%c0, %c0_1] : memref<32x128xf32, #tpu.memory_space<vmem>>, vector<32x128xf32>
    %c0_2 = arith.constant 0 : index
    %c0_3 = arith.constant 0 : index
    %4 = vector.load %arg3[%c0_2, %c0_3] : memref<32x384xbf16, #tpu.memory_space<vmem>>, vector<32x384xbf16>
    %c0_4 = arith.constant 0 : index
    %c0_5 = arith.constant 0 : index
    %5 = vector.load %arg4[%c0_4, %c0_5] : memref<384x128xbf16, #tpu.memory_space<vmem>>, vector<384x128xbf16>
    %cst = arith.constant dense<0.000000e+00> : vector<32x128xf32>
    %6 = tpu.matmul %4, %5, %cst {dimension_numbers = #tpu.dot_dimension_numbers<[1], [0], [0], [1], [0, 0, 1, 1], [], []>} : vector<32x384xbf16>, vector<384x128xbf16>, vector<32x128xf32> -> vector<32x128xf32>
    %7 = arith.addf %3, %6 : vector<32x128xf32>
    %c0_6 = arith.constant 0 : index
    %c0_7 = arith.constant 0 : index
    %8 = vector.load %arg7[%c0_6, %c0_7] : memref<32x128xf32, #tpu.memory_space<vmem>>, vector<32x128xf32>
    tpu.vector_store %arg7[%c0_6, %c0_7], %7 {strides = array<i32>} : memref<32x128xf32, #tpu.memory_space<vmem>>, vector<32x128xf32>,
    %c2_i32 = arith.constant 2 : i32
    %9 = arith.cmpi eq, %arg2, %c2_i32 : i32
    %10 = arith.extui %9 : i1 to i32
    %c0_i32_8 = arith.constant 0 : i32
    %11 = arith.cmpi ne, %10, %c0_i32_8 : i32
    scf.if %11 {
      %c0_9 = arith.constant 0 : index
      %c0_10 = arith.constant 0 : index
      %12 = vector.load %arg7[%c0_9, %c0_10] : memref<32x128xf32, #tpu.memory_space<vmem>>, vector<32x128xf32>
      %c0_11 = arith.constant 0 : index
      %c0_12 = arith.constant 0 : index
      %13 = vector.load %arg5[%c0_11, %c0_12] : memref<1x128xf32, #tpu.memory_space<vmem>>, vector<1x128xf32>
      %14 = vector.broadcast %13 : vector<1x128xf32> to vector<32x128xf32>
      %15 = arith.addf %12, %14 : vector<32x128xf32>
      %cst_13 = arith.constant 0.000000e+00 : f32
      %16 = vector.broadcast %cst_13 : f32 to vector<32x128xf32>
      %17 = arith.maximumf %15, %16 : vector<32x128xf32>
      %18 = arith.truncf %17 : vector<32x128xf32> to vector<32x128xbf16>
      %c0_14 = arith.constant 0 : index
      %c0_15 = arith.constant 0 : index
      %19 = vector.load %arg6[%c0_14, %c0_15] : memref<32x128xbf16, #tpu.memory_space<vmem>>, vector<32x128xbf16>
      tpu.vector_store %arg6[%c0_14, %c0_15], %18 {strides = array<i32>} : memref<32x128xbf16, #tpu.memory_space<vmem>>, vector<32x128xbf16>,
    } else {
    }
    return
  }
  func.func @transform_0(%arg0: i32, %arg1: i32, %arg2: i32) -> (i32, i32) {
    %c0_i32 = arith.constant 0 : i32
    return %arg0, %arg2 : i32, i32
  }
  func.func @transform_1(%arg0: i32, %arg1: i32, %arg2: i32) -> (i32, i32) {
    %c0_i32 = arith.constant 0 : i32
    return %arg2, %arg1 : i32, i32
  }
  func.func @transform_2(%arg0: i32, %arg1: i32, %arg2: i32) -> (i32, i32) {
    %c0_i32 = arith.constant 0 : i32
    %c0_i32_0 = arith.constant 0 : i32
    return %c0_i32, %arg1 : i32, i32
  }
  func.func @transform_3(%arg0: i32, %arg1: i32, %arg2: i32) -> (i32, i32) {
    %c0_i32 = arith.constant 0 : i32
    return %arg0, %arg1 : i32, i32
  }
}

module attributes {stable_mosaic.version = 11 : i64} {
  func.func @_fused_mm_kernel(%arg0: i32, %arg1: i32, %arg2: i32, %arg3: memref<8x384xbf16, #tpu.memory_space<vmem>>, %arg4: memref<384x256xbf16, #tpu.memory_space<vmem>>, %arg5: memref<1x256xf32, #tpu.memory_space<vmem>>, %arg6: memref<8x256xbf16, #tpu.memory_space<vmem>>, %arg7: memref<8x256xf32, #tpu.memory_space<vmem>>) attributes {dimension_semantics = [#tpu.dimension_semantics<parallel>, #tpu.dimension_semantics<parallel>, #tpu.dimension_semantics<arbitrary>], iteration_bounds = array<i64: 1, 1, 3>, scalar_prefetch = 0 : i64, scratch_operands = 1 : i64, tpu.core_type = #tpu.core_type<tc>, window_params = [{transform_indices = @transform_0, window_bounds = array<i64: 8, 384>}, {transform_indices = @transform_1, window_bounds = array<i64: 384, 256>}, {transform_indices = @transform_2, window_bounds = array<i64: 1, 256>}, {transform_indices = @transform_3, window_bounds = array<i64: 8, 256>}]} {
    %c0_i32 = arith.constant 0 : i32
    %0 = arith.cmpi eq, %arg2, %c0_i32 : i32
    %1 = arith.extui %0 : i1 to i32
    %c0_i32_0 = arith.constant 0 : i32
    %2 = arith.cmpi ne, %1, %c0_i32_0 : i32
    scf.if %2 {
      %cst_9 = arith.constant 0.000000e+00 : f32
      %12 = vector.broadcast %cst_9 : f32 to vector<8x256xf32>
      %c0_10 = arith.constant 0 : index
      %c0_11 = arith.constant 0 : index
      %13 = vector.load %arg7[%c0_10, %c0_11] : memref<8x256xf32, #tpu.memory_space<vmem>>, vector<8x256xf32>
      tpu.vector_store %arg7[%c0_10, %c0_11], %12 {strides = array<i32>} : memref<8x256xf32, #tpu.memory_space<vmem>>, vector<8x256xf32>,
    } else {
    }
    %c0 = arith.constant 0 : index
    %c0_1 = arith.constant 0 : index
    %3 = vector.load %arg7[%c0, %c0_1] : memref<8x256xf32, #tpu.memory_space<vmem>>, vector<8x256xf32>
    %c0_2 = arith.constant 0 : index
    %c0_3 = arith.constant 0 : index
    %4 = vector.load %arg3[%c0_2, %c0_3] : memref<8x384xbf16, #tpu.memory_space<vmem>>, vector<8x384xbf16>
    %c0_4 = arith.constant 0 : index
    %c0_5 = arith.constant 0 : index
    %5 = vector.load %arg4[%c0_4, %c0_5] : memref<384x256xbf16, #tpu.memory_space<vmem>>, vector<384x256xbf16>
    %cst = arith.constant dense<0.000000e+00> : vector<8x256xf32>
    %6 = tpu.matmul %4, %5, %cst {dimension_numbers = #tpu.dot_dimension_numbers<[1], [0], [0], [1], [0, 0, 1, 1], [], []>} : vector<8x384xbf16>, vector<384x256xbf16>, vector<8x256xf32> -> vector<8x256xf32>
    %7 = arith.addf %3, %6 : vector<8x256xf32>
    %c0_6 = arith.constant 0 : index
    %c0_7 = arith.constant 0 : index
    %8 = vector.load %arg7[%c0_6, %c0_7] : memref<8x256xf32, #tpu.memory_space<vmem>>, vector<8x256xf32>
    tpu.vector_store %arg7[%c0_6, %c0_7], %7 {strides = array<i32>} : memref<8x256xf32, #tpu.memory_space<vmem>>, vector<8x256xf32>,
    %c2_i32 = arith.constant 2 : i32
    %9 = arith.cmpi eq, %arg2, %c2_i32 : i32
    %10 = arith.extui %9 : i1 to i32
    %c0_i32_8 = arith.constant 0 : i32
    %11 = arith.cmpi ne, %10, %c0_i32_8 : i32
    scf.if %11 {
      %c0_9 = arith.constant 0 : index
      %c0_10 = arith.constant 0 : index
      %12 = vector.load %arg7[%c0_9, %c0_10] : memref<8x256xf32, #tpu.memory_space<vmem>>, vector<8x256xf32>
      %c0_11 = arith.constant 0 : index
      %c0_12 = arith.constant 0 : index
      %13 = vector.load %arg5[%c0_11, %c0_12] : memref<1x256xf32, #tpu.memory_space<vmem>>, vector<1x256xf32>
      %14 = vector.broadcast %13 : vector<1x256xf32> to vector<8x256xf32>
      %15 = arith.addf %12, %14 : vector<8x256xf32>
      %cst_13 = arith.constant 0.000000e+00 : f32
      %16 = vector.broadcast %cst_13 : f32 to vector<8x256xf32>
      %17 = arith.maximumf %15, %16 : vector<8x256xf32>
      %18 = arith.truncf %17 : vector<8x256xf32> to vector<8x256xbf16>
      %c0_14 = arith.constant 0 : index
      %c0_15 = arith.constant 0 : index
      %19 = vector.load %arg6[%c0_14, %c0_15] : memref<8x256xbf16, #tpu.memory_space<vmem>>, vector<8x256xbf16>
      tpu.vector_store %arg6[%c0_14, %c0_15], %18 {strides = array<i32>} : memref<8x256xbf16, #tpu.memory_space<vmem>>, vector<8x256xbf16>,
    } else {
    }
    return
  }
  func.func @transform_0(%arg0: i32, %arg1: i32, %arg2: i32) -> (i32, i32) {
    %c0_i32 = arith.constant 0 : i32
    return %arg0, %arg2 : i32, i32
  }
  func.func @transform_1(%arg0: i32, %arg1: i32, %arg2: i32) -> (i32, i32) {
    %c0_i32 = arith.constant 0 : i32
    return %arg2, %arg1 : i32, i32
  }
  func.func @transform_2(%arg0: i32, %arg1: i32, %arg2: i32) -> (i32, i32) {
    %c0_i32 = arith.constant 0 : i32
    %c0_i32_0 = arith.constant 0 : i32
    return %c0_i32, %arg1 : i32, i32
  }
  func.func @transform_3(%arg0: i32, %arg1: i32, %arg2: i32) -> (i32, i32) {
    %c0_i32 = arith.constant 0 : i32
    return %arg0, %arg1 : i32, i32
  }
}

module attributes {stable_mosaic.version = 11 : i64} {
  func.func @_fused_mm_kernel(%arg0: i32, %arg1: i32, %arg2: i32, %arg3: memref<8x128xbf16, #tpu.memory_space<vmem>>, %arg4: memref<128x256xbf16, #tpu.memory_space<vmem>>, %arg5: memref<1x256xf32, #tpu.memory_space<vmem>>, %arg6: memref<8x256xbf16, #tpu.memory_space<vmem>>, %arg7: memref<8x256xf32, #tpu.memory_space<vmem>>) attributes {dimension_semantics = [#tpu.dimension_semantics<parallel>, #tpu.dimension_semantics<parallel>, #tpu.dimension_semantics<arbitrary>], iteration_bounds = array<i64: 1, 1, 1>, scalar_prefetch = 0 : i64, scratch_operands = 1 : i64, tpu.core_type = #tpu.core_type<tc>, window_params = [{transform_indices = @transform_0, window_bounds = array<i64: 8, 128>}, {transform_indices = @transform_1, window_bounds = array<i64: 128, 256>}, {transform_indices = @transform_2, window_bounds = array<i64: 1, 256>}, {transform_indices = @transform_3, window_bounds = array<i64: 8, 256>}]} {
    %c0_i32 = arith.constant 0 : i32
    %0 = arith.cmpi eq, %arg2, %c0_i32 : i32
    %1 = arith.extui %0 : i1 to i32
    %c0_i32_0 = arith.constant 0 : i32
    %2 = arith.cmpi ne, %1, %c0_i32_0 : i32
    scf.if %2 {
      %cst_10 = arith.constant 0.000000e+00 : f32
      %12 = vector.broadcast %cst_10 : f32 to vector<8x256xf32>
      %c0_11 = arith.constant 0 : index
      %c0_12 = arith.constant 0 : index
      %13 = vector.load %arg7[%c0_11, %c0_12] : memref<8x256xf32, #tpu.memory_space<vmem>>, vector<8x256xf32>
      tpu.vector_store %arg7[%c0_11, %c0_12], %12 {strides = array<i32>} : memref<8x256xf32, #tpu.memory_space<vmem>>, vector<8x256xf32>,
    } else {
    }
    %c0 = arith.constant 0 : index
    %c0_1 = arith.constant 0 : index
    %3 = vector.load %arg7[%c0, %c0_1] : memref<8x256xf32, #tpu.memory_space<vmem>>, vector<8x256xf32>
    %c0_2 = arith.constant 0 : index
    %c0_3 = arith.constant 0 : index
    %4 = vector.load %arg3[%c0_2, %c0_3] : memref<8x128xbf16, #tpu.memory_space<vmem>>, vector<8x128xbf16>
    %c0_4 = arith.constant 0 : index
    %c0_5 = arith.constant 0 : index
    %5 = vector.load %arg4[%c0_4, %c0_5] : memref<128x256xbf16, #tpu.memory_space<vmem>>, vector<128x256xbf16>
    %cst = arith.constant dense<0.000000e+00> : vector<8x256xf32>
    %6 = tpu.matmul %4, %5, %cst {dimension_numbers = #tpu.dot_dimension_numbers<[1], [0], [0], [1], [0, 0, 1, 1], [], []>} : vector<8x128xbf16>, vector<128x256xbf16>, vector<8x256xf32> -> vector<8x256xf32>
    %7 = arith.addf %3, %6 : vector<8x256xf32>
    %c0_6 = arith.constant 0 : index
    %c0_7 = arith.constant 0 : index
    %8 = vector.load %arg7[%c0_6, %c0_7] : memref<8x256xf32, #tpu.memory_space<vmem>>, vector<8x256xf32>
    tpu.vector_store %arg7[%c0_6, %c0_7], %7 {strides = array<i32>} : memref<8x256xf32, #tpu.memory_space<vmem>>, vector<8x256xf32>,
    %c0_i32_8 = arith.constant 0 : i32
    %9 = arith.cmpi eq, %arg2, %c0_i32_8 : i32
    %10 = arith.extui %9 : i1 to i32
    %c0_i32_9 = arith.constant 0 : i32
    %11 = arith.cmpi ne, %10, %c0_i32_9 : i32
    scf.if %11 {
      %c0_10 = arith.constant 0 : index
      %c0_11 = arith.constant 0 : index
      %12 = vector.load %arg7[%c0_10, %c0_11] : memref<8x256xf32, #tpu.memory_space<vmem>>, vector<8x256xf32>
      %c0_12 = arith.constant 0 : index
      %c0_13 = arith.constant 0 : index
      %13 = vector.load %arg5[%c0_12, %c0_13] : memref<1x256xf32, #tpu.memory_space<vmem>>, vector<1x256xf32>
      %14 = vector.broadcast %13 : vector<1x256xf32> to vector<8x256xf32>
      %15 = arith.addf %12, %14 : vector<8x256xf32>
      %16 = arith.truncf %15 : vector<8x256xf32> to vector<8x256xbf16>
      %c0_14 = arith.constant 0 : index
      %c0_15 = arith.constant 0 : index
      %17 = vector.load %arg6[%c0_14, %c0_15] : memref<8x256xbf16, #tpu.memory_space<vmem>>, vector<8x256xbf16>
      tpu.vector_store %arg6[%c0_14, %c0_15], %16 {strides = array<i32>} : memref<8x256xbf16, #tpu.memory_space<vmem>>, vector<8x256xbf16>,
    } else {
    }
    return
  }
  func.func @transform_0(%arg0: i32, %arg1: i32, %arg2: i32) -> (i32, i32) {
    %c0_i32 = arith.constant 0 : i32
    return %arg0, %arg2 : i32, i32
  }
  func.func @transform_1(%arg0: i32, %arg1: i32, %arg2: i32) -> (i32, i32) {
    %c0_i32 = arith.constant 0 : i32
    return %arg2, %arg1 : i32, i32
  }
  func.func @transform_2(%arg0: i32, %arg1: i32, %arg2: i32) -> (i32, i32) {
    %c0_i32 = arith.constant 0 : i32
    %c0_i32_0 = arith.constant 0 : i32
    return %c0_i32, %arg1 : i32, i32
  }
  func.func @transform_3(%arg0: i32, %arg1: i32, %arg2: i32) -> (i32, i32) {
    %c0_i32 = arith.constant 0 : i32
    return %arg0, %arg1 : i32, i32
  }
}

module attributes {stable_mosaic.version = 11 : i64} {
  func.func @_fused_mm_kernel(%arg0: i32, %arg1: i32, %arg2: i32, %arg3: memref<8x384xbf16, #tpu.memory_space<vmem>>, %arg4: memref<384x256xbf16, #tpu.memory_space<vmem>>, %arg5: memref<1x256xf32, #tpu.memory_space<vmem>>, %arg6: memref<8x256xbf16, #tpu.memory_space<vmem>>, %arg7: memref<8x256xbf16, #tpu.memory_space<vmem>>, %arg8: memref<8x256xf32, #tpu.memory_space<vmem>>) attributes {dimension_semantics = [#tpu.dimension_semantics<parallel>, #tpu.dimension_semantics<parallel>, #tpu.dimension_semantics<arbitrary>], iteration_bounds = array<i64: 1, 1, 6>, scalar_prefetch = 0 : i64, scratch_operands = 1 : i64, tpu.core_type = #tpu.core_type<tc>, window_params = [{transform_indices = @transform_0, window_bounds = array<i64: 8, 384>}, {transform_indices = @transform_1, window_bounds = array<i64: 384, 256>}, {transform_indices = @transform_2, window_bounds = array<i64: 1, 256>}, {transform_indices = @transform_3, window_bounds = array<i64: 8, 256>}, {transform_indices = @transform_4, window_bounds = array<i64: 8, 256>}]} {
    %c0_i32 = arith.constant 0 : i32
    %0 = arith.cmpi eq, %arg2, %c0_i32 : i32
    %1 = arith.extui %0 : i1 to i32
    %c0_i32_0 = arith.constant 0 : i32
    %2 = arith.cmpi ne, %1, %c0_i32_0 : i32
    scf.if %2 {
      %cst_9 = arith.constant 0.000000e+00 : f32
      %12 = vector.broadcast %cst_9 : f32 to vector<8x256xf32>
      %c0_10 = arith.constant 0 : index
      %c0_11 = arith.constant 0 : index
      %13 = vector.load %arg8[%c0_10, %c0_11] : memref<8x256xf32, #tpu.memory_space<vmem>>, vector<8x256xf32>
      tpu.vector_store %arg8[%c0_10, %c0_11], %12 {strides = array<i32>} : memref<8x256xf32, #tpu.memory_space<vmem>>, vector<8x256xf32>,
    } else {
    }
    %c0 = arith.constant 0 : index
    %c0_1 = arith.constant 0 : index
    %3 = vector.load %arg8[%c0, %c0_1] : memref<8x256xf32, #tpu.memory_space<vmem>>, vector<8x256xf32>
    %c0_2 = arith.constant 0 : index
    %c0_3 = arith.constant 0 : index
    %4 = vector.load %arg3[%c0_2, %c0_3] : memref<8x384xbf16, #tpu.memory_space<vmem>>, vector<8x384xbf16>
    %c0_4 = arith.constant 0 : index
    %c0_5 = arith.constant 0 : index
    %5 = vector.load %arg4[%c0_4, %c0_5] : memref<384x256xbf16, #tpu.memory_space<vmem>>, vector<384x256xbf16>
    %cst = arith.constant dense<0.000000e+00> : vector<8x256xf32>
    %6 = tpu.matmul %4, %5, %cst {dimension_numbers = #tpu.dot_dimension_numbers<[1], [0], [0], [1], [0, 0, 1, 1], [], []>} : vector<8x384xbf16>, vector<384x256xbf16>, vector<8x256xf32> -> vector<8x256xf32>
    %7 = arith.addf %3, %6 : vector<8x256xf32>
    %c0_6 = arith.constant 0 : index
    %c0_7 = arith.constant 0 : index
    %8 = vector.load %arg8[%c0_6, %c0_7] : memref<8x256xf32, #tpu.memory_space<vmem>>, vector<8x256xf32>
    tpu.vector_store %arg8[%c0_6, %c0_7], %7 {strides = array<i32>} : memref<8x256xf32, #tpu.memory_space<vmem>>, vector<8x256xf32>,
    %c5_i32 = arith.constant 5 : i32
    %9 = arith.cmpi eq, %arg2, %c5_i32 : i32
    %10 = arith.extui %9 : i1 to i32
    %c0_i32_8 = arith.constant 0 : i32
    %11 = arith.cmpi ne, %10, %c0_i32_8 : i32
    scf.if %11 {
      %c0_9 = arith.constant 0 : index
      %c0_10 = arith.constant 0 : index
      %12 = vector.load %arg8[%c0_9, %c0_10] : memref<8x256xf32, #tpu.memory_space<vmem>>, vector<8x256xf32>
      %c0_11 = arith.constant 0 : index
      %c0_12 = arith.constant 0 : index
      %13 = vector.load %arg5[%c0_11, %c0_12] : memref<1x256xf32, #tpu.memory_space<vmem>>, vector<1x256xf32>
      %14 = vector.broadcast %13 : vector<1x256xf32> to vector<8x256xf32>
      %15 = arith.addf %12, %14 : vector<8x256xf32>
      %c0_13 = arith.constant 0 : index
      %c0_14 = arith.constant 0 : index
      %16 = vector.load %arg6[%c0_13, %c0_14] : memref<8x256xbf16, #tpu.memory_space<vmem>>, vector<8x256xbf16>
      %17 = arith.extf %16 : vector<8x256xbf16> to vector<8x256xf32>
      %18 = arith.addf %15, %17 : vector<8x256xf32>
      %cst_15 = arith.constant 0.000000e+00 : f32
      %19 = vector.broadcast %cst_15 : f32 to vector<8x256xf32>
      %20 = arith.maximumf %18, %19 : vector<8x256xf32>
      %21 = arith.truncf %20 : vector<8x256xf32> to vector<8x256xbf16>
      %c0_16 = arith.constant 0 : index
      %c0_17 = arith.constant 0 : index
      %22 = vector.load %arg7[%c0_16, %c0_17] : memref<8x256xbf16, #tpu.memory_space<vmem>>, vector<8x256xbf16>
      tpu.vector_store %arg7[%c0_16, %c0_17], %21 {strides = array<i32>} : memref<8x256xbf16, #tpu.memory_space<vmem>>, vector<8x256xbf16>,
    } else {
    }
    return
  }
  func.func @transform_0(%arg0: i32, %arg1: i32, %arg2: i32) -> (i32, i32) {
    %c0_i32 = arith.constant 0 : i32
    return %arg0, %arg2 : i32, i32
  }
  func.func @transform_1(%arg0: i32, %arg1: i32, %arg2: i32) -> (i32, i32) {
    %c0_i32 = arith.constant 0 : i32
    return %arg2, %arg1 : i32, i32
  }
  func.func @transform_2(%arg0: i32, %arg1: i32, %arg2: i32) -> (i32, i32) {
    %c0_i32 = arith.constant 0 : i32
    %c0_i32_0 = arith.constant 0 : i32
    return %c0_i32, %arg1 : i32, i32
  }
  func.func @transform_3(%arg0: i32, %arg1: i32, %arg2: i32) -> (i32, i32) {
    %c0_i32 = arith.constant 0 : i32
    return %arg0, %arg1 : i32, i32
  }
  func.func @transform_4(%arg0: i32, %arg1: i32, %arg2: i32) -> (i32, i32) {
    %c0_i32 = arith.constant 0 : i32
    return %arg0, %arg1 : i32, i32
  }
}

module attributes {stable_mosaic.version = 11 : i64} {
  func.func @_fused_mm_kernel(%arg0: i32, %arg1: i32, %arg2: i32, %arg3: memref<8x384xbf16, #tpu.memory_space<vmem>>, %arg4: memref<384x256xbf16, #tpu.memory_space<vmem>>, %arg5: memref<1x256xf32, #tpu.memory_space<vmem>>, %arg6: memref<8x256xbf16, #tpu.memory_space<vmem>>, %arg7: memref<8x256xf32, #tpu.memory_space<vmem>>) attributes {dimension_semantics = [#tpu.dimension_semantics<parallel>, #tpu.dimension_semantics<parallel>, #tpu.dimension_semantics<arbitrary>], iteration_bounds = array<i64: 1, 1, 6>, scalar_prefetch = 0 : i64, scratch_operands = 1 : i64, tpu.core_type = #tpu.core_type<tc>, window_params = [{transform_indices = @transform_0, window_bounds = array<i64: 8, 384>}, {transform_indices = @transform_1, window_bounds = array<i64: 384, 256>}, {transform_indices = @transform_2, window_bounds = array<i64: 1, 256>}, {transform_indices = @transform_3, window_bounds = array<i64: 8, 256>}]} {
    %c0_i32 = arith.constant 0 : i32
    %0 = arith.cmpi eq, %arg2, %c0_i32 : i32
    %1 = arith.extui %0 : i1 to i32
    %c0_i32_0 = arith.constant 0 : i32
    %2 = arith.cmpi ne, %1, %c0_i32_0 : i32
    scf.if %2 {
      %cst_9 = arith.constant 0.000000e+00 : f32
      %12 = vector.broadcast %cst_9 : f32 to vector<8x256xf32>
      %c0_10 = arith.constant 0 : index
      %c0_11 = arith.constant 0 : index
      %13 = vector.load %arg7[%c0_10, %c0_11] : memref<8x256xf32, #tpu.memory_space<vmem>>, vector<8x256xf32>
      tpu.vector_store %arg7[%c0_10, %c0_11], %12 {strides = array<i32>} : memref<8x256xf32, #tpu.memory_space<vmem>>, vector<8x256xf32>,
    } else {
    }
    %c0 = arith.constant 0 : index
    %c0_1 = arith.constant 0 : index
    %3 = vector.load %arg7[%c0, %c0_1] : memref<8x256xf32, #tpu.memory_space<vmem>>, vector<8x256xf32>
    %c0_2 = arith.constant 0 : index
    %c0_3 = arith.constant 0 : index
    %4 = vector.load %arg3[%c0_2, %c0_3] : memref<8x384xbf16, #tpu.memory_space<vmem>>, vector<8x384xbf16>
    %c0_4 = arith.constant 0 : index
    %c0_5 = arith.constant 0 : index
    %5 = vector.load %arg4[%c0_4, %c0_5] : memref<384x256xbf16, #tpu.memory_space<vmem>>, vector<384x256xbf16>
    %cst = arith.constant dense<0.000000e+00> : vector<8x256xf32>
    %6 = tpu.matmul %4, %5, %cst {dimension_numbers = #tpu.dot_dimension_numbers<[1], [0], [0], [1], [0, 0, 1, 1], [], []>} : vector<8x384xbf16>, vector<384x256xbf16>, vector<8x256xf32> -> vector<8x256xf32>
    %7 = arith.addf %3, %6 : vector<8x256xf32>
    %c0_6 = arith.constant 0 : index
    %c0_7 = arith.constant 0 : index
    %8 = vector.load %arg7[%c0_6, %c0_7] : memref<8x256xf32, #tpu.memory_space<vmem>>, vector<8x256xf32>
    tpu.vector_store %arg7[%c0_6, %c0_7], %7 {strides = array<i32>} : memref<8x256xf32, #tpu.memory_space<vmem>>, vector<8x256xf32>,
    %c5_i32 = arith.constant 5 : i32
    %9 = arith.cmpi eq, %arg2, %c5_i32 : i32
    %10 = arith.extui %9 : i1 to i32
    %c0_i32_8 = arith.constant 0 : i32
    %11 = arith.cmpi ne, %10, %c0_i32_8 : i32
    scf.if %11 {
      %c0_9 = arith.constant 0 : index
      %c0_10 = arith.constant 0 : index
      %12 = vector.load %arg7[%c0_9, %c0_10] : memref<8x256xf32, #tpu.memory_space<vmem>>, vector<8x256xf32>
      %c0_11 = arith.constant 0 : index
      %c0_12 = arith.constant 0 : index
      %13 = vector.load %arg5[%c0_11, %c0_12] : memref<1x256xf32, #tpu.memory_space<vmem>>, vector<1x256xf32>
      %14 = vector.broadcast %13 : vector<1x256xf32> to vector<8x256xf32>
      %15 = arith.addf %12, %14 : vector<8x256xf32>
      %cst_13 = arith.constant 0.000000e+00 : f32
      %16 = vector.broadcast %cst_13 : f32 to vector<8x256xf32>
      %17 = arith.maximumf %15, %16 : vector<8x256xf32>
      %18 = arith.truncf %17 : vector<8x256xf32> to vector<8x256xbf16>
      %c0_14 = arith.constant 0 : index
      %c0_15 = arith.constant 0 : index
      %19 = vector.load %arg6[%c0_14, %c0_15] : memref<8x256xbf16, #tpu.memory_space<vmem>>, vector<8x256xbf16>
      tpu.vector_store %arg6[%c0_14, %c0_15], %18 {strides = array<i32>} : memref<8x256xbf16, #tpu.memory_space<vmem>>, vector<8x256xbf16>,
    } else {
    }
    return
  }
  func.func @transform_0(%arg0: i32, %arg1: i32, %arg2: i32) -> (i32, i32) {
    %c0_i32 = arith.constant 0 : i32
    return %arg0, %arg2 : i32, i32
  }
  func.func @transform_1(%arg0: i32, %arg1: i32, %arg2: i32) -> (i32, i32) {
    %c0_i32 = arith.constant 0 : i32
    return %arg2, %arg1 : i32, i32
  }
  func.func @transform_2(%arg0: i32, %arg1: i32, %arg2: i32) -> (i32, i32) {
    %c0_i32 = arith.constant 0 : i32
    %c0_i32_0 = arith.constant 0 : i32
    return %c0_i32, %arg1 : i32, i32
  }
  func.func @transform_3(%arg0: i32, %arg1: i32, %arg2: i32) -> (i32, i32) {
    %c0_i32 = arith.constant 0 : i32
    return %arg0, %arg1 : i32, i32
  }
}

module attributes {stable_mosaic.version = 11 : i64} {
  func.func @_fused_mm_kernel(%arg0: i32, %arg1: i32, %arg2: i32, %arg3: memref<8x384xbf16, #tpu.memory_space<vmem>>, %arg4: memref<384x256xbf16, #tpu.memory_space<vmem>>, %arg5: memref<1x256xf32, #tpu.memory_space<vmem>>, %arg6: memref<8x256xbf16, #tpu.memory_space<vmem>>, %arg7: memref<8x256xf32, #tpu.memory_space<vmem>>) attributes {dimension_semantics = [#tpu.dimension_semantics<parallel>, #tpu.dimension_semantics<parallel>, #tpu.dimension_semantics<arbitrary>], iteration_bounds = array<i64: 1, 2, 6>, scalar_prefetch = 0 : i64, scratch_operands = 1 : i64, tpu.core_type = #tpu.core_type<tc>, window_params = [{transform_indices = @transform_0, window_bounds = array<i64: 8, 384>}, {transform_indices = @transform_1, window_bounds = array<i64: 384, 256>}, {transform_indices = @transform_2, window_bounds = array<i64: 1, 256>}, {transform_indices = @transform_3, window_bounds = array<i64: 8, 256>}]} {
    %c0_i32 = arith.constant 0 : i32
    %0 = arith.cmpi eq, %arg2, %c0_i32 : i32
    %1 = arith.extui %0 : i1 to i32
    %c0_i32_0 = arith.constant 0 : i32
    %2 = arith.cmpi ne, %1, %c0_i32_0 : i32
    scf.if %2 {
      %cst_9 = arith.constant 0.000000e+00 : f32
      %12 = vector.broadcast %cst_9 : f32 to vector<8x256xf32>
      %c0_10 = arith.constant 0 : index
      %c0_11 = arith.constant 0 : index
      %13 = vector.load %arg7[%c0_10, %c0_11] : memref<8x256xf32, #tpu.memory_space<vmem>>, vector<8x256xf32>
      tpu.vector_store %arg7[%c0_10, %c0_11], %12 {strides = array<i32>} : memref<8x256xf32, #tpu.memory_space<vmem>>, vector<8x256xf32>,
    } else {
    }
    %c0 = arith.constant 0 : index
    %c0_1 = arith.constant 0 : index
    %3 = vector.load %arg7[%c0, %c0_1] : memref<8x256xf32, #tpu.memory_space<vmem>>, vector<8x256xf32>
    %c0_2 = arith.constant 0 : index
    %c0_3 = arith.constant 0 : index
    %4 = vector.load %arg3[%c0_2, %c0_3] : memref<8x384xbf16, #tpu.memory_space<vmem>>, vector<8x384xbf16>
    %c0_4 = arith.constant 0 : index
    %c0_5 = arith.constant 0 : index
    %5 = vector.load %arg4[%c0_4, %c0_5] : memref<384x256xbf16, #tpu.memory_space<vmem>>, vector<384x256xbf16>
    %cst = arith.constant dense<0.000000e+00> : vector<8x256xf32>
    %6 = tpu.matmul %4, %5, %cst {dimension_numbers = #tpu.dot_dimension_numbers<[1], [0], [0], [1], [0, 0, 1, 1], [], []>} : vector<8x384xbf16>, vector<384x256xbf16>, vector<8x256xf32> -> vector<8x256xf32>
    %7 = arith.addf %3, %6 : vector<8x256xf32>
    %c0_6 = arith.constant 0 : index
    %c0_7 = arith.constant 0 : index
    %8 = vector.load %arg7[%c0_6, %c0_7] : memref<8x256xf32, #tpu.memory_space<vmem>>, vector<8x256xf32>
    tpu.vector_store %arg7[%c0_6, %c0_7], %7 {strides = array<i32>} : memref<8x256xf32, #tpu.memory_space<vmem>>, vector<8x256xf32>,
    %c5_i32 = arith.constant 5 : i32
    %9 = arith.cmpi eq, %arg2, %c5_i32 : i32
    %10 = arith.extui %9 : i1 to i32
    %c0_i32_8 = arith.constant 0 : i32
    %11 = arith.cmpi ne, %10, %c0_i32_8 : i32
    scf.if %11 {
      %c0_9 = arith.constant 0 : index
      %c0_10 = arith.constant 0 : index
      %12 = vector.load %arg7[%c0_9, %c0_10] : memref<8x256xf32, #tpu.memory_space<vmem>>, vector<8x256xf32>
      %c0_11 = arith.constant 0 : index
      %c0_12 = arith.constant 0 : index
      %13 = vector.load %arg5[%c0_11, %c0_12] : memref<1x256xf32, #tpu.memory_space<vmem>>, vector<1x256xf32>
      %14 = vector.broadcast %13 : vector<1x256xf32> to vector<8x256xf32>
      %15 = arith.addf %12, %14 : vector<8x256xf32>
      %cst_13 = arith.constant 0.000000e+00 : f32
      %16 = vector.broadcast %cst_13 : f32 to vector<8x256xf32>
      %17 = arith.maximumf %15, %16 : vector<8x256xf32>
      %18 = arith.truncf %17 : vector<8x256xf32> to vector<8x256xbf16>
      %c0_14 = arith.constant 0 : index
      %c0_15 = arith.constant 0 : index
      %19 = vector.load %arg6[%c0_14, %c0_15] : memref<8x256xbf16, #tpu.memory_space<vmem>>, vector<8x256xbf16>
      tpu.vector_store %arg6[%c0_14, %c0_15], %18 {strides = array<i32>} : memref<8x256xbf16, #tpu.memory_space<vmem>>, vector<8x256xbf16>,
    } else {
    }
    return
  }
  func.func @transform_0(%arg0: i32, %arg1: i32, %arg2: i32) -> (i32, i32) {
    %c0_i32 = arith.constant 0 : i32
    return %arg0, %arg2 : i32, i32
  }
  func.func @transform_1(%arg0: i32, %arg1: i32, %arg2: i32) -> (i32, i32) {
    %c0_i32 = arith.constant 0 : i32
    return %arg2, %arg1 : i32, i32
  }
  func.func @transform_2(%arg0: i32, %arg1: i32, %arg2: i32) -> (i32, i32) {
    %c0_i32 = arith.constant 0 : i32
    %c0_i32_0 = arith.constant 0 : i32
    return %c0_i32, %arg1 : i32, i32
  }
  func.func @transform_3(%arg0: i32, %arg1: i32, %arg2: i32) -> (i32, i32) {
    %c0_i32 = arith.constant 0 : i32
    return %arg0, %arg1 : i32, i32
  }
}

module attributes {stable_mosaic.version = 11 : i64} {
  func.func @_fused_mm_kernel(%arg0: i32, %arg1: i32, %arg2: i32, %arg3: memref<8x256xbf16, #tpu.memory_space<vmem>>, %arg4: memref<256x256xbf16, #tpu.memory_space<vmem>>, %arg5: memref<1x256xf32, #tpu.memory_space<vmem>>, %arg6: memref<8x256xbf16, #tpu.memory_space<vmem>>, %arg7: memref<8x256xf32, #tpu.memory_space<vmem>>) attributes {dimension_semantics = [#tpu.dimension_semantics<parallel>, #tpu.dimension_semantics<parallel>, #tpu.dimension_semantics<arbitrary>], iteration_bounds = array<i64: 1, 2, 1>, scalar_prefetch = 0 : i64, scratch_operands = 1 : i64, tpu.core_type = #tpu.core_type<tc>, window_params = [{transform_indices = @transform_0, window_bounds = array<i64: 8, 256>}, {transform_indices = @transform_1, window_bounds = array<i64: 256, 256>}, {transform_indices = @transform_2, window_bounds = array<i64: 1, 256>}, {transform_indices = @transform_3, window_bounds = array<i64: 8, 256>}]} {
    %c0_i32 = arith.constant 0 : i32
    %0 = arith.cmpi eq, %arg2, %c0_i32 : i32
    %1 = arith.extui %0 : i1 to i32
    %c0_i32_0 = arith.constant 0 : i32
    %2 = arith.cmpi ne, %1, %c0_i32_0 : i32
    scf.if %2 {
      %cst_10 = arith.constant 0.000000e+00 : f32
      %12 = vector.broadcast %cst_10 : f32 to vector<8x256xf32>
      %c0_11 = arith.constant 0 : index
      %c0_12 = arith.constant 0 : index
      %13 = vector.load %arg7[%c0_11, %c0_12] : memref<8x256xf32, #tpu.memory_space<vmem>>, vector<8x256xf32>
      tpu.vector_store %arg7[%c0_11, %c0_12], %12 {strides = array<i32>} : memref<8x256xf32, #tpu.memory_space<vmem>>, vector<8x256xf32>,
    } else {
    }
    %c0 = arith.constant 0 : index
    %c0_1 = arith.constant 0 : index
    %3 = vector.load %arg7[%c0, %c0_1] : memref<8x256xf32, #tpu.memory_space<vmem>>, vector<8x256xf32>
    %c0_2 = arith.constant 0 : index
    %c0_3 = arith.constant 0 : index
    %4 = vector.load %arg3[%c0_2, %c0_3] : memref<8x256xbf16, #tpu.memory_space<vmem>>, vector<8x256xbf16>
    %c0_4 = arith.constant 0 : index
    %c0_5 = arith.constant 0 : index
    %5 = vector.load %arg4[%c0_4, %c0_5] : memref<256x256xbf16, #tpu.memory_space<vmem>>, vector<256x256xbf16>
    %cst = arith.constant dense<0.000000e+00> : vector<8x256xf32>
    %6 = tpu.matmul %4, %5, %cst {dimension_numbers = #tpu.dot_dimension_numbers<[1], [0], [0], [1], [0, 0, 1, 1], [], []>} : vector<8x256xbf16>, vector<256x256xbf16>, vector<8x256xf32> -> vector<8x256xf32>
    %7 = arith.addf %3, %6 : vector<8x256xf32>
    %c0_6 = arith.constant 0 : index
    %c0_7 = arith.constant 0 : index
    %8 = vector.load %arg7[%c0_6, %c0_7] : memref<8x256xf32, #tpu.memory_space<vmem>>, vector<8x256xf32>
    tpu.vector_store %arg7[%c0_6, %c0_7], %7 {strides = array<i32>} : memref<8x256xf32, #tpu.memory_space<vmem>>, vector<8x256xf32>,
    %c0_i32_8 = arith.constant 0 : i32
    %9 = arith.cmpi eq, %arg2, %c0_i32_8 : i32
    %10 = arith.extui %9 : i1 to i32
    %c0_i32_9 = arith.constant 0 : i32
    %11 = arith.cmpi ne, %10, %c0_i32_9 : i32
    scf.if %11 {
      %c0_10 = arith.constant 0 : index
      %c0_11 = arith.constant 0 : index
      %12 = vector.load %arg7[%c0_10, %c0_11] : memref<8x256xf32, #tpu.memory_space<vmem>>, vector<8x256xf32>
      %c0_12 = arith.constant 0 : index
      %c0_13 = arith.constant 0 : index
      %13 = vector.load %arg5[%c0_12, %c0_13] : memref<1x256xf32, #tpu.memory_space<vmem>>, vector<1x256xf32>
      %14 = vector.broadcast %13 : vector<1x256xf32> to vector<8x256xf32>
      %15 = arith.addf %12, %14 : vector<8x256xf32>
      %16 = arith.truncf %15 : vector<8x256xf32> to vector<8x256xbf16>
      %c0_14 = arith.constant 0 : index
      %c0_15 = arith.constant 0 : index
      %17 = vector.load %arg6[%c0_14, %c0_15] : memref<8x256xbf16, #tpu.memory_space<vmem>>, vector<8x256xbf16>
      tpu.vector_store %arg6[%c0_14, %c0_15], %16 {strides = array<i32>} : memref<8x256xbf16, #tpu.memory_space<vmem>>, vector<8x256xbf16>,
    } else {
    }
    return
  }
  func.func @transform_0(%arg0: i32, %arg1: i32, %arg2: i32) -> (i32, i32) {
    %c0_i32 = arith.constant 0 : i32
    return %arg0, %arg2 : i32, i32
  }
  func.func @transform_1(%arg0: i32, %arg1: i32, %arg2: i32) -> (i32, i32) {
    %c0_i32 = arith.constant 0 : i32
    return %arg2, %arg1 : i32, i32
  }
  func.func @transform_2(%arg0: i32, %arg1: i32, %arg2: i32) -> (i32, i32) {
    %c0_i32 = arith.constant 0 : i32
    %c0_i32_0 = arith.constant 0 : i32
    return %c0_i32, %arg1 : i32, i32
  }
  func.func @transform_3(%arg0: i32, %arg1: i32, %arg2: i32) -> (i32, i32) {
    %c0_i32 = arith.constant 0 : i32
    return %arg0, %arg1 : i32, i32
  }
}

module attributes {stable_mosaic.version = 11 : i64} {
  func.func @_fused_mm_kernel(%arg0: i32, %arg1: i32, %arg2: i32, %arg3: memref<8x512xbf16, #tpu.memory_space<vmem>>, %arg4: memref<512x256xbf16, #tpu.memory_space<vmem>>, %arg5: memref<1x256xf32, #tpu.memory_space<vmem>>, %arg6: memref<8x256xbf16, #tpu.memory_space<vmem>>, %arg7: memref<8x256xbf16, #tpu.memory_space<vmem>>, %arg8: memref<8x256xf32, #tpu.memory_space<vmem>>) attributes {dimension_semantics = [#tpu.dimension_semantics<parallel>, #tpu.dimension_semantics<parallel>, #tpu.dimension_semantics<arbitrary>], iteration_bounds = array<i64: 1, 2, 9>, scalar_prefetch = 0 : i64, scratch_operands = 1 : i64, tpu.core_type = #tpu.core_type<tc>, window_params = [{transform_indices = @transform_0, window_bounds = array<i64: 8, 512>}, {transform_indices = @transform_1, window_bounds = array<i64: 512, 256>}, {transform_indices = @transform_2, window_bounds = array<i64: 1, 256>}, {transform_indices = @transform_3, window_bounds = array<i64: 8, 256>}, {transform_indices = @transform_4, window_bounds = array<i64: 8, 256>}]} {
    %c0_i32 = arith.constant 0 : i32
    %0 = arith.cmpi eq, %arg2, %c0_i32 : i32
    %1 = arith.extui %0 : i1 to i32
    %c0_i32_0 = arith.constant 0 : i32
    %2 = arith.cmpi ne, %1, %c0_i32_0 : i32
    scf.if %2 {
      %cst_9 = arith.constant 0.000000e+00 : f32
      %12 = vector.broadcast %cst_9 : f32 to vector<8x256xf32>
      %c0_10 = arith.constant 0 : index
      %c0_11 = arith.constant 0 : index
      %13 = vector.load %arg8[%c0_10, %c0_11] : memref<8x256xf32, #tpu.memory_space<vmem>>, vector<8x256xf32>
      tpu.vector_store %arg8[%c0_10, %c0_11], %12 {strides = array<i32>} : memref<8x256xf32, #tpu.memory_space<vmem>>, vector<8x256xf32>,
    } else {
    }
    %c0 = arith.constant 0 : index
    %c0_1 = arith.constant 0 : index
    %3 = vector.load %arg8[%c0, %c0_1] : memref<8x256xf32, #tpu.memory_space<vmem>>, vector<8x256xf32>
    %c0_2 = arith.constant 0 : index
    %c0_3 = arith.constant 0 : index
    %4 = vector.load %arg3[%c0_2, %c0_3] : memref<8x512xbf16, #tpu.memory_space<vmem>>, vector<8x512xbf16>
    %c0_4 = arith.constant 0 : index
    %c0_5 = arith.constant 0 : index
    %5 = vector.load %arg4[%c0_4, %c0_5] : memref<512x256xbf16, #tpu.memory_space<vmem>>, vector<512x256xbf16>
    %cst = arith.constant dense<0.000000e+00> : vector<8x256xf32>
    %6 = tpu.matmul %4, %5, %cst {dimension_numbers = #tpu.dot_dimension_numbers<[1], [0], [0], [1], [0, 0, 1, 1], [], []>} : vector<8x512xbf16>, vector<512x256xbf16>, vector<8x256xf32> -> vector<8x256xf32>
    %7 = arith.addf %3, %6 : vector<8x256xf32>
    %c0_6 = arith.constant 0 : index
    %c0_7 = arith.constant 0 : index
    %8 = vector.load %arg8[%c0_6, %c0_7] : memref<8x256xf32, #tpu.memory_space<vmem>>, vector<8x256xf32>
    tpu.vector_store %arg8[%c0_6, %c0_7], %7 {strides = array<i32>} : memref<8x256xf32, #tpu.memory_space<vmem>>, vector<8x256xf32>,
    %c8_i32 = arith.constant 8 : i32
    %9 = arith.cmpi eq, %arg2, %c8_i32 : i32
    %10 = arith.extui %9 : i1 to i32
    %c0_i32_8 = arith.constant 0 : i32
    %11 = arith.cmpi ne, %10, %c0_i32_8 : i32
    scf.if %11 {
      %c0_9 = arith.constant 0 : index
      %c0_10 = arith.constant 0 : index
      %12 = vector.load %arg8[%c0_9, %c0_10] : memref<8x256xf32, #tpu.memory_space<vmem>>, vector<8x256xf32>
      %c0_11 = arith.constant 0 : index
      %c0_12 = arith.constant 0 : index
      %13 = vector.load %arg5[%c0_11, %c0_12] : memref<1x256xf32, #tpu.memory_space<vmem>>, vector<1x256xf32>
      %14 = vector.broadcast %13 : vector<1x256xf32> to vector<8x256xf32>
      %15 = arith.addf %12, %14 : vector<8x256xf32>
      %c0_13 = arith.constant 0 : index
      %c0_14 = arith.constant 0 : index
      %16 = vector.load %arg6[%c0_13, %c0_14] : memref<8x256xbf16, #tpu.memory_space<vmem>>, vector<8x256xbf16>
      %17 = arith.extf %16 : vector<8x256xbf16> to vector<8x256xf32>
      %18 = arith.addf %15, %17 : vector<8x256xf32>
      %cst_15 = arith.constant 0.000000e+00 : f32
      %19 = vector.broadcast %cst_15 : f32 to vector<8x256xf32>
      %20 = arith.maximumf %18, %19 : vector<8x256xf32>
      %21 = arith.truncf %20 : vector<8x256xf32> to vector<8x256xbf16>
      %c0_16 = arith.constant 0 : index
      %c0_17 = arith.constant 0 : index
      %22 = vector.load %arg7[%c0_16, %c0_17] : memref<8x256xbf16, #tpu.memory_space<vmem>>, vector<8x256xbf16>
      tpu.vector_store %arg7[%c0_16, %c0_17], %21 {strides = array<i32>} : memref<8x256xbf16, #tpu.memory_space<vmem>>, vector<8x256xbf16>,
    } else {
    }
    return
  }
  func.func @transform_0(%arg0: i32, %arg1: i32, %arg2: i32) -> (i32, i32) {
    %c0_i32 = arith.constant 0 : i32
    return %arg0, %arg2 : i32, i32
  }
  func.func @transform_1(%arg0: i32, %arg1: i32, %arg2: i32) -> (i32, i32) {
    %c0_i32 = arith.constant 0 : i32
    return %arg2, %arg1 : i32, i32
  }
  func.func @transform_2(%arg0: i32, %arg1: i32, %arg2: i32) -> (i32, i32) {
    %c0_i32 = arith.constant 0 : i32
    %c0_i32_0 = arith.constant 0 : i32
    return %c0_i32, %arg1 : i32, i32
  }
  func.func @transform_3(%arg0: i32, %arg1: i32, %arg2: i32) -> (i32, i32) {
    %c0_i32 = arith.constant 0 : i32
    return %arg0, %arg1 : i32, i32
  }
  func.func @transform_4(%arg0: i32, %arg1: i32, %arg2: i32) -> (i32, i32) {
    %c0_i32 = arith.constant 0 : i32
    return %arg0, %arg1 : i32, i32
  }
}

module attributes {stable_mosaic.version = 11 : i64} {
  func.func @_fused_mm_kernel(%arg0: i32, %arg1: i32, %arg2: i32, %arg3: memref<8x512xbf16, #tpu.memory_space<vmem>>, %arg4: memref<512x256xbf16, #tpu.memory_space<vmem>>, %arg5: memref<1x256xf32, #tpu.memory_space<vmem>>, %arg6: memref<8x256xbf16, #tpu.memory_space<vmem>>, %arg7: memref<8x256xf32, #tpu.memory_space<vmem>>) attributes {dimension_semantics = [#tpu.dimension_semantics<parallel>, #tpu.dimension_semantics<parallel>, #tpu.dimension_semantics<arbitrary>], iteration_bounds = array<i64: 1, 2, 9>, scalar_prefetch = 0 : i64, scratch_operands = 1 : i64, tpu.core_type = #tpu.core_type<tc>, window_params = [{transform_indices = @transform_0, window_bounds = array<i64: 8, 512>}, {transform_indices = @transform_1, window_bounds = array<i64: 512, 256>}, {transform_indices = @transform_2, window_bounds = array<i64: 1, 256>}, {transform_indices = @transform_3, window_bounds = array<i64: 8, 256>}]} {
    %c0_i32 = arith.constant 0 : i32
    %0 = arith.cmpi eq, %arg2, %c0_i32 : i32
    %1 = arith.extui %0 : i1 to i32
    %c0_i32_0 = arith.constant 0 : i32
    %2 = arith.cmpi ne, %1, %c0_i32_0 : i32
    scf.if %2 {
      %cst_9 = arith.constant 0.000000e+00 : f32
      %12 = vector.broadcast %cst_9 : f32 to vector<8x256xf32>
      %c0_10 = arith.constant 0 : index
      %c0_11 = arith.constant 0 : index
      %13 = vector.load %arg7[%c0_10, %c0_11] : memref<8x256xf32, #tpu.memory_space<vmem>>, vector<8x256xf32>
      tpu.vector_store %arg7[%c0_10, %c0_11], %12 {strides = array<i32>} : memref<8x256xf32, #tpu.memory_space<vmem>>, vector<8x256xf32>,
    } else {
    }
    %c0 = arith.constant 0 : index
    %c0_1 = arith.constant 0 : index
    %3 = vector.load %arg7[%c0, %c0_1] : memref<8x256xf32, #tpu.memory_space<vmem>>, vector<8x256xf32>
    %c0_2 = arith.constant 0 : index
    %c0_3 = arith.constant 0 : index
    %4 = vector.load %arg3[%c0_2, %c0_3] : memref<8x512xbf16, #tpu.memory_space<vmem>>, vector<8x512xbf16>
    %c0_4 = arith.constant 0 : index
    %c0_5 = arith.constant 0 : index
    %5 = vector.load %arg4[%c0_4, %c0_5] : memref<512x256xbf16, #tpu.memory_space<vmem>>, vector<512x256xbf16>
    %cst = arith.constant dense<0.000000e+00> : vector<8x256xf32>
    %6 = tpu.matmul %4, %5, %cst {dimension_numbers = #tpu.dot_dimension_numbers<[1], [0], [0], [1], [0, 0, 1, 1], [], []>} : vector<8x512xbf16>, vector<512x256xbf16>, vector<8x256xf32> -> vector<8x256xf32>
    %7 = arith.addf %3, %6 : vector<8x256xf32>
    %c0_6 = arith.constant 0 : index
    %c0_7 = arith.constant 0 : index
    %8 = vector.load %arg7[%c0_6, %c0_7] : memref<8x256xf32, #tpu.memory_space<vmem>>, vector<8x256xf32>
    tpu.vector_store %arg7[%c0_6, %c0_7], %7 {strides = array<i32>} : memref<8x256xf32, #tpu.memory_space<vmem>>, vector<8x256xf32>,
    %c8_i32 = arith.constant 8 : i32
    %9 = arith.cmpi eq, %arg2, %c8_i32 : i32
    %10 = arith.extui %9 : i1 to i32
    %c0_i32_8 = arith.constant 0 : i32
    %11 = arith.cmpi ne, %10, %c0_i32_8 : i32
    scf.if %11 {
      %c0_9 = arith.constant 0 : index
      %c0_10 = arith.constant 0 : index
      %12 = vector.load %arg7[%c0_9, %c0_10] : memref<8x256xf32, #tpu.memory_space<vmem>>, vector<8x256xf32>
      %c0_11 = arith.constant 0 : index
      %c0_12 = arith.constant 0 : index
      %13 = vector.load %arg5[%c0_11, %c0_12] : memref<1x256xf32, #tpu.memory_space<vmem>>, vector<1x256xf32>
      %14 = vector.broadcast %13 : vector<1x256xf32> to vector<8x256xf32>
      %15 = arith.addf %12, %14 : vector<8x256xf32>
      %cst_13 = arith.constant 0.000000e+00 : f32
      %16 = vector.broadcast %cst_13 : f32 to vector<8x256xf32>
      %17 = arith.maximumf %15, %16 : vector<8x256xf32>
      %18 = arith.truncf %17 : vector<8x256xf32> to vector<8x256xbf16>
      %c0_14 = arith.constant 0 : index
      %c0_15 = arith.constant 0 : index
      %19 = vector.load %arg6[%c0_14, %c0_15] : memref<8x256xbf16, #tpu.memory_space<vmem>>, vector<8x256xbf16>
      tpu.vector_store %arg6[%c0_14, %c0_15], %18 {strides = array<i32>} : memref<8x256xbf16, #tpu.memory_space<vmem>>, vector<8x256xbf16>,
    } else {
    }
    return
  }
  func.func @transform_0(%arg0: i32, %arg1: i32, %arg2: i32) -> (i32, i32) {
    %c0_i32 = arith.constant 0 : i32
    return %arg0, %arg2 : i32, i32
  }
  func.func @transform_1(%arg0: i32, %arg1: i32, %arg2: i32) -> (i32, i32) {
    %c0_i32 = arith.constant 0 : i32
    return %arg2, %arg1 : i32, i32
  }
  func.func @transform_2(%arg0: i32, %arg1: i32, %arg2: i32) -> (i32, i32) {
    %c0_i32 = arith.constant 0 : i32
    %c0_i32_0 = arith.constant 0 : i32
    return %c0_i32, %arg1 : i32, i32
  }
  func.func @transform_3(%arg0: i32, %arg1: i32, %arg2: i32) -> (i32, i32) {
    %c0_i32 = arith.constant 0 : i32
    return %arg0, %arg1 : i32, i32
  }
}

module attributes {stable_mosaic.version = 11 : i64} {
  func.func @_mean_reduce_kernel(%arg0: i32, %arg1: memref<8x1x512xbf16, #tpu.memory_space<vmem>>, %arg2: memref<8x512xf32, #tpu.memory_space<vmem>>) attributes {dimension_semantics = [#tpu.dimension_semantics<parallel>], iteration_bounds = array<i64: 1>, scalar_prefetch = 0 : i64, scratch_operands = 0 : i64, tpu.core_type = #tpu.core_type<tc>, window_params = [{transform_indices = @transform_0, window_bounds = array<i64: 8, 1, 512>}, {transform_indices = @transform_1, window_bounds = array<i64: 8, 512>}]} {
    %c0 = arith.constant 0 : index
    %c0_0 = arith.constant 0 : index
    %c0_1 = arith.constant 0 : index
    %0 = vector.load %arg1[%c0, %c0_0, %c0_1] : memref<8x1x512xbf16, #tpu.memory_space<vmem>>, vector<8x1x512xbf16>
    %1 = arith.extf %0 : vector<8x1x512xbf16> to vector<8x1x512xf32>
    %cst = arith.constant dense<0.000000e+00> : vector<8x512xf32>
    %2 = vector.multi_reduction <add>, %1, %cst [1] : vector<8x1x512xf32> to vector<8x512xf32>
    %cst_2 = arith.constant 1.000000e+00 : f32
    %3 = vector.broadcast %cst_2 : f32 to vector<8x512xf32>
    %4 = arith.divf %2, %3 : vector<8x512xf32>
    %c0_3 = arith.constant 0 : index
    %c0_4 = arith.constant 0 : index
    %5 = vector.load %arg2[%c0_3, %c0_4] : memref<8x512xf32, #tpu.memory_space<vmem>>, vector<8x512xf32>
    tpu.vector_store %arg2[%c0_3, %c0_4], %4 {strides = array<i32>} : memref<8x512xf32, #tpu.memory_space<vmem>>, vector<8x512xf32>,
    return
  }
  func.func @transform_0(%arg0: i32) -> (i32, i32, i32) {
    %c0_i32 = arith.constant 0 : i32
    %c0_i32_0 = arith.constant 0 : i32
    %c0_i32_1 = arith.constant 0 : i32
    return %arg0, %c0_i32, %c0_i32_0 : i32, i32, i32
  }
  func.func @transform_1(%arg0: i32) -> (i32, i32) {
    %c0_i32 = arith.constant 0 : i32
    %c0_i32_0 = arith.constant 0 : i32
    return %arg0, %c0_i32 : i32, i32
  }
}

module attributes {stable_mosaic.version = 11 : i64} {
  func.func @_fused_mm_kernel(%arg0: i32, %arg1: i32, %arg2: i32, %arg3: memref<8x512xbf16, #tpu.memory_space<vmem>>, %arg4: memref<512x128xbf16, #tpu.memory_space<vmem>>, %arg5: memref<1x128xf32, #tpu.memory_space<vmem>>, %arg6: memref<8x128xf32, #tpu.memory_space<vmem>>, %arg7: memref<8x128xf32, #tpu.memory_space<vmem>>) attributes {dimension_semantics = [#tpu.dimension_semantics<parallel>, #tpu.dimension_semantics<parallel>, #tpu.dimension_semantics<arbitrary>], iteration_bounds = array<i64: 1, 1, 1>, scalar_prefetch = 0 : i64, scratch_operands = 1 : i64, tpu.core_type = #tpu.core_type<tc>, window_params = [{transform_indices = @transform_0, window_bounds = array<i64: 8, 512>}, {transform_indices = @transform_1, window_bounds = array<i64: 512, 128>}, {transform_indices = @transform_2, window_bounds = array<i64: 1, 128>}, {transform_indices = @transform_3, window_bounds = array<i64: 8, 128>}]} {
    %c0_i32 = arith.constant 0 : i32
    %0 = arith.cmpi eq, %arg2, %c0_i32 : i32
    %1 = arith.extui %0 : i1 to i32
    %c0_i32_0 = arith.constant 0 : i32
    %2 = arith.cmpi ne, %1, %c0_i32_0 : i32
    scf.if %2 {
      %cst_10 = arith.constant 0.000000e+00 : f32
      %12 = vector.broadcast %cst_10 : f32 to vector<8x128xf32>
      %c0_11 = arith.constant 0 : index
      %c0_12 = arith.constant 0 : index
      %13 = vector.load %arg7[%c0_11, %c0_12] : memref<8x128xf32, #tpu.memory_space<vmem>>, vector<8x128xf32>
      tpu.vector_store %arg7[%c0_11, %c0_12], %12 {strides = array<i32>} : memref<8x128xf32, #tpu.memory_space<vmem>>, vector<8x128xf32>,
    } else {
    }
    %c0 = arith.constant 0 : index
    %c0_1 = arith.constant 0 : index
    %3 = vector.load %arg7[%c0, %c0_1] : memref<8x128xf32, #tpu.memory_space<vmem>>, vector<8x128xf32>
    %c0_2 = arith.constant 0 : index
    %c0_3 = arith.constant 0 : index
    %4 = vector.load %arg3[%c0_2, %c0_3] : memref<8x512xbf16, #tpu.memory_space<vmem>>, vector<8x512xbf16>
    %c0_4 = arith.constant 0 : index
    %c0_5 = arith.constant 0 : index
    %5 = vector.load %arg4[%c0_4, %c0_5] : memref<512x128xbf16, #tpu.memory_space<vmem>>, vector<512x128xbf16>
    %cst = arith.constant dense<0.000000e+00> : vector<8x128xf32>
    %6 = tpu.matmul %4, %5, %cst {dimension_numbers = #tpu.dot_dimension_numbers<[1], [0], [0], [1], [0, 0, 1, 1], [], []>} : vector<8x512xbf16>, vector<512x128xbf16>, vector<8x128xf32> -> vector<8x128xf32>
    %7 = arith.addf %3, %6 : vector<8x128xf32>
    %c0_6 = arith.constant 0 : index
    %c0_7 = arith.constant 0 : index
    %8 = vector.load %arg7[%c0_6, %c0_7] : memref<8x128xf32, #tpu.memory_space<vmem>>, vector<8x128xf32>
    tpu.vector_store %arg7[%c0_6, %c0_7], %7 {strides = array<i32>} : memref<8x128xf32, #tpu.memory_space<vmem>>, vector<8x128xf32>,
    %c0_i32_8 = arith.constant 0 : i32
    %9 = arith.cmpi eq, %arg2, %c0_i32_8 : i32
    %10 = arith.extui %9 : i1 to i32
    %c0_i32_9 = arith.constant 0 : i32
    %11 = arith.cmpi ne, %10, %c0_i32_9 : i32
    scf.if %11 {
      %c0_10 = arith.constant 0 : index
      %c0_11 = arith.constant 0 : index
      %12 = vector.load %arg7[%c0_10, %c0_11] : memref<8x128xf32, #tpu.memory_space<vmem>>, vector<8x128xf32>
      %c0_12 = arith.constant 0 : index
      %c0_13 = arith.constant 0 : index
      %13 = vector.load %arg5[%c0_12, %c0_13] : memref<1x128xf32, #tpu.memory_space<vmem>>, vector<1x128xf32>
      %14 = vector.broadcast %13 : vector<1x128xf32> to vector<8x128xf32>
      %15 = arith.addf %12, %14 : vector<8x128xf32>
      %c0_14 = arith.constant 0 : index
      %c0_15 = arith.constant 0 : index
      %16 = vector.load %arg6[%c0_14, %c0_15] : memref<8x128xf32, #tpu.memory_space<vmem>>, vector<8x128xf32>
      tpu.vector_store %arg6[%c0_14, %c0_15], %15 {strides = array<i32>} : memref<8x128xf32, #tpu.memory_space<vmem>>, vector<8x128xf32>,
    } else {
    }
    return
  }
  func.func @transform_0(%arg0: i32, %arg1: i32, %arg2: i32) -> (i32, i32) {
    %c0_i32 = arith.constant 0 : i32
    return %arg0, %arg2 : i32, i32
  }
  func.func @transform_1(%arg0: i32, %arg1: i32, %arg2: i32) -> (i32, i32) {
    %c0_i32 = arith.constant 0 : i32
    return %arg2, %arg1 : i32, i32
  }
  func.func @transform_2(%arg0: i32, %arg1: i32, %arg2: i32) -> (i32, i32) {
    %c0_i32 = arith.constant 0 : i32
    %c0_i32_0 = arith.constant 0 : i32
    return %c0_i32, %arg1 : i32, i32
  }
  func.func @transform_3(%arg0: i32, %arg1: i32, %arg2: i32) -> (i32, i32) {
    %c0_i32 = arith.constant 0 : i32
    return %arg0, %arg1 : i32, i32
  }
}

</mosaic_0001>

<bundles_post_ra>
// kernel: resnet18_forward.23
= control target key start
LH: loop header
LB: loop body
LE: loop exit
PB: predicated region body
PF: predicated region fallthrough
CT: control target
= control target key end

     0   :  { %s1744_s12 = smov 0   ;;  %s1746_s13 = smov 0   ;;  %s1918_s0 = inlined_call_operand.vmem [shape: bf16[512,256], index: 0, kind: input, shape index: {}]   ;;  %s1919_s1 = inlined_call_operand.vmem [shape: bf16[256,128], index: 1, kind: input, shape index: {}]   ;;  %s1920_s2 = inlined_call_operand.vmem [shape: f32[1,128], index: 2, kind: input, shape index: {}]   ;;  %s1921_s3 = inlined_call_operand.vmem [shape: bf16[512,128], index: 3, kind: output, shape index: {}]  }
   0x1   :  { %s1748_s14 = smov 0  }
   0x2 LB: > { %s32_s15 = sadd.s32 1, %s1718_s13  ;;  %p1267_p0 = scmp.ge.s32.totalorder %s1722_s14, 1  ;;  %s1722_s14 = sphi %s1748_s14, %s13_s14   ;;  %s1718_s13 = sphi %s1746_s13, %s1923_s13   ;;  %s1714_s12 = sphi %s1744_s12, %s1922_s12  }
   0x3   : > { %p34_p1 = scmp.ge.s32.totalorder %s32_s15, 2  ;;  %p191_p2 = scmp.lt.s32.totalorder %s1722_s14, 3 }
   0x5   : > { %s1925_s15 = smov (%p34_p1, %s32_s15), 0  ;;  %p192_p3 = pnand %p1267_p0, %p191_p2 }
   0x6   : > { %s1268_s18 = sshll.u32 (!%p192_p3), %s1714_s12, 5 }
   0x7   : > { %195 = sbr.rel (%p192_p3) target bundleno = 309 (0x135), region = 32  ;;  %p236_p4 = scmp.lt.s32.totalorder (!%p192_p3), %s1268_s18, 63 }
   0xc   : > { %v1636_v0 = vld [vmem:[%s1919_s1 + $0x78] sm:$0xff]   ;;  %v1638_v2 = vld [vmem:[%s1919_s1 + $0x70] sm:$0xff]   ;;  %v1640_v4 = vld [vmem:[%s1919_s1 + $0x68] sm:$0xff]   ;;  %s1927_s18 = smov (!%p236_p4, %s1268_s18), 63 }
   0xd   : > { %v1637_v1 = vld [vmem:[%s1919_s1 + $0x38] sm:$0xff]   ;;  %1484 = vmatprep.subr.bf16.mxu0 %v1636_v0  ;;  %1596 = vmatprep.subr.bf16.mxu1 %v1636_v0  ;;  %v1639_v3 = vld [vmem:[%s1919_s1 + $0x30] sm:$0xff]   ;;  %v1641_v5 = vld [vmem:[%s1919_s1 + $0x28] sm:$0xff]   ;;  %s1356_s6 = sshll.u32 %s1927_s18, 3  ;;  %s1272_s5 = sshll.u32 %s1927_s18, 2 }
   0xe   : > { %1485 = vmatpush3.bf16.msra.mxu0 %v1637_v1  ;;  %1604 = vmatpush3.bf16.msra.mxu1 %v1637_v1  ;;  %v1642_v6 = vld [vmem:[%s1919_s1 + $0x60] sm:$0xff]   ;;  %v1644_v8 = vld [vmem:[%s1919_s1 + $0x58] sm:$0xff]   ;;  %s1795_s11 = scalar_lea.vmem %s1918_s0, %s1356_s6  ;;  %v1646_v10 = vld [vmem:[%s1919_s1 + $0x50] sm:$0xff]   ;;  %s1863_s8 = scalar_lea.vmem %s1921_s3, %s1272_s5 }
   0xf   : > { %1486 = vmatprep.subr.bf16.mxu0 %v1638_v2  ;;  %1597 = vmatprep.subr.bf16.mxu1 %v1638_v2  ;;  %v1643_v7 = vld [vmem:[%s1919_s1 + $0x20] sm:$0xff]   ;;  %v1645_v9 = vld [vmem:[%s1919_s1 + $0x18] sm:$0xff]   ;;  %v1647_v13 = vld [vmem:[%s1919_s1 + $0x10] sm:$0xff]  }
  0x10   : > { %v1654_v11 = vld [vmem:[%s1795_s11 + $0x4] ss:$8 sps:$4 sm:$0xff]   ;;  %v1652_v18 = vld [vmem:[%s1795_s11] ss:$8 sps:$4 sm:$0xff]   ;;  %v1658_v20 = vld [vmem:[%s1795_s11 + $0x14] ss:$8 sps:$4 sm:$0xff]  }
  0x11   : > { %v1657_v12 = vld [vmem:[%s1795_s11 + $0x84] ss:$8 sps:$4 sm:$0xff]   ;;  %688 = vmatprep.mubr.bf16.mxu0 %v1654_v11  ;;  %v1655_v19 = vld [vmem:[%s1795_s11 + $0x80] ss:$8 sps:$4 sm:$0xff]   ;;  %v1660_v21 = vld [vmem:[%s1795_s11 + $0x94] ss:$8 sps:$4 sm:$0xff]  }
  0x12   : > { %1487 = vmatpush3.bf16.msra.mxu0 %v1639_v3  ;;  %1605 = vmatpush3.bf16.msra.mxu1 %v1639_v3  ;;  %v1648_v14 = vld [vmem:[%s1919_s1 + $0x48] sm:$0xff]   ;;  %v1650_v16 = vld [vmem:[%s1919_s1 + $0x40] sm:$0xff]   ;;  %v1662_v22 = vld [vmem:[%s1795_s11 + $0x10] ss:$8 sps:$4 sm:$0xff]  }
  0x13   : > { %1488 = vmatprep.subr.bf16.mxu0 %v1640_v4  ;;  %1598 = vmatprep.subr.bf16.mxu1 %v1640_v4  ;;  %v1649_v15 = vld [vmem:[%s1919_s1 + $0x8] sm:$0xff]   ;;  %v1651_v17 = vld [vmem:[%s1919_s1] sm:$0xff]   ;;  %v1663_v23 = vld [vmem:[%s1795_s11 + $0x90] ss:$8 sps:$4 sm:$0xff]  }
  0x14   : > { %752 = vmatprep.mubr.bf16.mxu1 %v1657_v12  ;;  %v1664_v24 = vld [vmem:[%s1795_s11 + $0x24] ss:$8 sps:$4 sm:$0xff]   ;;  %v1668_v26 = vld [vmem:[%s1795_s11 + $0x20] ss:$8 sps:$4 sm:$0xff]   ;;  %v1670_v28 = vld [vmem:[%s1795_s11 + $0x34] ss:$8 sps:$4 sm:$0xff]  }
  0x15   : > { %v1666_v25 = vld [vmem:[%s1795_s11 + $0xa4] ss:$8 sps:$4 sm:$0xff]   ;;  %v1669_v27 = vld [vmem:[%s1795_s11 + $0xa0] ss:$8 sps:$4 sm:$0xff]   ;;  %v1672_v29 = vld [vmem:[%s1795_s11 + $0xb4] ss:$8 sps:$4 sm:$0xff]  }
  0x16   : > { %1489 = vmatpush3.bf16.msra.mxu0 %v1641_v5  ;;  %1606 = vmatpush3.bf16.msra.mxu1 %v1641_v5  ;;  %v1674_v30 = vld [vmem:[%s1795_s11 + $0x30] ss:$8 sps:$4 sm:$0xff]   ;;  %v1676_v32 = vld [vmem:[%s1795_s11 + $0x44] ss:$8 sps:$4 sm:$0xff]   ;;  %v1680_v34 = vld [vmem:[%s1795_s11 + $0x40] ss:$8 sps:$4 sm:$0xff]  }
  0x17   : > { %1490 = vmatprep.subr.bf16.mxu0 %v1642_v6  ;;  %1599 = vmatprep.subr.bf16.mxu1 %v1642_v6  ;;  %v1675_v31 = vld [vmem:[%s1795_s11 + $0xb0] ss:$8 sps:$4 sm:$0xff]   ;;  %v1678_v33 = vld [vmem:[%s1795_s11 + $0xc4] ss:$8 sps:$4 sm:$0xff]   ;;  %v1681_v35 = vld [vmem:[%s1795_s11 + $0xc0] ss:$8 sps:$4 sm:$0xff]  }
  0x18   : > { %v1682_v36 = vld [vmem:[%s1795_s11 + $0x54] ss:$8 sps:$4 sm:$0xff]   ;;  %v1686_v38 = vld [vmem:[%s1795_s11 + $0x50] ss:$8 sps:$4 sm:$0xff]   ;;  %v1688_v40 = vld [vmem:[%s1795_s11 + $0x64] ss:$8 sps:$4 sm:$0xff]  }
  0x19   : > { %v1684_v37 = vld [vmem:[%s1795_s11 + $0xd4] ss:$8 sps:$4 sm:$0xff]   ;;  %v1687_v39 = vld [vmem:[%s1795_s11 + $0xd0] ss:$8 sps:$4 sm:$0xff]   ;;  %v1690_v41 = vld [vmem:[%s1795_s11 + $0xe4] ss:$8 sps:$4 sm:$0xff]  }
  0x1a   : > { %1491 = vmatpush3.bf16.msra.mxu0 %v1643_v7  ;;  %1607 = vmatpush3.bf16.msra.mxu1 %v1643_v7  ;;  %v1692_v42 = vld [vmem:[%s1795_s11 + $0x60] ss:$8 sps:$4 sm:$0xff]   ;;  %v1694_v44 = vld [vmem:[%s1795_s11 + $0x74] ss:$8 sps:$4 sm:$0xff]   ;;  %v1698_v46 = vld [vmem:[%s1795_s11 + $0x70] ss:$8 sps:$4 sm:$0xff]  }
  0x1b   : > { %1492 = vmatprep.subr.bf16.mxu0 %v1644_v8  ;;  %1600 = vmatprep.subr.bf16.mxu1 %v1644_v8  ;;  %v1693_v43 = vld [vmem:[%s1795_s11 + $0xe0] ss:$8 sps:$4 sm:$0xff]   ;;  %v1696_v45 = vld [vmem:[%s1795_s11 + $0xf4] ss:$8 sps:$4 sm:$0xff]   ;;  %v1699_v47 = vld [vmem:[%s1795_s11 + $0xf0] ss:$8 sps:$4 sm:$0xff]  }
  0x1c   : > { %v1853_v53 = vld [vmem:[%s1920_s2] ss:$0 sm:$0xff] }
  0x1e   : > { %1493 = vmatpush3.bf16.msra.mxu0 %v1645_v9  ;;  %1608 = vmatpush3.bf16.msra.mxu1 %v1645_v9 }
  0x1f   : > { %1494 = vmatprep.subr.bf16.mxu0 %v1646_v10  ;;  %1601 = vmatprep.subr.bf16.mxu1 %v1646_v10 }
  0x22   : > { %1495 = vmatpush3.bf16.msra.mxu0 %v1647_v13  ;;  %1609 = vmatpush3.bf16.msra.mxu1 %v1647_v13 }
  0x23   : > { %1496 = vmatprep.subr.bf16.mxu0 %v1648_v14  ;;  %1602 = vmatprep.subr.bf16.mxu1 %v1648_v14 }
  0x26   : > { %1497 = vmatpush3.bf16.msra.mxu0 %v1649_v15  ;;  %1610 = vmatpush3.bf16.msra.mxu1 %v1649_v15 }
  0x27   : > { %1498 = vmatprep.subr.bf16.mxu0 %v1650_v16  ;;  %1603 = vmatprep.subr.bf16.mxu1 %v1650_v16 }
  0x2a   : > { %1499 = vmatpush3.bf16.msra.mxu0 %v1651_v17  ;;  %1611 = vmatpush3.bf16.msra.mxu1 %v1651_v17 }
  0x2d   : > { %689 = vmatmul.mubr.bf16.vlgmr.msra.gmra.mxu0 %v1652_v18  ;;  %753 = vmatmul.mubr.bf16.vlgmr.msra.gmra.mxu1 %v1655_v19 }
  0x2e   : > { %696 = vmatprep.mubr.bf16.mxu0 %v1658_v20  ;;  %760 = vmatprep.mubr.bf16.mxu1 %v1660_v21 }
  0x35   : > { %697 = vmatmul.mubr.bf16.gmra.mxu0 %v1662_v22  ;;  %761 = vmatmul.mubr.bf16.gmra.mxu1 %v1663_v23 }
  0x36   : > { %704 = vmatprep.mubr.bf16.mxu0 %v1664_v24  ;;  %768 = vmatprep.mubr.bf16.mxu1 %v1666_v25 }
  0x3d   : > { %705 = vmatmul.mubr.bf16.gmra.mxu0 %v1668_v26  ;;  %769 = vmatmul.mubr.bf16.gmra.mxu1 %v1669_v27 }
  0x3e   : > { %712 = vmatprep.mubr.bf16.mxu0 %v1670_v28  ;;  %776 = vmatprep.mubr.bf16.mxu1 %v1672_v29 }
  0x45   : > { %713 = vmatmul.mubr.bf16.gmra.mxu0 %v1674_v30  ;;  %777 = vmatmul.mubr.bf16.gmra.mxu1 %v1675_v31 }
  0x46   : > { %720 = vmatprep.mubr.bf16.mxu0 %v1676_v32  ;;  %784 = vmatprep.mubr.bf16.mxu1 %v1678_v33 }
  0x4d   : > { %721 = vmatmul.mubr.bf16.gmra.mxu0 %v1680_v34  ;;  %785 = vmatmul.mubr.bf16.gmra.mxu1 %v1681_v35 }
  0x4e   : > { %728 = vmatprep.mubr.bf16.mxu0 %v1682_v36  ;;  %792 = vmatprep.mubr.bf16.mxu1 %v1684_v37 }
  0x55   : > { %729 = vmatmul.mubr.bf16.gmra.mxu0 %v1686_v38  ;;  %793 = vmatmul.mubr.bf16.gmra.mxu1 %v1687_v39 }
  0x56   : > { %736 = vmatprep.mubr.bf16.mxu0 %v1688_v40  ;;  %800 = vmatprep.mubr.bf16.mxu1 %v1690_v41 }
  0x5d   : > { %737 = vmatmul.mubr.bf16.gmra.mxu0 %v1692_v42  ;;  %801 = vmatmul.mubr.bf16.gmra.mxu1 %v1693_v43 }
  0x5e   : > { %744 = vmatprep.mubr.bf16.mxu0 %v1694_v44  ;;  %808 = vmatprep.mubr.bf16.mxu1 %v1696_v45 }
  0x65   : > { %745 = vmatmul.mubr.bf16.gmra.mxu0 %v1698_v46  ;;  %809 = vmatmul.mubr.bf16.gmra.mxu1 %v1699_v47 }
  0xed   : > { %v1500_v48 = vpop.f32.mrf.mxu0  ;;  %v1548_v49 = vpop.f32.mrf.mxu1 }
  0xef   : > { %v1501_v50 = vpop.f32.mrf.mxu0  ;;  %v1549_v51 = vpop.f32.mrf.mxu1 }
  0xf0   : > { %v1502_v52 = vadd.f32 %v1501_v50, %v1500_v48  ;;  %v1550_v54 = vadd.f32 %v1549_v51, %v1548_v49 }
  0xf1   : > { %v1503_v55 = vpop.f32.mrf.mxu0  ;;  %v1551_v56 = vpop.f32.mrf.mxu1 }
  0xf2   : > { %v923_v57 = vadd.f32 %v1502_v52, %v1853_v53  ;;  %v939_v58 = vadd.f32 %v1550_v54, %v1853_v53 }
  0xf3   : > { %v1504_v59 = vpop.f32.mrf.mxu0  ;;  %v1552_v60 = vpop.f32.mrf.mxu1 }
  0xf4   : > { %v1505_v61 = vadd.f32 %v1504_v59, %v1503_v55  ;;  %v1553_v62 = vadd.f32 %v1552_v60, %v1551_v56  ;;  %v955_v3 = vmax.f32 %v923_v57, 0.0  ;;  %v971_v4 = vmax.f32 %v939_v58, 0.0 }
  0xf5   : > { %v1506_v63 = vpop.f32.mrf.mxu0  ;;  %v1554_v0 = vpop.f32.mrf.mxu1 }
  0xf6   : > { %v924_v1 = vadd.f32 %v1505_v61, %v1853_v53  ;;  %v940_v2 = vadd.f32 %v1553_v62, %v1853_v53 }
  0xf7   : > { %v1507_v5 = vpop.f32.mrf.mxu0  ;;  %v1555_v6 = vpop.f32.mrf.mxu1 }
  0xf8   : > { %v956_v7 = vmax.f32 %v924_v1, 0.0  ;;  %v972_v8 = vmax.f32 %v940_v2, 0.0  ;;  %v1508_v9 = vadd.f32 %v1507_v5, %v1506_v63  ;;  %v1556_v10 = vadd.f32 %v1555_v6, %v1554_v0 }
  0xf9   : > { %v1509_v11 = vpop.f32.mrf.mxu0  ;;  %v1557_v12 = vpop.f32.mrf.mxu1 }
  0xfa   : > { %v1392_v13 = vpack.c.bf16 %v956_v7, %v955_v3  ;;  %v1432_v14 = vpack.c.bf16 %v972_v8, %v971_v4  ;;  %v925_v15 = vadd.f32 %v1508_v9, %v1853_v53  ;;  %v941_v16 = vadd.f32 %v1556_v10, %v1853_v53 }
  0xfb   : > { %v1510_v17 = vpop.f32.mrf.mxu0  ;;  %v1558_v18 = vpop.f32.mrf.mxu1 }
  0xfc   : > { %1393 = vst [vmem:[%s1863_s8] sm:$0xff] %v1392_v13   ;;  %1476 = vst [vmem:[%s1863_s8 + $0x40] sm:$0xff] %v1432_v14   ;;  %v1511_v19 = vadd.f32 %v1510_v17, %v1509_v11  ;;  %v1559_v20 = vadd.f32 %v1558_v18, %v1557_v12  ;;  %v957_v25 = vmax.f32 %v925_v15, 0.0  ;;  %v973_v26 = vmax.f32 %v941_v16, 0.0 }
  0xfd   : > { %v1512_v21 = vpop.f32.mrf.mxu0  ;;  %v1560_v22 = vpop.f32.mrf.mxu1 }
  0xfe   : > { %v926_v23 = vadd.f32 %v1511_v19, %v1853_v53  ;;  %v942_v24 = vadd.f32 %v1559_v20, %v1853_v53 }
  0xff   : > { %v1513_v27 = vpop.f32.mrf.mxu0  ;;  %v1561_v28 = vpop.f32.mrf.mxu1 }
 0x100   : > { %v958_v29 = vmax.f32 %v926_v23, 0.0  ;;  %v974_v30 = vmax.f32 %v942_v24, 0.0  ;;  %v1514_v31 = vadd.f32 %v1513_v27, %v1512_v21  ;;  %v1562_v32 = vadd.f32 %v1561_v28, %v1560_v22 }
 0x101   : > { %v1515_v33 = vpop.f32.mrf.mxu0  ;;  %v1563_v34 = vpop.f32.mrf.mxu1 }
 0x102   : > { %v1397_v35 = vpack.c.bf16 %v958_v29, %v957_v25  ;;  %v1437_v36 = vpack.c.bf16 %v974_v30, %v973_v26  ;;  %v927_v37 = vadd.f32 %v1514_v31, %v1853_v53  ;;  %v943_v38 = vadd.f32 %v1562_v32, %v1853_v53 }
 0x103   : > { %v1516_v39 = vpop.f32.mrf.mxu0  ;;  %v1564_v40 = vpop.f32.mrf.mxu1 }
 0x104   : > { %1469 = vst [vmem:[%s1863_s8 + $0x8] sm:$0xff] %v1397_v35   ;;  %1477 = vst [vmem:[%s1863_s8 + $0x48] sm:$0xff] %v1437_v36   ;;  %v1517_v41 = vadd.f32 %v1516_v39, %v1515_v33  ;;  %v1565_v42 = vadd.f32 %v1564_v40, %v1563_v34  ;;  %v959_v47 = vmax.f32 %v927_v37, 0.0  ;;  %v975_v48 = vmax.f32 %v943_v38, 0.0 }
 0x105   : > { %v1518_v43 = vpop.f32.mrf.mxu0  ;;  %v1566_v44 = vpop.f32.mrf.mxu1 }
 0x106   : > { %v928_v45 = vadd.f32 %v1517_v41, %v1853_v53  ;;  %v944_v46 = vadd.f32 %v1565_v42, %v1853_v53 }
 0x107   : > { %v1519_v49 = vpop.f32.mrf.mxu0  ;;  %v1567_v50 = vpop.f32.mrf.mxu1 }
 0x108   : > { %v960_v51 = vmax.f32 %v928_v45, 0.0  ;;  %v976_v52 = vmax.f32 %v944_v46, 0.0  ;;  %v1520_v54 = vadd.f32 %v1519_v49, %v1518_v43  ;;  %v1568_v55 = vadd.f32 %v1567_v50, %v1566_v44 }
 0x109   : > { %v1521_v56 = vpop.f32.mrf.mxu0  ;;  %v1569_v57 = vpop.f32.mrf.mxu1 }
 0x10a   : > { %v1402_v58 = vpack.c.bf16 %v960_v51, %v959_v47  ;;  %v1442_v59 = vpack.c.bf16 %v976_v52, %v975_v48  ;;  %v929_v60 = vadd.f32 %v1520_v54, %v1853_v53  ;;  %v945_v61 = vadd.f32 %v1568_v55, %v1853_v53 }
 0x10b   : > { %v1522_v62 = vpop.f32.mrf.mxu0  ;;  %v1570_v63 = vpop.f32.mrf.mxu1 }
 0x10c   : > { %1470 = vst [vmem:[%s1863_s8 + $0x10] sm:$0xff] %v1402_v58   ;;  %1478 = vst [vmem:[%s1863_s8 + $0x50] sm:$0xff] %v1442_v59   ;;  %v1523_v0 = vadd.f32 %v1522_v62, %v1521_v56  ;;  %v1571_v1 = vadd.f32 %v1570_v63, %v1569_v57  ;;  %v961_v6 = vmax.f32 %v929_v60, 0.0  ;;  %v977_v7 = vmax.f32 %v945_v61, 0.0 }
 0x10d   : > { %v1524_v2 = vpop.f32.mrf.mxu0  ;;  %v1572_v3 = vpop.f32.mrf.mxu1 }
 0x10e   : > { %v930_v4 = vadd.f32 %v1523_v0, %v1853_v53  ;;  %v946_v5 = vadd.f32 %v1571_v1, %v1853_v53 }
 0x10f   : > { %v1525_v8 = vpop.f32.mrf.mxu0  ;;  %v1573_v9 = vpop.f32.mrf.mxu1 }
 0x110   : > { %v962_v10 = vmax.f32 %v930_v4, 0.0  ;;  %v978_v11 = vmax.f32 %v946_v5, 0.0  ;;  %v1526_v12 = vadd.f32 %v1525_v8, %v1524_v2  ;;  %v1574_v13 = vadd.f32 %v1573_v9, %v1572_v3 }
 0x111   : > { %v1527_v14 = vpop.f32.mrf.mxu0  ;;  %v1575_v15 = vpop.f32.mrf.mxu1 }
 0x112   : > { %v1407_v16 = vpack.c.bf16 %v962_v10, %v961_v6  ;;  %v1447_v17 = vpack.c.bf16 %v978_v11, %v977_v7  ;;  %v931_v18 = vadd.f32 %v1526_v12, %v1853_v53  ;;  %v947_v19 = vadd.f32 %v1574_v13, %v1853_v53 }
 0x113   : > { %v1528_v20 = vpop.f32.mrf.mxu0  ;;  %v1576_v21 = vpop.f32.mrf.mxu1 }
 0x114   : > { %1471 = vst [vmem:[%s1863_s8 + $0x18] sm:$0xff] %v1407_v16   ;;  %1479 = vst [vmem:[%s1863_s8 + $0x58] sm:$0xff] %v1447_v17   ;;  %v1529_v22 = vadd.f32 %v1528_v20, %v1527_v14  ;;  %v1577_v23 = vadd.f32 %v1576_v21, %v1575_v15  ;;  %v963_v28 = vmax.f32 %v931_v18, 0.0  ;;  %v979_v29 = vmax.f32 %v947_v19, 0.0 }
 0x115   : > { %v1530_v24 = vpop.f32.mrf.mxu0  ;;  %v1578_v25 = vpop.f32.mrf.mxu1 }
 0x116   : > { %v932_v26 = vadd.f32 %v1529_v22, %v1853_v53  ;;  %v948_v27 = vadd.f32 %v1577_v23, %v1853_v53 }
 0x117   : > { %v1531_v30 = vpop.f32.mrf.mxu0  ;;  %v1579_v31 = vpop.f32.mrf.mxu1 }
 0x118   : > { %v964_v32 = vmax.f32 %v932_v26, 0.0  ;;  %v980_v33 = vmax.f32 %v948_v27, 0.0  ;;  %v1532_v34 = vadd.f32 %v1531_v30, %v1530_v24  ;;  %v1580_v35 = vadd.f32 %v1579_v31, %v1578_v25 }
 0x119   : > { %v1533_v36 = vpop.f32.mrf.mxu0  ;;  %v1581_v37 = vpop.f32.mrf.mxu1 }
 0x11a   : > { %v1412_v38 = vpack.c.bf16 %v964_v32, %v963_v28  ;;  %v1452_v39 = vpack.c.bf16 %v980_v33, %v979_v29  ;;  %v933_v40 = vadd.f32 %v1532_v34, %v1853_v53  ;;  %v949_v41 = vadd.f32 %v1580_v35, %v1853_v53 }
 0x11b   : > { %v1534_v42 = vpop.f32.mrf.mxu0  ;;  %v1582_v43 = vpop.f32.mrf.mxu1 }
 0x11c   : > { %1472 = vst [vmem:[%s1863_s8 + $0x20] sm:$0xff] %v1412_v38   ;;  %1480 = vst [vmem:[%s1863_s8 + $0x60] sm:$0xff] %v1452_v39   ;;  %v1535_v44 = vadd.f32 %v1534_v42, %v1533_v36  ;;  %v1583_v45 = vadd.f32 %v1582_v43, %v1581_v37  ;;  %v965_v50 = vmax.f32 %v933_v40, 0.0  ;;  %v981_v51 = vmax.f32 %v949_v41, 0.0 }
 0x11d   : > { %v1536_v46 = vpop.f32.mrf.mxu0  ;;  %v1584_v47 = vpop.f32.mrf.mxu1 }
 0x11e   : > { %v934_v48 = vadd.f32 %v1535_v44, %v1853_v53  ;;  %v950_v49 = vadd.f32 %v1583_v45, %v1853_v53 }
 0x11f   : > { %v1537_v52 = vpop.f32.mrf.mxu0  ;;  %v1585_v54 = vpop.f32.mrf.mxu1 }
 0x120   : > { %v966_v55 = vmax.f32 %v934_v48, 0.0  ;;  %v982_v56 = vmax.f32 %v950_v49, 0.0  ;;  %v1538_v57 = vadd.f32 %v1537_v52, %v1536_v46  ;;  %v1586_v58 = vadd.f32 %v1585_v54, %v1584_v47 }
 0x121   : > { %v1539_v59 = vpop.f32.mrf.mxu0  ;;  %v1587_v60 = vpop.f32.mrf.mxu1 }
 0x122   : > { %v1417_v61 = vpack.c.bf16 %v966_v55, %v965_v50  ;;  %v1457_v62 = vpack.c.bf16 %v982_v56, %v981_v51  ;;  %v935_v63 = vadd.f32 %v1538_v57, %v1853_v53  ;;  %v951_v0 = vadd.f32 %v1586_v58, %v1853_v53 }
 0x123   : > { %v1540_v1 = vpop.f32.mrf.mxu0  ;;  %v1588_v2 = vpop.f32.mrf.mxu1 }
 0x124   : > { %1473 = vst [vmem:[%s1863_s8 + $0x28] sm:$0xff] %v1417_v61   ;;  %1481 = vst [vmem:[%s1863_s8 + $0x68] sm:$0xff] %v1457_v62   ;;  %v1541_v3 = vadd.f32 %v1540_v1, %v1539_v59  ;;  %v1589_v4 = vadd.f32 %v1588_v2, %v1587_v60  ;;  %v967_v9 = vmax.f32 %v935_v63, 0.0  ;;  %v983_v10 = vmax.f32 %v951_v0, 0.0 }
 0x125   : > { %v1542_v5 = vpop.f32.mrf.mxu0  ;;  %v1590_v6 = vpop.f32.mrf.mxu1 }
 0x126   : > { %v936_v7 = vadd.f32 %v1541_v3, %v1853_v53  ;;  %v952_v8 = vadd.f32 %v1589_v4, %v1853_v53 }
 0x127   : > { %v1543_v11 = vpop.f32.mrf.mxu0  ;;  %v1591_v12 = vpop.f32.mrf.mxu1 }
 0x128   : > { %v968_v13 = vmax.f32 %v936_v7, 0.0  ;;  %v984_v14 = vmax.f32 %v952_v8, 0.0  ;;  %v1544_v15 = vadd.f32 %v1543_v11, %v1542_v5  ;;  %v1592_v16 = vadd.f32 %v1591_v12, %v1590_v6 }
 0x129   : > { %v1545_v17 = vpop.f32.mrf.mxu0  ;;  %v1593_v18 = vpop.f32.mrf.mxu1 }
 0x12a   : > { %v1422_v19 = vpack.c.bf16 %v968_v13, %v967_v9  ;;  %v1462_v20 = vpack.c.bf16 %v984_v14, %v983_v10  ;;  %v937_v23 = vadd.f32 %v1544_v15, %v1853_v53  ;;  %v953_v24 = vadd.f32 %v1592_v16, %v1853_v53 }
 0x12b   : > { %v1546_v21 = vpop.f32.mrf.mxu0  ;;  %v1594_v22 = vpop.f32.mrf.mxu1 }
 0x12c   : > { %1474 = vst [vmem:[%s1863_s8 + $0x30] sm:$0xff] %v1422_v19   ;;  %1482 = vst [vmem:[%s1863_s8 + $0x70] sm:$0xff] %v1462_v20   ;;  %v1547_v25 = vadd.f32 %v1546_v21, %v1545_v17  ;;  %v1595_v26 = vadd.f32 %v1594_v22, %v1593_v18  ;;  %v969_v29 = vmax.f32 %v937_v23, 0.0  ;;  %v985_v30 = vmax.f32 %v953_v24, 0.0 }
 0x12e   : > { %v938_v27 = vadd.f32 %v1547_v25, %v1853_v53  ;;  %v954_v28 = vadd.f32 %v1595_v26, %v1853_v53 }
 0x130   : > { %v970_v31 = vmax.f32 %v938_v27, 0.0  ;;  %v986_v32 = vmax.f32 %v954_v28, 0.0 }
 0x132   : > { %v1427_v33 = vpack.c.bf16 %v970_v31, %v969_v29  ;;  %v1467_v34 = vpack.c.bf16 %v986_v32, %v985_v30 }
 0x134   : > { %1475 = vst [vmem:[%s1863_s8 + $0x38] sm:$0xff] %v1427_v33   ;;  %1483 = vst [vmem:[%s1863_s8 + $0x78] sm:$0xff] %v1467_v34  }
 0x135 PF: > { %s13_s14 = sadd.s32 1, %s1722_s14   ;;  %s1922_s12 = smov %s1718_s13 }
 0x136   : > { %p10_p5 = scmp.ge.s32.totalorder %s13_s14, 4   ;;  %s1923_s13 = smov %s1925_s15 }
 0x138   :  { %12 = sbr.rel (!%p10_p5) target bundleno = 2 (0x2), region = 76 }

// kernel: resnet18_forward.24
= control target key start
LH: loop header
LB: loop body
LE: loop exit
PB: predicated region body
PF: predicated region fallthrough
CT: control target
= control target key end

     0   :  { %vm1033_vm0 = vcmask 1044480   ;;  %vm1034_vm1 = vsmask.f32 4352  ;;  %vm2956_vm3 = vcmask 1041409   ;;  %vm2958_vm4 = vcmask 1042434   ;;  %s5637_s0 = inlined_call_operand.vmem [shape: bf16[128,9,128], index: 0, kind: input, shape index: {}]   ;;  %s5638_s1 = inlined_call_operand.vmem [shape: bf16[128,128], index: 1, kind: output, shape index: {}]  }
   0x1   :  { %v3383_v0 = vld [vmem:[%s5637_s0] sm:$0x1f]   ;;  %v3384_v1 = vld [vmem:[%s5637_s0 + $0x8] sm:$0x1f]   ;;  %v3385_v2 = vld [vmem:[%s5637_s0 + $0x10] sm:$0x1f]  }
   0x2   :  { %v3386_v3 = vld [vmem:[%s5637_s0 + $0x18] sm:$0x1f]   ;;  %v3387_v4 = vld [vmem:[%s5637_s0 + $0x20] sm:$0x1f]   ;;  %v3388_v5 = vld [vmem:[%s5637_s0 + $0x28] sm:$0x1f]  }
   0x3   :  { %vm3539_vm2 = vmand %vm1033_vm0, %vm1034_vm1  ;;  %v3389_v14 = vld [vmem:[%s5637_s0 + $0x30] sm:$0x1f]   ;;  %v3390_v27 = vld [vmem:[%s5637_s0 + $0x38] sm:$0x1f]   ;;  %vm2960_vm5 = vcmask 1043459   ;;  %vm2962_vm6 = vcmask 1044484  }
   0x4   :  { %v1036_v7 = vsel %vm3539_vm2, %v3383_v0, 4286644096  ;;  %v1047_v8 = vsel %vm3539_vm2, %v3384_v1, 4286644096  ;;  %v1058_v9 = vsel %vm3539_vm2, %v3385_v2, 4286644096 }
   0x5   :  { %v1037_v10 = vunpack.i.l.bf16 %v1036_v7  ;;  %v1038_v11 = vunpack.i.h.bf16 %v1036_v7  ;;  %v1048_v12 = vunpack.i.l.bf16 %v1047_v8  ;;  %v1049_v13 = vunpack.i.h.bf16 %v1047_v8 }
   0x6   :  { %v1059_v15 = vunpack.i.l.bf16 %v1058_v9  ;;  %v1060_v16 = vunpack.i.h.bf16 %v1058_v9  ;;  %v1069_v17 = vsel %vm3539_vm2, %v3386_v3, 4286644096  ;;  %v1080_v18 = vsel %vm3539_vm2, %v3387_v4, 4286644096  ;;  %v3391_v4 = vld [vmem:[%s5637_s0 + $0x40] sm:$0x1f]  }
   0x7   :  { %v1039_v19 = vmax.f32 %v1037_v10, %v1038_v11  ;;  %v1050_v20 = vmax.f32 %v1048_v12, %v1049_v13  ;;  %v1070_v21 = vunpack.i.l.bf16 %v1069_v17  ;;  %v1071_v22 = vunpack.i.h.bf16 %v1069_v17 }
   0x8   :  { %v1061_v23 = vmax.f32 %v1059_v15, %v1060_v16  ;;  %v1081_v24 = vunpack.i.l.bf16 %v1080_v18  ;;  %v1082_v25 = vunpack.i.h.bf16 %v1080_v18  ;;  %v1091_v26 = vsel %vm3539_vm2, %v3388_v5, 4286644096  ;;  %v3392_v5 = vld [vmem:[%s5637_s0 + $0x48] sm:$0x1f]  }
   0x9   :  { %v1040_v28 = vrot.slane %v1039_v19, 4  ;;  %v1051_v29 = vrot.slane %v1050_v20, 4  ;;  %v1072_v30 = vmax.f32 %v1070_v21, %v1071_v22  ;;  %v1092_v31 = vunpack.i.l.bf16 %v1091_v26 }
   0xa   :  { %v1062_v32 = vrot.slane %v1061_v23, 4  ;;  %v1083_v33 = vmax.f32 %v1081_v24, %v1082_v25  ;;  %v1093_v34 = vunpack.i.h.bf16 %v1091_v26  ;;  %v1102_v35 = vsel %vm3539_vm2, %v3389_v14, 4286644096 }
   0xb   :  { %v1041_v36 = vmax.f32 %v1039_v19, %v1040_v28  ;;  %v1052_v37 = vmax.f32 %v1050_v20, %v1051_v29  ;;  %v1073_v38 = vrot.slane %v1072_v30, 4  ;;  %v1103_v39 = vunpack.i.l.bf16 %v1102_v35  ;;  %v3393_v19 = vld [vmem:[%s5637_s0 + $0x50] sm:$0x1f]   ;;  %v3394_v20 = vld [vmem:[%s5637_s0 + $0x58] sm:$0x1f]  }
   0xc   :  { %v1063_v40 = vmax.f32 %v1061_v23, %v1062_v32  ;;  %v1084_v41 = vrot.slane %v1083_v33, 4  ;;  %v1094_v42 = vmax.f32 %v1092_v31, %v1093_v34  ;;  %v1104_v43 = vunpack.i.h.bf16 %v1102_v35 }
   0xd   :  { %v1042_v44 = vrot.slane %v1041_v36, 2  ;;  %v1053_v45 = vrot.slane %v1052_v37, 2  ;;  %v1074_v46 = vmax.f32 %v1072_v30, %v1073_v38  ;;  %v1113_v47 = vsel %vm3539_vm2, %v3390_v27, 4286644096 }
   0xe   :  { %v1064_v48 = vrot.slane %v1063_v40, 2  ;;  %v1085_v49 = vmax.f32 %v1083_v33, %v1084_v41  ;;  %v1095_v50 = vrot.slane %v1094_v42, 4  ;;  %v1105_v51 = vmax.f32 %v1103_v39, %v1104_v43  ;;  %v3395_v33 = vld [vmem:[%s5637_s0 + $0x60] sm:$0x1f]  }
   0xf   :  { %v1043_v52 = vmax.f32 %v1041_v36, %v1042_v44  ;;  %v1054_v53 = vmax.f32 %v1052_v37, %v1053_v45  ;;  %v1075_v54 = vrot.slane %v1074_v46, 2  ;;  %v1114_v55 = vunpack.i.l.bf16 %v1113_v47 }
  0x10   :  { %v1065_v56 = vmax.f32 %v1063_v40, %v1064_v48  ;;  %v1086_v57 = vrot.slane %v1085_v49, 2  ;;  %v1096_v58 = vmax.f32 %v1094_v42, %v1095_v50  ;;  %v1106_v59 = vrot.slane %v1105_v51, 4  ;;  %v3396_v42 = vld [vmem:[%s5637_s0 + $0x68] sm:$0x1f]  }
  0x11   :  { %v1044_v60 = vrot.slane %v1043_v52, 1  ;;  %v1055_v61 = vrot.slane %v1054_v53, 1  ;;  %v1076_v62 = vmax.f32 %v1074_v46, %v1075_v54  ;;  %v1115_v63 = vunpack.i.h.bf16 %v1113_v47 }
  0x12   :  { %v1066_v0 = vrot.slane %v1065_v56, 1  ;;  %v1087_v1 = vmax.f32 %v1085_v49, %v1086_v57  ;;  %v1097_v2 = vrot.slane %v1096_v58, 2  ;;  %v1107_v3 = vmax.f32 %v1105_v51, %v1106_v59 }
  0x13   :  { %v1045_v7 = vmax.f32 %v1043_v52, %v1044_v60  ;;  %v1056_v8 = vmax.f32 %v1054_v53, %v1055_v61  ;;  %v1077_v9 = vrot.slane %v1076_v62, 1  ;;  %v1116_v10 = vmax.f32 %v1114_v55, %v1115_v63  ;;  %v3397_v55 = vld [vmem:[%s5637_s0 + $0x70] sm:$0x1f]  }
  0x14   :  { %v1067_v11 = vmax.f32 %v1065_v56, %v1066_v0  ;;  %v1088_v12 = vrot.slane %v1087_v1, 1  ;;  %v1098_v13 = vmax.f32 %v1096_v58, %v1097_v2  ;;  %v1108_v14 = vrot.slane %v1107_v3, 2 }
  0x15   :  { %v3571_v15 = vpack.i.bf16 %v1045_v7, %v1045_v7  ;;  %v3573_v16 = vpack.i.bf16 %v1056_v8, %v1056_v8  ;;  %v1078_v17 = vmax.f32 %v1076_v62, %v1077_v9  ;;  %v1117_v18 = vrot.slane %v1116_v10, 4 }
  0x16   :  { %v3581_v21 = vpack.i.bf16 %v1067_v11, %v1067_v11  ;;  %v1089_v22 = vmax.f32 %v1087_v1, %v1088_v12  ;;  %v1099_v23 = vrot.slane %v1098_v13, 1  ;;  %v1109_v24 = vmax.f32 %v1107_v3, %v1108_v14 }
  0x17   :  { %v3583_v25 = vpack.i.bf16 %v1078_v17, %v1078_v17  ;;  %v1118_v26 = vmax.f32 %v1116_v10, %v1117_v18  ;;  %v1124_v27 = vsel %vm3539_vm2, %v3391_v4, 4286644096  ;;  %v1135_v28 = vsel %vm3539_vm2, %v3392_v5, 4286644096  ;;  %v3398_v4 = vld [vmem:[%s5637_s0 + $0x78] sm:$0x1f]  }
  0x18   :  { %v3589_v29 = vpack.i.bf16 %v1089_v22, %v1089_v22  ;;  %v1100_v30 = vmax.f32 %v1098_v13, %v1099_v23  ;;  %v1110_v31 = vrot.slane %v1109_v24, 1  ;;  %v1125_v32 = vunpack.i.l.bf16 %v1124_v27 }
  0x19   :  { %v1119_v34 = vrot.slane %v1118_v26, 2  ;;  %v1126_v35 = vunpack.i.h.bf16 %v1124_v27  ;;  %v1136_v36 = vunpack.i.l.bf16 %v1135_v28  ;;  %v1137_v37 = vunpack.i.h.bf16 %v1135_v28 }
  0x1a   :  { %v3594_v38 = vpack.i.bf16 %v1100_v30, %v1100_v30  ;;  %v1111_v39 = vmax.f32 %v1109_v24, %v1110_v31  ;;  %v1146_v40 = vsel %vm3539_vm2, %v3393_v19, 4286644096  ;;  %v1157_v41 = vsel %vm3539_vm2, %v3394_v20, 4286644096 }
  0x1b   :  { %v1120_v43 = vmax.f32 %v1118_v26, %v1119_v34  ;;  %v1127_v44 = vmax.f32 %v1125_v32, %v1126_v35  ;;  %v1138_v45 = vmax.f32 %v1136_v36, %v1137_v37  ;;  %v1147_v46 = vunpack.i.l.bf16 %v1146_v40  ;;  %v3399_v35 = vld [vmem:[%s5637_s0 + $0x80] sm:$0x1f]   ;;  %v3400_v36 = vld [vmem:[%s5637_s0 + $0x88] sm:$0x1f]  }
  0x1c   :  { %v3603_v47 = vpack.i.bf16 %v1111_v39, %v1111_v39  ;;  %v1148_v48 = vunpack.i.h.bf16 %v1146_v40  ;;  %v1158_v49 = vunpack.i.l.bf16 %v1157_v41  ;;  %v1159_v50 = vunpack.i.h.bf16 %v1157_v41 }
  0x1d   :  { %v1121_v51 = vrot.slane %v1120_v43, 1  ;;  %v1128_v52 = vrot.slane %v1127_v44, 4  ;;  %v1139_v53 = vrot.slane %v1138_v45, 4  ;;  %v1168_v54 = vsel %vm3539_vm2, %v3395_v33, 4286644096 }
  0x1e   :  { %v1149_v56 = vmax.f32 %v1147_v46, %v1148_v48  ;;  %v1160_v57 = vmax.f32 %v1158_v49, %v1159_v50  ;;  %v1169_v58 = vunpack.i.l.bf16 %v1168_v54  ;;  %v1170_v59 = vunpack.i.h.bf16 %v1168_v54 }
  0x1f   :  { %v1122_v60 = vmax.f32 %v1120_v43, %v1121_v51  ;;  %v1129_v61 = vmax.f32 %v1127_v44, %v1128_v52  ;;  %v1140_v62 = vmax.f32 %v1138_v45, %v1139_v53  ;;  %v1179_v63 = vsel %vm3539_vm2, %v3396_v42, 4286644096 }
  0x20   :  { %v1150_v0 = vrot.slane %v1149_v56, 4  ;;  %v1161_v1 = vrot.slane %v1160_v57, 4  ;;  %v1171_v2 = vmax.f32 %v1169_v58, %v1170_v59  ;;  %v1180_v3 = vunpack.i.l.bf16 %v1179_v63 }
  0x21   :  { %v3615_v5 = vpack.i.bf16 %v1122_v60, %v1122_v60  ;;  %v1130_v7 = vrot.slane %v1129_v61, 2  ;;  %v1141_v8 = vrot.slane %v1140_v62, 2  ;;  %v1181_v9 = vunpack.i.h.bf16 %v1179_v63 }
  0x22   :  { %v1151_v10 = vmax.f32 %v1149_v56, %v1150_v0  ;;  %v1162_v11 = vmax.f32 %v1160_v57, %v1161_v1  ;;  %v1172_v12 = vrot.slane %v1171_v2, 4  ;;  %v1190_v13 = vsel %vm3539_vm2, %v3397_v55, 4286644096  ;;  %v3401_v55 = vld [vmem:[%s5637_s0 + $0x90] sm:$0x1f]  }
  0x23   :  { %v1131_v14 = vmax.f32 %v1129_v61, %v1130_v7  ;;  %v1142_v17 = vmax.f32 %v1140_v62, %v1141_v8  ;;  %v1182_v18 = vmax.f32 %v1180_v3, %v1181_v9  ;;  %v1191_v19 = vunpack.i.l.bf16 %v1190_v13  ;;  %v3402_v0 = vld [vmem:[%s5637_s0 + $0x98] sm:$0x1f]  }
  0x24   :  { %v1152_v20 = vrot.slane %v1151_v10, 2  ;;  %v1163_v22 = vrot.slane %v1162_v11, 2  ;;  %v1173_v23 = vmax.f32 %v1171_v2, %v1172_v12  ;;  %v1192_v24 = vunpack.i.h.bf16 %v1190_v13 }
  0x25   :  { %v1132_v26 = vrot.slane %v1131_v14, 1  ;;  %v1143_v27 = vrot.slane %v1142_v17, 1  ;;  %v1183_v28 = vrot.slane %v1182_v18, 4  ;;  %v1201_v30 = vsel %vm3539_vm2, %v3398_v4, 4286644096 }
  0x26   :  { %v1153_v31 = vmax.f32 %v1151_v10, %v1152_v20  ;;  %v1164_v32 = vmax.f32 %v1162_v11, %v1163_v22  ;;  %v1174_v33 = vrot.slane %v1173_v23, 2  ;;  %v1193_v34 = vmax.f32 %v1191_v19, %v1192_v24  ;;  %v3403_v11 = vld [vmem:[%s5637_s0 + $0xa0] sm:$0x1f]  }
  0x27   :  { %v1133_v37 = vmax.f32 %v1131_v14, %v1132_v26  ;;  %v1144_v39 = vmax.f32 %v1142_v17, %v1143_v27  ;;  %v1184_v40 = vmax.f32 %v1182_v18, %v1183_v28  ;;  %v1202_v41 = vunpack.i.l.bf16 %v1201_v30  ;;  %v3404_v28 = vld [vmem:[%s5637_s0 + $0xa8] sm:$0x1f]  }
  0x28   :  { %v1154_v42 = vrot.slane %v1153_v31, 1  ;;  %v1165_v43 = vrot.slane %v1164_v32, 1  ;;  %v1175_v44 = vmax.f32 %v1173_v23, %v1174_v33  ;;  %v1194_v45 = vrot.slane %v1193_v34, 4 }
  0x29   :  { %v3627_v46 = vpack.i.bf16 %v1133_v37, %v1133_v37  ;;  %v3629_v48 = vpack.i.bf16 %v1144_v39, %v1144_v39  ;;  %v1185_v49 = vrot.slane %v1184_v40, 2  ;;  %v1203_v50 = vunpack.i.h.bf16 %v1201_v30  ;;  %v3405_v30 = vld [vmem:[%s5637_s0 + $0xb0] sm:$0x1f]  }
  0x2a   :  { %v1155_v51 = vmax.f32 %v1153_v31, %v1154_v42  ;;  %v1166_v52 = vmax.f32 %v1164_v32, %v1165_v43  ;;  %v1176_v53 = vrot.slane %v1175_v44, 1  ;;  %v1195_v54 = vmax.f32 %v1193_v34, %v1194_v45 }
  0x2b   :  { %v1186_v56 = vmax.f32 %v1184_v40, %v1185_v49  ;;  %v1204_v57 = vmax.f32 %v1202_v41, %v1203_v50  ;;  %v1212_v58 = vsel %vm3539_vm2, %v3399_v35, 4286644096  ;;  %v1223_v59 = vsel %vm3539_vm2, %v3400_v36, 4286644096 }
  0x2c   :  { %v3638_v60 = vpack.i.bf16 %v1155_v51, %v1155_v51  ;;  %v3640_v61 = vpack.i.bf16 %v1166_v52, %v1166_v52  ;;  %v1177_v62 = vmax.f32 %v1175_v44, %v1176_v53  ;;  %v1196_v63 = vrot.slane %v1195_v54, 2 }
  0x2d   :  { %v1187_v1 = vrot.slane %v1186_v56, 1  ;;  %v1205_v2 = vrot.slane %v1204_v57, 4  ;;  %v1213_v3 = vunpack.i.l.bf16 %v1212_v58  ;;  %v1214_v4 = vunpack.i.h.bf16 %v1212_v58 }
  0x2e   :  { %v3645_v7 = vpack.i.bf16 %v1177_v62, %v1177_v62  ;;  %v1197_v8 = vmax.f32 %v1195_v54, %v1196_v63  ;;  %v1224_v9 = vunpack.i.l.bf16 %v1223_v59  ;;  %v1225_v10 = vunpack.i.h.bf16 %v1223_v59  ;;  %v3406_v59 = vld [vmem:[%s5637_s0 + $0xb8] sm:$0x1f]  }
  0x2f   :  { %v1188_v12 = vmax.f32 %v1186_v56, %v1187_v1  ;;  %v1206_v13 = vmax.f32 %v1204_v57, %v1205_v2  ;;  %v1215_v14 = vmax.f32 %v1213_v3, %v1214_v4  ;;  %v1234_v17 = vsel %vm3539_vm2, %v3401_v55, 4286644096 }
  0x30   :  { %v1198_v18 = vrot.slane %v1197_v8, 1  ;;  %v1226_v19 = vmax.f32 %v1224_v9, %v1225_v10  ;;  %v1235_v20 = vunpack.i.l.bf16 %v1234_v17  ;;  %v1236_v22 = vunpack.i.h.bf16 %v1234_v17 }
  0x31   :  { %v3652_v23 = vpack.i.bf16 %v1188_v12, %v1188_v12  ;;  %v1207_v24 = vrot.slane %v1206_v13, 2  ;;  %v1216_v26 = vrot.slane %v1215_v14, 4  ;;  %v1245_v27 = vsel %vm3539_vm2, %v3402_v0, 4286644096 }
  0x32   :  { %v1199_v31 = vmax.f32 %v1197_v8, %v1198_v18  ;;  %v1227_v32 = vrot.slane %v1226_v19, 4  ;;  %v1237_v33 = vmax.f32 %v1235_v20, %v1236_v22  ;;  %v1246_v34 = vunpack.i.l.bf16 %v1245_v27  ;;  %v3408_v20 = vld [vmem:[%s5637_s0 + $0xc8] sm:$0x1f]  }
  0x33   :  { %v1208_v35 = vmax.f32 %v1206_v13, %v1207_v24  ;;  %v1217_v36 = vmax.f32 %v1215_v14, %v1216_v26  ;;  %v1247_v37 = vunpack.i.h.bf16 %v1245_v27  ;;  %v1256_v39 = vsel %vm3539_vm2, %v3403_v11, 4286644096  ;;  %v3407_v13 = vld [vmem:[%s5637_s0 + $0xc0] sm:$0x1f]  }
  0x34   :  { %v3664_v40 = vpack.i.bf16 %v1199_v31, %v1199_v31  ;;  %v1228_v41 = vmax.f32 %v1226_v19, %v1227_v32  ;;  %v1238_v42 = vrot.slane %v1237_v33, 4  ;;  %v1257_v43 = vunpack.i.l.bf16 %v1256_v39 }
  0x35   :  { %v1209_v44 = vrot.slane %v1208_v35, 1  ;;  %v1218_v45 = vrot.slane %v1217_v36, 2  ;;  %v1248_v49 = vmax.f32 %v1246_v34, %v1247_v37  ;;  %v1258_v50 = vunpack.i.h.bf16 %v1256_v39  ;;  %v3409_v37 = vld [vmem:[%s5637_s0 + $0xd0] sm:$0x1f]  }
  0x36   :  { %v1229_v51 = vrot.slane %v1228_v41, 2  ;;  %v1239_v52 = vmax.f32 %v1237_v33, %v1238_v42  ;;  %v1267_v53 = vsel %vm3539_vm2, %v3404_v28, 4286644096  ;;  %v1278_v54 = vsel %vm3539_vm2, %v3405_v30, 4286644096 }
  0x37   :  { %v1210_v55 = vmax.f32 %v1208_v35, %v1209_v44  ;;  %v1219_v56 = vmax.f32 %v1217_v36, %v1218_v45  ;;  %v1249_v57 = vrot.slane %v1248_v49, 4  ;;  %v1259_v58 = vmax.f32 %v1257_v43, %v1258_v50 }
  0x38   :  { %v1230_v62 = vmax.f32 %v1228_v41, %v1229_v51  ;;  %v1240_v63 = vrot.slane %v1239_v52, 2  ;;  %v1268_v0 = vunpack.i.l.bf16 %v1267_v53  ;;  %v1269_v1 = vunpack.i.h.bf16 %v1267_v53 }
  0x39   :  { %v3673_v2 = vpack.i.bf16 %v1210_v55, %v1210_v55  ;;  %v1220_v3 = vrot.slane %v1219_v56, 1  ;;  %v1250_v4 = vmax.f32 %v1248_v49, %v1249_v57  ;;  %v1260_v8 = vrot.slane %v1259_v58, 4 }
  0x3a   :  { %v1231_v9 = vrot.slane %v1230_v62, 1  ;;  %v1241_v10 = vmax.f32 %v1239_v52, %v1240_v63  ;;  %v1270_v11 = vmax.f32 %v1268_v0, %v1269_v1  ;;  %v1279_v12 = vunpack.i.l.bf16 %v1278_v54 }
  0x3b   :  { %v1221_v14 = vmax.f32 %v1219_v56, %v1220_v3  ;;  %v1251_v17 = vrot.slane %v1250_v4, 2  ;;  %v1261_v18 = vmax.f32 %v1259_v58, %v1260_v8  ;;  %v1280_v19 = vunpack.i.h.bf16 %v1278_v54 }
  0x3c   :  { %v1232_v22 = vmax.f32 %v1230_v62, %v1231_v9  ;;  %v1242_v24 = vrot.slane %v1241_v10, 1  ;;  %v1271_v26 = vrot.slane %v1270_v11, 4  ;;  %v1289_v27 = vsel %vm3539_vm2, %v3406_v59, 4286644096  ;;  %v3410_v59 = vld [vmem:[%s5637_s0 + $0xd8] sm:$0x1f]  }
  0x3d   :  { %v3683_v28 = vpack.i.bf16 %v1221_v14, %v1221_v14  ;;  %v1252_v30 = vmax.f32 %v1250_v4, %v1251_v17  ;;  %v1262_v31 = vrot.slane %v1261_v18, 2  ;;  %v1281_v32 = vmax.f32 %v1279_v12, %v1280_v19  ;;  %v3411_v62 = vld [vmem:[%s5637_s0 + $0xe0] sm:$0x1f]  }
  0x3e   :  { %v3685_v33 = vpack.i.bf16 %v1232_v22, %v1232_v22  ;;  %v1243_v34 = vmax.f32 %v1241_v10, %v1242_v24  ;;  %v1272_v35 = vmax.f32 %v1270_v11, %v1271_v26  ;;  %v1290_v36 = vunpack.i.l.bf16 %v1289_v27 }
  0x3f   :  { %v1253_v39 = vrot.slane %v1252_v30, 1  ;;  %v1263_v41 = vmax.f32 %v1261_v18, %v1262_v31  ;;  %v1282_v42 = vrot.slane %v1281_v32, 4  ;;  %v1291_v43 = vunpack.i.h.bf16 %v1289_v27 }
  0x40   :  { %v3690_v44 = vpack.i.bf16 %v1243_v34, %v1243_v34  ;;  %v1273_v45 = vrot.slane %v1272_v35, 2  ;;  %v1300_v49 = vsel %vm3539_vm2, %v3407_v13, 4286644096  ;;  %v1311_v50 = vsel %vm3539_vm2, %v3408_v20, 4286644096 }
  0x41   :  { %v1254_v51 = vmax.f32 %v1252_v30, %v1253_v39  ;;  %v1264_v52 = vrot.slane %v1263_v41, 1  ;;  %v1283_v53 = vmax.f32 %v1281_v32, %v1282_v42  ;;  %v1292_v54 = vmax.f32 %v1290_v36, %v1291_v43  ;;  %v3412_v30 = vld [vmem:[%s5637_s0 + $0xe8] sm:$0x1f]  }
  0x42   :  { %v1274_v55 = vmax.f32 %v1272_v35, %v1273_v45  ;;  %v1301_v56 = vunpack.i.l.bf16 %v1300_v49  ;;  %v1302_v57 = vunpack.i.h.bf16 %v1300_v49  ;;  %v1312_v58 = vunpack.i.l.bf16 %v1311_v50 }
  0x43   :  { %v3702_v63 = vpack.i.bf16 %v1254_v51, %v1254_v51  ;;  %v1265_v0 = vmax.f32 %v1263_v41, %v1264_v52  ;;  %v1284_v1 = vrot.slane %v1283_v53, 2  ;;  %v1293_v3 = vrot.slane %v1292_v54, 4 }
  0x44   :  { %v1275_v4 = vrot.slane %v1274_v55, 1  ;;  %v1303_v8 = vmax.f32 %v1301_v56, %v1302_v57  ;;  %v1313_v9 = vunpack.i.h.bf16 %v1311_v50  ;;  %v1322_v10 = vsel %vm3539_vm2, %v3409_v37, 4286644096  ;;  %v3413_v50 = vld [vmem:[%s5637_s0 + $0xf0] sm:$0x1f]  }
  0x45   :  { %v3706_v11 = vpack.i.bf16 %v1265_v0, %v1265_v0  ;;  %v1285_v12 = vmax.f32 %v1283_v53, %v1284_v1  ;;  %v1294_v13 = vmax.f32 %v1292_v54, %v1293_v3  ;;  %v1323_v14 = vunpack.i.l.bf16 %v1322_v10 }
  0x46   :  { %v1276_v17 = vmax.f32 %v1274_v55, %v1275_v4  ;;  %v1304_v18 = vrot.slane %v1303_v8, 4  ;;  %v1314_v19 = vmax.f32 %v1312_v58, %v1313_v9  ;;  %v1324_v20 = vunpack.i.h.bf16 %v1322_v10  ;;  %v3414_v10 = vld [vmem:[%s5637_s0 + $0xf8] sm:$0x1f]  }
  0x47   :  { %v1286_v22 = vrot.slane %v1285_v12, 1  ;;  %v1295_v24 = vrot.slane %v1294_v13, 2  ;;  %v1333_v26 = vsel %vm3539_vm2, %v3410_v59, 4286644096  ;;  %v1344_v27 = vsel %vm3539_vm2, %v3411_v62, 4286644096 }
  0x48   :  { %v3715_v31 = vpack.i.bf16 %v1276_v17, %v1276_v17  ;;  %v1305_v32 = vmax.f32 %v1303_v8, %v1304_v18  ;;  %v1315_v34 = vrot.slane %v1314_v19, 4  ;;  %v1325_v35 = vmax.f32 %v1323_v14, %v1324_v20 }
  0x49   :  { %v1287_v36 = vmax.f32 %v1285_v12, %v1286_v22  ;;  %v1296_v37 = vmax.f32 %v1294_v13, %v1295_v24  ;;  %v1334_v39 = vunpack.i.l.bf16 %v1333_v26  ;;  %v1335_v41 = vunpack.i.h.bf16 %v1333_v26 }
  0x4a   :  { %v1306_v42 = vrot.slane %v1305_v32, 2  ;;  %v1316_v43 = vmax.f32 %v1314_v19, %v1315_v34  ;;  %v1326_v45 = vrot.slane %v1325_v35, 4  ;;  %v1345_v49 = vunpack.i.l.bf16 %v1344_v27  ;;  %v3416_v34 = vld [vmem:[%s5637_s0 + $0x108] sm:$0x1f]  }
  0x4b   :  { %v3720_v51 = vpack.i.bf16 %v1287_v36, %v1287_v36  ;;  %v1297_v52 = vrot.slane %v1296_v37, 1  ;;  %v1336_v53 = vmax.f32 %v1334_v39, %v1335_v41  ;;  %v1346_v54 = vunpack.i.h.bf16 %v1344_v27 }
  0x4c   :  { %v1307_v55 = vmax.f32 %v1305_v32, %v1306_v42  ;;  %v1317_v56 = vrot.slane %v1316_v43, 2  ;;  %v1327_v57 = vmax.f32 %v1325_v35, %v1326_v45  ;;  %v1355_v58 = vsel %vm3539_vm2, %v3412_v30, 4286644096  ;;  %v3415_v32 = vld [vmem:[%s5637_s0 + $0x100] sm:$0x1f]  }
  0x4d   :  { %v1298_v59 = vmax.f32 %v1296_v37, %v1297_v52  ;;  %v1337_v62 = vrot.slane %v1336_v53, 4  ;;  %v1347_v0 = vmax.f32 %v1345_v49, %v1346_v54  ;;  %v1356_v1 = vunpack.i.l.bf16 %v1355_v58  ;;  %v3417_v54 = vld [vmem:[%s5637_s0 + $0x110] sm:$0x1f]  }
  0x4e   :  { %v1308_v3 = vrot.slane %v1307_v55, 1  ;;  %v1318_v4 = vmax.f32 %v1316_v43, %v1317_v56  ;;  %v1328_v8 = vrot.slane %v1327_v57, 2  ;;  %v1357_v9 = vunpack.i.h.bf16 %v1355_v58 }
  0x4f   :  { %v3727_v12 = vpack.i.bf16 %v1298_v59, %v1298_v59  ;;  %v1338_v13 = vmax.f32 %v1336_v53, %v1337_v62  ;;  %v1348_v14 = vrot.slane %v1347_v0, 4  ;;  %v1366_v17 = vsel %vm3539_vm2, %v3413_v50, 4286644096 }
  0x50   :  { %v1309_v18 = vmax.f32 %v1307_v55, %v1308_v3  ;;  %v1319_v19 = vrot.slane %v1318_v4, 1  ;;  %v1329_v20 = vmax.f32 %v1327_v57, %v1328_v8  ;;  %v1358_v22 = vmax.f32 %v1356_v1, %v1357_v9 }
  0x51   :  { %v1339_v24 = vrot.slane %v1338_v13, 2  ;;  %v1349_v26 = vmax.f32 %v1347_v0, %v1348_v14  ;;  %v1367_v27 = vunpack.i.l.bf16 %v1366_v17  ;;  %v1368_v30 = vunpack.i.h.bf16 %v1366_v17 }
  0x52   :  { %v3737_v35 = vpack.i.bf16 %v1309_v18, %v1309_v18  ;;  %v1320_v36 = vmax.f32 %v1318_v4, %v1319_v19  ;;  %v1330_v37 = vrot.slane %v1329_v20, 1  ;;  %v1359_v39 = vrot.slane %v1358_v22, 4  ;;  %v3418_v18 = vld [vmem:[%s5637_s0 + $0x118] sm:$0x1f]   ;;  %v3419_v19 = vld [vmem:[%s5637_s0 + $0x120] sm:$0x1f]  }
  0x53   :  { %v1340_v41 = vmax.f32 %v1338_v13, %v1339_v24  ;;  %v1350_v42 = vrot.slane %v1349_v26, 2  ;;  %v1369_v43 = vmax.f32 %v1367_v27, %v1368_v30  ;;  %v1377_v45 = vsel %vm3539_vm2, %v3414_v10, 4286644096 }
  0x54   :  { %v3741_v49 = vpack.i.bf16 %v1320_v36, %v1320_v36  ;;  %v1331_v50 = vmax.f32 %v1329_v20, %v1330_v37  ;;  %v1360_v52 = vmax.f32 %v1358_v22, %v1359_v39  ;;  %v1378_v53 = vunpack.i.l.bf16 %v1377_v45 }
  0x55   :  { %v1341_v55 = vrot.slane %v1340_v41, 1  ;;  %v1351_v56 = vmax.f32 %v1349_v26, %v1350_v42  ;;  %v1370_v57 = vrot.slane %v1369_v43, 4  ;;  %v1379_v58 = vunpack.i.h.bf16 %v1377_v45 }
  0x56   :  { %v3746_v59 = vpack.i.bf16 %v1331_v50, %v1331_v50  ;;  %v1361_v62 = vrot.slane %v1360_v52, 2  ;;  %v1388_v0 = vsel %vm3539_vm2, %v3415_v32, 4286644096  ;;  %v1399_v1 = vsel %vm3539_vm2, %v3416_v34, 4286644096 }
  0x57   :  { %v1342_v3 = vmax.f32 %v1340_v41, %v1341_v55  ;;  %v1352_v4 = vrot.slane %v1351_v56, 1  ;;  %v1371_v8 = vmax.f32 %v1369_v43, %v1370_v57  ;;  %v1380_v9 = vmax.f32 %v1378_v53, %v1379_v58 }
  0x58   :  { %v1362_v10 = vmax.f32 %v1360_v52, %v1361_v62  ;;  %v1389_v13 = vunpack.i.l.bf16 %v1388_v0  ;;  %v1390_v14 = vunpack.i.h.bf16 %v1388_v0  ;;  %v1400_v17 = vunpack.i.l.bf16 %v1399_v1 }
  0x59   :  { %v3758_v20 = vpack.i.bf16 %v1342_v3, %v1342_v3  ;;  %v1353_v22 = vmax.f32 %v1351_v56, %v1352_v4  ;;  %v1372_v24 = vrot.slane %v1371_v8, 2  ;;  %v1381_v26 = vrot.slane %v1380_v9, 4 }
  0x5a   :  { %v1363_v27 = vrot.slane %v1362_v10, 1  ;;  %v1391_v30 = vmax.f32 %v1389_v13, %v1390_v14  ;;  %v1401_v32 = vunpack.i.h.bf16 %v1399_v1  ;;  %v1410_v34 = vsel %vm3539_vm2, %v3417_v54, 4286644096  ;;  %v3420_v54 = vld [vmem:[%s5637_s0 + $0x128] sm:$0x1f]  }
  0x5b   :  { %v3762_v36 = vpack.i.bf16 %v1353_v22, %v1353_v22  ;;  %v1373_v37 = vmax.f32 %v1371_v8, %v1372_v24  ;;  %v1382_v39 = vmax.f32 %v1380_v9, %v1381_v26  ;;  %v1411_v41 = vunpack.i.l.bf16 %v1410_v34 }
  0x5c   :  { %v1364_v42 = vmax.f32 %v1362_v10, %v1363_v27  ;;  %v1392_v43 = vrot.slane %v1391_v30, 4  ;;  %v1402_v45 = vmax.f32 %v1400_v17, %v1401_v32  ;;  %v1412_v50 = vunpack.i.h.bf16 %v1410_v34  ;;  %v3421_v17 = vld [vmem:[%s5637_s0 + $0x130] sm:$0x1f]  }
  0x5d   :  { %v1374_v52 = vrot.slane %v1373_v37, 1  ;;  %v1383_v53 = vrot.slane %v1382_v39, 2  ;;  %v1421_v55 = vsel %vm3539_vm2, %v3418_v18, 4286644096  ;;  %v1432_v56 = vsel %vm3539_vm2, %v3419_v19, 4286644096 }
  0x5e   :  { %v3771_v57 = vpack.i.bf16 %v1364_v42, %v1364_v42  ;;  %v1393_v58 = vmax.f32 %v1391_v30, %v1392_v43  ;;  %v1403_v62 = vrot.slane %v1402_v45, 4  ;;  %v1413_v0 = vmax.f32 %v1411_v41, %v1412_v50 }
  0x5f   :  { %v1375_v1 = vmax.f32 %v1373_v37, %v1374_v52  ;;  %v1384_v3 = vmax.f32 %v1382_v39, %v1383_v53  ;;  %v1422_v4 = vunpack.i.l.bf16 %v1421_v55  ;;  %v1423_v8 = vunpack.i.h.bf16 %v1421_v55  ;;  %v3422_v52 = vld [vmem:[%s5637_s0 + $0x138] sm:$0x1f]  }
  0x60   :  { %v1394_v9 = vrot.slane %v1393_v58, 2  ;;  %v1404_v10 = vmax.f32 %v1402_v45, %v1403_v62  ;;  %v1414_v13 = vrot.slane %v1413_v0, 4  ;;  %v1433_v14 = vunpack.i.l.bf16 %v1432_v56 }
  0x61   :  { %v3776_v18 = vpack.i.bf16 %v1375_v1, %v1375_v1  ;;  %v1385_v19 = vrot.slane %v1384_v3, 1  ;;  %v1424_v22 = vmax.f32 %v1422_v4, %v1423_v8  ;;  %v1434_v24 = vunpack.i.h.bf16 %v1432_v56 }
  0x62   :  { %v1395_v26 = vmax.f32 %v1393_v58, %v1394_v9  ;;  %v1405_v27 = vrot.slane %v1404_v10, 2  ;;  %v1415_v30 = vmax.f32 %v1413_v0, %v1414_v13  ;;  %v1443_v32 = vsel %vm3539_vm2, %v3420_v54, 4286644096  ;;  %v3424_v13 = vld [vmem:[%s5637_s0 + $0x148] sm:$0x1f]  }
  0x63   :  { %v1386_v34 = vmax.f32 %v1384_v3, %v1385_v19  ;;  %v1425_v37 = vrot.slane %v1424_v22, 4  ;;  %v1435_v39 = vmax.f32 %v1433_v14, %v1434_v24  ;;  %v1444_v41 = vunpack.i.l.bf16 %v1443_v32 }
  0x64   :  { %v1396_v42 = vrot.slane %v1395_v26, 1  ;;  %v1406_v43 = vmax.f32 %v1404_v10, %v1405_v27  ;;  %v1416_v45 = vrot.slane %v1415_v30, 2  ;;  %v1445_v50 = vunpack.i.h.bf16 %v1443_v32  ;;  %v3423_v10 = vld [vmem:[%s5637_s0 + $0x140] sm:$0x1f]  }
  0x65   :  { %v3783_v53 = vpack.i.bf16 %v1386_v34, %v1386_v34  ;;  %v1426_v55 = vmax.f32 %v1424_v22, %v1425_v37  ;;  %v1436_v56 = vrot.slane %v1435_v39, 4  ;;  %v1454_v58 = vsel %vm3539_vm2, %v3421_v17, 4286644096 }
  0x66   :  { %v1397_v54 = vmax.f32 %v1395_v26, %v1396_v42  ;;  %v1407_v62 = vrot.slane %v1406_v43, 1  ;;  %v1417_v0 = vmax.f32 %v1415_v30, %v1416_v45  ;;  %v1446_v1 = vmax.f32 %v1444_v41, %v1445_v50  ;;  %v3425_v41 = vld [vmem:[%s5637_s0 + $0x150] sm:$0x1f]  }
  0x67   :  { %v1427_v3 = vrot.slane %v1426_v55, 2  ;;  %v1437_v4 = vmax.f32 %v1435_v39, %v1436_v56  ;;  %v1455_v8 = vunpack.i.l.bf16 %v1454_v58  ;;  %v1456_v9 = vunpack.i.h.bf16 %v1454_v58 }
  0x68   :  { %v3793_v14 = vpack.i.bf16 %v1397_v54, %v1397_v54  ;;  %v1408_v19 = vmax.f32 %v1406_v43, %v1407_v62  ;;  %v1418_v17 = vrot.slane %v1417_v0, 1  ;;  %v1447_v22 = vrot.slane %v1446_v1, 4 }
  0x69   :  { %v1428_v24 = vmax.f32 %v1426_v55, %v1427_v3  ;;  %v1438_v26 = vrot.slane %v1437_v4, 2  ;;  %v1457_v27 = vmax.f32 %v1455_v8, %v1456_v9  ;;  %v1465_v30 = vsel %vm3539_vm2, %v3422_v52, 4286644096 }
  0x6a   :  { %v3797_v32 = vpack.i.bf16 %v1408_v19, %v1408_v19  ;;  %v1419_v34 = vmax.f32 %v1417_v0, %v1418_v17  ;;  %v1448_v37 = vmax.f32 %v1446_v1, %v1447_v22  ;;  %v1466_v39 = vunpack.i.l.bf16 %v1465_v30  ;;  %v3427_v17 = vld [vmem:[%s5637_s0 + $0x160] sm:$0x1f]  }
  0x6b   :  { %v1429_v42 = vrot.slane %v1428_v24, 1  ;;  %v1439_v45 = vmax.f32 %v1437_v4, %v1438_v26  ;;  %v1458_v43 = vrot.slane %v1457_v27, 4  ;;  %v1467_v50 = vunpack.i.h.bf16 %v1465_v30  ;;  %v3426_v4 = vld [vmem:[%s5637_s0 + $0x158] sm:$0x1f]  }
  0x6c   :  { %v3802_v56 = vpack.i.bf16 %v1419_v34, %v1419_v34  ;;  %v1449_v55 = vrot.slane %v1448_v37, 2  ;;  %v1476_v58 = vsel %vm3539_vm2, %v3423_v10, 4286644096  ;;  %v1487_v52 = vsel %vm3539_vm2, %v3424_v13, 4286644096 }
  0x6d   :  { %v1430_v54 = vmax.f32 %v1428_v24, %v1429_v42  ;;  %v1440_v62 = vrot.slane %v1439_v45, 1  ;;  %v1459_v0 = vmax.f32 %v1457_v27, %v1458_v43  ;;  %v1468_v1 = vmax.f32 %v1466_v39, %v1467_v50 }
  0x6e   :  { %5731 = vst [vmem:[#allocation2_spill] sm:$0xff] %v3802_v56  ;;  %v1450_v3 = vmax.f32 %v1448_v37, %v1449_v55  ;;  %v1477_v8 = vunpack.i.l.bf16 %v1476_v58  ;;  %v1478_v9 = vunpack.i.h.bf16 %v1476_v58  ;;  %v1488_v19 = vunpack.i.l.bf16 %v1487_v52 }
  0x6f   :  { %v3814_v10 = vpack.i.bf16 %v1430_v54, %v1430_v54  ;;  %v1441_v22 = vmax.f32 %v1439_v45, %v1440_v62  ;;  %v1460_v13 = vrot.slane %v1459_v0, 2  ;;  %v1469_v24 = vrot.slane %v1468_v1, 4 }
  0x70   :  { %v1451_v26 = vrot.slane %v1450_v3, 1  ;;  %v1479_v27 = vmax.f32 %v1477_v8, %v1478_v9  ;;  %v1489_v30 = vunpack.i.h.bf16 %v1487_v52  ;;  %v1498_v34 = vsel %vm3539_vm2, %v3425_v41, 4286644096  ;;  %v3428_v41 = vld [vmem:[%s5637_s0 + $0x168] sm:$0x1f]  }
  0x71   :  { %5732 = vst [vmem:[#allocation3_spill] sm:$0xff] %v3814_v10  ;;  %v3818_v37 = vpack.i.bf16 %v1441_v22, %v1441_v22  ;;  %v1461_v39 = vmax.f32 %v1459_v0, %v1460_v13  ;;  %v1470_v42 = vmax.f32 %v1468_v1, %v1469_v24  ;;  %v1499_v43 = vunpack.i.l.bf16 %v1498_v34 }
  0x72   :  { %v1452_v50 = vmax.f32 %v1450_v3, %v1451_v26  ;;  %v1480_v55 = vrot.slane %v1479_v27, 4  ;;  %v1490_v58 = vmax.f32 %v1488_v19, %v1489_v30  ;;  %v1500_v56 = vunpack.i.h.bf16 %v1498_v34 }
  0x73   :  { %5733 = vst [vmem:[#allocation4_spill] sm:$0xff] %v3818_v37  ;;  %v1462_v54 = vrot.slane %v1461_v39, 1  ;;  %v1471_v10 = vrot.slane %v1470_v42, 2  ;;  %v1509_v45 = vsel %vm3539_vm2, %v3426_v4, 4286644096  ;;  %vm2964_vm7 = vcmask 1045509  }
  0x74   :  { %v1520_v52 = vsel %vm3539_vm2, %v3427_v17, 4286644096  ;;  %v3827_v62 = vpack.i.bf16 %v1452_v50, %v1452_v50  ;;  %v1481_v0 = vmax.f32 %v1479_v27, %v1480_v55  ;;  %v1491_v1 = vrot.slane %v1490_v58, 4  ;;  %v3429_v17 = vld [vmem:[%s5637_s0 + $0x170] sm:$0x1f]  }
  0x75   :  { %v1501_v3 = vmax.f32 %v1499_v43, %v1500_v56  ;;  %v1463_v8 = vmax.f32 %v1461_v39, %v1462_v54  ;;  %v1472_v9 = vmax.f32 %v1470_v42, %v1471_v10  ;;  %v1510_v19 = vunpack.i.l.bf16 %v1509_v45 }
  0x76   :  { %5734 = vst [vmem:[#allocation5_spill] sm:$0xff] %v3827_v62  ;;  %v1511_v22 = vunpack.i.h.bf16 %v1509_v45  ;;  %v1482_v13 = vrot.slane %v1481_v0, 2  ;;  %v1492_v24 = vmax.f32 %v1490_v58, %v1491_v1  ;;  %v1521_v4 = vunpack.i.l.bf16 %v1520_v52 }
  0x77   :  { %v1502_v26 = vrot.slane %v1501_v3, 4  ;;  %v3832_v30 = vpack.i.bf16 %v1463_v8, %v1463_v8  ;;  %v1473_v34 = vrot.slane %v1472_v9, 1  ;;  %v1522_v62 = vunpack.i.h.bf16 %v1520_v52  ;;  %v3430_v8 = vld [vmem:[%s5637_s0 + $0x178] sm:$0x1f]  }
  0x78   :  { %v1512_v50 = vmax.f32 %v1510_v19, %v1511_v22  ;;  %v1483_v27 = vmax.f32 %v1481_v0, %v1482_v13  ;;  %v1493_v55 = vrot.slane %v1492_v24, 2  ;;  %v1531_v10 = vsel %vm3539_vm2, %v3428_v41, 4286644096 }
  0x79   :  { %5735 = vst [vmem:[#allocation6_spill] sm:$0xff] %v3832_v30  ;;  %v1503_v56 = vmax.f32 %v1501_v3, %v1502_v26  ;;  %v1474_v39 = vmax.f32 %v1472_v9, %v1473_v34  ;;  %v1523_v43 = vmax.f32 %v1521_v4, %v1522_v62  ;;  %v1532_v58 = vunpack.i.l.bf16 %v1531_v10  ;;  %v3431_v34 = vld [vmem:[%s5637_s0 + $0x180] sm:$0x1f]  }
  0x7a   :  { %v1513_v42 = vrot.slane %v1512_v50, 4  ;;  %v1484_v54 = vrot.slane %v1483_v27, 1  ;;  %v1494_v45 = vmax.f32 %v1492_v24, %v1493_v55  ;;  %v1533_v37 = vunpack.i.h.bf16 %v1531_v10 }
  0x7b   :  { %v1504_v1 = vrot.slane %v1503_v56, 2  ;;  %v3839_v19 = vpack.i.bf16 %v1474_v39, %v1474_v39  ;;  %v1524_v0 = vrot.slane %v1523_v43, 4  ;;  %v1542_v3 = vsel %vm3539_vm2, %v3429_v17, 4286644096 }
  0x7c   :  { %v1514_v52 = vmax.f32 %v1512_v50, %v1513_v42  ;;  %v1485_v41 = vmax.f32 %v1483_v27, %v1484_v54  ;;  %v1495_v9 = vrot.slane %v1494_v45, 1  ;;  %v1534_v62 = vmax.f32 %v1532_v58, %v1533_v37  ;;  %v3432_v50 = vld [vmem:[%s5637_s0 + $0x188] sm:$0x1f]  }
  0x7d   :  { %5736 = vst [vmem:[#allocation7_spill] sm:$0xff] %v3839_v19  ;;  %v1505_v22 = vmax.f32 %v1503_v56, %v1504_v1  ;;  %v1525_v26 = vmax.f32 %v1523_v43, %v1524_v0  ;;  %v1543_v24 = vunpack.i.l.bf16 %v1542_v3  ;;  %v1544_v4 = vunpack.i.h.bf16 %v1542_v3  ;;  %v3433_v0 = vld [vmem:[%s5637_s0 + $0x190] sm:$0x1f]  }
  0x7e   :  { %v1515_v13 = vrot.slane %v1514_v52, 2  ;;  %v3849_v55 = vpack.i.bf16 %v1485_v41, %v1485_v41  ;;  %v1496_v10 = vmax.f32 %v1494_v45, %v1495_v9  ;;  %v1535_v27 = vrot.slane %v1534_v62, 4 }
  0x7f   :  { %v1506_v17 = vrot.slane %v1505_v22, 1  ;;  %v1526_v56 = vrot.slane %v1525_v26, 2  ;;  %v1545_v37 = vmax.f32 %v1543_v24, %v1544_v4  ;;  %v1553_v42 = vsel %vm3539_vm2, %v3430_v8, 4286644096 }
  0x80   :  { %5737 = vst [vmem:[#allocation8_spill] sm:$0xff] %v3849_v55  ;;  %v1516_v39 = vmax.f32 %v1514_v52, %v1515_v13  ;;  %v3853_v43 = vpack.i.bf16 %v1496_v10, %v1496_v10  ;;  %v1536_v54 = vmax.f32 %v1534_v62, %v1535_v27  ;;  %v1554_v1 = vunpack.i.l.bf16 %v1553_v42 }
  0x81   :  { %v1507_v58 = vmax.f32 %v1505_v22, %v1506_v17  ;;  %v1527_v41 = vmax.f32 %v1525_v26, %v1526_v56  ;;  %v1546_v45 = vrot.slane %v1545_v37, 4  ;;  %v1555_v9 = vunpack.i.h.bf16 %v1553_v42  ;;  %v3434_v26 = vld [vmem:[%s5637_s0 + $0x198] sm:$0x1f]   ;;  %v3435_v56 = vld [vmem:[%s5637_s0 + $0x1a0] sm:$0x1f]  }
  0x82   :  { %5738 = vst [vmem:[#allocation9_spill] sm:$0xff] %v3853_v43  ;;  %v1517_v3 = vrot.slane %v1516_v39, 1  ;;  %v1537_v52 = vrot.slane %v1536_v54, 2  ;;  %v1564_v13 = vsel %vm3539_vm2, %v3431_v34, 4286644096  ;;  %vm2966_vm8 = vcmask 1046534  }
  0x83   :  { %v3858_v55 = vpack.i.bf16 %v1507_v58, %v1507_v58  ;;  %v1575_v8 = vsel %vm3539_vm2, %v3432_v50, 4286644096  ;;  %v1528_v62 = vrot.slane %v1527_v41, 1  ;;  %v1547_v24 = vmax.f32 %v1545_v37, %v1546_v45 }
  0x84   :  { %v1518_v22 = vmax.f32 %v1516_v39, %v1517_v3  ;;  %v1556_v4 = vmax.f32 %v1554_v1, %v1555_v9  ;;  %v1538_v10 = vmax.f32 %v1536_v54, %v1537_v52  ;;  %v1565_v17 = vunpack.i.l.bf16 %v1564_v13 }
  0x85   :  { %5739 = vst [vmem:[#allocation10_spill] sm:$0xff] %v3858_v55  ;;  %v1566_v27 = vunpack.i.h.bf16 %v1564_v13  ;;  %v1576_v43 = vunpack.i.l.bf16 %v1575_v8  ;;  %v1529_v42 = vmax.f32 %v1527_v41, %v1528_v62  ;;  %v1548_v50 = vrot.slane %v1547_v24, 2 }
  0x86   :  { %v3870_v34 = vpack.i.bf16 %v1518_v22, %v1518_v22  ;;  %v1557_v39 = vrot.slane %v1556_v4, 4  ;;  %v1539_v58 = vrot.slane %v1538_v10, 1  ;;  %v1577_v1 = vunpack.i.h.bf16 %v1575_v8 }
  0x87   :  { %v1567_v37 = vmax.f32 %v1565_v17, %v1566_v27  ;;  %v1586_v54 = vsel %vm3539_vm2, %v3433_v0, 4286644096  ;;  %v3874_v3 = vpack.i.bf16 %v1529_v42, %v1529_v42  ;;  %v1549_v45 = vmax.f32 %v1547_v24, %v1548_v50  ;;  %v3436_v0 = vld [vmem:[%s5637_s0 + $0x1a8] sm:$0x1f]  }
  0x88   :  { %5740 = vst [vmem:[#allocation11_spill] sm:$0xff] %v3870_v34  ;;  %v1558_v9 = vmax.f32 %v1556_v4, %v1557_v39  ;;  %v1587_v52 = vunpack.i.l.bf16 %v1586_v54  ;;  %v1540_v13 = vmax.f32 %v1538_v10, %v1539_v58  ;;  %v1578_v19 = vmax.f32 %v1576_v43, %v1577_v1 }
  0x89   :  { %5741 = vst [vmem:[#allocation12_spill] sm:$0xff] %v3874_v3  ;;  %v1568_v55 = vrot.slane %v1567_v37, 4  ;;  %v1588_v30 = vunpack.i.h.bf16 %v1586_v54  ;;  %v1550_v22 = vrot.slane %v1549_v45, 1  ;;  %v1597_v41 = vsel %vm3539_vm2, %v3434_v26, 4286644096 }
  0x8a   :  { %v1559_v34 = vrot.slane %v1558_v9, 2  ;;  %v1608_v8 = vsel %vm3539_vm2, %v3435_v56, 4286644096  ;;  %v3883_v62 = vpack.i.bf16 %v1540_v13, %v1540_v13  ;;  %v1579_v4 = vrot.slane %v1578_v19, 4  ;;  %v3437_v56 = vld [vmem:[%s5637_s0 + $0x1b0] sm:$0x1f]  }
  0x8b   :  { %v1569_v24 = vmax.f32 %v1567_v37, %v1568_v55  ;;  %v1589_v10 = vmax.f32 %v1587_v52, %v1588_v30  ;;  %v1551_v17 = vmax.f32 %v1549_v45, %v1550_v22  ;;  %v1598_v27 = vunpack.i.l.bf16 %v1597_v41 }
  0x8c   :  { %5742 = vst [vmem:[#allocation13_spill] sm:$0xff] %v3883_v62  ;;  %v1560_v43 = vmax.f32 %v1558_v9, %v1559_v34  ;;  %v1599_v42 = vunpack.i.h.bf16 %v1597_v41  ;;  %v1580_v39 = vmax.f32 %v1578_v19, %v1579_v4  ;;  %v1609_v26 = vunpack.i.l.bf16 %v1608_v8 }
  0x8d   :  { %v1570_v50 = vrot.slane %v1569_v24, 2  ;;  %v1590_v58 = vrot.slane %v1589_v10, 4  ;;  %v3888_v1 = vpack.i.bf16 %v1551_v17, %v1551_v17  ;;  %v1610_v62 = vunpack.i.h.bf16 %v1608_v8  ;;  %v3438_v17 = vld [vmem:[%s5637_s0 + $0x1b8] sm:$0x1f]  }
  0x8e   :  { %v1561_v54 = vrot.slane %v1560_v43, 1  ;;  %v1600_v13 = vmax.f32 %v1598_v27, %v1599_v42  ;;  %v1581_v37 = vrot.slane %v1580_v39, 2  ;;  %v1619_v34 = vsel %vm3539_vm2, %v3436_v0, 4286644096 }
  0x8f   :  { %5743 = vst [vmem:[#allocation14_spill] sm:$0xff] %v3888_v1  ;;  %v1571_v55 = vmax.f32 %v1569_v24, %v1570_v50  ;;  %v1591_v30 = vmax.f32 %v1589_v10, %v1590_v58  ;;  %v1611_v19 = vmax.f32 %v1609_v26, %v1610_v62  ;;  %v1620_v52 = vunpack.i.l.bf16 %v1619_v34 }
  0x90   :  { %v1562_v45 = vmax.f32 %v1560_v43, %v1561_v54  ;;  %v1601_v9 = vrot.slane %v1600_v13, 4  ;;  %v1582_v41 = vmax.f32 %v1580_v39, %v1581_v37  ;;  %v1621_v3 = vunpack.i.h.bf16 %v1619_v34  ;;  %v3439_v54 = vld [vmem:[%s5637_s0 + $0x1c0] sm:$0x1f]  }
  0x91   :  { %v1572_v22 = vrot.slane %v1571_v55, 1  ;;  %v1592_v4 = vrot.slane %v1591_v30, 2  ;;  %v1612_v24 = vrot.slane %v1611_v19, 4  ;;  %v1630_v10 = vsel %vm3539_vm2, %v3437_v56, 4286644096 }
  0x92   :  { %v3895_v27 = vpack.i.bf16 %v1562_v45, %v1562_v45  ;;  %v1602_v8 = vmax.f32 %v1600_v13, %v1601_v9  ;;  %v1583_v43 = vrot.slane %v1582_v41, 1  ;;  %v1622_v62 = vmax.f32 %v1620_v52, %v1621_v3  ;;  %v3440_v13 = vld [vmem:[%s5637_s0 + $0x1c8] sm:$0x1f]  }
  0x93   :  { %v1573_v0 = vmax.f32 %v1571_v55, %v1572_v22  ;;  %v1593_v42 = vmax.f32 %v1591_v30, %v1592_v4  ;;  %v1613_v58 = vmax.f32 %v1611_v19, %v1612_v24  ;;  %v1631_v39 = vunpack.i.l.bf16 %v1630_v10  ;;  %v3441_v24 = vld [vmem:[%s5637_s0 + $0x1d0] sm:$0x1f]  }
  0x94   :  { %5744 = vst [vmem:[#allocation15_spill] sm:$0xff] %v3895_v27  ;;  %v1603_v50 = vrot.slane %v1602_v8, 2  ;;  %v1632_v26 = vunpack.i.h.bf16 %v1630_v10  ;;  %v1584_v34 = vmax.f32 %v1582_v41, %v1583_v43  ;;  %v1623_v55 = vrot.slane %v1622_v62, 4 }
  0x95   :  { %v3905_v37 = vpack.i.bf16 %v1573_v0, %v1573_v0  ;;  %v1594_v56 = vrot.slane %v1593_v42, 1  ;;  %v1614_v30 = vrot.slane %v1613_v58, 2  ;;  %v1641_v9 = vsel %vm3539_vm2, %v3438_v17, 4286644096 }
  0x96   :  { %v1604_v45 = vmax.f32 %v1602_v8, %v1603_v50  ;;  %v1633_v3 = vmax.f32 %v1631_v39, %v1632_v26  ;;  %v3909_v19 = vpack.i.bf16 %v1584_v34, %v1584_v34  ;;  %v1624_v22 = vmax.f32 %v1622_v62, %v1623_v55 }
  0x97   :  { %5745 = vst [vmem:[#allocation16_spill] sm:$0xff] %v3905_v37  ;;  %v1595_v52 = vmax.f32 %v1593_v42, %v1594_v56  ;;  %v1642_v4 = vunpack.i.l.bf16 %v1641_v9  ;;  %v1615_v0 = vmax.f32 %v1613_v58, %v1614_v30  ;;  %v1643_v43 = vunpack.i.h.bf16 %v1641_v9  ;;  %v3442_v58 = vld [vmem:[%s5637_s0 + $0x1d8] sm:$0x1f]   ;;  %v3443_v30 = vld [vmem:[%s5637_s0 + $0x1e0] sm:$0x1f]  }
  0x98   :  { %5746 = vst [vmem:[#allocation17_spill] sm:$0xff] %v3909_v19  ;;  %v1605_v10 = vrot.slane %v1604_v45, 1  ;;  %v1634_v41 = vrot.slane %v1633_v3, 4  ;;  %v1625_v8 = vrot.slane %v1624_v22, 2  ;;  %v1652_v50 = vsel %vm3539_vm2, %v3439_v54, 4286644096 }
  0x99   :  { %v3914_v37 = vpack.i.bf16 %v1595_v52, %v1595_v52  ;;  %v1663_v17 = vsel %vm3539_vm2, %v3440_v13, 4286644096  ;;  %v1616_v62 = vrot.slane %v1615_v0, 1  ;;  %v1644_v26 = vmax.f32 %v1642_v4, %v1643_v43 }
  0x9a   :  { %v1606_v42 = vmax.f32 %v1604_v45, %v1605_v10  ;;  %v1635_v39 = vmax.f32 %v1633_v3, %v1634_v41  ;;  %v1626_v34 = vmax.f32 %v1624_v22, %v1625_v8  ;;  %v1653_v56 = vunpack.i.l.bf16 %v1652_v50 }
  0x9b   :  { %5747 = vst [vmem:[#allocation18_spill] sm:$0xff] %v3914_v37  ;;  %v1654_v55 = vunpack.i.h.bf16 %v1652_v50  ;;  %v1664_v19 = vunpack.i.l.bf16 %v1663_v17  ;;  %v1617_v9 = vmax.f32 %v1615_v0, %v1616_v62  ;;  %v1645_v45 = vrot.slane %v1644_v26, 4 }
  0x9c   :  { %v3926_v54 = vpack.i.bf16 %v1606_v42, %v1606_v42  ;;  %v1636_v13 = vrot.slane %v1635_v39, 2  ;;  %v1627_v52 = vrot.slane %v1626_v34, 1  ;;  %v1665_v4 = vunpack.i.h.bf16 %v1663_v17 }
  0x9d   :  { %v1655_v3 = vmax.f32 %v1653_v56, %v1654_v55  ;;  %v1674_v22 = vsel %vm3539_vm2, %v3441_v24, 4286644096  ;;  %v3930_v10 = vpack.i.bf16 %v1617_v9, %v1617_v9  ;;  %v1646_v43 = vmax.f32 %v1644_v26, %v1645_v45  ;;  %v3444_v24 = vld [vmem:[%s5637_s0 + $0x1e8] sm:$0x1f]  }
  0x9e   :  { %5748 = vst [vmem:[#allocation19_spill] sm:$0xff] %v3926_v54  ;;  %v1637_v41 = vmax.f32 %v1635_v39, %v1636_v13  ;;  %v1675_v8 = vunpack.i.l.bf16 %v1674_v22  ;;  %v1628_v50 = vmax.f32 %v1626_v34, %v1627_v52  ;;  %v1666_v27 = vmax.f32 %v1664_v19, %v1665_v4 }
  0x9f   :  { %5749 = vst [vmem:[#allocation20_spill] sm:$0xff] %v3930_v10  ;;  %v1656_v37 = vrot.slane %v1655_v3, 4  ;;  %v1676_v1 = vunpack.i.h.bf16 %v1674_v22  ;;  %v1647_v54 = vrot.slane %v1646_v43, 2  ;;  %v1685_v0 = vsel %vm3539_vm2, %v3442_v58, 4286644096 }
  0xa0   :  { %v1638_v42 = vrot.slane %v1637_v41, 1  ;;  %v1696_v17 = vsel %vm3539_vm2, %v3443_v30, 4286644096  ;;  %v3939_v62 = vpack.i.bf16 %v1628_v50, %v1628_v50  ;;  %v1667_v26 = vrot.slane %v1666_v27, 4  ;;  %v3445_v30 = vld [vmem:[%s5637_s0 + $0x1f0] sm:$0x1f]  }
  0xa1   :  { %v1657_v39 = vmax.f32 %v1655_v3, %v1656_v37  ;;  %v1677_v34 = vmax.f32 %v1675_v8, %v1676_v1  ;;  %v1648_v19 = vmax.f32 %v1646_v43, %v1647_v54  ;;  %v1686_v55 = vunpack.i.l.bf16 %v1685_v0 }
  0xa2   :  { %5750 = vst [vmem:[#allocation21_spill] sm:$0xff] %v3939_v62  ;;  %v1639_v56 = vmax.f32 %v1637_v41, %v1638_v42  ;;  %v1687_v9 = vunpack.i.h.bf16 %v1685_v0  ;;  %v1668_v45 = vmax.f32 %v1666_v27, %v1667_v26  ;;  %v1697_v58 = vunpack.i.l.bf16 %v1696_v17 }
  0xa3   :  { %v1658_v13 = vrot.slane %v1657_v39, 2  ;;  %v1678_v52 = vrot.slane %v1677_v34, 4  ;;  %v1649_v22 = vrot.slane %v1648_v19, 1  ;;  %v1698_v62 = vunpack.i.h.bf16 %v1696_v17 }
  0xa4   :  { %v3944_v4 = vpack.i.bf16 %v1639_v56, %v1639_v56  ;;  %v1688_v50 = vmax.f32 %v1686_v55, %v1687_v9  ;;  %v1669_v3 = vrot.slane %v1668_v45, 2  ;;  %v1707_v54 = vsel %vm3539_vm2, %v3444_v24, 4286644096  ;;  %v3446_v56 = vld [vmem:[%s5637_s0 + $0x1f8] sm:$0x1f]  }
  0xa5   :  { %v1659_v37 = vmax.f32 %v1657_v39, %v1658_v13  ;;  %v1679_v1 = vmax.f32 %v1677_v34, %v1678_v52  ;;  %v1650_v41 = vmax.f32 %v1648_v19, %v1649_v22  ;;  %v1699_v27 = vmax.f32 %v1697_v58, %v1698_v62  ;;  %v3447_v22 = vld [vmem:[%s5637_s0 + $0x200] sm:$0x1f]  }
  0xa6   :  { %5751 = vst [vmem:[#allocation22_spill] sm:$0xff] %v3944_v4  ;;  %v1689_v43 = vrot.slane %v1688_v50, 4  ;;  %v1708_v8 = vunpack.i.l.bf16 %v1707_v54  ;;  %v1670_v0 = vmax.f32 %v1668_v45, %v1669_v3  ;;  %v1709_v10 = vunpack.i.h.bf16 %v1707_v54 }
  0xa7   :  { %v1660_v42 = vrot.slane %v1659_v37, 1  ;;  %v1680_v26 = vrot.slane %v1679_v1, 2  ;;  %v3951_v55 = vpack.i.bf16 %v1650_v41, %v1650_v41  ;;  %v1700_v39 = vrot.slane %v1699_v27, 4 }
  0xa8   :  { %v1690_v17 = vmax.f32 %v1688_v50, %v1689_v43  ;;  %v1718_v34 = vsel %vm3539_vm2, %v3445_v30, 4286644096  ;;  %v1671_v19 = vrot.slane %v1670_v0, 1  ;;  %v1710_v62 = vmax.f32 %v1708_v8, %v1709_v10  ;;  %v3448_v50 = vld [vmem:[%s5637_s0 + $0x208] sm:$0x1f]  }
  0xa9   :  { %5752 = vst [vmem:[#allocation23_spill] sm:$0xff] %v3951_v55  ;;  %v1661_v24 = vmax.f32 %v1659_v37, %v1660_v42  ;;  %v1681_v9 = vmax.f32 %v1679_v1, %v1680_v26  ;;  %v1701_v52 = vmax.f32 %v1699_v27, %v1700_v39  ;;  %v1719_v45 = vunpack.i.l.bf16 %v1718_v34  ;;  %v3449_v39 = vld [vmem:[%s5637_s0 + $0x210] sm:$0x1f]  }
  0xaa   :  { %v1691_v13 = vrot.slane %v1690_v17, 2  ;;  %v1720_v58 = vunpack.i.h.bf16 %v1718_v34  ;;  %v1672_v54 = vmax.f32 %v1670_v0, %v1671_v19  ;;  %v1711_v37 = vrot.slane %v1710_v62, 4 }
  0xab   :  { %v3961_v3 = vpack.i.bf16 %v1661_v24, %v1661_v24  ;;  %v1682_v30 = vrot.slane %v1681_v9, 1  ;;  %v1702_v1 = vrot.slane %v1701_v52, 2  ;;  %v1729_v43 = vsel %vm3539_vm2, %v3446_v56, 4286644096 }
  0xac   :  { %v1692_v41 = vmax.f32 %v1690_v17, %v1691_v13  ;;  %v1721_v10 = vmax.f32 %v1719_v45, %v1720_v58  ;;  %v3965_v27 = vpack.i.bf16 %v1672_v54, %v1672_v54  ;;  %v1712_v42 = vmax.f32 %v1710_v62, %v1711_v37 }
  0xad   :  { %5753 = vst [vmem:[#allocation24_spill] sm:$0xff] %v3961_v3  ;;  %v1683_v8 = vmax.f32 %v1681_v9, %v1682_v30  ;;  %v1730_v26 = vunpack.i.l.bf16 %v1729_v43  ;;  %v1703_v24 = vmax.f32 %v1701_v52, %v1702_v1  ;;  %v1731_v19 = vunpack.i.h.bf16 %v1729_v43  ;;  %v3450_v52 = vld [vmem:[%s5637_s0 + $0x218] sm:$0x1f]   ;;  %v3451_v1 = vld [vmem:[%s5637_s0 + $0x220] sm:$0x1f]  }
  0xae   :  { %5754 = vst [vmem:[#allocation25_spill] sm:$0xff] %v3965_v27  ;;  %v1693_v34 = vrot.slane %v1692_v41, 1  ;;  %v1722_v0 = vrot.slane %v1721_v10, 4  ;;  %v1713_v17 = vrot.slane %v1712_v42, 2  ;;  %v1740_v13 = vsel %vm3539_vm2, %v3447_v22, 4286644096 }
  0xaf   :  { %v3970_v3 = vpack.i.bf16 %v1683_v8, %v1683_v8  ;;  %v1751_v56 = vsel %vm3539_vm2, %v3448_v50, 4286644096  ;;  %v1704_v62 = vrot.slane %v1703_v24, 1  ;;  %v1732_v58 = vmax.f32 %v1730_v26, %v1731_v19 }
  0xb0   :  { %v1694_v9 = vmax.f32 %v1692_v41, %v1693_v34  ;;  %v1723_v45 = vmax.f32 %v1721_v10, %v1722_v0  ;;  %v1714_v54 = vmax.f32 %v1712_v42, %v1713_v17  ;;  %v1741_v30 = vunpack.i.l.bf16 %v1740_v13 }
  0xb1   :  { %5755 = vst [vmem:[#allocation26_spill] sm:$0xff] %v3970_v3  ;;  %v1742_v37 = vunpack.i.h.bf16 %v1740_v13  ;;  %v1752_v27 = vunpack.i.l.bf16 %v1751_v56  ;;  %v1705_v43 = vmax.f32 %v1703_v24, %v1704_v62  ;;  %v1733_v41 = vrot.slane %v1732_v58, 4 }
  0xb2   :  { %v3982_v22 = vpack.i.bf16 %v1694_v9, %v1694_v9  ;;  %v1724_v50 = vrot.slane %v1723_v45, 2  ;;  %v1715_v8 = vrot.slane %v1714_v54, 1  ;;  %v1753_v26 = vunpack.i.h.bf16 %v1751_v56 }
  0xb3   :  { %v1743_v10 = vmax.f32 %v1741_v30, %v1742_v37  ;;  %v1762_v42 = vsel %vm3539_vm2, %v3449_v39, 4286644096  ;;  %v3986_v34 = vpack.i.bf16 %v1705_v43, %v1705_v43  ;;  %v1734_v19 = vmax.f32 %v1732_v58, %v1733_v41  ;;  %v3452_v39 = vld [vmem:[%s5637_s0 + $0x228] sm:$0x1f]  }
  0xb4   :  { %5756 = vst [vmem:[#allocation27_spill] sm:$0xff] %v3982_v22  ;;  %v1725_v0 = vmax.f32 %v1723_v45, %v1724_v50  ;;  %v1763_v17 = vunpack.i.l.bf16 %v1762_v42  ;;  %v1716_v13 = vmax.f32 %v1714_v54, %v1715_v8  ;;  %v1754_v55 = vmax.f32 %v1752_v27, %v1753_v26 }
  0xb5   :  { %5757 = vst [vmem:[#allocation28_spill] sm:$0xff] %v3986_v34  ;;  %v1744_v3 = vrot.slane %v1743_v10, 4  ;;  %v1764_v4 = vunpack.i.h.bf16 %v1762_v42  ;;  %v1735_v22 = vrot.slane %v1734_v19, 2  ;;  %v1773_v24 = vsel %vm3539_vm2, %v3450_v52, 4286644096 }
  0xb6   :  { %v1726_v9 = vrot.slane %v1725_v0, 1  ;;  %v1784_v56 = vsel %vm3539_vm2, %v3451_v1, 4286644096  ;;  %v3995_v62 = vpack.i.bf16 %v1716_v13, %v1716_v13  ;;  %v1755_v58 = vrot.slane %v1754_v55, 4  ;;  %v3453_v1 = vld [vmem:[%s5637_s0 + $0x230] sm:$0x1f]  }
  0xb7   :  { %v1745_v45 = vmax.f32 %v1743_v10, %v1744_v3  ;;  %v1765_v54 = vmax.f32 %v1763_v17, %v1764_v4  ;;  %v1736_v27 = vmax.f32 %v1734_v19, %v1735_v22  ;;  %v1774_v37 = vunpack.i.l.bf16 %v1773_v24 }
  0xb8   :  { %5758 = vst [vmem:[#allocation29_spill] sm:$0xff] %v3995_v62  ;;  %v1727_v30 = vmax.f32 %v1725_v0, %v1726_v9  ;;  %v1775_v43 = vunpack.i.h.bf16 %v1773_v24  ;;  %v1756_v41 = vmax.f32 %v1754_v55, %v1755_v58  ;;  %v1785_v52 = vunpack.i.l.bf16 %v1784_v56 }
  0xb9   :  { %v1746_v50 = vrot.slane %v1745_v45, 2  ;;  %v1766_v8 = vrot.slane %v1765_v54, 4  ;;  %v1737_v42 = vrot.slane %v1736_v27, 1  ;;  %v1786_v62 = vunpack.i.h.bf16 %v1784_v56 }
  0xba   :  { %v4000_v26 = vpack.i.bf16 %v1727_v30, %v1727_v30  ;;  %v1776_v13 = vmax.f32 %v1774_v37, %v1775_v43  ;;  %v1757_v10 = vrot.slane %v1756_v41, 2  ;;  %v1795_v22 = vsel %vm3539_vm2, %v3452_v39, 4286644096  ;;  %v3454_v30 = vld [vmem:[%s5637_s0 + $0x238] sm:$0x1f]  }
  0xbb   :  { %v1747_v3 = vmax.f32 %v1745_v45, %v1746_v50  ;;  %v1767_v4 = vmax.f32 %v1765_v54, %v1766_v8  ;;  %v1738_v0 = vmax.f32 %v1736_v27, %v1737_v42  ;;  %v1787_v55 = vmax.f32 %v1785_v52, %v1786_v62  ;;  %v3455_v42 = vld [vmem:[%s5637_s0 + $0x240] sm:$0x1f]  }
  0xbc   :  { %5759 = vst [vmem:[#allocation30_spill] sm:$0xff] %v4000_v26  ;;  %v1777_v19 = vrot.slane %v1776_v13, 4  ;;  %v1796_v17 = vunpack.i.l.bf16 %v1795_v22  ;;  %v1758_v24 = vmax.f32 %v1756_v41, %v1757_v10  ;;  %v1797_v34 = vunpack.i.h.bf16 %v1795_v22 }
  0xbd   :  { %v1748_v9 = vrot.slane %v1747_v3, 1  ;;  %v1768_v58 = vrot.slane %v1767_v4, 2  ;;  %v4007_v37 = vpack.i.bf16 %v1738_v0, %v1738_v0  ;;  %v1788_v45 = vrot.slane %v1787_v55, 4 }
  0xbe   :  { %v1778_v56 = vmax.f32 %v1776_v13, %v1777_v19  ;;  %v1806_v54 = vsel %vm3539_vm2, %v3453_v1, 4286644096  ;;  %v1759_v27 = vrot.slane %v1758_v24, 1  ;;  %v1798_v62 = vmax.f32 %v1796_v17, %v1797_v34  ;;  %v3456_v13 = vld [vmem:[%s5637_s0 + $0x248] sm:$0x1f]  }
  0xbf   :  { %5760 = vst [vmem:[#allocation31_spill] sm:$0xff] %v4007_v37  ;;  %v1749_v39 = vmax.f32 %v1747_v3, %v1748_v9  ;;  %v1769_v43 = vmax.f32 %v1767_v4, %v1768_v58  ;;  %v1789_v8 = vmax.f32 %v1787_v55, %v1788_v45  ;;  %v1807_v41 = vunpack.i.l.bf16 %v1806_v54  ;;  %v3457_v45 = vld [vmem:[%s5637_s0 + $0x250] sm:$0x1f]  }
  0xc0   :  { %v1779_v50 = vrot.slane %v1778_v56, 2  ;;  %v1808_v52 = vunpack.i.h.bf16 %v1806_v54  ;;  %v1760_v22 = vmax.f32 %v1758_v24, %v1759_v27  ;;  %v1799_v3 = vrot.slane %v1798_v62, 4 }
  0xc1   :  { %v4017_v10 = vpack.i.bf16 %v1749_v39, %v1749_v39  ;;  %v1770_v1 = vrot.slane %v1769_v43, 1  ;;  %v1790_v4 = vrot.slane %v1789_v8, 2  ;;  %v1817_v19 = vsel %vm3539_vm2, %v3454_v30, 4286644096 }
  0xc2   :  { %v1780_v0 = vmax.f32 %v1778_v56, %v1779_v50  ;;  %v1809_v34 = vmax.f32 %v1807_v41, %v1808_v52  ;;  %v4021_v55 = vpack.i.bf16 %v1760_v22, %v1760_v22  ;;  %v1800_v9 = vmax.f32 %v1798_v62, %v1799_v3 }
  0xc3   :  { %5761 = vst [vmem:[#allocation32_spill] sm:$0xff] %v4017_v10  ;;  %v1771_v17 = vmax.f32 %v1769_v43, %v1770_v1  ;;  %v1818_v58 = vunpack.i.l.bf16 %v1817_v19  ;;  %v1791_v39 = vmax.f32 %v1789_v8, %v1790_v4  ;;  %v1819_v27 = vunpack.i.h.bf16 %v1817_v19  ;;  %v3458_v8 = vld [vmem:[%s5637_s0 + $0x258] sm:$0x1f]   ;;  %v3459_v4 = vld [vmem:[%s5637_s0 + $0x260] sm:$0x1f]  }
  0xc4   :  { %5762 = vst [vmem:[#allocation33_spill] sm:$0xff] %v4021_v55  ;;  %v1781_v54 = vrot.slane %v1780_v0, 1  ;;  %v1810_v24 = vrot.slane %v1809_v34, 4  ;;  %v1801_v56 = vrot.slane %v1800_v9, 2  ;;  %v1828_v50 = vsel %vm3539_vm2, %v3455_v42, 4286644096 }
  0xc5   :  { %v4026_v10 = vpack.i.bf16 %v1771_v17, %v1771_v17  ;;  %v1839_v30 = vsel %vm3539_vm2, %v3456_v13, 4286644096  ;;  %v1792_v62 = vrot.slane %v1791_v39, 1  ;;  %v1820_v52 = vmax.f32 %v1818_v58, %v1819_v27 }
  0xc6   :  { %v1782_v43 = vmax.f32 %v1780_v0, %v1781_v54  ;;  %v1811_v41 = vmax.f32 %v1809_v34, %v1810_v24  ;;  %v1802_v22 = vmax.f32 %v1800_v9, %v1801_v56  ;;  %v1829_v1 = vunpack.i.l.bf16 %v1828_v50 }
  0xc7   :  { %5763 = vst [vmem:[#allocation34_spill] sm:$0xff] %v4026_v10  ;;  %v1830_v3 = vunpack.i.h.bf16 %v1828_v50  ;;  %v1840_v55 = vunpack.i.l.bf16 %v1839_v30  ;;  %v1793_v19 = vmax.f32 %v1791_v39, %v1792_v62  ;;  %v1821_v0 = vrot.slane %v1820_v52, 4 }
  0xc8   :  { %v4038_v42 = vpack.i.bf16 %v1782_v43, %v1782_v43  ;;  %v1812_v13 = vrot.slane %v1811_v41, 2  ;;  %v1803_v17 = vrot.slane %v1802_v22, 1  ;;  %v1841_v58 = vunpack.i.h.bf16 %v1839_v30 }
  0xc9   :  { %v1831_v34 = vmax.f32 %v1829_v1, %v1830_v3  ;;  %v1850_v9 = vsel %vm3539_vm2, %v3457_v45, 4286644096  ;;  %v4042_v54 = vpack.i.bf16 %v1793_v19, %v1793_v19  ;;  %v1822_v27 = vmax.f32 %v1820_v52, %v1821_v0  ;;  %v3460_v45 = vld [vmem:[%s5637_s0 + $0x268] sm:$0x1f]  }
  0xca   :  { %5764 = vst [vmem:[#allocation35_spill] sm:$0xff] %v4038_v42  ;;  %v1813_v24 = vmax.f32 %v1811_v41, %v1812_v13  ;;  %v1851_v56 = vunpack.i.l.bf16 %v1850_v9  ;;  %v1804_v50 = vmax.f32 %v1802_v22, %v1803_v17  ;;  %v1842_v37 = vmax.f32 %v1840_v55, %v1841_v58 }
  0xcb   :  { %5765 = vst [vmem:[#allocation36_spill] sm:$0xff] %v4042_v54  ;;  %v1832_v10 = vrot.slane %v1831_v34, 4  ;;  %v1852_v26 = vunpack.i.h.bf16 %v1850_v9  ;;  %v1823_v42 = vrot.slane %v1822_v27, 2  ;;  %v1861_v39 = vsel %vm3539_vm2, %v3458_v8, 4286644096 }
  0xcc   :  { %v1814_v43 = vrot.slane %v1813_v24, 1  ;;  %v1872_v30 = vsel %vm3539_vm2, %v3459_v4, 4286644096  ;;  %v4051_v62 = vpack.i.bf16 %v1804_v50, %v1804_v50  ;;  %v1843_v52 = vrot.slane %v1842_v37, 4  ;;  %v3461_v4 = vld [vmem:[%s5637_s0 + $0x270] sm:$0x1f]  }
  0xcd   :  { %v1833_v41 = vmax.f32 %v1831_v34, %v1832_v10  ;;  %v1853_v22 = vmax.f32 %v1851_v56, %v1852_v26  ;;  %v1824_v55 = vmax.f32 %v1822_v27, %v1823_v42  ;;  %v1862_v3 = vunpack.i.l.bf16 %v1861_v39 }
  0xce   :  { %5766 = vst [vmem:[#allocation37_spill] sm:$0xff] %v4051_v62  ;;  %v1815_v1 = vmax.f32 %v1813_v24, %v1814_v43  ;;  %v1863_v19 = vunpack.i.h.bf16 %v1861_v39  ;;  %v1844_v0 = vmax.f32 %v1842_v37, %v1843_v52  ;;  %v1873_v8 = vunpack.i.l.bf16 %v1872_v30 }
  0xcf   :  { %v1834_v13 = vrot.slane %v1833_v41, 2  ;;  %v1854_v17 = vrot.slane %v1853_v22, 4  ;;  %v1825_v9 = vrot.slane %v1824_v55, 1  ;;  %v1874_v62 = vunpack.i.h.bf16 %v1872_v30 }
  0xd0   :  { %v4056_v58 = vpack.i.bf16 %v1815_v1, %v1815_v1  ;;  %v1864_v50 = vmax.f32 %v1862_v3, %v1863_v19  ;;  %v1845_v34 = vrot.slane %v1844_v0, 2  ;;  %v1883_v42 = vsel %vm3539_vm2, %v3460_v45, 4286644096  ;;  %v3462_v1 = vld [vmem:[%s5637_s0 + $0x278] sm:$0x1f]  }
  0xd1   :  { %v1835_v10 = vmax.f32 %v1833_v41, %v1834_v13  ;;  %v1855_v26 = vmax.f32 %v1853_v22, %v1854_v17  ;;  %v1826_v24 = vmax.f32 %v1824_v55, %v1825_v9  ;;  %v1875_v37 = vmax.f32 %v1873_v8, %v1874_v62  ;;  %v3463_v9 = vld [vmem:[%s5637_s0 + $0x280] sm:$0x1f]  }
  0xd2   :  { %5767 = vst [vmem:[#allocation38_spill] sm:$0xff] %v4056_v58  ;;  %v1865_v27 = vrot.slane %v1864_v50, 4  ;;  %v1884_v56 = vunpack.i.l.bf16 %v1883_v42  ;;  %v1846_v39 = vmax.f32 %v1844_v0, %v1845_v34  ;;  %v1885_v54 = vunpack.i.h.bf16 %v1883_v42 }
  0xd3   :  { %v1836_v43 = vrot.slane %v1835_v10, 1  ;;  %v1856_v52 = vrot.slane %v1855_v26, 2  ;;  %v4063_v3 = vpack.i.bf16 %v1826_v24, %v1826_v24  ;;  %v1876_v41 = vrot.slane %v1875_v37, 4 }
  0xd4   :  { %v1866_v30 = vmax.f32 %v1864_v50, %v1865_v27  ;;  %v1894_v22 = vsel %vm3539_vm2, %v3461_v4, 4286644096  ;;  %v1847_v55 = vrot.slane %v1846_v39, 1  ;;  %v1886_v62 = vmax.f32 %v1884_v56, %v1885_v54  ;;  %v3464_v50 = vld [vmem:[%s5637_s0 + $0x288] sm:$0x1f]  }
  0xd5   :  { %5768 = vst [vmem:[#allocation39_spill] sm:$0xff] %v4063_v3  ;;  %v1837_v45 = vmax.f32 %v1835_v10, %v1836_v43  ;;  %v1857_v19 = vmax.f32 %v1855_v26, %v1856_v52  ;;  %v1877_v17 = vmax.f32 %v1875_v37, %v1876_v41  ;;  %v1895_v0 = vunpack.i.l.bf16 %v1894_v22  ;;  %v3465_v41 = vld [vmem:[%s5637_s0 + $0x290] sm:$0x1f]  }
  0xd6   :  { %v1867_v13 = vrot.slane %v1866_v30, 2  ;;  %v1896_v8 = vunpack.i.h.bf16 %v1894_v22  ;;  %v1848_v42 = vmax.f32 %v1846_v39, %v1847_v55  ;;  %v1887_v10 = vrot.slane %v1886_v62, 4 }
  0xd7   :  { %v4073_v34 = vpack.i.bf16 %v1837_v45, %v1837_v45  ;;  %v1858_v4 = vrot.slane %v1857_v19, 1  ;;  %v1878_v26 = vrot.slane %v1877_v17, 2  ;;  %v1905_v27 = vsel %vm3539_vm2, %v3462_v1, 4286644096 }
  0xd8   :  { %v1868_v24 = vmax.f32 %v1866_v30, %v1867_v13  ;;  %v1897_v54 = vmax.f32 %v1895_v0, %v1896_v8  ;;  %v4077_v37 = vpack.i.bf16 %v1848_v42, %v1848_v42  ;;  %v1888_v43 = vmax.f32 %v1886_v62, %v1887_v10 }
  0xd9   :  { %5769 = vst [vmem:[#allocation40_spill] sm:$0xff] %v4073_v34  ;;  %v1859_v56 = vmax.f32 %v1857_v19, %v1858_v4  ;;  %v1906_v52 = vunpack.i.l.bf16 %v1905_v27  ;;  %v1879_v45 = vmax.f32 %v1877_v17, %v1878_v26  ;;  %v1907_v55 = vunpack.i.h.bf16 %v1905_v27  ;;  %v3466_v17 = vld [vmem:[%s5637_s0 + $0x298] sm:$0x1f]   ;;  %v3467_v26 = vld [vmem:[%s5637_s0 + $0x2a0] sm:$0x1f]  }
  0xda   :  { %5770 = vst [vmem:[#allocation41_spill] sm:$0xff] %v4077_v37  ;;  %v1869_v22 = vrot.slane %v1868_v24, 1  ;;  %v1898_v39 = vrot.slane %v1897_v54, 4  ;;  %v1889_v30 = vrot.slane %v1888_v43, 2  ;;  %v1916_v13 = vsel %vm3539_vm2, %v3463_v9, 4286644096 }
  0xdb   :  { %v4082_v34 = vpack.i.bf16 %v1859_v56, %v1859_v56  ;;  %v1927_v1 = vsel %vm3539_vm2, %v3464_v50, 4286644096  ;;  %v1880_v62 = vrot.slane %v1879_v45, 1  ;;  %v1908_v8 = vmax.f32 %v1906_v52, %v1907_v55 }
  0xdc   :  { %v1870_v19 = vmax.f32 %v1868_v24, %v1869_v22  ;;  %v1899_v0 = vmax.f32 %v1897_v54, %v1898_v39  ;;  %v1890_v42 = vmax.f32 %v1888_v43, %v1889_v30  ;;  %v1917_v4 = vunpack.i.l.bf16 %v1916_v13 }
  0xdd   :  { %5771 = vst [vmem:[#allocation42_spill] sm:$0xff] %v4082_v34  ;;  %v1918_v10 = vunpack.i.h.bf16 %v1916_v13  ;;  %v1928_v37 = vunpack.i.l.bf16 %v1927_v1  ;;  %v1881_v27 = vmax.f32 %v1879_v45, %v1880_v62  ;;  %v1909_v24 = vrot.slane %v1908_v8, 4 }
  0xde   :  { %v4094_v9 = vpack.i.bf16 %v1870_v19, %v1870_v19  ;;  %v1900_v50 = vrot.slane %v1899_v0, 2  ;;  %v1891_v56 = vrot.slane %v1890_v42, 1  ;;  %v1929_v52 = vunpack.i.h.bf16 %v1927_v1 }
  0xdf   :  { %v1919_v54 = vmax.f32 %v1917_v4, %v1918_v10  ;;  %v1938_v43 = vsel %vm3539_vm2, %v3465_v41, 4286644096  ;;  %v4098_v22 = vpack.i.bf16 %v1881_v27, %v1881_v27  ;;  %v1910_v55 = vmax.f32 %v1908_v8, %v1909_v24  ;;  %v3468_v41 = vld [vmem:[%s5637_s0 + $0x2a8] sm:$0x1f]  }
  0xe0   :  { %5772 = vst [vmem:[#allocation43_spill] sm:$0xff] %v4094_v9  ;;  %v1901_v39 = vmax.f32 %v1899_v0, %v1900_v50  ;;  %v1939_v30 = vunpack.i.l.bf16 %v1938_v43  ;;  %v1892_v13 = vmax.f32 %v1890_v42, %v1891_v56  ;;  %v1930_v3 = vmax.f32 %v1928_v37, %v1929_v52 }
  0xe1   :  { %5773 = vst [vmem:[#allocation44_spill] sm:$0xff] %v4098_v22  ;;  %v1920_v34 = vrot.slane %v1919_v54, 4  ;;  %v1940_v58 = vunpack.i.h.bf16 %v1938_v43  ;;  %v1911_v9 = vrot.slane %v1910_v55, 2  ;;  %v1949_v45 = vsel %vm3539_vm2, %v3466_v17, 4286644096 }
  0xe2   :  { %v1902_v19 = vrot.slane %v1901_v39, 1  ;;  %v1960_v1 = vsel %vm3539_vm2, %v3467_v26, 4286644096  ;;  %v4107_v62 = vpack.i.bf16 %v1892_v13, %v1892_v13  ;;  %v1931_v8 = vrot.slane %v1930_v3, 4  ;;  %v3469_v26 = vld [vmem:[%s5637_s0 + $0x2b0] sm:$0x1f]  }
  0xe3   :  { %v1921_v0 = vmax.f32 %v1919_v54, %v1920_v34  ;;  %v1941_v42 = vmax.f32 %v1939_v30, %v1940_v58  ;;  %v1912_v37 = vmax.f32 %v1910_v55, %v1911_v9  ;;  %v1950_v10 = vunpack.i.l.bf16 %v1949_v45 }
  0xe4   :  { %5774 = vst [vmem:[#allocation45_spill] sm:$0xff] %v4107_v62  ;;  %v1903_v4 = vmax.f32 %v1901_v39, %v1902_v19  ;;  %v1951_v27 = vunpack.i.h.bf16 %v1949_v45  ;;  %v1932_v24 = vmax.f32 %v1930_v3, %v1931_v8  ;;  %v1961_v17 = vunpack.i.l.bf16 %v1960_v1 }
  0xe5   :  { %v1922_v50 = vrot.slane %v1921_v0, 2  ;;  %v1942_v56 = vrot.slane %v1941_v42, 4  ;;  %v1913_v43 = vrot.slane %v1912_v37, 1  ;;  %v1962_v62 = vunpack.i.h.bf16 %v1960_v1 }
  0xe6   :  { %v4112_v52 = vpack.i.bf16 %v1903_v4, %v1903_v4  ;;  %v1952_v13 = vmax.f32 %v1950_v10, %v1951_v27  ;;  %v1933_v54 = vrot.slane %v1932_v24, 2  ;;  %v1971_v9 = vsel %vm3539_vm2, %v3468_v41, 4286644096  ;;  %v3470_v4 = vld [vmem:[%s5637_s0 + $0x2b8] sm:$0x1f]  }
  0xe7   :  { %v1923_v34 = vmax.f32 %v1921_v0, %v1922_v50  ;;  %v1943_v58 = vmax.f32 %v1941_v42, %v1942_v56  ;;  %v1914_v39 = vmax.f32 %v1912_v37, %v1913_v43  ;;  %v1963_v3 = vmax.f32 %v1961_v17, %v1962_v62  ;;  %v3471_v43 = vld [vmem:[%s5637_s0 + $0x2c0] sm:$0x1f]  }
  0xe8   :  { %5775 = vst [vmem:[#allocation46_spill] sm:$0xff] %v4112_v52  ;;  %v1953_v55 = vrot.slane %v1952_v13, 4  ;;  %v1972_v30 = vunpack.i.l.bf16 %v1971_v9  ;;  %v1934_v45 = vmax.f32 %v1932_v24, %v1933_v54  ;;  %v1973_v22 = vunpack.i.h.bf16 %v1971_v9 }
  0xe9   :  { %v1924_v19 = vrot.slane %v1923_v34, 1  ;;  %v1944_v8 = vrot.slane %v1943_v58, 2  ;;  %v4119_v10 = vpack.i.bf16 %v1914_v39, %v1914_v39  ;;  %v1964_v0 = vrot.slane %v1963_v3, 4 }
  0xea   :  { %v1954_v1 = vmax.f32 %v1952_v13, %v1953_v55  ;;  %v1982_v42 = vsel %vm3539_vm2, %v3469_v26, 4286644096  ;;  %v1935_v37 = vrot.slane %v1934_v45, 1  ;;  %v1974_v62 = vmax.f32 %v1972_v30, %v1973_v22  ;;  %v3472_v13 = vld [vmem:[%s5637_s0 + $0x2c8] sm:$0x1f]  }
  0xeb   :  { %5776 = vst [vmem:[#allocation47_spill] sm:$0xff] %v4119_v10  ;;  %v1925_v41 = vmax.f32 %v1923_v34, %v1924_v19  ;;  %v1945_v27 = vmax.f32 %v1943_v58, %v1944_v8  ;;  %v1965_v56 = vmax.f32 %v1963_v3, %v1964_v0  ;;  %v1983_v24 = vunpack.i.l.bf16 %v1982_v42  ;;  %v3473_v0 = vld [vmem:[%s5637_s0 + $0x2d0] sm:$0x1f]  }
  0xec   :  { %v1955_v50 = vrot.slane %v1954_v1, 2  ;;  %v1984_v17 = vunpack.i.h.bf16 %v1982_v42  ;;  %v1936_v9 = vmax.f32 %v1934_v45, %v1935_v37  ;;  %v1975_v34 = vrot.slane %v1974_v62, 4 }
  0xed   :  { %v4129_v54 = vpack.i.bf16 %v1925_v41, %v1925_v41  ;;  %v1946_v26 = vrot.slane %v1945_v27, 1  ;;  %v1966_v58 = vrot.slane %v1965_v56, 2  ;;  %v1993_v55 = vsel %vm3539_vm2, %v3470_v4, 4286644096 }
  0xee   :  { %v1956_v39 = vmax.f32 %v1954_v1, %v1955_v50  ;;  %v1985_v22 = vmax.f32 %v1983_v24, %v1984_v17  ;;  %v4133_v3 = vpack.i.bf16 %v1936_v9, %v1936_v9  ;;  %v1976_v19 = vmax.f32 %v1974_v62, %v1975_v34 }
  0xef   :  { %5777 = vst [vmem:[#allocation48_spill] sm:$0xff] %v4129_v54  ;;  %v1947_v30 = vmax.f32 %v1945_v27, %v1946_v26  ;;  %v1994_v8 = vunpack.i.l.bf16 %v1993_v55  ;;  %v1967_v41 = vmax.f32 %v1965_v56, %v1966_v58  ;;  %v1995_v37 = vunpack.i.h.bf16 %v1993_v55  ;;  %v3474_v56 = vld [vmem:[%s5637_s0 + $0x2d8] sm:$0x1f]   ;;  %v3475_v58 = vld [vmem:[%s5637_s0 + $0x2e0] sm:$0x1f]  }
  0xf0   :  { %5778 = vst [vmem:[#allocation49_spill] sm:$0xff] %v4133_v3  ;;  %v1957_v42 = vrot.slane %v1956_v39, 1  ;;  %v1986_v45 = vrot.slane %v1985_v22, 4  ;;  %v1977_v1 = vrot.slane %v1976_v19, 2  ;;  %v2004_v50 = vsel %vm3539_vm2, %v3471_v43, 4286644096 }
  0xf1   :  { %v4138_v54 = vpack.i.bf16 %v1947_v30, %v1947_v30  ;;  %v2015_v4 = vsel %vm3539_vm2, %v3472_v13, 4286644096  ;;  %v1968_v62 = vrot.slane %v1967_v41, 1  ;;  %v1996_v17 = vmax.f32 %v1994_v8, %v1995_v37 }
  0xf2   :  { %v1958_v27 = vmax.f32 %v1956_v39, %v1957_v42  ;;  %v1987_v24 = vmax.f32 %v1985_v22, %v1986_v45  ;;  %v1978_v9 = vmax.f32 %v1976_v19, %v1977_v1  ;;  %v2005_v26 = vunpack.i.l.bf16 %v2004_v50 }
  0xf3   :  { %5779 = vst [vmem:[#allocation50_spill] sm:$0xff] %v4138_v54  ;;  %v2006_v34 = vunpack.i.h.bf16 %v2004_v50  ;;  %v2016_v3 = vunpack.i.l.bf16 %v2015_v4  ;;  %v1969_v55 = vmax.f32 %v1967_v41, %v1968_v62  ;;  %v1997_v39 = vrot.slane %v1996_v17, 4 }
  0xf4   :  { %v4150_v43 = vpack.i.bf16 %v1958_v27, %v1958_v27  ;;  %v1988_v13 = vrot.slane %v1987_v24, 2  ;;  %v1979_v30 = vrot.slane %v1978_v9, 1  ;;  %v2017_v8 = vunpack.i.h.bf16 %v2015_v4 }
  0xf5   :  { %v2007_v22 = vmax.f32 %v2005_v26, %v2006_v34  ;;  %v2026_v19 = vsel %vm3539_vm2, %v3473_v0, 4286644096  ;;  %v4154_v42 = vpack.i.bf16 %v1969_v55, %v1969_v55  ;;  %v1998_v37 = vmax.f32 %v1996_v17, %v1997_v39  ;;  %v3476_v0 = vld [vmem:[%s5637_s0 + $0x2e8] sm:$0x1f]  }
  0xf6   :  { %5780 = vst [vmem:[#allocation51_spill] sm:$0xff] %v4150_v43  ;;  %v1989_v45 = vmax.f32 %v1987_v24, %v1988_v13  ;;  %v2027_v1 = vunpack.i.l.bf16 %v2026_v19  ;;  %v1980_v50 = vmax.f32 %v1978_v9, %v1979_v30  ;;  %v2018_v10 = vmax.f32 %v2016_v3, %v2017_v8 }
  0xf7   :  { %5781 = vst [vmem:[#allocation52_spill] sm:$0xff] %v4154_v42  ;;  %v2008_v54 = vrot.slane %v2007_v22, 4  ;;  %v2028_v52 = vunpack.i.h.bf16 %v2026_v19  ;;  %v1999_v43 = vrot.slane %v1998_v37, 2  ;;  %v2037_v41 = vsel %vm3539_vm2, %v3474_v56, 4286644096 }
  0xf8   :  { %v1990_v27 = vrot.slane %v1989_v45, 1  ;;  %v2048_v4 = vsel %vm3539_vm2, %v3475_v58, 4286644096  ;;  %v4163_v62 = vpack.i.bf16 %v1980_v50, %v1980_v50  ;;  %v2019_v17 = vrot.slane %v2018_v10, 4  ;;  %v3477_v58 = vld [vmem:[%s5637_s0 + $0x2f0] sm:$0x1f]  }
  0xf9   :  { %v2009_v24 = vmax.f32 %v2007_v22, %v2008_v54  ;;  %v2029_v9 = vmax.f32 %v2027_v1, %v2028_v52  ;;  %v2000_v3 = vmax.f32 %v1998_v37, %v1999_v43  ;;  %v2038_v34 = vunpack.i.l.bf16 %v2037_v41 }
  0xfa   :  { %5782 = vst [vmem:[#allocation53_spill] sm:$0xff] %v4163_v62  ;;  %v1991_v26 = vmax.f32 %v1989_v45, %v1990_v27  ;;  %v2039_v55 = vunpack.i.h.bf16 %v2037_v41  ;;  %v2020_v39 = vmax.f32 %v2018_v10, %v2019_v17  ;;  %v2049_v56 = vunpack.i.l.bf16 %v2048_v4 }
  0xfb   :  { %v2010_v13 = vrot.slane %v2009_v24, 2  ;;  %v2030_v30 = vrot.slane %v2029_v9, 4  ;;  %v2001_v19 = vrot.slane %v2000_v3, 1  ;;  %v2050_v62 = vunpack.i.h.bf16 %v2048_v4 }
  0xfc   :  { %v4168_v8 = vpack.i.bf16 %v1991_v26, %v1991_v26  ;;  %v2040_v50 = vmax.f32 %v2038_v34, %v2039_v55  ;;  %v2021_v22 = vrot.slane %v2020_v39, 2  ;;  %v2059_v43 = vsel %vm3539_vm2, %v3476_v0, 4286644096  ;;  %v3478_v26 = vld [vmem:[%s5637_s0 + $0x2f8] sm:$0x1f]  }
  0xfd   :  { %v2011_v54 = vmax.f32 %v2009_v24, %v2010_v13  ;;  %v2031_v52 = vmax.f32 %v2029_v9, %v2030_v30  ;;  %v2002_v45 = vmax.f32 %v2000_v3, %v2001_v19  ;;  %v2051_v10 = vmax.f32 %v2049_v56, %v2050_v62  ;;  %v3479_v19 = vld [vmem:[%s5637_s0 + $0x300] sm:$0x1f]  }
  0xfe   :  { %5783 = vst [vmem:[#allocation54_spill] sm:$0xff] %v4168_v8  ;;  %v2041_v37 = vrot.slane %v2040_v50, 4  ;;  %v2060_v1 = vunpack.i.l.bf16 %v2059_v43  ;;  %v2022_v41 = vmax.f32 %v2020_v39, %v2021_v22  ;;  %v2061_v42 = vunpack.i.h.bf16 %v2059_v43 }
  0xff   :  { %v2012_v27 = vrot.slane %v2011_v54, 1  ;;  %v2032_v17 = vrot.slane %v2031_v52, 2  ;;  %v4175_v34 = vpack.i.bf16 %v2002_v45, %v2002_v45  ;;  %v2052_v24 = vrot.slane %v2051_v10, 4 }
 0x100   :  { %v2042_v4 = vmax.f32 %v2040_v50, %v2041_v37  ;;  %v2070_v9 = vsel %vm3539_vm2, %v3477_v58, 4286644096  ;;  %v2023_v3 = vrot.slane %v2022_v41, 1  ;;  %v2062_v62 = vmax.f32 %v2060_v1, %v2061_v42  ;;  %v3480_v50 = vld [vmem:[%s5637_s0 + $0x308] sm:$0x1f]  }
 0x101   :  { %5784 = vst [vmem:[#allocation55_spill] sm:$0xff] %v4175_v34  ;;  %v2013_v0 = vmax.f32 %v2011_v54, %v2012_v27  ;;  %v2033_v55 = vmax.f32 %v2031_v52, %v2032_v17  ;;  %v2053_v30 = vmax.f32 %v2051_v10, %v2052_v24  ;;  %v2071_v39 = vunpack.i.l.bf16 %v2070_v9  ;;  %v3481_v24 = vld [vmem:[%s5637_s0 + $0x310] sm:$0x1f]  }
 0x102   :  { %v2043_v13 = vrot.slane %v2042_v4, 2  ;;  %v2072_v56 = vunpack.i.h.bf16 %v2070_v9  ;;  %v2024_v43 = vmax.f32 %v2022_v41, %v2023_v3  ;;  %v2063_v54 = vrot.slane %v2062_v62, 4 }
 0x103   :  { %v4185_v22 = vpack.i.bf16 %v2013_v0, %v2013_v0  ;;  %v2034_v58 = vrot.slane %v2033_v55, 1  ;;  %v2054_v52 = vrot.slane %v2053_v30, 2  ;;  %v2081_v37 = vsel %vm3539_vm2, %v3478_v26, 4286644096 }
 0x104   :  { %v2044_v45 = vmax.f32 %v2042_v4, %v2043_v13  ;;  %v2073_v42 = vmax.f32 %v2071_v39, %v2072_v56  ;;  %v4189_v10 = vpack.i.bf16 %v2024_v43, %v2024_v43  ;;  %v2064_v27 = vmax.f32 %v2062_v62, %v2063_v54 }
 0x105   :  { %5785 = vst [vmem:[#allocation56_spill] sm:$0xff] %v4185_v22  ;;  %v2035_v1 = vmax.f32 %v2033_v55, %v2034_v58  ;;  %v2082_v17 = vunpack.i.l.bf16 %v2081_v37  ;;  %v2055_v0 = vmax.f32 %v2053_v30, %v2054_v52  ;;  %v2083_v3 = vunpack.i.h.bf16 %v2081_v37  ;;  %v3482_v30 = vld [vmem:[%s5637_s0 + $0x318] sm:$0x1f]   ;;  %v3483_v52 = vld [vmem:[%s5637_s0 + $0x320] sm:$0x1f]  }
 0x106   :  { %5786 = vst [vmem:[#allocation57_spill] sm:$0xff] %v4189_v10  ;;  %v2045_v9 = vrot.slane %v2044_v45, 1  ;;  %v2074_v41 = vrot.slane %v2073_v42, 4  ;;  %v2065_v4 = vrot.slane %v2064_v27, 2  ;;  %v2092_v13 = vsel %vm3539_vm2, %v3479_v19, 4286644096 }
 0x107   :  { %v4194_v22 = vpack.i.bf16 %v2035_v1, %v2035_v1  ;;  %v2103_v26 = vsel %vm3539_vm2, %v3480_v50, 4286644096  ;;  %v2056_v62 = vrot.slane %v2055_v0, 1  ;;  %v2084_v56 = vmax.f32 %v2082_v17, %v2083_v3 }
 0x108   :  { %v2046_v55 = vmax.f32 %v2044_v45, %v2045_v9  ;;  %v2075_v39 = vmax.f32 %v2073_v42, %v2074_v41  ;;  %v2066_v43 = vmax.f32 %v2064_v27, %v2065_v4  ;;  %v2093_v58 = vunpack.i.l.bf16 %v2092_v13 }
 0x109   :  { %5787 = vst [vmem:[#allocation58_spill] sm:$0xff] %v4194_v22  ;;  %v2094_v54 = vunpack.i.h.bf16 %v2092_v13  ;;  %v2104_v10 = vunpack.i.l.bf16 %v2103_v26  ;;  %v2057_v37 = vmax.f32 %v2055_v0, %v2056_v62  ;;  %v2085_v45 = vrot.slane %v2084_v56, 4 }
 0x10a   :  { %v4206_v19 = vpack.i.bf16 %v2046_v55, %v2046_v55  ;;  %v2076_v50 = vrot.slane %v2075_v39, 2  ;;  %v2067_v1 = vrot.slane %v2066_v43, 1  ;;  %v2105_v17 = vunpack.i.h.bf16 %v2103_v26 }
 0x10b   :  { %v2095_v42 = vmax.f32 %v2093_v58, %v2094_v54  ;;  %v2114_v27 = vsel %vm3539_vm2, %v3481_v24, 4286644096  ;;  %v4210_v9 = vpack.i.bf16 %v2057_v37, %v2057_v37  ;;  %v2086_v3 = vmax.f32 %v2084_v56, %v2085_v45  ;;  %v3484_v24 = vld [vmem:[%s5637_s0 + $0x328] sm:$0x1f]  }
 0x10c   :  { %5788 = vst [vmem:[#allocation59_spill] sm:$0xff] %v4206_v19  ;;  %v2077_v41 = vmax.f32 %v2075_v39, %v2076_v50  ;;  %v2115_v4 = vunpack.i.l.bf16 %v2114_v27  ;;  %v2068_v13 = vmax.f32 %v2066_v43, %v2067_v1  ;;  %v2106_v34 = vmax.f32 %v2104_v10, %v2105_v17 }
 0x10d   :  { %5789 = vst [vmem:[#allocation60_spill] sm:$0xff] %v4210_v9  ;;  %v2096_v22 = vrot.slane %v2095_v42, 4  ;;  %v2116_v8 = vunpack.i.h.bf16 %v2114_v27  ;;  %v2087_v19 = vrot.slane %v2086_v3, 2  ;;  %v2125_v0 = vsel %vm3539_vm2, %v3482_v30, 4286644096 }
 0x10e   :  { %v2078_v55 = vrot.slane %v2077_v41, 1  ;;  %v2136_v26 = vsel %vm3539_vm2, %v3483_v52, 4286644096  ;;  %v4219_v62 = vpack.i.bf16 %v2068_v13, %v2068_v13  ;;  %v2107_v56 = vrot.slane %v2106_v34, 4  ;;  %v3485_v52 = vld [vmem:[%s5637_s0 + $0x330] sm:$0x1f]  }
 0x10f   :  { %v2097_v39 = vmax.f32 %v2095_v42, %v2096_v22  ;;  %v2117_v43 = vmax.f32 %v2115_v4, %v2116_v8  ;;  %v2088_v10 = vmax.f32 %v2086_v3, %v2087_v19  ;;  %v2126_v54 = vunpack.i.l.bf16 %v2125_v0 }
 0x110   :  { %5790 = vst [vmem:[#allocation61_spill] sm:$0xff] %v4219_v62  ;;  %v2079_v58 = vmax.f32 %v2077_v41, %v2078_v55  ;;  %v2127_v37 = vunpack.i.h.bf16 %v2125_v0  ;;  %v2108_v45 = vmax.f32 %v2106_v34, %v2107_v56  ;;  %v2137_v30 = vunpack.i.l.bf16 %v2136_v26 }
 0x111   :  { %v2098_v50 = vrot.slane %v2097_v39, 2  ;;  %v2118_v1 = vrot.slane %v2117_v43, 4  ;;  %v2089_v27 = vrot.slane %v2088_v10, 1  ;;  %v2138_v62 = vunpack.i.h.bf16 %v2136_v26 }
 0x112   :  { %v4224_v17 = vpack.i.bf16 %v2079_v58, %v2079_v58  ;;  %v2128_v13 = vmax.f32 %v2126_v54, %v2127_v37  ;;  %v2109_v42 = vrot.slane %v2108_v45, 2  ;;  %v2147_v19 = vsel %vm3539_vm2, %v3484_v24, 4286644096  ;;  %v3486_v58 = vld [vmem:[%s5637_s0 + $0x338] sm:$0x1f]  }
 0x113   :  { %v2099_v22 = vmax.f32 %v2097_v39, %v2098_v50  ;;  %v2119_v8 = vmax.f32 %v2117_v43, %v2118_v1  ;;  %v2090_v41 = vmax.f32 %v2088_v10, %v2089_v27  ;;  %v2139_v34 = vmax.f32 %v2137_v30, %v2138_v62  ;;  %v3487_v27 = vld [vmem:[%s5637_s0 + $0x340] sm:$0x1f]  }
 0x114   :  { %5791 = vst [vmem:[#allocation62_spill] sm:$0xff] %v4224_v17  ;;  %v2129_v3 = vrot.slane %v2128_v13, 4  ;;  %v2148_v4 = vunpack.i.l.bf16 %v2147_v19  ;;  %v2110_v0 = vmax.f32 %v2108_v45, %v2109_v42  ;;  %v2149_v9 = vunpack.i.h.bf16 %v2147_v19 }
 0x115   :  { %v2100_v55 = vrot.slane %v2099_v22, 1  ;;  %v2120_v56 = vrot.slane %v2119_v8, 2  ;;  %v4231_v54 = vpack.i.bf16 %v2090_v41, %v2090_v41  ;;  %v2140_v39 = vrot.slane %v2139_v34, 4 }
 0x116   :  { %v2130_v26 = vmax.f32 %v2128_v13, %v2129_v3  ;;  %v2158_v43 = vsel %vm3539_vm2, %v3485_v52, 4286644096  ;;  %v2111_v10 = vrot.slane %v2110_v0, 1  ;;  %v2150_v62 = vmax.f32 %v2148_v4, %v2149_v9  ;;  %v3488_v13 = vld [vmem:[%s5637_s0 + $0x348] sm:$0x1f]  }
 0x117   :  { %5792 = vst [vmem:[#allocation63_spill] sm:$0xff] %v4231_v54  ;;  %v2101_v24 = vmax.f32 %v2099_v22, %v2100_v55  ;;  %v2121_v37 = vmax.f32 %v2119_v8, %v2120_v56  ;;  %v2141_v1 = vmax.f32 %v2139_v34, %v2140_v39  ;;  %v2159_v45 = vunpack.i.l.bf16 %v2158_v43  ;;  %v3489_v39 = vld [vmem:[%s5637_s0 + $0x350] sm:$0x1f]  }
 0x118   :  { %v2131_v50 = vrot.slane %v2130_v26, 2  ;;  %v2160_v30 = vunpack.i.h.bf16 %v2158_v43  ;;  %v2112_v19 = vmax.f32 %v2110_v0, %v2111_v10  ;;  %v2151_v22 = vrot.slane %v2150_v62, 4 }
 0x119   :  { %v4241_v42 = vpack.i.bf16 %v2101_v24, %v2101_v24  ;;  %v2122_v52 = vrot.slane %v2121_v37, 1  ;;  %v2142_v8 = vrot.slane %v2141_v1, 2  ;;  %v2169_v3 = vsel %vm3539_vm2, %v3486_v58, 4286644096 }
 0x11a   :  { %v2132_v41 = vmax.f32 %v2130_v26, %v2131_v50  ;;  %v2161_v9 = vmax.f32 %v2159_v45, %v2160_v30  ;;  %v4245_v34 = vpack.i.bf16 %v2112_v19, %v2112_v19  ;;  %v2152_v55 = vmax.f32 %v2150_v62, %v2151_v22 }
 0x11b   :  { %5793 = vst [vmem:[#allocation64_spill] sm:$0xff] %v4241_v42  ;;  %v2123_v4 = vmax.f32 %v2121_v37, %v2122_v52  ;;  %v2170_v56 = vunpack.i.l.bf16 %v2169_v3  ;;  %v2143_v24 = vmax.f32 %v2141_v1, %v2142_v8  ;;  %v2171_v10 = vunpack.i.h.bf16 %v2169_v3  ;;  %v3490_v1 = vld [vmem:[%s5637_s0 + $0x358] sm:$0x1f]   ;;  %v3491_v8 = vld [vmem:[%s5637_s0 + $0x360] sm:$0x1f]  }
 0x11c   :  { %5794 = vst [vmem:[#allocation65_spill] sm:$0xff] %v4245_v34  ;;  %v2133_v43 = vrot.slane %v2132_v41, 1  ;;  %v2162_v0 = vrot.slane %v2161_v9, 4  ;;  %v2153_v26 = vrot.slane %v2152_v55, 2  ;;  %v2180_v50 = vsel %vm3539_vm2, %v3487_v27, 4286644096 }
 0x11d   :  { %v4250_v42 = vpack.i.bf16 %v2123_v4, %v2123_v4  ;;  %v2191_v58 = vsel %vm3539_vm2, %v3488_v13, 4286644096  ;;  %v2144_v62 = vrot.slane %v2143_v24, 1  ;;  %v2172_v30 = vmax.f32 %v2170_v56, %v2171_v10 }
 0x11e   :  { %v2134_v37 = vmax.f32 %v2132_v41, %v2133_v43  ;;  %v2163_v45 = vmax.f32 %v2161_v9, %v2162_v0  ;;  %v2154_v19 = vmax.f32 %v2152_v55, %v2153_v26  ;;  %v2181_v52 = vunpack.i.l.bf16 %v2180_v50 }
 0x11f   :  { %5795 = vst [vmem:[#allocation66_spill] sm:$0xff] %v4250_v42  ;;  %v2182_v22 = vunpack.i.h.bf16 %v2180_v50  ;;  %v2192_v34 = vunpack.i.l.bf16 %v2191_v58  ;;  %v2145_v3 = vmax.f32 %v2143_v24, %v2144_v62  ;;  %v2173_v41 = vrot.slane %v2172_v30, 4 }
 0x120   :  { %v4262_v27 = vpack.i.bf16 %v2134_v37, %v2134_v37  ;;  %v2164_v13 = vrot.slane %v2163_v45, 2  ;;  %v2155_v4 = vrot.slane %v2154_v19, 1  ;;  %v2193_v56 = vunpack.i.h.bf16 %v2191_v58 }
 0x121   :  { %v2183_v9 = vmax.f32 %v2181_v52, %v2182_v22  ;;  %v2202_v55 = vsel %vm3539_vm2, %v3489_v39, 4286644096  ;;  %v4266_v43 = vpack.i.bf16 %v2145_v3, %v2145_v3  ;;  %v2174_v10 = vmax.f32 %v2172_v30, %v2173_v41  ;;  %v3492_v39 = vld [vmem:[%s5637_s0 + $0x368] sm:$0x1f]  }
 0x122   :  { %5796 = vst [vmem:[#allocation67_spill] sm:$0xff] %v4262_v27  ;;  %v2165_v0 = vmax.f32 %v2163_v45, %v2164_v13  ;;  %v2203_v26 = vunpack.i.l.bf16 %v2202_v55  ;;  %v2156_v50 = vmax.f32 %v2154_v19, %v2155_v4  ;;  %v2194_v54 = vmax.f32 %v2192_v34, %v2193_v56 }
 0x123   :  { %5797 = vst [vmem:[#allocation68_spill] sm:$0xff] %v4266_v43  ;;  %v2184_v42 = vrot.slane %v2183_v9, 4  ;;  %v2204_v17 = vunpack.i.h.bf16 %v2202_v55  ;;  %v2175_v27 = vrot.slane %v2174_v10, 2  ;;  %v2213_v24 = vsel %vm3539_vm2, %v3490_v1, 4286644096 }
 0x124   :  { %v2166_v37 = vrot.slane %v2165_v0, 1  ;;  %v2224_v58 = vsel %vm3539_vm2, %v3491_v8, 4286644096  ;;  %v4275_v62 = vpack.i.bf16 %v2156_v50, %v2156_v50  ;;  %v2195_v30 = vrot.slane %v2194_v54, 4  ;;  %v3493_v8 = vld [vmem:[%s5637_s0 + $0x370] sm:$0x1f]  }
 0x125   :  { %v2185_v45 = vmax.f32 %v2183_v9, %v2184_v42  ;;  %v2205_v19 = vmax.f32 %v2203_v26, %v2204_v17  ;;  %v2176_v34 = vmax.f32 %v2174_v10, %v2175_v27  ;;  %v2214_v22 = vunpack.i.l.bf16 %v2213_v24 }
 0x126   :  { %5798 = vst [vmem:[#allocation69_spill] sm:$0xff] %v4275_v62  ;;  %v2167_v52 = vmax.f32 %v2165_v0, %v2166_v37  ;;  %v2215_v3 = vunpack.i.h.bf16 %v2213_v24  ;;  %v2196_v41 = vmax.f32 %v2194_v54, %v2195_v30  ;;  %v2225_v1 = vunpack.i.l.bf16 %v2224_v58 }
 0x127   :  { %v2186_v13 = vrot.slane %v2185_v45, 2  ;;  %v2206_v4 = vrot.slane %v2205_v19, 4  ;;  %v2177_v55 = vrot.slane %v2176_v34, 1  ;;  %v2226_v62 = vunpack.i.h.bf16 %v2224_v58 }
 0x128   :  { %v4280_v56 = vpack.i.bf16 %v2167_v52, %v2167_v52  ;;  %v2216_v50 = vmax.f32 %v2214_v22, %v2215_v3  ;;  %v2197_v9 = vrot.slane %v2196_v41, 2  ;;  %v2235_v27 = vsel %vm3539_vm2, %v3492_v39, 4286644096  ;;  %v3494_v52 = vld [vmem:[%s5637_s0 + $0x378] sm:$0x1f]  }
 0x129   :  { %v2187_v42 = vmax.f32 %v2185_v45, %v2186_v13  ;;  %v2207_v17 = vmax.f32 %v2205_v19, %v2206_v4  ;;  %v2178_v0 = vmax.f32 %v2176_v34, %v2177_v55  ;;  %v2227_v54 = vmax.f32 %v2225_v1, %v2226_v62  ;;  %v3495_v55 = vld [vmem:[%s5637_s0 + $0x380] sm:$0x1f]  }
 0x12a   :  { %5799 = vst [vmem:[#allocation70_spill] sm:$0xff] %v4280_v56  ;;  %v2217_v10 = vrot.slane %v2216_v50, 4  ;;  %v2236_v26 = vunpack.i.l.bf16 %v2235_v27  ;;  %v2198_v24 = vmax.f32 %v2196_v41, %v2197_v9  ;;  %v2237_v43 = vunpack.i.h.bf16 %v2235_v27 }
 0x12b   :  { %v2188_v37 = vrot.slane %v2187_v42, 1  ;;  %v2208_v30 = vrot.slane %v2207_v17, 2  ;;  %v4287_v22 = vpack.i.bf16 %v2178_v0, %v2178_v0  ;;  %v2228_v45 = vrot.slane %v2227_v54, 4 }
 0x12c   :  { %v2218_v58 = vmax.f32 %v2216_v50, %v2217_v10  ;;  %v2246_v19 = vsel %vm3539_vm2, %v3493_v8, 4286644096  ;;  %v2199_v34 = vrot.slane %v2198_v24, 1  ;;  %v2238_v62 = vmax.f32 %v2236_v26, %v2237_v43  ;;  %v3496_v50 = vld [vmem:[%s5637_s0 + $0x388] sm:$0x1f]  }
 0x12d   :  { %5800 = vst [vmem:[#allocation71_spill] sm:$0xff] %v4287_v22  ;;  %v2189_v39 = vmax.f32 %v2187_v42, %v2188_v37  ;;  %v2209_v3 = vmax.f32 %v2207_v17, %v2208_v30  ;;  %v2229_v4 = vmax.f32 %v2227_v54, %v2228_v45  ;;  %v2247_v41 = vunpack.i.l.bf16 %v2246_v19  ;;  %v3497_v45 = vld [vmem:[%s5637_s0 + $0x390] sm:$0x1f]  }
 0x12e   :  { %v2219_v13 = vrot.slane %v2218_v58, 2  ;;  %v2248_v1 = vunpack.i.h.bf16 %v2246_v19  ;;  %v2200_v27 = vmax.f32 %v2198_v24, %v2199_v34  ;;  %v2239_v42 = vrot.slane %v2238_v62, 4 }
 0x12f   :  { %v4297_v9 = vpack.i.bf16 %v2189_v39, %v2189_v39  ;;  %v2210_v8 = vrot.slane %v2209_v3, 1  ;;  %v2230_v17 = vrot.slane %v2229_v4, 2  ;;  %v2257_v10 = vsel %vm3539_vm2, %v3494_v52, 4286644096 }
 0x130   :  { %v2220_v0 = vmax.f32 %v2218_v58, %v2219_v13  ;;  %v2249_v43 = vmax.f32 %v2247_v41, %v2248_v1  ;;  %v4301_v54 = vpack.i.bf16 %v2200_v27, %v2200_v27  ;;  %v2240_v37 = vmax.f32 %v2238_v62, %v2239_v42 }
 0x131   :  { %5801 = vst [vmem:[#allocation72_spill] sm:$0xff] %v4297_v9  ;;  %v2211_v26 = vmax.f32 %v2209_v3, %v2210_v8  ;;  %v2258_v30 = vunpack.i.l.bf16 %v2257_v10  ;;  %v2231_v39 = vmax.f32 %v2229_v4, %v2230_v17  ;;  %v2259_v34 = vunpack.i.h.bf16 %v2257_v10  ;;  %v3498_v4 = vld [vmem:[%s5637_s0 + $0x398] sm:$0x1f]   ;;  %v3499_v17 = vld [vmem:[%s5637_s0 + $0x3a0] sm:$0x1f]  }
 0x132   :  { %5802 = vst [vmem:[#allocation73_spill] sm:$0xff] %v4301_v54  ;;  %v2221_v19 = vrot.slane %v2220_v0, 1  ;;  %v2250_v24 = vrot.slane %v2249_v43, 4  ;;  %v2241_v58 = vrot.slane %v2240_v37, 2  ;;  %v2268_v13 = vsel %vm3539_vm2, %v3495_v55, 4286644096 }
 0x133   :  { %v4306_v9 = vpack.i.bf16 %v2211_v26, %v2211_v26  ;;  %v2279_v52 = vsel %vm3539_vm2, %v3496_v50, 4286644096  ;;  %v2232_v62 = vrot.slane %v2231_v39, 1  ;;  %v2260_v1 = vmax.f32 %v2258_v30, %v2259_v34 }
 0x134   :  { %v2222_v3 = vmax.f32 %v2220_v0, %v2221_v19  ;;  %v2251_v41 = vmax.f32 %v2249_v43, %v2250_v24  ;;  %v2242_v27 = vmax.f32 %v2240_v37, %v2241_v58  ;;  %v2269_v8 = vunpack.i.l.bf16 %v2268_v13 }
 0x135   :  { %5803 = vst [vmem:[#allocation74_spill] sm:$0xff] %v4306_v9  ;;  %v2270_v42 = vunpack.i.h.bf16 %v2268_v13  ;;  %v2280_v54 = vunpack.i.l.bf16 %v2279_v52  ;;  %v2233_v10 = vmax.f32 %v2231_v39, %v2232_v62  ;;  %v2261_v0 = vrot.slane %v2260_v1, 4 }
 0x136   :  { %v4318_v55 = vpack.i.bf16 %v2222_v3, %v2222_v3  ;;  %v2252_v50 = vrot.slane %v2251_v41, 2  ;;  %v2243_v26 = vrot.slane %v2242_v27, 1  ;;  %v2281_v30 = vunpack.i.h.bf16 %v2279_v52 }
 0x137   :  { %v2271_v43 = vmax.f32 %v2269_v8, %v2270_v42  ;;  %v2290_v37 = vsel %vm3539_vm2, %v3497_v45, 4286644096  ;;  %v4322_v19 = vpack.i.bf16 %v2233_v10, %v2233_v10  ;;  %v2262_v34 = vmax.f32 %v2260_v1, %v2261_v0  ;;  %v3500_v45 = vld [vmem:[%s5637_s0 + $0x3a8] sm:$0x1f]  }
 0x138   :  { %5804 = vst [vmem:[#allocation75_spill] sm:$0xff] %v4318_v55  ;;  %v2253_v24 = vmax.f32 %v2251_v41, %v2252_v50  ;;  %v2291_v58 = vunpack.i.l.bf16 %v2290_v37  ;;  %v2244_v13 = vmax.f32 %v2242_v27, %v2243_v26  ;;  %v2282_v22 = vmax.f32 %v2280_v54, %v2281_v30 }
 0x139   :  { %5805 = vst [vmem:[#allocation76_spill] sm:$0xff] %v4322_v19  ;;  %v2272_v9 = vrot.slane %v2271_v43, 4  ;;  %v2292_v56 = vunpack.i.h.bf16 %v2290_v37  ;;  %v2263_v55 = vrot.slane %v2262_v34, 2  ;;  %v2301_v39 = vsel %vm3539_vm2, %v3498_v4, 4286644096 }
 0x13a   :  { %v2254_v3 = vrot.slane %v2253_v24, 1  ;;  %v2312_v52 = vsel %vm3539_vm2, %v3499_v17, 4286644096  ;;  %v4331_v62 = vpack.i.bf16 %v2244_v13, %v2244_v13  ;;  %v2283_v1 = vrot.slane %v2282_v22, 4  ;;  %v3501_v17 = vld [vmem:[%s5637_s0 + $0x3b0] sm:$0x1f]  }
 0x13b   :  { %v2273_v41 = vmax.f32 %v2271_v43, %v2272_v9  ;;  %v2293_v27 = vmax.f32 %v2291_v58, %v2292_v56  ;;  %v2264_v54 = vmax.f32 %v2262_v34, %v2263_v55  ;;  %v2302_v42 = vunpack.i.l.bf16 %v2301_v39 }
 0x13c   :  { %5806 = vst [vmem:[#allocation77_spill] sm:$0xff] %v4331_v62  ;;  %v2255_v8 = vmax.f32 %v2253_v24, %v2254_v3  ;;  %v2303_v10 = vunpack.i.h.bf16 %v2301_v39  ;;  %v2284_v0 = vmax.f32 %v2282_v22, %v2283_v1  ;;  %v2313_v4 = vunpack.i.l.bf16 %v2312_v52 }
 0x13d   :  { %v2274_v50 = vrot.slane %v2273_v41, 2  ;;  %v2294_v26 = vrot.slane %v2293_v27, 4  ;;  %v2265_v37 = vrot.slane %v2264_v54, 1  ;;  %v2314_v62 = vunpack.i.h.bf16 %v2312_v52 }
 0x13e   :  { %v4336_v30 = vpack.i.bf16 %v2255_v8, %v2255_v8  ;;  %v2304_v13 = vmax.f32 %v2302_v42, %v2303_v10  ;;  %v2285_v43 = vrot.slane %v2284_v0, 2  ;;  %v2323_v55 = vsel %vm3539_vm2, %v3500_v45, 4286644096  ;;  %v3502_v8 = vld [vmem:[%s5637_s0 + $0x3b8] sm:$0x1f]  }
 0x13f   :  { %v2275_v9 = vmax.f32 %v2273_v41, %v2274_v50  ;;  %v2295_v56 = vmax.f32 %v2293_v27, %v2294_v26  ;;  %v2266_v24 = vmax.f32 %v2264_v54, %v2265_v37  ;;  %v2315_v22 = vmax.f32 %v2313_v4, %v2314_v62  ;;  %v3503_v37 = vld [vmem:[%s5637_s0 + $0x3c0] sm:$0x1f]  }
 0x140   :  { %5807 = vst [vmem:[#allocation78_spill] sm:$0xff] %v4336_v30  ;;  %v2305_v34 = vrot.slane %v2304_v13, 4  ;;  %v2324_v58 = vunpack.i.l.bf16 %v2323_v55  ;;  %v2286_v39 = vmax.f32 %v2284_v0, %v2285_v43  ;;  %v2325_v19 = vunpack.i.h.bf16 %v2323_v55 }
 0x141   :  { %v2276_v3 = vrot.slane %v2275_v9, 1  ;;  %v2296_v1 = vrot.slane %v2295_v56, 2  ;;  %v4343_v42 = vpack.i.bf16 %v2266_v24, %v2266_v24  ;;  %v2316_v41 = vrot.slane %v2315_v22, 4 }
 0x142   :  { %v2306_v52 = vmax.f32 %v2304_v13, %v2305_v34  ;;  %v2334_v27 = vsel %vm3539_vm2, %v3501_v17, 4286644096  ;;  %v2287_v54 = vrot.slane %v2286_v39, 1  ;;  %v2326_v62 = vmax.f32 %v2324_v58, %v2325_v19  ;;  %v3504_v13 = vld [vmem:[%s5637_s0 + $0x3c8] sm:$0x1f]  }
 0x143   :  { %5808 = vst [vmem:[#allocation79_spill] sm:$0xff] %v4343_v42  ;;  %v2277_v45 = vmax.f32 %v2275_v9, %v2276_v3  ;;  %v2297_v10 = vmax.f32 %v2295_v56, %v2296_v1  ;;  %v2317_v26 = vmax.f32 %v2315_v22, %v2316_v41  ;;  %v2335_v0 = vunpack.i.l.bf16 %v2334_v27  ;;  %v3505_v41 = vld [vmem:[%s5637_s0 + $0x3d0] sm:$0x1f]  }
 0x144   :  { %v2307_v50 = vrot.slane %v2306_v52, 2  ;;  %v2336_v4 = vunpack.i.h.bf16 %v2334_v27  ;;  %v2288_v55 = vmax.f32 %v2286_v39, %v2287_v54  ;;  %v2327_v9 = vrot.slane %v2326_v62, 4 }
 0x145   :  { %v4353_v43 = vpack.i.bf16 %v2277_v45, %v2277_v45  ;;  %v2298_v17 = vrot.slane %v2297_v10, 1  ;;  %v2318_v56 = vrot.slane %v2317_v26, 2  ;;  %v2345_v34 = vsel %vm3539_vm2, %v3502_v8, 4286644096 }
 0x146   :  { %v2308_v24 = vmax.f32 %v2306_v52, %v2307_v50  ;;  %v2337_v19 = vmax.f32 %v2335_v0, %v2336_v4  ;;  %v4357_v22 = vpack.i.bf16 %v2288_v55, %v2288_v55  ;;  %v2328_v3 = vmax.f32 %v2326_v62, %v2327_v9 }
 0x147   :  { %5809 = vst [vmem:[#allocation80_spill] sm:$0xff] %v4353_v43  ;;  %v2299_v58 = vmax.f32 %v2297_v10, %v2298_v17  ;;  %v2346_v1 = vunpack.i.l.bf16 %v2345_v34  ;;  %v2319_v45 = vmax.f32 %v2317_v26, %v2318_v56  ;;  %v2347_v54 = vunpack.i.h.bf16 %v2345_v34  ;;  %v3506_v26 = vld [vmem:[%s5637_s0 + $0x3d8] sm:$0x1f]   ;;  %v3507_v56 = vld [vmem:[%s5637_s0 + $0x3e0] sm:$0x1f]  }
 0x148   :  { %5810 = vst [vmem:[#allocation81_spill] sm:$0xff] %v4357_v22  ;;  %v2309_v27 = vrot.slane %v2308_v24, 1  ;;  %v2338_v39 = vrot.slane %v2337_v19, 4  ;;  %v2329_v52 = vrot.slane %v2328_v3, 2  ;;  %v2356_v50 = vsel %vm3539_vm2, %v3503_v37, 4286644096 }
 0x149   :  { %v4362_v43 = vpack.i.bf16 %v2299_v58, %v2299_v58  ;;  %v2367_v8 = vsel %vm3539_vm2, %v3504_v13, 4286644096  ;;  %v2320_v62 = vrot.slane %v2319_v45, 1  ;;  %v2348_v4 = vmax.f32 %v2346_v1, %v2347_v54 }
 0x14a   :  { %v2310_v10 = vmax.f32 %v2308_v24, %v2309_v27  ;;  %v2339_v0 = vmax.f32 %v2337_v19, %v2338_v39  ;;  %v2330_v55 = vmax.f32 %v2328_v3, %v2329_v52  ;;  %v2357_v17 = vunpack.i.l.bf16 %v2356_v50 }
 0x14b   :  { %5811 = vst [vmem:[#allocation82_spill] sm:$0xff] %v4362_v43  ;;  %v2358_v9 = vunpack.i.h.bf16 %v2356_v50  ;;  %v2368_v22 = vunpack.i.l.bf16 %v2367_v8  ;;  %v2321_v34 = vmax.f32 %v2319_v45, %v2320_v62  ;;  %v2349_v24 = vrot.slane %v2348_v4, 4 }
 0x14c   :  { %v4374_v37 = vpack.i.bf16 %v2310_v10, %v2310_v10  ;;  %v2340_v13 = vrot.slane %v2339_v0, 2  ;;  %v2331_v58 = vrot.slane %v2330_v55, 1  ;;  %v2369_v1 = vunpack.i.h.bf16 %v2367_v8 }
 0x14d   :  { %v2359_v19 = vmax.f32 %v2357_v17, %v2358_v9  ;;  %v2378_v3 = vsel %vm3539_vm2, %v3505_v41, 4286644096  ;;  %v4378_v27 = vpack.i.bf16 %v2321_v34, %v2321_v34  ;;  %v2350_v54 = vmax.f32 %v2348_v4, %v2349_v24  ;;  %v3508_v41 = vld [vmem:[%s5637_s0 + $0x3e8] sm:$0x1f]  }
 0x14e   :  { %5812 = vst [vmem:[#allocation83_spill] sm:$0xff] %v4374_v37  ;;  %v2341_v39 = vmax.f32 %v2339_v0, %v2340_v13  ;;  %v2379_v52 = vunpack.i.l.bf16 %v2378_v3  ;;  %v2332_v50 = vmax.f32 %v2330_v55, %v2331_v58  ;;  %v2370_v42 = vmax.f32 %v2368_v22, %v2369_v1 }
 0x14f   :  { %5813 = vst [vmem:[#allocation84_spill] sm:$0xff] %v4378_v27  ;;  %v2360_v43 = vrot.slane %v2359_v19, 4  ;;  %v2380_v30 = vunpack.i.h.bf16 %v2378_v3  ;;  %v2351_v37 = vrot.slane %v2350_v54, 2  ;;  %v2389_v45 = vsel %vm3539_vm2, %v3506_v26, 4286644096 }
 0x150   :  { %v2342_v10 = vrot.slane %v2341_v39, 1  ;;  %v2400_v8 = vsel %vm3539_vm2, %v3507_v56, 4286644096  ;;  %v4387_v62 = vpack.i.bf16 %v2332_v50, %v2332_v50  ;;  %v2371_v4 = vrot.slane %v2370_v42, 4  ;;  %v3509_v56 = vld [vmem:[%s5637_s0 + $0x3f0] sm:$0x1f]  }
 0x151   :  { %v2361_v0 = vmax.f32 %v2359_v19, %v2360_v43  ;;  %v2381_v55 = vmax.f32 %v2379_v52, %v2380_v30  ;;  %v2352_v22 = vmax.f32 %v2350_v54, %v2351_v37  ;;  %v2390_v9 = vunpack.i.l.bf16 %v2389_v45 }
 0x152   :  { %5814 = vst [vmem:[#allocation85_spill] sm:$0xff] %v4387_v62  ;;  %v2343_v17 = vmax.f32 %v2341_v39, %v2342_v10  ;;  %v2391_v34 = vunpack.i.h.bf16 %v2389_v45  ;;  %v2372_v24 = vmax.f32 %v2370_v42, %v2371_v4  ;;  %v2401_v26 = vunpack.i.l.bf16 %v2400_v8 }
 0x153   :  { %v2362_v13 = vrot.slane %v2361_v0, 2  ;;  %v2382_v58 = vrot.slane %v2381_v55, 4  ;;  %v2353_v3 = vrot.slane %v2352_v22, 1  ;;  %v2402_v62 = vunpack.i.h.bf16 %v2400_v8 }
 0x154   :  { %v4392_v1 = vpack.i.bf16 %v2343_v17, %v2343_v17  ;;  %v2392_v50 = vmax.f32 %v2390_v9, %v2391_v34  ;;  %v2373_v19 = vrot.slane %v2372_v24, 2  ;;  %v2411_v37 = vsel %vm3539_vm2, %v3508_v41, 4286644096  ;;  %v3510_v17 = vld [vmem:[%s5637_s0 + $0x3f8] sm:$0x1f]  }
 0x155   :  { %v2363_v43 = vmax.f32 %v2361_v0, %v2362_v13  ;;  %v2383_v30 = vmax.f32 %v2381_v55, %v2382_v58  ;;  %v2354_v39 = vmax.f32 %v2352_v22, %v2353_v3  ;;  %v2403_v42 = vmax.f32 %v2401_v26, %v2402_v62 }
 0x156   :  { %5815 = vst [vmem:[#allocation86_spill] sm:$0xff] %v4392_v1  ;;  %v2393_v54 = vrot.slane %v2392_v50, 4  ;;  %v2412_v52 = vunpack.i.l.bf16 %v2411_v37  ;;  %v2374_v45 = vmax.f32 %v2372_v24, %v2373_v19  ;;  %v2413_v27 = vunpack.i.h.bf16 %v2411_v37 }
 0x157   :  { %v2364_v10 = vrot.slane %v2363_v43, 1  ;;  %v2384_v4 = vrot.slane %v2383_v30, 2  ;;  %v4399_v9 = vpack.i.bf16 %v2354_v39, %v2354_v39  ;;  %v2404_v0 = vrot.slane %v2403_v42, 4 }
 0x158   :  { %v2394_v8 = vmax.f32 %v2392_v50, %v2393_v54  ;;  %v2422_v55 = vsel %vm3539_vm2, %v3509_v56, 4286644096  ;;  %v2375_v22 = vrot.slane %v2374_v45, 1  ;;  %v2414_v62 = vmax.f32 %v2412_v52, %v2413_v27 }
 0x159   :  { %5816 = vst [vmem:[#allocation87_spill] sm:$0xff] %v4399_v9  ;;  %v2365_v41 = vmax.f32 %v2363_v43, %v2364_v10  ;;  %v2385_v34 = vmax.f32 %v2383_v30, %v2384_v4  ;;  %v2405_v58 = vmax.f32 %v2403_v42, %v2404_v0  ;;  %v2423_v24 = vunpack.i.l.bf16 %v2422_v55 }
 0x15a   :  { %v2395_v13 = vrot.slane %v2394_v8, 2  ;;  %v2424_v26 = vunpack.i.h.bf16 %v2422_v55  ;;  %v2376_v19 = vmax.f32 %v2374_v45, %v2375_v22  ;;  %v2415_v1 = vrot.slane %v2414_v62, 4 }
 0x15b   :  { %v4403_v3 = vpack.i.bf16 %v2365_v41, %v2365_v41  ;;  %v2386_v37 = vrot.slane %v2385_v34, 1  ;;  %v2406_v9 = vrot.slane %v2405_v58, 2  ;;  %v2433_v54 = vsel %vm3539_vm2, %v3510_v17, 4286644096 }
 0x15c   :  { %v2396_v39 = vmax.f32 %v2394_v8, %v2395_v13  ;;  %v2425_v50 = vmax.f32 %v2423_v24, %v2424_v26  ;;  %v4407_v56 = vpack.i.bf16 %v2376_v19, %v2376_v19  ;;  %v2416_v30 = vmax.f32 %v2414_v62, %v2415_v1  ;;  %v5897_v8 = vld [vmem:[#allocation80_spill] sm:$0xff] }
 0x15d   :  { %v2387_v43 = vmax.f32 %v2385_v34, %v2386_v37  ;;  %v2434_v27 = vunpack.i.l.bf16 %v2433_v54  ;;  %v2407_v42 = vmax.f32 %v2405_v58, %v2406_v9  ;;  %v2435_v4 = vunpack.i.h.bf16 %v2433_v54  ;;  %v5900_v37 = vld [vmem:[#allocation83_spill] sm:$0xff]  ;;  %v5901_v62 = vld [vmem:[#allocation84_spill] sm:$0xff]  ;;  %v5902_v9 = vld [vmem:[#allocation85_spill] sm:$0xff] }
 0x15e   :  { %5817 = vst [vmem:[#allocation88_spill] sm:$0xff] %v4407_v56  ;;  %v2397_v52 = vrot.slane %v2396_v39, 1  ;;  %v2426_v10 = vrot.slane %v2425_v50, 4  ;;  %v2417_v45 = vrot.slane %v2416_v30, 2  ;;  %v5903_v1 = vld [vmem:[#allocation86_spill] sm:$0xff]  ;;  %vm2968_vm9 = vcmask 1047559  }
 0x15f   :  { %v4409_v0 = vpack.i.bf16 %v2387_v43, %v2387_v43  ;;  %v2408_v17 = vrot.slane %v2407_v42, 1  ;;  %v2436_v22 = vmax.f32 %v2434_v27, %v2435_v4  ;;  %v5825_v27 = vld [vmem:[#allocation8_spill] sm:$0xff]  ;;  %v5907_v4 = vcombine.low %v3581_v21, %v3581_v21 }
 0x160   :  { %v2398_v6 = vmax.f32 %v2396_v39, %v2397_v52  ;;  %v2427_v41 = vmax.f32 %v2425_v50, %v2426_v10  ;;  %v2418_v34 = vmax.f32 %v2416_v30, %v2417_v45  ;;  %v5823_v10 = vld [vmem:[#allocation6_spill] sm:$0xff]  ;;  %v5898_v50 = vld [vmem:[#allocation81_spill] sm:$0xff]  ;;  %v5904_v55 = vld [vmem:[#allocation87_spill] sm:$0xff]  ;;  %v5908_v39 = vcombine.low %v3583_v25, %v3583_v25 }
 0x161   :  { %v2409_v58 = vmax.f32 %v2407_v42, %v2408_v17  ;;  %v2437_v26 = vrot.slane %v2436_v22, 4  ;;  %v5821_v17 = vld [vmem:[#allocation4_spill] sm:$0xff]  ;;  %v5824_v42 = vld [vmem:[#allocation7_spill] sm:$0xff]  ;;  %v5911_v21 = vcombine.low %v3603_v47, %v3603_v47  ;;  %v5912_v25 = vcombine.low %v3615_v5, %v3615_v5 }
 0x162   :  { %v4421_v13 = vpack.i.bf16 %v2398_v6, %v2398_v6  ;;  %v2428_v24 = vrot.slane %v2427_v41, 2  ;;  %v2419_v19 = vrot.slane %v2418_v34, 1  ;;  %v5915_v47 = vcombine.low %v3638_v60, %v3638_v60 }
 0x163   :  { %v4429_v54 = vpack.i.bf16 %v2409_v58, %v2409_v58  ;;  %v2438_v30 = vmax.f32 %v2436_v22, %v2437_v26  ;;  %v5819_v58 = vld [vmem:[#allocation2_spill] sm:$0xff]  ;;  %v5916_v5 = vcombine.low %v3640_v61, %v3640_v61  ;;  %v5919_v60 = vcombine.low %v3664_v40, %v3664_v40 }
 0x164   :  { %v2429_v43 = vmax.f32 %v2427_v41, %v2428_v24  ;;  %v2420_v52 = vmax.f32 %v2418_v34, %v2419_v19  ;;  %v5822_v41 = vld [vmem:[#allocation5_spill] sm:$0xff]  ;;  %v5906_v34 = vcombine.low %v3573_v16, %v3573_v16  ;;  %v5910_v16 = vcombine.low %v3594_v38, %v3594_v38 }
 0x165   :  { %v2439_v6 = vrot.slane %v2438_v30, 2  ;;  %v5914_v38 = vcombine.low %v3629_v48, %v3629_v48  ;;  %v5918_v48 = vcombine.low %v3652_v23, %v3652_v23  ;;  %v5920_v61 = vcombine.low %v3673_v2, %v3673_v2 }
 0x166   :  { %v2430_v45 = vrot.slane %v2429_v43, 1  ;;  %v4443_v22 = vpack.i.bf16 %v2420_v52, %v2420_v52  ;;  %v4685_v52 = vunpack.c.l.b16 %v5906_v34  ;;  %v4705_v34 = vunpack.c.l.b16 %v5910_v16 }
 0x167   :  { %v2440_v19 = vmax.f32 %v2438_v30, %v2439_v6  ;;  %v5905_v6 = vcombine.low %v3571_v15, %v3571_v15  ;;  %v5909_v15 = vcombine.low %v3589_v29, %v3589_v29  ;;  %v5913_v29 = vcombine.low %v3627_v46, %v3627_v46 }
 0x168   :  { %v2431_v26 = vmax.f32 %v2429_v43, %v2430_v45  ;;  %v4725_v16 = vunpack.c.l.b16 %v5914_v38  ;;  %v5917_v46 = vcombine.low %v3645_v7, %v3645_v7  ;;  %v4745_v38 = vunpack.c.l.b16 %v5918_v48  ;;  %v5951_v45 = vld [vmem:[#allocation9_spill] sm:$0xff] }
 0x169   :  { %v2441_v30 = vrot.slane %v2440_v19, 1  ;;  %v4680_v56 = vunpack.c.l.b16 %v5905_v6  ;;  %v4700_v6 = vunpack.c.l.b16 %v5909_v15  ;;  %v4720_v15 = vunpack.c.l.b16 %v5913_v29 }
 0x16a   :  { %v4463_v43 = vpack.i.bf16 %v2431_v26, %v2431_v26  ;;  %v5820_v26 = vld [vmem:[#allocation3_spill] sm:$0xff]  ;;  %v4740_v29 = vunpack.c.l.b16 %v5917_v46  ;;  %v5921_v7 = vcombine.low %v3683_v28, %v3683_v28  ;;  %v5922_v23 = vcombine.low %v3685_v33, %v3685_v33 }
 0x16b   :  { %v2442_v24 = vmax.f32 %v2440_v19, %v2441_v30  ;;  %v4690_v19 = vunpack.c.l.b16 %v5907_v4  ;;  %v4710_v4 = vunpack.c.l.b16 %v5911_v21  ;;  %v4730_v21 = vunpack.c.l.b16 %v5915_v47 }
 0x16c   :  { %5818 = vst [vmem:[#allocation89_spill] sm:$0xff] %v4463_v43  ;;  %v4695_v43 = vunpack.c.l.b16 %v5908_v39  ;;  %v4715_v39 = vunpack.c.l.b16 %v5912_v25  ;;  %v4735_v25 = vunpack.c.l.b16 %v5916_v5  ;;  %v4750_v47 = vunpack.c.l.b16 %v5919_v60 }
 0x16d   :  { %v4491_v30 = vpack.i.bf16 %v2442_v24, %v2442_v24  ;;  %v5899_v24 = vld [vmem:[#allocation82_spill] sm:$0xff]  ;;  %v4755_v5 = vunpack.c.l.b16 %v5920_v61  ;;  %v4760_v46 = vunpack.c.l.b16 %v5921_v7  ;;  %v4765_v48 = vunpack.c.l.b16 %v5922_v23 }
 0x16e   :  { %v5923_v40 = vcombine.low %v3690_v44, %v3690_v44  ;;  %v5924_v2 = vcombine.low %v3702_v63, %v3702_v63  ;;  %v5925_v28 = vcombine.low %v3706_v11, %v3706_v11  ;;  %v5926_v33 = vcombine.low %v3715_v31, %v3715_v31 }
 0x16f   :  { %v5927_v44 = vcombine.low %v3720_v51, %v3720_v51  ;;  %v5928_v63 = vcombine.low %v3727_v12, %v3727_v12  ;;  %v5929_v11 = vcombine.low %v3737_v35, %v3737_v35  ;;  %v5930_v31 = vcombine.low %v3741_v49, %v3741_v49 }
 0x170   :  { %v4770_v60 = vunpack.c.l.b16 %v5923_v40  ;;  %v4775_v61 = vunpack.c.l.b16 %v5924_v2  ;;  %v4780_v7 = vunpack.c.l.b16 %v5925_v28  ;;  %v4785_v23 = vunpack.c.l.b16 %v5926_v33 }
 0x171   :  { %v4790_v40 = vunpack.c.l.b16 %v5927_v44  ;;  %v4795_v2 = vunpack.c.l.b16 %v5928_v63  ;;  %v4800_v28 = vunpack.c.l.b16 %v5929_v11  ;;  %v4805_v33 = vunpack.c.l.b16 %v5930_v31 }
 0x172   :  { %v5931_v51 = vcombine.low %v3746_v59, %v3746_v59  ;;  %v5932_v12 = vcombine.low %v3758_v20, %v3758_v20  ;;  %v5933_v35 = vcombine.low %v3762_v36, %v3762_v36  ;;  %v5934_v49 = vcombine.low %v3771_v57, %v3771_v57 }
 0x173   :  { %v5935_v59 = vcombine.low %v3776_v18, %v3776_v18  ;;  %v5936_v20 = vcombine.low %v3783_v53, %v3783_v53  ;;  %v5937_v36 = vcombine.low %v3793_v14, %v3793_v14  ;;  %v5938_v57 = vcombine.low %v3797_v32, %v3797_v32 }
 0x174   :  { %v4810_v44 = vunpack.c.l.b16 %v5931_v51  ;;  %v4815_v63 = vunpack.c.l.b16 %v5932_v12  ;;  %v4820_v11 = vunpack.c.l.b16 %v5933_v35  ;;  %v4825_v31 = vunpack.c.l.b16 %v5934_v49 }
 0x175   :  { %v4830_v51 = vunpack.c.l.b16 %v5935_v59  ;;  %v4835_v12 = vunpack.c.l.b16 %v5936_v20  ;;  %v4840_v35 = vunpack.c.l.b16 %v5937_v36  ;;  %v4845_v49 = vunpack.c.l.b16 %v5938_v57 }
 0x176   :  { %v5939_v18 = vcombine.low %v5819_v58, %v5819_v58  ;;  %v5940_v53 = vcombine.low %v5820_v26, %v5820_v26  ;;  %v5942_v14 = vcombine.low %v5821_v17, %v5821_v17  ;;  %v5944_v32 = vcombine.low %v5822_v41, %v5822_v41 }
 0x177   :  { %v5946_v58 = vcombine.low %v5823_v10, %v5823_v10  ;;  %v5948_v26 = vcombine.low %v5824_v42, %v5824_v42  ;;  %v5950_v17 = vcombine.low %v5825_v27, %v5825_v27  ;;  %v5952_v41 = vcombine.low %v5951_v45, %v5951_v45 }
 0x178   :  { %v4850_v59 = vunpack.c.l.b16 %v5939_v18  ;;  %v4855_v20 = vunpack.c.l.b16 %v5940_v53  ;;  %v4860_v36 = vunpack.c.l.b16 %v5942_v14  ;;  %v4865_v57 = vunpack.c.l.b16 %v5944_v32 }
 0x179   :  { %v4870_v18 = vunpack.c.l.b16 %v5946_v58  ;;  %v4875_v53 = vunpack.c.l.b16 %v5948_v26  ;;  %v4880_v14 = vunpack.c.l.b16 %v5950_v17  ;;  %v4885_v32 = vunpack.c.l.b16 %v5952_v41 }
 0x17a   :  { %5941 = vst [vmem:[#allocation2_spill] sm:$0xff] %v4855_v20  ;;  %5943 = vst [vmem:[#allocation3_spill] sm:$0xff] %v4860_v36  ;;  %v5962_v36 = vld [vmem:[#allocation13_spill] sm:$0xff]  ;;  %v5965_v20 = vld [vmem:[#allocation14_spill] sm:$0xff] }
 0x17b   :  { %5945 = vst [vmem:[#allocation4_spill] sm:$0xff] %v4865_v57  ;;  %5947 = vst [vmem:[#allocation5_spill] sm:$0xff] %v4870_v18  ;;  %v5953_v57 = vld [vmem:[#allocation10_spill] sm:$0xff]  ;;  %v5956_v18 = vld [vmem:[#allocation11_spill] sm:$0xff]  ;;  %v5963_v45 = vcombine.low %v5962_v36, %v5962_v36 }
 0x17c   :  { %5949 = vst [vmem:[#allocation6_spill] sm:$0xff] %v4875_v53  ;;  %v5954_v10 = vcombine.low %v5953_v57, %v5953_v57  ;;  %v5957_v42 = vcombine.low %v5956_v18, %v5956_v18  ;;  %v5959_v53 = vld [vmem:[#allocation12_spill] sm:$0xff]  ;;  %v5966_v57 = vcombine.low %v5965_v20, %v5965_v20 }
 0x17d   :  { %v5960_v27 = vcombine.low %v5959_v53, %v5959_v53  ;;  %v4905_v41 = vunpack.c.l.b16 %v5963_v45 }
 0x17e   :  { %v4890_v58 = vunpack.c.l.b16 %v5954_v10  ;;  %v4895_v26 = vunpack.c.l.b16 %v5957_v42  ;;  %v4910_v10 = vunpack.c.l.b16 %v5966_v57 }
 0x17f   :  { %v4900_v17 = vunpack.c.l.b16 %v5960_v27  ;;  %5964 = vst [vmem:[#allocation81_spill] sm:$0xff] %v4905_v41  ;;  %v5977_v41 = vld [vmem:[#allocation18_spill] sm:$0xff] }
 0x180   :  { %5955 = vst [vmem:[#allocation7_spill] sm:$0xff] %v4890_v58  ;;  %5958 = vst [vmem:[#allocation8_spill] sm:$0xff] %v4895_v26  ;;  %v5968_v58 = vld [vmem:[#allocation15_spill] sm:$0xff]  ;;  %v5971_v26 = vld [vmem:[#allocation16_spill] sm:$0xff]  ;;  %v5978_v20 = vcombine.low %v5977_v41, %v5977_v41 }
 0x181   :  { %5961 = vst [vmem:[#allocation80_spill] sm:$0xff] %v4900_v17  ;;  %5967 = vst [vmem:[#allocation82_spill] sm:$0xff] %v4910_v10  ;;  %v5969_v18 = vcombine.low %v5968_v58, %v5968_v58  ;;  %v5972_v53 = vcombine.low %v5971_v26, %v5971_v26  ;;  %v5974_v17 = vld [vmem:[#allocation17_spill] sm:$0xff]  ;;  %v5980_v10 = vld [vmem:[#allocation19_spill] sm:$0xff] }
 0x182   :  { %v5975_v36 = vcombine.low %v5974_v17, %v5974_v17  ;;  %v4930_v57 = vunpack.c.l.b16 %v5978_v20  ;;  %v5981_v58 = vcombine.low %v5980_v10, %v5980_v10 }
 0x183   :  { %v4915_v42 = vunpack.c.l.b16 %v5969_v18  ;;  %v4920_v27 = vunpack.c.l.b16 %v5972_v53 }
 0x184   :  { %v4925_v45 = vunpack.c.l.b16 %v5975_v36  ;;  %5979 = vst [vmem:[#allocation86_spill] sm:$0xff] %v4930_v57  ;;  %v4935_v18 = vunpack.c.l.b16 %v5981_v58  ;;  %v5992_v57 = vld [vmem:[#allocation23_spill] sm:$0xff] }
 0x185   :  { %5970 = vst [vmem:[#allocation83_spill] sm:$0xff] %v4915_v42  ;;  %5973 = vst [vmem:[#allocation84_spill] sm:$0xff] %v4920_v27  ;;  %v5983_v42 = vld [vmem:[#allocation20_spill] sm:$0xff]  ;;  %v5986_v27 = vld [vmem:[#allocation21_spill] sm:$0xff]  ;;  %v5993_v10 = vcombine.low %v5992_v57, %v5992_v57 }
 0x186   :  { %5976 = vst [vmem:[#allocation85_spill] sm:$0xff] %v4925_v45  ;;  %5982 = vst [vmem:[#allocation87_spill] sm:$0xff] %v4935_v18  ;;  %v5984_v26 = vcombine.low %v5983_v42, %v5983_v42  ;;  %v5987_v17 = vcombine.low %v5986_v27, %v5986_v27  ;;  %v5989_v45 = vld [vmem:[#allocation22_spill] sm:$0xff]  ;;  %v5995_v18 = vld [vmem:[#allocation24_spill] sm:$0xff] }
 0x187   :  { %v5990_v41 = vcombine.low %v5989_v45, %v5989_v45  ;;  %v4955_v58 = vunpack.c.l.b16 %v5993_v10  ;;  %v5996_v42 = vcombine.low %v5995_v18, %v5995_v18 }
 0x188   :  { %v4940_v53 = vunpack.c.l.b16 %v5984_v26  ;;  %v4945_v36 = vunpack.c.l.b16 %v5987_v17 }
 0x189   :  { %v4950_v20 = vunpack.c.l.b16 %v5990_v41  ;;  %5994 = vst [vmem:[#allocation12_spill] sm:$0xff] %v4955_v58  ;;  %v4960_v26 = vunpack.c.l.b16 %v5996_v42  ;;  %v6007_v58 = vld [vmem:[#allocation28_spill] sm:$0xff] }
 0x18a   :  { %5985 = vst [vmem:[#allocation9_spill] sm:$0xff] %v4940_v53  ;;  %5988 = vst [vmem:[#allocation10_spill] sm:$0xff] %v4945_v36  ;;  %v5998_v53 = vld [vmem:[#allocation25_spill] sm:$0xff]  ;;  %v6001_v36 = vld [vmem:[#allocation26_spill] sm:$0xff]  ;;  %v6008_v18 = vcombine.low %v6007_v58, %v6007_v58 }
 0x18b   :  { %5991 = vst [vmem:[#allocation11_spill] sm:$0xff] %v4950_v20  ;;  %5997 = vst [vmem:[#allocation13_spill] sm:$0xff] %v4960_v26  ;;  %v5999_v27 = vcombine.low %v5998_v53, %v5998_v53  ;;  %v6002_v45 = vcombine.low %v6001_v36, %v6001_v36  ;;  %v6004_v20 = vld [vmem:[#allocation27_spill] sm:$0xff]  ;;  %v6010_v26 = vld [vmem:[#allocation29_spill] sm:$0xff] }
 0x18c   :  { %v6005_v57 = vcombine.low %v6004_v20, %v6004_v20  ;;  %v4980_v42 = vunpack.c.l.b16 %v6008_v18  ;;  %v6011_v53 = vcombine.low %v6010_v26, %v6010_v26 }
 0x18d   :  { %v4965_v17 = vunpack.c.l.b16 %v5999_v27  ;;  %v4970_v41 = vunpack.c.l.b16 %v6002_v45 }
 0x18e   :  { %v4975_v10 = vunpack.c.l.b16 %v6005_v57  ;;  %6009 = vst [vmem:[#allocation17_spill] sm:$0xff] %v4980_v42  ;;  %v4985_v27 = vunpack.c.l.b16 %v6011_v53  ;;  %v6022_v42 = vld [vmem:[#allocation33_spill] sm:$0xff] }
 0x18f   :  { %6000 = vst [vmem:[#allocation14_spill] sm:$0xff] %v4965_v17  ;;  %6003 = vst [vmem:[#allocation15_spill] sm:$0xff] %v4970_v41  ;;  %v6013_v17 = vld [vmem:[#allocation30_spill] sm:$0xff]  ;;  %v6016_v41 = vld [vmem:[#allocation31_spill] sm:$0xff]  ;;  %v6023_v26 = vcombine.low %v6022_v42, %v6022_v42 }
 0x190   :  { %6006 = vst [vmem:[#allocation16_spill] sm:$0xff] %v4975_v10  ;;  %6012 = vst [vmem:[#allocation18_spill] sm:$0xff] %v4985_v27  ;;  %v6014_v36 = vcombine.low %v6013_v17, %v6013_v17  ;;  %v6017_v20 = vcombine.low %v6016_v41, %v6016_v41  ;;  %v6019_v10 = vld [vmem:[#allocation32_spill] sm:$0xff]  ;;  %v6025_v27 = vld [vmem:[#allocation34_spill] sm:$0xff] }
 0x191   :  { %v6020_v58 = vcombine.low %v6019_v10, %v6019_v10  ;;  %v5005_v53 = vunpack.c.l.b16 %v6023_v26  ;;  %v6026_v17 = vcombine.low %v6025_v27, %v6025_v27 }
 0x192   :  { %v4990_v45 = vunpack.c.l.b16 %v6014_v36  ;;  %v4995_v57 = vunpack.c.l.b16 %v6017_v20 }
 0x193   :  { %v5000_v18 = vunpack.c.l.b16 %v6020_v58  ;;  %6024 = vst [vmem:[#allocation22_spill] sm:$0xff] %v5005_v53  ;;  %v5010_v36 = vunpack.c.l.b16 %v6026_v17  ;;  %v6037_v53 = vld [vmem:[#allocation38_spill] sm:$0xff] }
 0x194   :  { %6015 = vst [vmem:[#allocation19_spill] sm:$0xff] %v4990_v45  ;;  %6018 = vst [vmem:[#allocation20_spill] sm:$0xff] %v4995_v57  ;;  %v6028_v45 = vld [vmem:[#allocation35_spill] sm:$0xff]  ;;  %v6031_v57 = vld [vmem:[#allocation36_spill] sm:$0xff]  ;;  %v6038_v27 = vcombine.low %v6037_v53, %v6037_v53 }
 0x195   :  { %6021 = vst [vmem:[#allocation21_spill] sm:$0xff] %v5000_v18  ;;  %6027 = vst [vmem:[#allocation23_spill] sm:$0xff] %v5010_v36  ;;  %v6029_v41 = vcombine.low %v6028_v45, %v6028_v45  ;;  %v6032_v10 = vcombine.low %v6031_v57, %v6031_v57  ;;  %v6034_v18 = vld [vmem:[#allocation37_spill] sm:$0xff]  ;;  %v6040_v36 = vld [vmem:[#allocation39_spill] sm:$0xff] }
 0x196   :  { %v6035_v42 = vcombine.low %v6034_v18, %v6034_v18  ;;  %v5030_v17 = vunpack.c.l.b16 %v6038_v27  ;;  %v6041_v45 = vcombine.low %v6040_v36, %v6040_v36 }
 0x197   :  { %v5015_v20 = vunpack.c.l.b16 %v6029_v41  ;;  %v5020_v58 = vunpack.c.l.b16 %v6032_v10 }
 0x198   :  { %v5025_v26 = vunpack.c.l.b16 %v6035_v42  ;;  %6039 = vst [vmem:[#allocation27_spill] sm:$0xff] %v5030_v17  ;;  %v5035_v41 = vunpack.c.l.b16 %v6041_v45  ;;  %v6052_v17 = vld [vmem:[#allocation43_spill] sm:$0xff] }
 0x199   :  { %6030 = vst [vmem:[#allocation24_spill] sm:$0xff] %v5015_v20  ;;  %6033 = vst [vmem:[#allocation25_spill] sm:$0xff] %v5020_v58  ;;  %v6043_v20 = vld [vmem:[#allocation40_spill] sm:$0xff]  ;;  %v6046_v58 = vld [vmem:[#allocation41_spill] sm:$0xff]  ;;  %v6053_v36 = vcombine.low %v6052_v17, %v6052_v17 }
 0x19a   :  { %6036 = vst [vmem:[#allocation26_spill] sm:$0xff] %v5025_v26  ;;  %6042 = vst [vmem:[#allocation28_spill] sm:$0xff] %v5035_v41  ;;  %v6044_v57 = vcombine.low %v6043_v20, %v6043_v20  ;;  %v6047_v18 = vcombine.low %v6046_v58, %v6046_v58  ;;  %v6049_v26 = vld [vmem:[#allocation42_spill] sm:$0xff]  ;;  %v6055_v41 = vld [vmem:[#allocation44_spill] sm:$0xff] }
 0x19b   :  { %v6050_v53 = vcombine.low %v6049_v26, %v6049_v26  ;;  %v5055_v45 = vunpack.c.l.b16 %v6053_v36  ;;  %v6056_v20 = vcombine.low %v6055_v41, %v6055_v41 }
 0x19c   :  { %v5040_v10 = vunpack.c.l.b16 %v6044_v57  ;;  %v5045_v42 = vunpack.c.l.b16 %v6047_v18 }
 0x19d   :  { %v5050_v27 = vunpack.c.l.b16 %v6050_v53  ;;  %6054 = vst [vmem:[#allocation32_spill] sm:$0xff] %v5055_v45  ;;  %v5060_v57 = vunpack.c.l.b16 %v6056_v20  ;;  %v6067_v45 = vld [vmem:[#allocation48_spill] sm:$0xff] }
 0x19e   :  { %6045 = vst [vmem:[#allocation29_spill] sm:$0xff] %v5040_v10  ;;  %6048 = vst [vmem:[#allocation30_spill] sm:$0xff] %v5045_v42  ;;  %v6058_v10 = vld [vmem:[#allocation45_spill] sm:$0xff]  ;;  %v6061_v42 = vld [vmem:[#allocation46_spill] sm:$0xff]  ;;  %v6068_v41 = vcombine.low %v6067_v45, %v6067_v45 }
 0x19f   :  { %6051 = vst [vmem:[#allocation31_spill] sm:$0xff] %v5050_v27  ;;  %6057 = vst [vmem:[#allocation33_spill] sm:$0xff] %v5060_v57  ;;  %v6059_v58 = vcombine.low %v6058_v10, %v6058_v10  ;;  %v6062_v26 = vcombine.low %v6061_v42, %v6061_v42  ;;  %v6064_v27 = vld [vmem:[#allocation47_spill] sm:$0xff]  ;;  %v6070_v57 = vld [vmem:[#allocation49_spill] sm:$0xff] }
 0x1a0   :  { %v6065_v17 = vcombine.low %v6064_v27, %v6064_v27  ;;  %v5080_v20 = vunpack.c.l.b16 %v6068_v41  ;;  %v6071_v10 = vcombine.low %v6070_v57, %v6070_v57 }
 0x1a1   :  { %v5065_v18 = vunpack.c.l.b16 %v6059_v58  ;;  %v5070_v53 = vunpack.c.l.b16 %v6062_v26 }
 0x1a2   :  { %v5075_v36 = vunpack.c.l.b16 %v6065_v17  ;;  %6069 = vst [vmem:[#allocation37_spill] sm:$0xff] %v5080_v20  ;;  %v5085_v58 = vunpack.c.l.b16 %v6071_v10  ;;  %v6082_v20 = vld [vmem:[#allocation53_spill] sm:$0xff] }
 0x1a3   :  { %6060 = vst [vmem:[#allocation34_spill] sm:$0xff] %v5065_v18  ;;  %6063 = vst [vmem:[#allocation35_spill] sm:$0xff] %v5070_v53  ;;  %v6073_v18 = vld [vmem:[#allocation50_spill] sm:$0xff]  ;;  %v6076_v53 = vld [vmem:[#allocation51_spill] sm:$0xff]  ;;  %v6083_v57 = vcombine.low %v6082_v20, %v6082_v20 }
 0x1a4   :  { %6066 = vst [vmem:[#allocation36_spill] sm:$0xff] %v5075_v36  ;;  %6072 = vst [vmem:[#allocation38_spill] sm:$0xff] %v5085_v58  ;;  %v6074_v42 = vcombine.low %v6073_v18, %v6073_v18  ;;  %v6077_v27 = vcombine.low %v6076_v53, %v6076_v53  ;;  %v6079_v36 = vld [vmem:[#allocation52_spill] sm:$0xff]  ;;  %v6085_v58 = vld [vmem:[#allocation54_spill] sm:$0xff] }
 0x1a5   :  { %v6080_v45 = vcombine.low %v6079_v36, %v6079_v36  ;;  %v5105_v10 = vunpack.c.l.b16 %v6083_v57  ;;  %v6086_v18 = vcombine.low %v6085_v58, %v6085_v58 }
 0x1a6   :  { %v5090_v26 = vunpack.c.l.b16 %v6074_v42  ;;  %v5095_v17 = vunpack.c.l.b16 %v6077_v27 }
 0x1a7   :  { %v5100_v41 = vunpack.c.l.b16 %v6080_v45  ;;  %6084 = vst [vmem:[#allocation42_spill] sm:$0xff] %v5105_v10  ;;  %v5110_v42 = vunpack.c.l.b16 %v6086_v18  ;;  %v6097_v10 = vld [vmem:[#allocation58_spill] sm:$0xff] }
 0x1a8   :  { %6075 = vst [vmem:[#allocation39_spill] sm:$0xff] %v5090_v26  ;;  %6078 = vst [vmem:[#allocation40_spill] sm:$0xff] %v5095_v17  ;;  %v6088_v26 = vld [vmem:[#allocation55_spill] sm:$0xff]  ;;  %v6091_v17 = vld [vmem:[#allocation56_spill] sm:$0xff]  ;;  %v6098_v58 = vcombine.low %v6097_v10, %v6097_v10 }
 0x1a9   :  { %6081 = vst [vmem:[#allocation41_spill] sm:$0xff] %v5100_v41  ;;  %6087 = vst [vmem:[#allocation43_spill] sm:$0xff] %v5110_v42  ;;  %v6089_v53 = vcombine.low %v6088_v26, %v6088_v26  ;;  %v6092_v36 = vcombine.low %v6091_v17, %v6091_v17  ;;  %v6094_v41 = vld [vmem:[#allocation57_spill] sm:$0xff]  ;;  %v6100_v42 = vld [vmem:[#allocation59_spill] sm:$0xff] }
 0x1aa   :  { %v6095_v20 = vcombine.low %v6094_v41, %v6094_v41  ;;  %v5130_v18 = vunpack.c.l.b16 %v6098_v58  ;;  %v6101_v26 = vcombine.low %v6100_v42, %v6100_v42 }
 0x1ab   :  { %v5115_v27 = vunpack.c.l.b16 %v6089_v53  ;;  %v5120_v45 = vunpack.c.l.b16 %v6092_v36 }
 0x1ac   :  { %v5125_v57 = vunpack.c.l.b16 %v6095_v20  ;;  %6099 = vst [vmem:[#allocation47_spill] sm:$0xff] %v5130_v18  ;;  %v5135_v53 = vunpack.c.l.b16 %v6101_v26  ;;  %v6112_v18 = vld [vmem:[#allocation63_spill] sm:$0xff] }
 0x1ad   :  { %6090 = vst [vmem:[#allocation44_spill] sm:$0xff] %v5115_v27  ;;  %6093 = vst [vmem:[#allocation45_spill] sm:$0xff] %v5120_v45  ;;  %v6103_v27 = vld [vmem:[#allocation60_spill] sm:$0xff]  ;;  %v6106_v45 = vld [vmem:[#allocation61_spill] sm:$0xff]  ;;  %v6113_v42 = vcombine.low %v6112_v18, %v6112_v18 }
 0x1ae   :  { %6096 = vst [vmem:[#allocation46_spill] sm:$0xff] %v5125_v57  ;;  %6102 = vst [vmem:[#allocation48_spill] sm:$0xff] %v5135_v53  ;;  %v6104_v17 = vcombine.low %v6103_v27, %v6103_v27  ;;  %v6107_v41 = vcombine.low %v6106_v45, %v6106_v45  ;;  %v6109_v57 = vld [vmem:[#allocation62_spill] sm:$0xff]  ;;  %v6115_v53 = vld [vmem:[#allocation64_spill] sm:$0xff] }
 0x1af   :  { %v6110_v10 = vcombine.low %v6109_v57, %v6109_v57  ;;  %v5155_v26 = vunpack.c.l.b16 %v6113_v42  ;;  %v6116_v27 = vcombine.low %v6115_v53, %v6115_v53 }
 0x1b0   :  { %v5140_v36 = vunpack.c.l.b16 %v6104_v17  ;;  %v5145_v20 = vunpack.c.l.b16 %v6107_v41 }
 0x1b1   :  { %v5150_v58 = vunpack.c.l.b16 %v6110_v10  ;;  %6114 = vst [vmem:[#allocation52_spill] sm:$0xff] %v5155_v26  ;;  %v5160_v17 = vunpack.c.l.b16 %v6116_v27  ;;  %v6127_v26 = vld [vmem:[#allocation68_spill] sm:$0xff] }
 0x1b2   :  { %6105 = vst [vmem:[#allocation49_spill] sm:$0xff] %v5140_v36  ;;  %6108 = vst [vmem:[#allocation50_spill] sm:$0xff] %v5145_v20  ;;  %v6118_v36 = vld [vmem:[#allocation65_spill] sm:$0xff]  ;;  %v6121_v20 = vld [vmem:[#allocation66_spill] sm:$0xff]  ;;  %v6128_v53 = vcombine.low %v6127_v26, %v6127_v26 }
 0x1b3   :  { %6111 = vst [vmem:[#allocation51_spill] sm:$0xff] %v5150_v58  ;;  %6117 = vst [vmem:[#allocation53_spill] sm:$0xff] %v5160_v17  ;;  %v6119_v45 = vcombine.low %v6118_v36, %v6118_v36  ;;  %v6122_v57 = vcombine.low %v6121_v20, %v6121_v20  ;;  %v6124_v58 = vld [vmem:[#allocation67_spill] sm:$0xff]  ;;  %v6130_v17 = vld [vmem:[#allocation69_spill] sm:$0xff] }
 0x1b4   :  { %v6125_v18 = vcombine.low %v6124_v58, %v6124_v58  ;;  %v5180_v27 = vunpack.c.l.b16 %v6128_v53  ;;  %v6131_v36 = vcombine.low %v6130_v17, %v6130_v17 }
 0x1b5   :  { %v5165_v41 = vunpack.c.l.b16 %v6119_v45  ;;  %v5170_v10 = vunpack.c.l.b16 %v6122_v57 }
 0x1b6   :  { %v5175_v42 = vunpack.c.l.b16 %v6125_v18  ;;  %6129 = vst [vmem:[#allocation57_spill] sm:$0xff] %v5180_v27  ;;  %v5185_v45 = vunpack.c.l.b16 %v6131_v36  ;;  %v6142_v27 = vld [vmem:[#allocation73_spill] sm:$0xff] }
 0x1b7   :  { %6120 = vst [vmem:[#allocation54_spill] sm:$0xff] %v5165_v41  ;;  %6123 = vst [vmem:[#allocation55_spill] sm:$0xff] %v5170_v10  ;;  %v6133_v41 = vld [vmem:[#allocation70_spill] sm:$0xff]  ;;  %v6136_v10 = vld [vmem:[#allocation71_spill] sm:$0xff]  ;;  %v6143_v17 = vcombine.low %v6142_v27, %v6142_v27 }
 0x1b8   :  { %6126 = vst [vmem:[#allocation56_spill] sm:$0xff] %v5175_v42  ;;  %6132 = vst [vmem:[#allocation58_spill] sm:$0xff] %v5185_v45  ;;  %v6134_v20 = vcombine.low %v6133_v41, %v6133_v41  ;;  %v6137_v58 = vcombine.low %v6136_v10, %v6136_v10  ;;  %v6139_v42 = vld [vmem:[#allocation72_spill] sm:$0xff]  ;;  %v6145_v45 = vld [vmem:[#allocation74_spill] sm:$0xff] }
 0x1b9   :  { %v6140_v26 = vcombine.low %v6139_v42, %v6139_v42  ;;  %v5205_v36 = vunpack.c.l.b16 %v6143_v17  ;;  %v6146_v41 = vcombine.low %v6145_v45, %v6145_v45 }
 0x1ba   :  { %v5190_v57 = vunpack.c.l.b16 %v6134_v20  ;;  %v5195_v18 = vunpack.c.l.b16 %v6137_v58 }
 0x1bb   :  { %v5200_v53 = vunpack.c.l.b16 %v6140_v26  ;;  %6144 = vst [vmem:[#allocation62_spill] sm:$0xff] %v5205_v36  ;;  %v5210_v20 = vunpack.c.l.b16 %v6146_v41  ;;  %v6154_v36 = vld [vmem:[#allocation78_spill] sm:$0xff] }
 0x1bc   :  { %6135 = vst [vmem:[#allocation59_spill] sm:$0xff] %v5190_v57  ;;  %6138 = vst [vmem:[#allocation60_spill] sm:$0xff] %v5195_v18  ;;  %v6148_v57 = vld [vmem:[#allocation75_spill] sm:$0xff]  ;;  %v6150_v18 = vld [vmem:[#allocation76_spill] sm:$0xff]  ;;  %v6155_v45 = vcombine.low %v6154_v36, %v6154_v36  ;;  %v6161_v36 = vcombine.low %v5899_v24, %v5899_v24  ;;  %v6165_v24 = vcombine.low %v5903_v1, %v5903_v1 }
 0x1bd   :  { %6141 = vst [vmem:[#allocation61_spill] sm:$0xff] %v5200_v53  ;;  %6147 = vst [vmem:[#allocation63_spill] sm:$0xff] %v5210_v20  ;;  %v6149_v10 = vcombine.low %v6148_v57, %v6148_v57  ;;  %v6151_v42 = vcombine.low %v6150_v18, %v6150_v18  ;;  %v6152_v53 = vld [vmem:[#allocation77_spill] sm:$0xff]  ;;  %v6156_v20 = vld [vmem:[#allocation79_spill] sm:$0xff]  ;;  %v6159_v18 = vcombine.low %v5897_v8, %v5897_v8 }
 0x1be   :  { %v6153_v27 = vcombine.low %v6152_v53, %v6152_v53  ;;  %v5230_v41 = vunpack.c.l.b16 %v6155_v45  ;;  %v6157_v57 = vcombine.low %v6156_v20, %v6156_v20  ;;  %v6160_v53 = vcombine.low %v5898_v50, %v5898_v50 }
 0x1bf   :  { %v5215_v58 = vunpack.c.l.b16 %v6149_v10  ;;  %v5220_v26 = vunpack.c.l.b16 %v6151_v42  ;;  %v5240_v42 = vunpack.c.l.b16 %v6159_v18  ;;  %v5250_v45 = vunpack.c.l.b16 %v6161_v36 }
 0x1c0   :  { %v5225_v17 = vunpack.c.l.b16 %v6153_v27  ;;  %v5235_v10 = vunpack.c.l.b16 %v6157_v57  ;;  %v5245_v27 = vunpack.c.l.b16 %v6160_v53  ;;  %v6162_v20 = vcombine.low %v5900_v37, %v5900_v37 }
 0x1c1   :  { %v6163_v8 = vcombine.low %v5901_v62, %v5901_v62  ;;  %v6164_v50 = vcombine.low %v5902_v9, %v5902_v9  ;;  %v5270_v36 = vunpack.c.l.b16 %v6165_v24  ;;  %v6166_v37 = vcombine.low %v5904_v55, %v5904_v55 }
 0x1c2   :  { %6158 = vst [vmem:[#allocation64_spill] sm:$0xff] %v5235_v10  ;;  %v5255_v57 = vunpack.c.l.b16 %v6162_v20  ;;  %v6168_v62 = vcombine.low %v4403_v3, %v4403_v3  ;;  %v6169_v10 = vld [vmem:[#allocation88_spill] sm:$0xff]  ;;  %v6171_v1 = vcombine.low %v4409_v0, %v4409_v0  ;;  %v6172_v55 = vcombine.low %v4421_v13, %v4421_v13 }
 0x1c3   :  { %v5260_v18 = vunpack.c.l.b16 %v6163_v8  ;;  %v5265_v53 = vunpack.c.l.b16 %v6164_v50  ;;  %v5275_v20 = vunpack.c.l.b16 %v6166_v37  ;;  %v6170_v9 = vcombine.low %v6169_v10, %v6169_v10 }
 0x1c4   :  { %v5280_v8 = vunpack.c.l.b16 %v6168_v62  ;;  %v5290_v24 = vunpack.c.l.b16 %v6171_v1  ;;  %v5295_v37 = vunpack.c.l.b16 %v6172_v55  ;;  %v6173_v3 = vcombine.low %v4429_v54, %v4429_v54 }
 0x1c5   :  { %6167 = vst [vmem:[#allocation65_spill] sm:$0xff] %v5275_v20  ;;  %v5285_v50 = vunpack.c.l.b16 %v6170_v9  ;;  %v6174_v10 = vcombine.low %v4443_v22, %v4443_v22  ;;  %v6175_v20 = vld [vmem:[#allocation89_spill] sm:$0xff]  ;;  %v6177_v13 = vcombine.low %v4491_v30, %v4491_v30  ;;  %v2957_v54 = vsel %vm2956_vm3, %v4685_v52, %v4680_v56 }
 0x1c6   :  { %v5300_v62 = vunpack.c.l.b16 %v6173_v3  ;;  %v6176_v0 = vcombine.low %v6175_v20, %v6175_v20  ;;  %v2959_v22 = vsel %vm2958_vm4, %v4690_v19, %v2957_v54  ;;  %v2970_v30 = vsel %vm2956_vm3, %v4725_v16, %v4720_v15  ;;  %v6185_v54 = vld [vmem:[#allocation3_spill] sm:$0xff] }
 0x1c7   :  { %v5305_v9 = vunpack.c.l.b16 %v6174_v10  ;;  %v5315_v55 = vunpack.c.l.b16 %v6177_v13  ;;  %v2977_v20 = vsel %vm2956_vm3, %v4765_v48, %v4760_v46  ;;  %v2961_v3 = vsel %vm2960_vm5, %v4695_v43, %v2959_v22  ;;  %v6181_v10 = vld [vmem:[#allocation7_spill] sm:$0xff]  ;;  %v6184_v13 = vld [vmem:[#allocation14_spill] sm:$0xff] }
 0x1c8   :  { %v5310_v1 = vunpack.c.l.b16 %v6176_v0  ;;  %v2971_v56 = vsel %vm2958_vm4, %v4730_v21, %v2970_v30  ;;  %v2978_v52 = vsel %vm2958_vm4, %v4770_v60, %v2977_v20  ;;  %v2984_v19 = vsel %vm2956_vm3, %v4805_v33, %v4800_v28  ;;  %v6183_v0 = vld [vmem:[#allocation13_spill] sm:$0xff]  ;;  %v6187_v30 = vld [vmem:[#allocation87_spill] sm:$0xff] }
 0x1c9   :  { %v2963_v15 = vsel %vm2962_vm6, %v4700_v6, %v2961_v3  ;;  %v2972_v16 = vsel %vm2960_vm5, %v4735_v25, %v2971_v56  ;;  %v2979_v46 = vsel %vm2960_vm5, %v4775_v61, %v2978_v52  ;;  %v2985_v43 = vsel %vm2958_vm4, %v4810_v44, %v2984_v19  ;;  %v6188_v3 = vld [vmem:[#allocation15_spill] sm:$0xff]  ;;  %v6189_v52 = vld [vmem:[#allocation4_spill] sm:$0xff] }
 0x1ca   :  { %v2965_v21 = vsel %vm2964_vm7, %v4705_v34, %v2963_v15  ;;  %v2973_v48 = vsel %vm2962_vm6, %v4740_v29, %v2972_v16  ;;  %v2980_v60 = vsel %vm2962_vm6, %v4780_v7, %v2979_v46  ;;  %v2986_v6 = vsel %vm2960_vm5, %v4815_v63, %v2985_v43  ;;  %v6179_v63 = vld [vmem:[#allocation85_spill] sm:$0xff]  ;;  %v6190_v15 = vld [vmem:[#allocation80_spill] sm:$0xff] }
 0x1cb   :  { %v2967_v25 = vsel %vm2966_vm8, %v4710_v4, %v2965_v21  ;;  %v2974_v61 = vsel %vm2964_vm7, %v4745_v38, %v2973_v48  ;;  %v2981_v28 = vsel %vm2964_vm7, %v4785_v23, %v2980_v60  ;;  %v2987_v34 = vsel %vm2962_vm6, %v4820_v11, %v2986_v6  ;;  %v6191_v46 = vld [vmem:[#allocation9_spill] sm:$0xff]  ;;  %v6192_v21 = vld [vmem:[#allocation16_spill] sm:$0xff] }
 0x1cc   :  { %v5363_v29 = vsel %vm2968_vm9, %v4715_v39, %v2967_v25  ;;  %v2975_v7 = vsel %vm2966_vm8, %v4750_v47, %v2974_v61  ;;  %v2982_v33 = vsel %vm2966_vm8, %v4790_v40, %v2981_v28  ;;  %v2988_v4 = vsel %vm2964_vm7, %v4825_v31, %v2987_v34  ;;  %v6180_v31 = vld [vmem:[#allocation2_spill] sm:$0xff]  ;;  %v6193_v60 = vld [vmem:[#allocation5_spill] sm:$0xff] }
 0x1cd   :  { %v5373_v38 = vsel %vm2968_vm9, %v4755_v5, %v2975_v7  ;;  %v5377_v23 = vsel %vm2968_vm9, %v4795_v2, %v2982_v33  ;;  %v2989_v39 = vsel %vm2966_vm8, %v4830_v51, %v2988_v4  ;;  %v2991_v47 = vsel %vm2956_vm3, %v4845_v49, %v4840_v35  ;;  %v6178_v2 = vld [vmem:[#allocation84_spill] sm:$0xff]  ;;  %v6182_v49 = vld [vmem:[#allocation86_spill] sm:$0xff]  ;;  %v6194_v25 = vld [vmem:[#allocation81_spill] sm:$0xff] }
 0x1ce   :  { %v5386_v40 = vsel %vm2968_vm9, %v4835_v12, %v2989_v39  ;;  %v2992_v44 = vsel %vm2958_vm4, %v4850_v59, %v2991_v47  ;;  %v2998_v5 = vsel %vm2956_vm3, %v4885_v32, %v4880_v14  ;;  %v3005_v11 = vsel %vm2956_vm3, %v6179_v63, %v6178_v2  ;;  %v6186_v32 = vld [vmem:[#allocation8_spill] sm:$0xff]  ;;  %v6195_v28 = vld [vmem:[#allocation10_spill] sm:$0xff]  ;;  %v6196_v7 = vld [vmem:[#allocation17_spill] sm:$0xff] }
 0x1cf   :  { %v2993_v51 = vsel %vm2960_vm5, %v6180_v31, %v2992_v44  ;;  %v2999_v35 = vsel %vm2958_vm4, %v6181_v10, %v2998_v5  ;;  %v3006_v12 = vsel %vm2958_vm4, %v6182_v49, %v3005_v11  ;;  %v3012_v59 = vsel %vm2956_vm3, %v6184_v13, %v6183_v0  ;;  %v6197_v4 = vld [vmem:[#allocation6_spill] sm:$0xff]  ;;  %v6199_v5 = vld [vmem:[#allocation11_spill] sm:$0xff]  ;;  %v6202_v10 = vld [vmem:[#allocation12_spill] sm:$0xff] }
 0x1d0   :  { %v2994_v14 = vsel %vm2962_vm6, %v6185_v54, %v2993_v51  ;;  %v3000_v22 = vsel %vm2960_vm5, %v6186_v32, %v2999_v35  ;;  %v3007_v20 = vsel %vm2960_vm5, %v6187_v30, %v3006_v12  ;;  %v3013_v56 = vsel %vm2958_vm4, %v6188_v3, %v3012_v59  ;;  %v6198_v47 = vld [vmem:[#allocation82_spill] sm:$0xff]  ;;  %v6201_v31 = vld [vmem:[#allocation83_spill] sm:$0xff]  ;;  %v6204_v0 = vld [vmem:[#allocation21_spill] sm:$0xff] }
 0x1d1   :  { %v2995_v19 = vsel %vm2964_vm7, %v6189_v52, %v2994_v14  ;;  %v3001_v16 = vsel %vm2962_vm6, %v6190_v15, %v3000_v22  ;;  %v3008_v43 = vsel %vm2962_vm6, %v6191_v46, %v3007_v20  ;;  %v3014_v48 = vsel %vm2960_vm5, %v6192_v21, %v3013_v56  ;;  %v6200_v63 = vld [vmem:[#allocation18_spill] sm:$0xff]  ;;  %v6203_v49 = vld [vmem:[#allocation19_spill] sm:$0xff]  ;;  %v6206_v54 = vld [vmem:[#allocation20_spill] sm:$0xff] }
 0x1d2   :  { %v2996_v6 = vsel %vm2966_vm8, %v6193_v60, %v2995_v19  ;;  %v3002_v61 = vsel %vm2964_vm7, %v6194_v25, %v3001_v16  ;;  %v3009_v34 = vsel %vm2964_vm7, %v6195_v28, %v3008_v43  ;;  %v3015_v33 = vsel %vm2962_vm6, %v6196_v7, %v3014_v48  ;;  %v6205_v13 = vld [vmem:[#allocation22_spill] sm:$0xff]  ;;  %v6207_v32 = vld [vmem:[#allocation23_spill] sm:$0xff]  ;;  %v6208_v30 = vld [vmem:[#allocation29_spill] sm:$0xff] }
 0x1d3   :  { %v5431_v39 = vsel %vm2968_vm9, %v6197_v4, %v2996_v6  ;;  %v3003_v44 = vsel %vm2966_vm8, %v6198_v47, %v3002_v61  ;;  %v3010_v2 = vsel %vm2966_vm8, %v6199_v5, %v3009_v34  ;;  %v3016_v11 = vsel %vm2964_vm7, %v6200_v63, %v3015_v33  ;;  %v6209_v20 = vld [vmem:[#allocation30_spill] sm:$0xff]  ;;  %v6210_v56 = vld [vmem:[#allocation37_spill] sm:$0xff]  ;;  %v6212_v15 = vld [vmem:[#allocation24_spill] sm:$0xff] }
 0x1d4   :  { %v5441_v51 = vsel %vm2968_vm9, %v6201_v31, %v3003_v44  ;;  %v5445_v35 = vsel %vm2968_vm9, %v6202_v10, %v3010_v2  ;;  %v3017_v12 = vsel %vm2966_vm8, %v6203_v49, %v3016_v11  ;;  %v3019_v59 = vsel %vm2956_vm3, %v6205_v13, %v6204_v0  ;;  %v6211_v52 = vld [vmem:[#allocation38_spill] sm:$0xff]  ;;  %v6213_v46 = vld [vmem:[#allocation31_spill] sm:$0xff]  ;;  %v6215_v60 = vld [vmem:[#allocation45_spill] sm:$0xff] }
 0x1d5   :  { %v5454_v14 = vsel %vm2968_vm9, %v6206_v54, %v3017_v12  ;;  %v3020_v22 = vsel %vm2958_vm4, %v6207_v32, %v3019_v59  ;;  %v3026_v3 = vsel %vm2956_vm3, %v6209_v20, %v6208_v30  ;;  %v3033_v19 = vsel %vm2956_vm3, %v6211_v52, %v6210_v56  ;;  %v6214_v21 = vld [vmem:[#allocation39_spill] sm:$0xff]  ;;  %v6216_v6 = vld [vmem:[#allocation46_spill] sm:$0xff]  ;;  %v6217_v61 = vld [vmem:[#allocation25_spill] sm:$0xff] }
 0x1d6   :  { %v3021_v16 = vsel %vm2960_vm5, %v6212_v15, %v3020_v22  ;;  %v3027_v43 = vsel %vm2958_vm4, %v6213_v46, %v3026_v3  ;;  %v3034_v48 = vsel %vm2958_vm4, %v6214_v21, %v3033_v19  ;;  %v3040_v25 = vsel %vm2956_vm3, %v6216_v6, %v6215_v60  ;;  %v6218_v34 = vld [vmem:[#allocation32_spill] sm:$0xff]  ;;  %v6220_v47 = vld [vmem:[#allocation47_spill] sm:$0xff]  ;;  %v6221_v5 = vld [vmem:[#allocation26_spill] sm:$0xff] }
 0x1d7   :  { %v3022_v28 = vsel %vm2962_vm6, %v6217_v61, %v3021_v16  ;;  %v3028_v7 = vsel %vm2960_vm5, %v6218_v34, %v3027_v43  ;;  %v6219_v33 = vld [vmem:[#allocation40_spill] sm:$0xff]  ;;  %v3041_v44 = vsel %vm2958_vm4, %v6220_v47, %v3040_v25  ;;  %v6222_v63 = vld [vmem:[#allocation33_spill] sm:$0xff]  ;;  %v6225_v0 = vld [vmem:[#allocation27_spill] sm:$0xff] }
 0x1d8   :  { %v3035_v4 = vsel %vm2960_vm5, %v6219_v33, %v3034_v48  ;;  %v3023_v2 = vsel %vm2964_vm7, %v6221_v5, %v3022_v28  ;;  %v3029_v11 = vsel %vm2962_vm6, %v6222_v63, %v3028_v7  ;;  %v6223_v31 = vld [vmem:[#allocation41_spill] sm:$0xff]  ;;  %v6224_v49 = vld [vmem:[#allocation48_spill] sm:$0xff]  ;;  %v6226_v59 = vld [vmem:[#allocation34_spill] sm:$0xff] }
 0x1d9   :  { %v3036_v10 = vsel %vm2962_vm6, %v6223_v31, %v3035_v4  ;;  %v3042_v12 = vsel %vm2960_vm5, %v6224_v49, %v3041_v44  ;;  %v3024_v13 = vsel %vm2966_vm8, %v6225_v0, %v3023_v2  ;;  %v3030_v54 = vsel %vm2964_vm7, %v6226_v59, %v3029_v11  ;;  %v6227_v32 = vld [vmem:[#allocation42_spill] sm:$0xff]  ;;  %v6228_v30 = vld [vmem:[#allocation49_spill] sm:$0xff]  ;;  %v6229_v3 = vld [vmem:[#allocation28_spill] sm:$0xff] }
 0x1da   :  { %v3037_v22 = vsel %vm2964_vm7, %v6227_v32, %v3036_v10  ;;  %v3043_v20 = vsel %vm2962_vm6, %v6228_v30, %v3042_v12  ;;  %v3025_v56 = vsel %vm2968_vm9, %v6229_v3, %v3024_v13  ;;  %v6230_v52 = vld [vmem:[#allocation35_spill] sm:$0xff]  ;;  %v6232_v46 = vld [vmem:[#allocation50_spill] sm:$0xff]  ;;  %v6233_v21 = vld [vmem:[#allocation36_spill] sm:$0xff]  ;;  %v3061_v11 = vsel %vm2956_vm3, %v5245_v27, %v5240_v42 }
 0x1db   :  { %v3031_v19 = vsel %vm2966_vm8, %v6230_v52, %v3030_v54  ;;  %v6231_v15 = vld [vmem:[#allocation43_spill] sm:$0xff]  ;;  %v3044_v43 = vsel %vm2964_vm7, %v6232_v46, %v3043_v20  ;;  %v6234_v60 = vld [vmem:[#allocation44_spill] sm:$0xff]  ;;  %v6236_v28 = vld [vmem:[#allocation53_spill] sm:$0xff]  ;;  %v3062_v0 = vsel %vm2958_vm4, %v5250_v45, %v3061_v11  ;;  %v3068_v13 = vsel %vm2956_vm3, %v5285_v50, %v5280_v8 }
 0x1dc   :  { %v3038_v16 = vsel %vm2966_vm8, %v6231_v15, %v3037_v22  ;;  %v3032_v48 = vsel %vm2968_vm9, %v6233_v21, %v3031_v19  ;;  %v6235_v25 = vld [vmem:[#allocation51_spill] sm:$0xff]  ;;  %v6237_v34 = vld [vmem:[#allocation54_spill] sm:$0xff]  ;;  %v6238_v33 = vld [vmem:[#allocation52_spill] sm:$0xff]  ;;  %v3063_v42 = vsel %vm2960_vm5, %v5255_v57, %v3062_v0  ;;  %v3069_v27 = vsel %vm2958_vm4, %v5290_v24, %v3068_v13 }
 0x1dd   :  { %v3039_v6 = vsel %vm2968_vm9, %v6234_v60, %v3038_v16  ;;  %v3045_v61 = vsel %vm2966_vm8, %v6235_v25, %v3044_v43  ;;  %v3047_v7 = vsel %vm2956_vm3, %v6237_v34, %v6236_v28  ;;  %v6239_v47 = vld [vmem:[#allocation55_spill] sm:$0xff]  ;;  %v6240_v5 = vld [vmem:[#allocation61_spill] sm:$0xff]  ;;  %v6241_v2 = vld [vmem:[#allocation62_spill] sm:$0xff]  ;;  %v3064_v8 = vsel %vm2962_vm6, %v5260_v18, %v3063_v42 }
 0x1de   :  { %v3046_v4 = vsel %vm2968_vm9, %v6238_v33, %v3045_v61  ;;  %v3048_v44 = vsel %vm2958_vm4, %v6239_v47, %v3047_v7  ;;  %v3054_v63 = vsel %vm2956_vm3, %v6241_v2, %v6240_v5  ;;  %v6242_v31 = vld [vmem:[#allocation56_spill] sm:$0xff]  ;;  %v6243_v49 = vld [vmem:[#allocation63_spill] sm:$0xff]  ;;  %v6244_v59 = vld [vmem:[#allocation57_spill] sm:$0xff]  ;;  %v3070_v50 = vsel %vm2960_vm5, %v5295_v37, %v3069_v27 }
 0x1df   :  { %v3049_v10 = vsel %vm2960_vm5, %v6242_v31, %v3048_v44  ;;  %v3055_v12 = vsel %vm2958_vm4, %v6243_v49, %v3054_v63  ;;  %v6245_v22 = vld [vmem:[#allocation58_spill] sm:$0xff]  ;;  %v6246_v20 = vld [vmem:[#allocation59_spill] sm:$0xff]  ;;  %v3065_v24 = vsel %vm2964_vm7, %v5265_v53, %v3064_v8  ;;  %v3071_v3 = vsel %vm2962_vm6, %v5300_v62, %v3070_v50  ;;  %v6247_v52 = vld [vmem:[#allocation60_spill] sm:$0xff] }
 0x1e0   :  { %v3050_v54 = vsel %vm2962_vm6, %v6244_v59, %v3049_v10  ;;  %v3056_v32 = vsel %vm2960_vm5, %v5215_v58, %v3055_v12  ;;  %v3066_v37 = vsel %vm2966_vm8, %v5270_v36, %v3065_v24  ;;  %v3072_v19 = vsel %vm2964_vm7, %v5305_v9, %v3071_v3  ;;  %v6248_v15 = vld [vmem:[#allocation64_spill] sm:$0xff]  ;;  %v6249_v16 = vld [vmem:[#allocation65_spill] sm:$0xff] }
 0x1e1   :  { %v3051_v30 = vsel %vm2964_vm7, %v6245_v22, %v3050_v54  ;;  %v3057_v45 = vsel %vm2962_vm6, %v5220_v26, %v3056_v32  ;;  %v3067_v53 = vsel %vm2968_vm9, %v6249_v16, %v3066_v37  ;;  %v3073_v62 = vsel %vm2966_vm8, %v5310_v1, %v3072_v19 }
 0x1e2   :  { %v3052_v58 = vsel %vm2966_vm8, %v6246_v20, %v3051_v30  ;;  %v3058_v57 = vsel %vm2964_vm7, %v5225_v17, %v3057_v45  ;;  %v3075_v46 = vpack.c.b16 %v5363_v29, %v5363_v29  ;;  %v3076_v36 = vpack.c.b16 %v5373_v38, %v5373_v38 }
 0x1e3   :  { %v3053_v26 = vsel %vm2968_vm9, %v6247_v52, %v3052_v58  ;;  %v3059_v18 = vsel %vm2966_vm8, %v5230_v41, %v3058_v57  ;;  %v3074_v41 = vsel %vm2968_vm9, %v5315_v55, %v3073_v62  ;;  %v3077_v9 = vpack.c.b16 %v5377_v23, %v5377_v23 }
 0x1e4   :  { %v3060_v17 = vsel %vm2968_vm9, %v6248_v15, %v3059_v18  ;;  %v3078_v43 = vpack.c.b16 %v5386_v40, %v5386_v40  ;;  %v3079_v21 = vpack.c.b16 %v5431_v39, %v5431_v39  ;;  %v3080_v1 = vpack.c.b16 %v5441_v51, %v5441_v51  ;;  %3107 = vst [vmem:[%s5638_s1] sm:$0xf] %v3075_v46 }
 0x1e5   :  { %v3081_v29 = vpack.c.b16 %v5445_v35, %v5445_v35  ;;  %v3082_v55 = vpack.c.b16 %v5454_v14, %v5454_v14  ;;  %v3083_v38 = vpack.c.b16 %v3025_v56, %v3025_v56  ;;  %v3084_v23 = vpack.c.b16 %v3032_v48, %v3032_v48  ;;  %3108 = vst [vmem:[%s5638_s1 + $0x4] sm:$0xf] %v3076_v36 }
 0x1e6   :  { %v3085_v60 = vpack.c.b16 %v3039_v6, %v3039_v6  ;;  %v3086_v40 = vpack.c.b16 %v3046_v4, %v3046_v4  ;;  %3109 = vst [vmem:[%s5638_s1 + $0x8] sm:$0xf] %v3077_v9  ;;  %3110 = vst [vmem:[%s5638_s1 + $0xc] sm:$0xf] %v3078_v43  ;;  %v3087_v39 = vpack.c.b16 %v3053_v26, %v3053_v26 }
 0x1e7   :  { %v3088_v51 = vpack.c.b16 %v3060_v17, %v3060_v17  ;;  %v3089_v35 = vpack.c.b16 %v3067_v53, %v3067_v53  ;;  %v3090_v14 = vpack.c.b16 %v3074_v41, %v3074_v41  ;;  %3111 = vst [vmem:[%s5638_s1 + $0x10] sm:$0xf] %v3079_v21  ;;  %3112 = vst [vmem:[%s5638_s1 + $0x14] sm:$0xf] %v3080_v1 }
 0x1e8   :  { %3113 = vst [vmem:[%s5638_s1 + $0x18] sm:$0xf] %v3081_v29  ;;  %3114 = vst [vmem:[%s5638_s1 + $0x1c] sm:$0xf] %v3082_v55 }
 0x1e9   :  { %3115 = vst [vmem:[%s5638_s1 + $0x20] sm:$0xf] %v3083_v38  ;;  %3116 = vst [vmem:[%s5638_s1 + $0x24] sm:$0xf] %v3084_v23 }
 0x1ea   :  { %3117 = vst [vmem:[%s5638_s1 + $0x28] sm:$0xf] %v3085_v60  ;;  %3118 = vst [vmem:[%s5638_s1 + $0x2c] sm:$0xf] %v3086_v40 }
 0x1eb   :  { %3119 = vst [vmem:[%s5638_s1 + $0x30] sm:$0xf] %v3087_v39  ;;  %3120 = vst [vmem:[%s5638_s1 + $0x34] sm:$0xf] %v3088_v51 }
 0x1ec   :  { %3121 = vst [vmem:[%s5638_s1 + $0x38] sm:$0xf] %v3089_v35  ;;  %3122 = vst [vmem:[%s5638_s1 + $0x3c] sm:$0xf] %v3090_v14 }

// kernel: resnet18_forward.25
= control target key start
LH: loop header
LB: loop body
LE: loop exit
PB: predicated region body
PF: predicated region fallthrough
CT: control target
= control target key end

     0   :  { %s1192_s12 = smov 0   ;;  %s1194_s13 = smov 0   ;;  %s1324_s0 = inlined_call_operand.vmem [shape: bf16[128,640], index: 0, kind: input, shape index: {}]   ;;  %s1325_s1 = inlined_call_operand.vmem [shape: bf16[640,128], index: 1, kind: input, shape index: {}]   ;;  %s1326_s2 = inlined_call_operand.vmem [shape: f32[1,128], index: 2, kind: input, shape index: {}]   ;;  %s1327_s3 = inlined_call_operand.vmem [shape: bf16[128,128], index: 3, kind: output, shape index: {}]  }
   0x1   :  { %s1196_s14 = smov 0   ;;  %s1198_s15 = smov 0  }
   0x2   :  { %s1200_s16 = smov 0  }
   0x3 LB: > { %s25_s17 = sadd.s32 1, %s1165_s15  ;;  %p48_p1 = scmp.ne.s32.totalorder %s1157_s13, %s1153_s12  ;;  %s1169_s16 = sphi %s1200_s16, %s13_s16   ;;  %s1165_s15 = sphi %s1198_s15, %s1331_s15   ;;  %s1161_s14 = sphi %s1196_s14, %s1330_s14   ;;  %s1157_s13 = sphi %s1194_s13, %s1329_s13   ;;  %s1153_s12 = sphi %s1192_s12, %s1328_s12  }
   0x4   : > { %p26_p0 = scmp.ge.s32.totalorder %s25_s17, 5  ;;  %p49_p2 = scmp.eq.s32.totalorder %s1169_s16, 0 }
   0x5   : > { %s41_s19 = sadd.s32 1, %s1157_s13  ;;  %p901_p5 = scmp.ge.s32.totalorder %s1169_s16, 5 }
   0x6   : > { %s1333_s17 = smov (%p26_p0, %s25_s17), 0  ;;  %p50_p3 = por %p49_p2, %p48_p1 }
   0x7   : > { %s37_s18 = ssub.s32 %s1165_s15, %s1333_s17  ;;  %162 = sbr.rel (%p901_p5) target bundleno = 26 (0x1a), region = 20 }
   0x8   : > { %p39_p4 = scmp.eq.s32.totalorder %s37_s18, 0 }
   0xa   : > { %s1227_s20 = scalar_select %p39_p4, %s1157_s13, %s41_s19  }
   0xc   : > { %165 = sbr.rel (!%p50_p3) target bundleno = 26 (0x1a), region = 24  ;;  %s167_s21 = sand.u32 (%p50_p3), 1, %s1157_s13  }
   0xd   : > { %s903_s22 = sshll.u32 (%p50_p3), %s1165_s15, 2  ;;  %s902_s23 = sshll.u32 (%p50_p3), %s167_s21, 6 }
   0xe   : > { %s1235_s26 = scalar_lea.vmem (%p50_p3), %s1324_s0, %s903_s22  ;;  %s169_s27 = scalar_lea.vmem (%p50_p3), [#allocation3], %s902_s23 }
   0xf   : > { %v191_v0 = vld [vmem:[%s1235_s26] sm:$0xf] (%p50_p3)  ;;  %v193_v1 = vld [vmem:[%s1235_s26 + $0x14] sm:$0xf] (%p50_p3)  ;;  %v195_v2 = vld [vmem:[%s1235_s26 + $0x28] sm:$0xf] (%p50_p3) }
  0x10   : > { %192 = vst [vmem:[%s169_s27] sm:$0xf] (%p50_p3), %v191_v0  ;;  %194 = vst [vmem:[%s169_s27 + $0x4] sm:$0xf] (%p50_p3), %v193_v1  ;;  %v197_v3 = vld [vmem:[%s1235_s26 + $0x3c] sm:$0xf] (%p50_p3) }
  0x11   : > { %v199_v4 = vld [vmem:[%s1235_s26 + $0x50] sm:$0xf]  ;;  %196 = vst [vmem:[%s169_s27 + $0x8] sm:$0xf] %v195_v2  ;;  %198 = vst [vmem:[%s169_s27 + $0xc] sm:$0xf] %v197_v3 }
  0x12   : > { %200 = vst [vmem:[%s169_s27 + $0x10] sm:$0xf] %v199_v4  ;;  %v201_v5 = vld [vmem:[%s1235_s26 + $0x64] sm:$0xf]  ;;  %v203_v6 = vld [vmem:[%s1235_s26 + $0x78] sm:$0xf] }
  0x13   : > { %v205_v7 = vld [vmem:[%s1235_s26 + $0x8c] sm:$0xf]  ;;  %202 = vst [vmem:[%s169_s27 + $0x14] sm:$0xf] %v201_v5  ;;  %204 = vst [vmem:[%s169_s27 + $0x18] sm:$0xf] %v203_v6 }
  0x14   : > { %206 = vst [vmem:[%s169_s27 + $0x1c] sm:$0xf] %v205_v7  ;;  %v207_v8 = vld [vmem:[%s1235_s26 + $0xa0] sm:$0xf]  ;;  %v209_v9 = vld [vmem:[%s1235_s26 + $0xb4] sm:$0xf] }
  0x15   : > { %v211_v10 = vld [vmem:[%s1235_s26 + $0xc8] sm:$0xf]  ;;  %208 = vst [vmem:[%s169_s27 + $0x20] sm:$0xf] %v207_v8  ;;  %210 = vst [vmem:[%s169_s27 + $0x24] sm:$0xf] %v209_v9 }
  0x16   : > { %212 = vst [vmem:[%s169_s27 + $0x28] sm:$0xf] %v211_v10  ;;  %v213_v11 = vld [vmem:[%s1235_s26 + $0xdc] sm:$0xf]  ;;  %v215_v12 = vld [vmem:[%s1235_s26 + $0xf0] sm:$0xf] }
  0x17   : > { %v217_v13 = vld [vmem:[%s1235_s26 + $0x104] sm:$0xf]  ;;  %214 = vst [vmem:[%s169_s27 + $0x2c] sm:$0xf] %v213_v11  ;;  %216 = vst [vmem:[%s169_s27 + $0x30] sm:$0xf] %v215_v12 }
  0x18   : > { %218 = vst [vmem:[%s169_s27 + $0x34] sm:$0xf] %v217_v13  ;;  %v219_v14 = vld [vmem:[%s1235_s26 + $0x118] sm:$0xf]  ;;  %v221_v15 = vld [vmem:[%s1235_s26 + $0x12c] sm:$0xf] }
  0x19   : > { %220 = vst [vmem:[%s169_s27 + $0x38] sm:$0xf] %v219_v14  ;;  %222 = vst [vmem:[%s169_s27 + $0x3c] sm:$0xf] %v221_v15 }
  0x1a PF: > { %p904_p6 = scmp.ge.s32.totalorder %s1169_s16, 1  ;;  %p289_p7 = scmp.lt.s32.totalorder %s1169_s16, 6 }
  0x1c   : > { %p290_p8 = pnand %p904_p6, %p289_p7 }
  0x1d   : > { %s296_s28 = sand.u32 (!%p290_p8), 1, %s1153_s12   ;;  %s906_s29 = sshll.u32 (!%p290_p8), %s1161_s14, 4 }
  0x1e   : > { %293 = sbr.rel (%p290_p8) target bundleno = 308 (0x134), region = 69  ;;  %s905_s30 = sshll.u32 (!%p290_p8), %s296_s28, 6 }
  0x1f   : > { %p335_p9 = scmp.lt.s32.totalorder (!%p290_p8), %s906_s29, 79  ;;  %s1262_s8 = scalar_lea.vmem (!%p290_p8), [#allocation3], %s905_s30 }
  0x20   : > { %p908_p10 = scmp.ne.s32.totalorder (!%p290_p8), %s1161_s14, 0 }
  0x23   : > { %s1335_s29 = smov (!%p335_p9, %s906_s29), 79  ;;  %359 = sbr.rel (%p908_p10) target bundleno = 49 (0x31), region = 77 }
  0x24   : > { %s907_s4 = sshll.u32 %s1335_s29, 2 }
  0x25   : > { %s1260_s7 = scalar_lea.vmem %s1325_s1, %s907_s4 }
  0x28   : > { %v1171_v16 = vmov 0.0  }
  0x29   : > { %360 = vst [vmem:[#allocation2 + $0x30] sm:$0xff] %v1171_v16  ;;  %361 = vst [vmem:[#allocation2] sm:$0xff] %v1171_v16 }
  0x2a   : > { %362 = vst [vmem:[#allocation2 + $0x58] sm:$0xff] %v1171_v16  ;;  %363 = vst [vmem:[#allocation2 + $0x18] sm:$0xff] %v1171_v16 }
  0x2b   : > { %364 = vst [vmem:[#allocation2 + $0x50] sm:$0xff] %v1171_v16  ;;  %365 = vst [vmem:[#allocation2 + $0x68] sm:$0xff] %v1171_v16 }
  0x2c   : > { %366 = vst [vmem:[#allocation2 + $0x8] sm:$0xff] %v1171_v16  ;;  %367 = vst [vmem:[#allocation2 + $0x48] sm:$0xff] %v1171_v16 }
  0x2d   : > { %368 = vst [vmem:[#allocation2 + $0x40] sm:$0xff] %v1171_v16  ;;  %369 = vst [vmem:[#allocation2 + $0x20] sm:$0xff] %v1171_v16 }
  0x2e   : > { %370 = vst [vmem:[#allocation2 + $0x10] sm:$0xff] %v1171_v16  ;;  %371 = vst [vmem:[#allocation2 + $0x38] sm:$0xff] %v1171_v16 }
  0x2f   : > { %372 = vst [vmem:[#allocation2 + $0x60] sm:$0xff] %v1171_v16  ;;  %373 = vst [vmem:[#allocation2 + $0x70] sm:$0xff] %v1171_v16 }
  0x30   : > { %374 = vst [vmem:[#allocation2 + $0x78] sm:$0xff] %v1171_v16  ;;  %375 = vst [vmem:[#allocation2 + $0x28] sm:$0xff] %v1171_v16 }
  0x31 PF: > { %v1115_v17 = vld [vmem:[%s1260_s7 + $0x38] sm:$0xff]   ;;  %v1116_v18 = vld [vmem:[%s1260_s7 + $0x30] sm:$0xff]   ;;  %v1117_v19 = vld [vmem:[%s1260_s7 + $0x28] sm:$0xff]   ;;  %p925_p11 = scmp.ne.s32.totalorder %s1161_s14, 4 }
  0x32   : > { %1026 = vmatprep.subr.bf16.mxu0 %v1115_v17  ;;  %1058 = vmatprep.subr.bf16.mxu1 %v1115_v17  ;;  %v1118_v20 = vld [vmem:[%s1260_s7 + $0x20] sm:$0xff]   ;;  %v1119_v23 = vld [vmem:[%s1260_s7 + $0x18] sm:$0xff]   ;;  %v1120_v24 = vld [vmem:[%s1260_s7 + $0x10] sm:$0xff]  }
  0x33   : > { %1027 = vmatpush3.bf16.msra.mxu0 %v1115_v17  ;;  %1066 = vmatpush3.bf16.msra.mxu1 %v1115_v17  ;;  %v1123_v21 = vld [vmem:[%s1262_s8] sm:$0xff]   ;;  %v1121_v25 = vld [vmem:[%s1260_s7 + $0x8] sm:$0xff]   ;;  %v1127_v29 = vld [vmem:[%s1262_s8 + $0x10] sm:$0xff]  }
  0x34   : > { %1028 = vmatprep.subr.bf16.mxu0 %v1116_v18  ;;  %1059 = vmatprep.subr.bf16.mxu1 %v1116_v18  ;;  %v1124_v22 = vld [vmem:[%s1262_s8 + $0x20] sm:$0xff]   ;;  %v1125_v27 = vld [vmem:[%s1262_s8 + $0x8] sm:$0xff]   ;;  %v1128_v30 = vld [vmem:[%s1262_s8 + $0x30] sm:$0xff]  }
  0x35   : > { %1042 = vmatprep.mubr.bf16.mxu0 %v1123_v21  ;;  %1050 = vmatprep.mubr.bf16.mxu1 %v1124_v22  ;;  %v1122_v26 = vld [vmem:[%s1260_s7] sm:$0xff]   ;;  %v1126_v28 = vld [vmem:[%s1262_s8 + $0x28] sm:$0xff]   ;;  %v1129_v31 = vld [vmem:[%s1262_s8 + $0x18] sm:$0xff]  }
  0x36   : > { %v1130_v32 = vld [vmem:[%s1262_s8 + $0x38] sm:$0xff]   ;;  %v386_v34 = vld [vmem:[#allocation2 + $0x10] sm:$0xff]  ;;  %v384_v38 = vld [vmem:[#allocation2 + $0x40] sm:$0xff] }
  0x37   : > { %1029 = vmatpush3.bf16.msra.mxu0 %v1116_v18  ;;  %1067 = vmatpush3.bf16.msra.mxu1 %v1116_v18  ;;  %v378_v33 = vld [vmem:[#allocation2 + $0x58] sm:$0xff]  ;;  %v376_v37 = vld [vmem:[#allocation2 + $0x30] sm:$0xff]  ;;  %v377_v49 = vld [vmem:[#allocation2] sm:$0xff] }
  0x38   : > { %1030 = vmatprep.subr.bf16.mxu0 %v1117_v19  ;;  %1060 = vmatprep.subr.bf16.mxu1 %v1117_v19  ;;  %v379_v43 = vld [vmem:[#allocation2 + $0x18] sm:$0xff]  ;;  %v385_v50 = vld [vmem:[#allocation2 + $0x20] sm:$0xff]  ;;  %v382_v55 = vld [vmem:[#allocation2 + $0x8] sm:$0xff] }
  0x39   : > { %v387_v44 = vld [vmem:[#allocation2 + $0x38] sm:$0xff]  ;;  %v380_v61 = vld [vmem:[#allocation2 + $0x50] sm:$0xff]  ;;  %v388_v62 = vld [vmem:[#allocation2 + $0x60] sm:$0xff] }
  0x3a   : > { %v390_v56 = vld [vmem:[#allocation2 + $0x78] sm:$0xff]  ;;  %v383_v3 = vld [vmem:[#allocation2 + $0x48] sm:$0xff]  ;;  %v389_v10 = vld [vmem:[#allocation2 + $0x70] sm:$0xff] }
  0x3b   : > { %1031 = vmatpush3.bf16.msra.mxu0 %v1117_v19  ;;  %1068 = vmatpush3.bf16.msra.mxu1 %v1117_v19  ;;  %v391_v4 = vld [vmem:[#allocation2 + $0x28] sm:$0xff] }
  0x3c   : > { %1032 = vmatprep.subr.bf16.mxu0 %v1118_v20  ;;  %1061 = vmatprep.subr.bf16.mxu1 %v1118_v20  ;;  %v381_v9 = vld [vmem:[#allocation2 + $0x68] sm:$0xff] }
  0x3f   : > { %1033 = vmatpush3.bf16.msra.mxu0 %v1118_v20  ;;  %1069 = vmatpush3.bf16.msra.mxu1 %v1118_v20 }
  0x40   : > { %1034 = vmatprep.subr.bf16.mxu0 %v1119_v23  ;;  %1062 = vmatprep.subr.bf16.mxu1 %v1119_v23 }
  0x43   : > { %1035 = vmatpush3.bf16.msra.mxu0 %v1119_v23  ;;  %1070 = vmatpush3.bf16.msra.mxu1 %v1119_v23 }
  0x44   : > { %1036 = vmatprep.subr.bf16.mxu0 %v1120_v24  ;;  %1063 = vmatprep.subr.bf16.mxu1 %v1120_v24 }
  0x47   : > { %1037 = vmatpush3.bf16.msra.mxu0 %v1120_v24  ;;  %1071 = vmatpush3.bf16.msra.mxu1 %v1120_v24 }
  0x48   : > { %1038 = vmatprep.subr.bf16.mxu0 %v1121_v25  ;;  %1064 = vmatprep.subr.bf16.mxu1 %v1121_v25 }
  0x4b   : > { %1039 = vmatpush3.bf16.msra.mxu0 %v1121_v25  ;;  %1072 = vmatpush3.bf16.msra.mxu1 %v1121_v25 }
  0x4c   : > { %1040 = vmatprep.subr.bf16.mxu0 %v1122_v26  ;;  %1065 = vmatprep.subr.bf16.mxu1 %v1122_v26 }
  0x4f   : > { %1041 = vmatpush3.bf16.msra.mxu0 %v1122_v26  ;;  %1073 = vmatpush3.bf16.msra.mxu1 %v1122_v26 }
  0x52   : > { %1043 = vmatmul.mubr.bf16.vlgmr.msra.gmra.mxu0 %v1125_v27  ;;  %1051 = vmatmul.mubr.bf16.vlgmr.msra.gmra.mxu1 %v1126_v28 }
  0x53   : > { %1046 = vmatprep.mubr.bf16.mxu0 %v1127_v29  ;;  %1054 = vmatprep.mubr.bf16.mxu1 %v1128_v30 }
  0x5a   : > { %1047 = vmatmul.mubr.bf16.gmra.mxu0 %v1129_v31  ;;  %1055 = vmatmul.mubr.bf16.gmra.mxu1 %v1130_v32 }
 0x112   : > { %v1044_v35 = vpop.f32.mrf.mxu0  ;;  %v1052_v36 = vpop.f32.mrf.mxu1 }
 0x113   : > { %v619_v39 = vadd.f32 %v1044_v35, %v378_v33  ;;  %v627_v40 = vadd.f32 %v1052_v36, %v386_v34 }
 0x114   : > { %v554_v41 = vpop.f32.mrf.mxu0  ;;  %v586_v42 = vpop.f32.mrf.mxu1 }
 0x115   : > { %635 = vst [vmem:[#allocation2 + $0x58] sm:$0xff] %v619_v39  ;;  %643 = vst [vmem:[#allocation2 + $0x10] sm:$0xff] %v627_v40  ;;  %v617_v45 = vadd.f32 %v554_v41, %v376_v37  ;;  %v625_v46 = vadd.f32 %v586_v42, %v384_v38 }
 0x116   : > { %v1045_v47 = vpop.f32.mrf.mxu0  ;;  %v1053_v48 = vpop.f32.mrf.mxu1 }
 0x117   : > { %633 = vst [vmem:[#allocation2 + $0x30] sm:$0xff] %v617_v45  ;;  %641 = vst [vmem:[#allocation2 + $0x40] sm:$0xff] %v625_v46  ;;  %v620_v51 = vadd.f32 %v1045_v47, %v379_v43  ;;  %v628_v52 = vadd.f32 %v1053_v48, %v387_v44 }
 0x118   : > { %v557_v53 = vpop.f32.mrf.mxu0  ;;  %v589_v54 = vpop.f32.mrf.mxu1 }
 0x119   : > { %636 = vst [vmem:[#allocation2 + $0x18] sm:$0xff] %v620_v51  ;;  %644 = vst [vmem:[#allocation2 + $0x38] sm:$0xff] %v628_v52  ;;  %v618_v57 = vadd.f32 %v557_v53, %v377_v49  ;;  %v626_v58 = vadd.f32 %v589_v54, %v385_v50 }
 0x11a   : > { %v1048_v59 = vpop.f32.mrf.mxu0  ;;  %v1056_v60 = vpop.f32.mrf.mxu1 }
 0x11b   : > { %634 = vst [vmem:[#allocation2] sm:$0xff] %v618_v57  ;;  %642 = vst [vmem:[#allocation2 + $0x20] sm:$0xff] %v626_v58  ;;  %v623_v63 = vadd.f32 %v1048_v59, %v382_v55  ;;  %v631_v0 = vadd.f32 %v1056_v60, %v390_v56 }
 0x11c   : > { %v570_v1 = vpop.f32.mrf.mxu0  ;;  %v602_v2 = vpop.f32.mrf.mxu1 }
 0x11d   : > { %639 = vst [vmem:[#allocation2 + $0x8] sm:$0xff] %v623_v63  ;;  %647 = vst [vmem:[#allocation2 + $0x78] sm:$0xff] %v631_v0  ;;  %v621_v5 = vadd.f32 %v570_v1, %v380_v61  ;;  %v629_v6 = vadd.f32 %v602_v2, %v388_v62 }
 0x11e   : > { %v1049_v7 = vpop.f32.mrf.mxu0  ;;  %v1057_v8 = vpop.f32.mrf.mxu1 }
 0x11f   : > { %637 = vst [vmem:[#allocation2 + $0x50] sm:$0xff] %v621_v5  ;;  %645 = vst [vmem:[#allocation2 + $0x60] sm:$0xff] %v629_v6  ;;  %v624_v11 = vadd.f32 %v1049_v7, %v383_v3  ;;  %v632_v12 = vadd.f32 %v1057_v8, %v391_v4  ;;  %652 = sbr.rel (%p925_p11) target bundleno = 308 (0x134), region = 81 }
 0x120   : > { %v573_v13 = vpop.f32.mrf.mxu0  ;;  %v605_v14 = vpop.f32.mrf.mxu1 }
 0x121   : > { %640 = vst [vmem:[#allocation2 + $0x48] sm:$0xff] %v624_v11  ;;  %648 = vst [vmem:[#allocation2 + $0x28] sm:$0xff] %v632_v12  ;;  %v622_v15 = vadd.f32 %v573_v13, %v381_v9  ;;  %v630_v16 = vadd.f32 %v605_v14, %v389_v10 }
 0x123   : > { %638 = vst [vmem:[#allocation2 + $0x68] sm:$0xff] %v622_v15  ;;  %646 = vst [vmem:[#allocation2 + $0x70] sm:$0xff] %v630_v16 }
 0x124   : > { %v653_v17 = vld [vmem:[#allocation2 + $0x30] sm:$0xff]  ;;  %v654_v18 = vld [vmem:[#allocation2] sm:$0xff]  ;;  %v655_v22 = vld [vmem:[#allocation2 + $0x58] sm:$0xff] }
 0x125   : > { %v926_v19 = vld [vmem:[%s1326_s2] ss:$0 sm:$0xff]  ;;  %v656_v23 = vld [vmem:[#allocation2 + $0x18] sm:$0xff]  ;;  %v659_v29 = vld [vmem:[#allocation2 + $0x8] sm:$0xff] }
 0x126   : > { %v676_v20 = vadd.f32 %v926_v19, %v653_v17  ;;  %v677_v21 = vadd.f32 %v926_v19, %v654_v18  ;;  %v657_v24 = vld [vmem:[#allocation2 + $0x50] sm:$0xff]  ;;  %v678_v25 = vadd.f32 %v926_v19, %v655_v22  ;;  %v679_v26 = vadd.f32 %v926_v19, %v656_v23  ;;  %v661_v35 = vld [vmem:[#allocation2 + $0x40] sm:$0xff]  ;;  %v664_v42 = vld [vmem:[#allocation2 + $0x38] sm:$0xff] }
 0x127   : > { %v680_v28 = vadd.f32 %v926_v19, %v657_v24  ;;  %v682_v34 = vadd.f32 %v926_v19, %v659_v29  ;;  %v662_v36 = vld [vmem:[#allocation2 + $0x20] sm:$0xff]  ;;  %v663_v37 = vld [vmem:[#allocation2 + $0x10] sm:$0xff]  ;;  %v684_v47 = vadd.f32 %v926_v19, %v661_v35  ;;  %v667_v53 = vld [vmem:[#allocation2 + $0x78] sm:$0xff]  ;;  %v687_v57 = vadd.f32 %v926_v19, %v664_v42 }
 0x128   : > { %v660_v30 = vld [vmem:[#allocation2 + $0x48] sm:$0xff]  ;;  %v692_v31 = vmax.f32 %v676_v20, 0.0  ;;  %v693_v32 = vmax.f32 %v677_v21, 0.0  ;;  %v694_v38 = vmax.f32 %v678_v25, 0.0  ;;  %v695_v39 = vmax.f32 %v679_v26, 0.0  ;;  %v665_v43 = vld [vmem:[#allocation2 + $0x60] sm:$0xff] }
 0x129   : > { %v696_v40 = vmax.f32 %v680_v28, 0.0  ;;  %v683_v41 = vadd.f32 %v926_v19, %v660_v30  ;;  %v698_v46 = vmax.f32 %v682_v34, 0.0  ;;  %v685_v51 = vadd.f32 %v926_v19, %v662_v36  ;;  %v668_v54 = vld [vmem:[#allocation2 + $0x28] sm:$0xff] }
 0x12a   : > { %v658_v27 = vld [vmem:[#allocation2 + $0x68] sm:$0xff]  ;;  %v966_v44 = vpack.c.bf16 %v693_v32, %v692_v31  ;;  %v666_v48 = vld [vmem:[#allocation2 + $0x70] sm:$0xff]  ;;  %v971_v49 = vpack.c.bf16 %v695_v39, %v694_v38  ;;  %v686_v52 = vadd.f32 %v926_v19, %v663_v37  ;;  %v700_v56 = vmax.f32 %v684_v47, 0.0 }
 0x12b   : > { %v681_v33 = vadd.f32 %v926_v19, %v658_v27  ;;  %v699_v50 = vmax.f32 %v683_v41, 0.0  ;;  %v688_v58 = vadd.f32 %v926_v19, %v665_v43  ;;  %v701_v60 = vmax.f32 %v685_v51, 0.0 }
 0x12c   : > { %967 = vst [vmem:[%s1327_s3] sm:$0xff] %v966_v44   ;;  %1003 = vst [vmem:[%s1327_s3 + $0x8] sm:$0xff] %v971_v49   ;;  %v702_v61 = vmax.f32 %v686_v52, 0.0  ;;  %v689_v62 = vadd.f32 %v926_v19, %v666_v48  ;;  %v703_v63 = vmax.f32 %v687_v57, 0.0  ;;  %v690_v1 = vadd.f32 %v926_v19, %v667_v53 }
 0x12d   : > { %v697_v45 = vmax.f32 %v681_v33, 0.0  ;;  %v981_v59 = vpack.c.bf16 %v699_v50, %v698_v46  ;;  %v704_v0 = vmax.f32 %v688_v58, 0.0  ;;  %v691_v2 = vadd.f32 %v926_v19, %v668_v54 }
 0x12e   : > { %v986_v3 = vpack.c.bf16 %v701_v60, %v700_v56  ;;  %v705_v4 = vmax.f32 %v689_v62, 0.0  ;;  %v991_v5 = vpack.c.bf16 %v703_v63, %v702_v61  ;;  %v706_v6 = vmax.f32 %v690_v1, 0.0 }
 0x12f   : > { %v976_v55 = vpack.c.bf16 %v697_v45, %v696_v40  ;;  %1005 = vst [vmem:[%s1327_s3 + $0x18] sm:$0xff] %v981_v59   ;;  %v707_v7 = vmax.f32 %v691_v2, 0.0 }
 0x130   : > { %1006 = vst [vmem:[%s1327_s3 + $0x20] sm:$0xff] %v986_v3   ;;  %v996_v8 = vpack.c.bf16 %v705_v4, %v704_v0  ;;  %1007 = vst [vmem:[%s1327_s3 + $0x28] sm:$0xff] %v991_v5  }
 0x131   : > { %1004 = vst [vmem:[%s1327_s3 + $0x10] sm:$0xff] %v976_v55   ;;  %v1001_v9 = vpack.c.bf16 %v707_v7, %v706_v6 }
 0x132   : > { %1008 = vst [vmem:[%s1327_s3 + $0x30] sm:$0xff] %v996_v8  }
 0x133   : > { %1009 = vst [vmem:[%s1327_s3 + $0x38] sm:$0xff] %v1001_v9  }
 0x134 PF: > { %s13_s16 = sadd.s32 1, %s1169_s16   ;;  %s1328_s12 = smov %s1157_s13 }
 0x135   : > { %p10_p12 = scmp.ge.s32.totalorder %s13_s16, 7   ;;  %s1329_s13 = smov %s1227_s20 }
 0x136   : > { %s1330_s14 = smov %s1165_s15  ;;  %s1331_s15 = smov %s1333_s17 }
 0x137   :  { %12 = sbr.rel (!%p10_p12) target bundleno = 3 (0x3), region = 122 }

// kernel: resnet18_forward.26
= control target key start
LH: loop header
LB: loop body
LE: loop exit
PB: predicated region body
PF: predicated region fallthrough
CT: control target
= control target key end

     0   :  { %s1363_s15 = smov 0   ;;  %s1365_s16 = smov 0   ;;  %s1537_s0 = inlined_call_operand.vmem [shape: bf16[128,640], index: 0, kind: input, shape index: {}]   ;;  %s1538_s1 = inlined_call_operand.vmem [shape: bf16[640,128], index: 1, kind: input, shape index: {}]   ;;  %s1539_s2 = inlined_call_operand.vmem [shape: f32[1,128], index: 2, kind: input, shape index: {}]   ;;  %s1540_s3 = inlined_call_operand.vmem [shape: bf16[128,128], index: 3, kind: input, shape index: {}]   ;;  %s1541_s4 = inlined_call_operand.vmem [shape: bf16[128,128], index: 4, kind: output, shape index: {}]  }
   0x1   :  { %s1367_s17 = smov 0   ;;  %s1369_s18 = smov 0  }
   0x2   :  { %s1371_s19 = smov 0  }
   0x3 LB: > { %s26_s20 = sadd.s32 1, %s1331_s18  ;;  %p49_p1 = scmp.ne.s32.totalorder %s1323_s16, %s1319_s15  ;;  %s1335_s19 = sphi %s1371_s19, %s14_s19   ;;  %s1331_s18 = sphi %s1369_s18, %s1545_s18   ;;  %s1327_s17 = sphi %s1367_s17, %s1544_s17   ;;  %s1323_s16 = sphi %s1365_s16, %s1543_s16   ;;  %s1319_s15 = sphi %s1363_s15, %s1542_s15  }
   0x4   : > { %p27_p0 = scmp.ge.s32.totalorder %s26_s20, 5  ;;  %p50_p2 = scmp.eq.s32.totalorder %s1335_s19, 0 }
   0x5   : > { %s42_s22 = sadd.s32 1, %s1323_s16  ;;  %p1028_p5 = scmp.ge.s32.totalorder %s1335_s19, 5 }
   0x6   : > { %s1547_s20 = smov (%p27_p0, %s26_s20), 0  ;;  %p51_p3 = por %p50_p2, %p49_p1 }
   0x7   : > { %s38_s21 = ssub.s32 %s1331_s18, %s1547_s20  ;;  %203 = sbr.rel (%p1028_p5) target bundleno = 26 (0x1a), region = 24 }
   0x8   : > { %p40_p4 = scmp.eq.s32.totalorder %s38_s21, 0 }
   0xa   : > { %s1398_s23 = scalar_select %p40_p4, %s1323_s16, %s42_s22  }
   0xc   : > { %206 = sbr.rel (!%p51_p3) target bundleno = 26 (0x1a), region = 28  ;;  %s208_s24 = sand.u32 (%p51_p3), 1, %s1323_s16  }
   0xd   : > { %s1030_s25 = sshll.u32 (%p51_p3), %s1331_s18, 2  ;;  %s1029_s26 = sshll.u32 (%p51_p3), %s208_s24, 6 }
   0xe   : > { %s1406_s29 = scalar_lea.vmem (%p51_p3), %s1537_s0, %s1030_s25  ;;  %s210_s30 = scalar_lea.vmem (%p51_p3), [#allocation3], %s1029_s26 }
   0xf   : > { %v232_v0 = vld [vmem:[%s1406_s29] sm:$0xf] (%p51_p3)  ;;  %v234_v1 = vld [vmem:[%s1406_s29 + $0x14] sm:$0xf] (%p51_p3)  ;;  %v236_v2 = vld [vmem:[%s1406_s29 + $0x28] sm:$0xf] (%p51_p3) }
  0x10   : > { %233 = vst [vmem:[%s210_s30] sm:$0xf] (%p51_p3), %v232_v0  ;;  %235 = vst [vmem:[%s210_s30 + $0x4] sm:$0xf] (%p51_p3), %v234_v1  ;;  %v238_v3 = vld [vmem:[%s1406_s29 + $0x3c] sm:$0xf] (%p51_p3) }
  0x11   : > { %v240_v4 = vld [vmem:[%s1406_s29 + $0x50] sm:$0xf]  ;;  %237 = vst [vmem:[%s210_s30 + $0x8] sm:$0xf] %v236_v2  ;;  %239 = vst [vmem:[%s210_s30 + $0xc] sm:$0xf] %v238_v3 }
  0x12   : > { %241 = vst [vmem:[%s210_s30 + $0x10] sm:$0xf] %v240_v4  ;;  %v242_v5 = vld [vmem:[%s1406_s29 + $0x64] sm:$0xf]  ;;  %v244_v6 = vld [vmem:[%s1406_s29 + $0x78] sm:$0xf] }
  0x13   : > { %v246_v7 = vld [vmem:[%s1406_s29 + $0x8c] sm:$0xf]  ;;  %243 = vst [vmem:[%s210_s30 + $0x14] sm:$0xf] %v242_v5  ;;  %245 = vst [vmem:[%s210_s30 + $0x18] sm:$0xf] %v244_v6 }
  0x14   : > { %247 = vst [vmem:[%s210_s30 + $0x1c] sm:$0xf] %v246_v7  ;;  %v248_v8 = vld [vmem:[%s1406_s29 + $0xa0] sm:$0xf]  ;;  %v250_v9 = vld [vmem:[%s1406_s29 + $0xb4] sm:$0xf] }
  0x15   : > { %v252_v10 = vld [vmem:[%s1406_s29 + $0xc8] sm:$0xf]  ;;  %249 = vst [vmem:[%s210_s30 + $0x20] sm:$0xf] %v248_v8  ;;  %251 = vst [vmem:[%s210_s30 + $0x24] sm:$0xf] %v250_v9 }
  0x16   : > { %253 = vst [vmem:[%s210_s30 + $0x28] sm:$0xf] %v252_v10  ;;  %v254_v11 = vld [vmem:[%s1406_s29 + $0xdc] sm:$0xf]  ;;  %v256_v12 = vld [vmem:[%s1406_s29 + $0xf0] sm:$0xf] }
  0x17   : > { %v258_v13 = vld [vmem:[%s1406_s29 + $0x104] sm:$0xf]  ;;  %255 = vst [vmem:[%s210_s30 + $0x2c] sm:$0xf] %v254_v11  ;;  %257 = vst [vmem:[%s210_s30 + $0x30] sm:$0xf] %v256_v12 }
  0x18   : > { %259 = vst [vmem:[%s210_s30 + $0x34] sm:$0xf] %v258_v13  ;;  %v260_v14 = vld [vmem:[%s1406_s29 + $0x118] sm:$0xf]  ;;  %v262_v15 = vld [vmem:[%s1406_s29 + $0x12c] sm:$0xf] }
  0x19   : > { %261 = vst [vmem:[%s210_s30 + $0x38] sm:$0xf] %v260_v14  ;;  %263 = vst [vmem:[%s210_s30 + $0x3c] sm:$0xf] %v262_v15 }
  0x1a PF: > { %p1031_p6 = scmp.ge.s32.totalorder %s1335_s19, 1  ;;  %p330_p7 = scmp.lt.s32.totalorder %s1335_s19, 6 }
  0x1c   : > { %p331_p8 = pnand %p1031_p6, %p330_p7 }
  0x1d   : > { %s337_s5 = sand.u32 (!%p331_p8), 1, %s1319_s15   ;;  %s1033_s6 = sshll.u32 (!%p331_p8), %s1327_s17, 4 }
  0x1e   : > { %334 = sbr.rel (%p331_p8) target bundleno = 318 (0x13e), region = 73  ;;  %s1032_s7 = sshll.u32 (!%p331_p8), %s337_s5, 6 }
  0x1f   : > { %p386_p9 = scmp.lt.s32.totalorder (!%p331_p8), %s1033_s6, 79  ;;  %s1433_s12 = scalar_lea.vmem (!%p331_p8), [#allocation3], %s1032_s7 }
  0x20   : > { %p1035_p10 = scmp.ne.s32.totalorder (!%p331_p8), %s1327_s17, 0 }
  0x23   : > { %s1549_s6 = smov (!%p386_p9, %s1033_s6), 79  ;;  %419 = sbr.rel (%p1035_p10) target bundleno = 49 (0x31), region = 81 }
  0x24   : > { %s1034_s8 = sshll.u32 %s1549_s6, 2 }
  0x25   : > { %s1431_s11 = scalar_lea.vmem %s1538_s1, %s1034_s8 }
  0x28   : > { %v1337_v16 = vmov 0.0  }
  0x29   : > { %420 = vst [vmem:[#allocation2 + $0x30] sm:$0xff] %v1337_v16  ;;  %421 = vst [vmem:[#allocation2] sm:$0xff] %v1337_v16 }
  0x2a   : > { %422 = vst [vmem:[#allocation2 + $0x58] sm:$0xff] %v1337_v16  ;;  %423 = vst [vmem:[#allocation2 + $0x18] sm:$0xff] %v1337_v16 }
  0x2b   : > { %424 = vst [vmem:[#allocation2 + $0x50] sm:$0xff] %v1337_v16  ;;  %425 = vst [vmem:[#allocation2 + $0x68] sm:$0xff] %v1337_v16 }
  0x2c   : > { %426 = vst [vmem:[#allocation2 + $0x8] sm:$0xff] %v1337_v16  ;;  %427 = vst [vmem:[#allocation2 + $0x48] sm:$0xff] %v1337_v16 }
  0x2d   : > { %428 = vst [vmem:[#allocation2 + $0x40] sm:$0xff] %v1337_v16  ;;  %429 = vst [vmem:[#allocation2 + $0x20] sm:$0xff] %v1337_v16 }
  0x2e   : > { %430 = vst [vmem:[#allocation2 + $0x10] sm:$0xff] %v1337_v16  ;;  %431 = vst [vmem:[#allocation2 + $0x38] sm:$0xff] %v1337_v16 }
  0x2f   : > { %432 = vst [vmem:[#allocation2 + $0x60] sm:$0xff] %v1337_v16  ;;  %433 = vst [vmem:[#allocation2 + $0x70] sm:$0xff] %v1337_v16 }
  0x30   : > { %434 = vst [vmem:[#allocation2 + $0x78] sm:$0xff] %v1337_v16  ;;  %435 = vst [vmem:[#allocation2 + $0x28] sm:$0xff] %v1337_v16 }
  0x31 PF: > { %v1281_v17 = vld [vmem:[%s1431_s11 + $0x38] sm:$0xff]   ;;  %v1282_v18 = vld [vmem:[%s1431_s11 + $0x30] sm:$0xff]   ;;  %v1283_v19 = vld [vmem:[%s1431_s11 + $0x28] sm:$0xff]   ;;  %p1052_p11 = scmp.ne.s32.totalorder %s1327_s17, 4 }
  0x32   : > { %1192 = vmatprep.subr.bf16.mxu0 %v1281_v17  ;;  %1224 = vmatprep.subr.bf16.mxu1 %v1281_v17  ;;  %v1284_v20 = vld [vmem:[%s1431_s11 + $0x20] sm:$0xff]   ;;  %v1285_v23 = vld [vmem:[%s1431_s11 + $0x18] sm:$0xff]   ;;  %v1286_v24 = vld [vmem:[%s1431_s11 + $0x10] sm:$0xff]  }
  0x33   : > { %1193 = vmatpush3.bf16.msra.mxu0 %v1281_v17  ;;  %1232 = vmatpush3.bf16.msra.mxu1 %v1281_v17  ;;  %v1289_v21 = vld [vmem:[%s1433_s12] sm:$0xff]   ;;  %v1287_v25 = vld [vmem:[%s1431_s11 + $0x8] sm:$0xff]   ;;  %v1293_v29 = vld [vmem:[%s1433_s12 + $0x10] sm:$0xff]  }
  0x34   : > { %1194 = vmatprep.subr.bf16.mxu0 %v1282_v18  ;;  %1225 = vmatprep.subr.bf16.mxu1 %v1282_v18  ;;  %v1290_v22 = vld [vmem:[%s1433_s12 + $0x20] sm:$0xff]   ;;  %v1291_v27 = vld [vmem:[%s1433_s12 + $0x8] sm:$0xff]   ;;  %v1294_v30 = vld [vmem:[%s1433_s12 + $0x30] sm:$0xff]  }
  0x35   : > { %1208 = vmatprep.mubr.bf16.mxu0 %v1289_v21  ;;  %1216 = vmatprep.mubr.bf16.mxu1 %v1290_v22  ;;  %v1288_v26 = vld [vmem:[%s1431_s11] sm:$0xff]   ;;  %v1292_v28 = vld [vmem:[%s1433_s12 + $0x28] sm:$0xff]   ;;  %v1295_v31 = vld [vmem:[%s1433_s12 + $0x18] sm:$0xff]  }
  0x36   : > { %v1296_v32 = vld [vmem:[%s1433_s12 + $0x38] sm:$0xff]   ;;  %v446_v34 = vld [vmem:[#allocation2 + $0x10] sm:$0xff]  ;;  %v444_v38 = vld [vmem:[#allocation2 + $0x40] sm:$0xff] }
  0x37   : > { %1195 = vmatpush3.bf16.msra.mxu0 %v1282_v18  ;;  %1233 = vmatpush3.bf16.msra.mxu1 %v1282_v18  ;;  %v438_v33 = vld [vmem:[#allocation2 + $0x58] sm:$0xff]  ;;  %v436_v37 = vld [vmem:[#allocation2 + $0x30] sm:$0xff]  ;;  %v437_v49 = vld [vmem:[#allocation2] sm:$0xff] }
  0x38   : > { %1196 = vmatprep.subr.bf16.mxu0 %v1283_v19  ;;  %1226 = vmatprep.subr.bf16.mxu1 %v1283_v19  ;;  %v439_v43 = vld [vmem:[#allocation2 + $0x18] sm:$0xff]  ;;  %v445_v50 = vld [vmem:[#allocation2 + $0x20] sm:$0xff]  ;;  %v442_v55 = vld [vmem:[#allocation2 + $0x8] sm:$0xff] }
  0x39   : > { %v447_v44 = vld [vmem:[#allocation2 + $0x38] sm:$0xff]  ;;  %v440_v61 = vld [vmem:[#allocation2 + $0x50] sm:$0xff]  ;;  %v448_v62 = vld [vmem:[#allocation2 + $0x60] sm:$0xff] }
  0x3a   : > { %v450_v56 = vld [vmem:[#allocation2 + $0x78] sm:$0xff]  ;;  %v443_v3 = vld [vmem:[#allocation2 + $0x48] sm:$0xff]  ;;  %v449_v10 = vld [vmem:[#allocation2 + $0x70] sm:$0xff] }
  0x3b   : > { %1197 = vmatpush3.bf16.msra.mxu0 %v1283_v19  ;;  %1234 = vmatpush3.bf16.msra.mxu1 %v1283_v19  ;;  %v451_v4 = vld [vmem:[#allocation2 + $0x28] sm:$0xff] }
  0x3c   : > { %1198 = vmatprep.subr.bf16.mxu0 %v1284_v20  ;;  %1227 = vmatprep.subr.bf16.mxu1 %v1284_v20  ;;  %v441_v9 = vld [vmem:[#allocation2 + $0x68] sm:$0xff] }
  0x3f   : > { %1199 = vmatpush3.bf16.msra.mxu0 %v1284_v20  ;;  %1235 = vmatpush3.bf16.msra.mxu1 %v1284_v20 }
  0x40   : > { %1200 = vmatprep.subr.bf16.mxu0 %v1285_v23  ;;  %1228 = vmatprep.subr.bf16.mxu1 %v1285_v23 }
  0x43   : > { %1201 = vmatpush3.bf16.msra.mxu0 %v1285_v23  ;;  %1236 = vmatpush3.bf16.msra.mxu1 %v1285_v23 }
  0x44   : > { %1202 = vmatprep.subr.bf16.mxu0 %v1286_v24  ;;  %1229 = vmatprep.subr.bf16.mxu1 %v1286_v24 }
  0x47   : > { %1203 = vmatpush3.bf16.msra.mxu0 %v1286_v24  ;;  %1237 = vmatpush3.bf16.msra.mxu1 %v1286_v24 }
  0x48   : > { %1204 = vmatprep.subr.bf16.mxu0 %v1287_v25  ;;  %1230 = vmatprep.subr.bf16.mxu1 %v1287_v25 }
  0x4b   : > { %1205 = vmatpush3.bf16.msra.mxu0 %v1287_v25  ;;  %1238 = vmatpush3.bf16.msra.mxu1 %v1287_v25 }
  0x4c   : > { %1206 = vmatprep.subr.bf16.mxu0 %v1288_v26  ;;  %1231 = vmatprep.subr.bf16.mxu1 %v1288_v26 }
  0x4f   : > { %1207 = vmatpush3.bf16.msra.mxu0 %v1288_v26  ;;  %1239 = vmatpush3.bf16.msra.mxu1 %v1288_v26 }
  0x52   : > { %1209 = vmatmul.mubr.bf16.vlgmr.msra.gmra.mxu0 %v1291_v27  ;;  %1217 = vmatmul.mubr.bf16.vlgmr.msra.gmra.mxu1 %v1292_v28 }
  0x53   : > { %1212 = vmatprep.mubr.bf16.mxu0 %v1293_v29  ;;  %1220 = vmatprep.mubr.bf16.mxu1 %v1294_v30 }
  0x5a   : > { %1213 = vmatmul.mubr.bf16.gmra.mxu0 %v1295_v31  ;;  %1221 = vmatmul.mubr.bf16.gmra.mxu1 %v1296_v32 }
 0x112   : > { %v1210_v35 = vpop.f32.mrf.mxu0  ;;  %v1218_v36 = vpop.f32.mrf.mxu1 }
 0x113   : > { %v679_v39 = vadd.f32 %v1210_v35, %v438_v33  ;;  %v687_v40 = vadd.f32 %v1218_v36, %v446_v34 }
 0x114   : > { %v614_v41 = vpop.f32.mrf.mxu0  ;;  %v646_v42 = vpop.f32.mrf.mxu1 }
 0x115   : > { %695 = vst [vmem:[#allocation2 + $0x58] sm:$0xff] %v679_v39  ;;  %703 = vst [vmem:[#allocation2 + $0x10] sm:$0xff] %v687_v40  ;;  %v677_v45 = vadd.f32 %v614_v41, %v436_v37  ;;  %v685_v46 = vadd.f32 %v646_v42, %v444_v38 }
 0x116   : > { %v1211_v47 = vpop.f32.mrf.mxu0  ;;  %v1219_v48 = vpop.f32.mrf.mxu1 }
 0x117   : > { %693 = vst [vmem:[#allocation2 + $0x30] sm:$0xff] %v677_v45  ;;  %701 = vst [vmem:[#allocation2 + $0x40] sm:$0xff] %v685_v46  ;;  %v680_v51 = vadd.f32 %v1211_v47, %v439_v43  ;;  %v688_v52 = vadd.f32 %v1219_v48, %v447_v44 }
 0x118   : > { %v617_v53 = vpop.f32.mrf.mxu0  ;;  %v649_v54 = vpop.f32.mrf.mxu1 }
 0x119   : > { %696 = vst [vmem:[#allocation2 + $0x18] sm:$0xff] %v680_v51  ;;  %704 = vst [vmem:[#allocation2 + $0x38] sm:$0xff] %v688_v52  ;;  %v678_v57 = vadd.f32 %v617_v53, %v437_v49  ;;  %v686_v58 = vadd.f32 %v649_v54, %v445_v50 }
 0x11a   : > { %v1214_v59 = vpop.f32.mrf.mxu0  ;;  %v1222_v60 = vpop.f32.mrf.mxu1 }
 0x11b   : > { %694 = vst [vmem:[#allocation2] sm:$0xff] %v678_v57  ;;  %702 = vst [vmem:[#allocation2 + $0x20] sm:$0xff] %v686_v58  ;;  %v683_v63 = vadd.f32 %v1214_v59, %v442_v55  ;;  %v691_v0 = vadd.f32 %v1222_v60, %v450_v56 }
 0x11c   : > { %v630_v1 = vpop.f32.mrf.mxu0  ;;  %v662_v2 = vpop.f32.mrf.mxu1 }
 0x11d   : > { %699 = vst [vmem:[#allocation2 + $0x8] sm:$0xff] %v683_v63  ;;  %707 = vst [vmem:[#allocation2 + $0x78] sm:$0xff] %v691_v0  ;;  %v681_v5 = vadd.f32 %v630_v1, %v440_v61  ;;  %v689_v6 = vadd.f32 %v662_v2, %v448_v62 }
 0x11e   : > { %v1215_v7 = vpop.f32.mrf.mxu0  ;;  %v1223_v8 = vpop.f32.mrf.mxu1 }
 0x11f   : > { %697 = vst [vmem:[#allocation2 + $0x50] sm:$0xff] %v681_v5  ;;  %705 = vst [vmem:[#allocation2 + $0x60] sm:$0xff] %v689_v6  ;;  %v684_v11 = vadd.f32 %v1215_v7, %v443_v3  ;;  %v692_v12 = vadd.f32 %v1223_v8, %v451_v4  ;;  %712 = sbr.rel (%p1052_p11) target bundleno = 318 (0x13e), region = 85 }
 0x120   : > { %v633_v13 = vpop.f32.mrf.mxu0  ;;  %v665_v14 = vpop.f32.mrf.mxu1 }
 0x121   : > { %700 = vst [vmem:[#allocation2 + $0x48] sm:$0xff] %v684_v11  ;;  %708 = vst [vmem:[#allocation2 + $0x28] sm:$0xff] %v692_v12  ;;  %v682_v15 = vadd.f32 %v633_v13, %v441_v9  ;;  %v690_v16 = vadd.f32 %v665_v14, %v449_v10 }
 0x123   : > { %698 = vst [vmem:[#allocation2 + $0x68] sm:$0xff] %v682_v15  ;;  %706 = vst [vmem:[#allocation2 + $0x70] sm:$0xff] %v690_v16 }
 0x124   : > { %v713_v17 = vld [vmem:[#allocation2 + $0x30] sm:$0xff]  ;;  %v714_v18 = vld [vmem:[#allocation2] sm:$0xff]  ;;  %v715_v23 = vld [vmem:[#allocation2 + $0x58] sm:$0xff] }
 0x125   : > { %v1456_v19 = vld [vmem:[%s1539_s2] ss:$0 sm:$0xff]  ;;  %v716_v24 = vld [vmem:[#allocation2 + $0x18] sm:$0xff]  ;;  %v1162_v29 = vld [vmem:[%s1540_s3 + $0x8] sm:$0xff]  }
 0x126   : > { %v736_v20 = vadd.f32 %v1456_v19, %v713_v17  ;;  %v737_v21 = vadd.f32 %v1456_v19, %v714_v18  ;;  %v1091_v22 = vld [vmem:[%s1540_s3] sm:$0xff]   ;;  %v738_v27 = vadd.f32 %v1456_v19, %v715_v23  ;;  %v739_v28 = vadd.f32 %v1456_v19, %v716_v24  ;;  %v717_v30 = vld [vmem:[#allocation2 + $0x50] sm:$0xff]  ;;  %v719_v37 = vld [vmem:[#allocation2 + $0x8] sm:$0xff] }
 0x127   : > { %v1092_v25 = vunpack.c.l.bf16 %v1091_v22  ;;  %v1093_v26 = vunpack.c.h.bf16 %v1091_v22  ;;  %v1096_v32 = vunpack.c.l.bf16 %v1162_v29  ;;  %v1097_v33 = vunpack.c.h.bf16 %v1162_v29  ;;  %v1163_v36 = vld [vmem:[%s1540_s3 + $0x10] sm:$0xff]   ;;  %v1164_v43 = vld [vmem:[%s1540_s3 + $0x18] sm:$0xff]   ;;  %v721_v48 = vld [vmem:[#allocation2 + $0x40] sm:$0xff] }
 0x128   : > { %v740_v34 = vadd.f32 %v1456_v19, %v717_v30  ;;  %v720_v38 = vld [vmem:[#allocation2 + $0x48] sm:$0xff]  ;;  %v1100_v41 = vunpack.c.l.bf16 %v1163_v36  ;;  %v1101_v42 = vunpack.c.h.bf16 %v1163_v36  ;;  %v742_v46 = vadd.f32 %v1456_v19, %v719_v37  ;;  %v722_v53 = vld [vmem:[#allocation2 + $0x20] sm:$0xff]  ;;  %v723_v59 = vld [vmem:[#allocation2 + $0x10] sm:$0xff] }
 0x129   : > { %v784_v39 = vadd.f32 %v1092_v25, %v736_v20  ;;  %v785_v40 = vadd.f32 %v1093_v26, %v737_v21  ;;  %v786_v44 = vadd.f32 %v1096_v32, %v738_v27  ;;  %v787_v45 = vadd.f32 %v1097_v33, %v739_v28  ;;  %v1165_v58 = vld [vmem:[%s1540_s3 + $0x20] sm:$0xff]   ;;  %v724_v0 = vld [vmem:[#allocation2 + $0x38] sm:$0xff]  ;;  %v1166_v1 = vld [vmem:[%s1540_s3 + $0x28] sm:$0xff]  }
 0x12a   : > { %v718_v31 = vld [vmem:[#allocation2 + $0x68] sm:$0xff]  ;;  %v743_v47 = vadd.f32 %v1456_v19, %v720_v38  ;;  %v788_v51 = vadd.f32 %v1100_v41, %v740_v34  ;;  %v1104_v56 = vunpack.c.l.bf16 %v1164_v43  ;;  %v1105_v57 = vunpack.c.h.bf16 %v1164_v43  ;;  %v725_v6 = vld [vmem:[#allocation2 + $0x60] sm:$0xff]  ;;  %v726_v11 = vld [vmem:[#allocation2 + $0x70] sm:$0xff] }
 0x12b   : > { %v741_v35 = vadd.f32 %v1456_v19, %v718_v31  ;;  %v800_v49 = vmax.f32 %v784_v39, 0.0  ;;  %v801_v50 = vmax.f32 %v785_v40, 0.0  ;;  %v802_v54 = vmax.f32 %v786_v44, 0.0  ;;  %v1167_v12 = vld [vmem:[%s1540_s3 + $0x30] sm:$0xff]   ;;  %v727_v22 = vld [vmem:[#allocation2 + $0x78] sm:$0xff]  ;;  %v728_v23 = vld [vmem:[#allocation2 + $0x28] sm:$0xff] }
 0x12c   : > { %v803_v55 = vmax.f32 %v787_v45, 0.0  ;;  %v804_v61 = vmax.f32 %v788_v51, 0.0  ;;  %v744_v63 = vadd.f32 %v1456_v19, %v721_v48  ;;  %v790_v3 = vadd.f32 %v1104_v56, %v742_v46  ;;  %v1168_v28 = vld [vmem:[%s1540_s3 + $0x38] sm:$0xff]  }
 0x12d   : > { %v789_v52 = vadd.f32 %v1101_v42, %v741_v35  ;;  %v1125_v60 = vpack.c.bf16 %v801_v50, %v800_v49  ;;  %v791_v4 = vadd.f32 %v1105_v57, %v743_v47  ;;  %v745_v5 = vadd.f32 %v1456_v19, %v722_v53 }
 0x12e   : > { %v1130_v2 = vpack.c.bf16 %v803_v55, %v802_v54  ;;  %v1108_v8 = vunpack.c.l.bf16 %v1165_v58  ;;  %v1109_v9 = vunpack.c.h.bf16 %v1165_v58  ;;  %v746_v10 = vadd.f32 %v1456_v19, %v723_v59 }
 0x12f   : > { %v805_v62 = vmax.f32 %v789_v52, 0.0  ;;  %1126 = vst [vmem:[%s1541_s4] sm:$0xff] %v1125_v60   ;;  %v806_v13 = vmax.f32 %v790_v3, 0.0  ;;  %v807_v14 = vmax.f32 %v791_v4, 0.0  ;;  %v747_v15 = vadd.f32 %v1456_v19, %v724_v0 }
 0x130   : > { %1169 = vst [vmem:[%s1541_s4 + $0x8] sm:$0xff] %v1130_v2   ;;  %v1112_v16 = vunpack.c.l.bf16 %v1166_v1  ;;  %v792_v17 = vadd.f32 %v1108_v8, %v744_v63  ;;  %v793_v18 = vadd.f32 %v1109_v9, %v745_v5  ;;  %v1113_v20 = vunpack.c.h.bf16 %v1166_v1 }
 0x131   : > { %v1135_v7 = vpack.c.bf16 %v805_v62, %v804_v61  ;;  %v748_v21 = vadd.f32 %v1456_v19, %v725_v6  ;;  %v1140_v24 = vpack.c.bf16 %v807_v14, %v806_v13  ;;  %v749_v26 = vadd.f32 %v1456_v19, %v726_v11 }
 0x132   : > { %v794_v25 = vadd.f32 %v1112_v16, %v746_v10  ;;  %v1116_v27 = vunpack.c.l.bf16 %v1167_v12  ;;  %v808_v29 = vmax.f32 %v792_v17, 0.0  ;;  %v809_v30 = vmax.f32 %v793_v18, 0.0 }
 0x133   : > { %1170 = vst [vmem:[%s1541_s4 + $0x10] sm:$0xff] %v1135_v7   ;;  %v795_v31 = vadd.f32 %v1113_v20, %v747_v15  ;;  %v1117_v32 = vunpack.c.h.bf16 %v1167_v12  ;;  %1171 = vst [vmem:[%s1541_s4 + $0x18] sm:$0xff] %v1140_v24   ;;  %v750_v35 = vadd.f32 %v1456_v19, %v727_v22  ;;  %v751_v36 = vadd.f32 %v1456_v19, %v728_v23 }
 0x134   : > { %v810_v33 = vmax.f32 %v794_v25, 0.0  ;;  %v796_v34 = vadd.f32 %v1116_v27, %v748_v21  ;;  %v1145_v37 = vpack.c.bf16 %v809_v30, %v808_v29  ;;  %v1120_v40 = vunpack.c.l.bf16 %v1168_v28 }
 0x135   : > { %v811_v38 = vmax.f32 %v795_v31, 0.0  ;;  %v797_v39 = vadd.f32 %v1117_v32, %v749_v26  ;;  %v1121_v42 = vunpack.c.h.bf16 %v1168_v28 }
 0x136   : > { %v812_v41 = vmax.f32 %v796_v34, 0.0  ;;  %1172 = vst [vmem:[%s1541_s4 + $0x20] sm:$0xff] %v1145_v37   ;;  %v798_v45 = vadd.f32 %v1120_v40, %v750_v35 }
 0x137   : > { %v1150_v43 = vpack.c.bf16 %v811_v38, %v810_v33  ;;  %v813_v44 = vmax.f32 %v797_v39, 0.0  ;;  %v799_v46 = vadd.f32 %v1121_v42, %v751_v36 }
 0x138   : > { %v814_v19 = vmax.f32 %v798_v45, 0.0 }
 0x139   : > { %1173 = vst [vmem:[%s1541_s4 + $0x28] sm:$0xff] %v1150_v43   ;;  %v1155_v47 = vpack.c.bf16 %v813_v44, %v812_v41  ;;  %v815_v48 = vmax.f32 %v799_v46, 0.0 }
 0x13b   : > { %1174 = vst [vmem:[%s1541_s4 + $0x30] sm:$0xff] %v1155_v47   ;;  %v1160_v49 = vpack.c.bf16 %v815_v48, %v814_v19 }
 0x13d   : > { %1175 = vst [vmem:[%s1541_s4 + $0x38] sm:$0xff] %v1160_v49  }
 0x13e PF: > { %s14_s19 = sadd.s32 1, %s1335_s19   ;;  %s1542_s15 = smov %s1323_s16 }
 0x13f   : > { %p11_p12 = scmp.ge.s32.totalorder %s14_s19, 7   ;;  %s1543_s16 = smov %s1398_s23 }
 0x140   : > { %s1544_s17 = smov %s1331_s18  ;;  %s1545_s18 = smov %s1547_s20 }
 0x141   :  { %13 = sbr.rel (!%p11_p12) target bundleno = 3 (0x3), region = 129 }

// kernel: resnet18_forward.30
= control target key start
LH: loop header
LB: loop body
LE: loop exit
PB: predicated region body
PF: predicated region fallthrough
CT: control target
= control target key end

     0   :  { %s798_s12 = smov 0   ;;  %s800_s13 = smov 0   ;;  %s891_s0 = inlined_call_operand.vmem [shape: bf16[32,640], index: 0, kind: input, shape index: {}]   ;;  %s892_s1 = inlined_call_operand.vmem [shape: bf16[640,128], index: 1, kind: input, shape index: {}]   ;;  %s893_s2 = inlined_call_operand.vmem [shape: f32[1,128], index: 2, kind: input, shape index: {}]   ;;  %s894_s3 = inlined_call_operand.vmem [shape: bf16[32,128], index: 3, kind: output, shape index: {}]  }
   0x1   :  { %s802_s14 = smov 0   ;;  %s804_s15 = smov 0  }
   0x2   :  { %s806_s16 = smov 0  }
   0x3 LB: > { %s25_s17 = sadd.s32 1, %s771_s15  ;;  %p48_p1 = scmp.ne.s32.totalorder %s763_s13, %s759_s12  ;;  %s775_s16 = sphi %s806_s16, %s13_s16   ;;  %s771_s15 = sphi %s804_s15, %s898_s15   ;;  %s767_s14 = sphi %s802_s14, %s897_s14   ;;  %s763_s13 = sphi %s800_s13, %s896_s13   ;;  %s759_s12 = sphi %s798_s12, %s895_s12  }
   0x4   : > { %p26_p0 = scmp.ge.s32.totalorder %s25_s17, 5  ;;  %p49_p2 = scmp.eq.s32.totalorder %s775_s16, 0 }
   0x5   : > { %s41_s19 = sadd.s32 1, %s763_s13  ;;  %p613_p5 = scmp.ge.s32.totalorder %s775_s16, 5 }
   0x6   : > { %s900_s17 = smov (%p26_p0, %s25_s17), 0  ;;  %p50_p3 = por %p49_p2, %p48_p1 }
   0x7   : > { %s37_s18 = ssub.s32 %s771_s15, %s900_s17  ;;  %162 = sbr.rel (%p613_p5) target bundleno = 18 (0x12), region = 20 }
   0x8   : > { %p39_p4 = scmp.eq.s32.totalorder %s37_s18, 0 }
   0xa   : > { %s833_s20 = scalar_select %p39_p4, %s763_s13, %s41_s19  }
   0xc   : > { %165 = sbr.rel (!%p50_p3) target bundleno = 18 (0x12), region = 24  ;;  %s167_s21 = sand.u32 (%p50_p3), 1, %s763_s13  }
   0xd   : > { %s615_s22 = sshll.u32 (%p50_p3), %s771_s15, 2  ;;  %s614_s23 = sshll.u32 (%p50_p3), %s167_s21, 4 }
   0xe   : > { %s174_s26 = scalar_lea.vmem (%p50_p3), %s891_s0, %s615_s22  ;;  %s169_s27 = scalar_lea.vmem (%p50_p3), [#allocation3], %s614_s23 }
   0xf   : > { %v191_v0 = vld [vmem:[%s174_s26] sm:$0xf] (%p50_p3)  ;;  %v193_v1 = vld [vmem:[%s174_s26 + $0x14] sm:$0xf] (%p50_p3)  ;;  %v195_v2 = vld [vmem:[%s174_s26 + $0x28] sm:$0xf] (%p50_p3) }
  0x10   : > { %192 = vst [vmem:[%s169_s27] sm:$0xf] (%p50_p3), %v191_v0  ;;  %194 = vst [vmem:[%s169_s27 + $0x4] sm:$0xf] (%p50_p3), %v193_v1  ;;  %v197_v3 = vld [vmem:[%s174_s26 + $0x3c] sm:$0xf] (%p50_p3) }
  0x11   : > { %196 = vst [vmem:[%s169_s27 + $0x8] sm:$0xf] %v195_v2  ;;  %198 = vst [vmem:[%s169_s27 + $0xc] sm:$0xf] %v197_v3 }
  0x12 PF: > { %p616_p6 = scmp.ge.s32.totalorder %s775_s16, 1  ;;  %p241_p7 = scmp.lt.s32.totalorder %s775_s16, 6 }
  0x14   : > { %p242_p8 = pnand %p616_p6, %p241_p7 }
  0x15   : > { %s248_s28 = sand.u32 (!%p242_p8), 1, %s759_s12   ;;  %s618_s29 = sshll.u32 (!%p242_p8), %s767_s14, 4 }
  0x16   : > { %245 = sbr.rel (%p242_p8) target bundleno = 284 (0x11c), region = 69  ;;  %s845_s30 = sshll.u32 (!%p242_p8), %s248_s28, 4 }
  0x17   : > { %p287_p9 = scmp.lt.s32.totalorder (!%p242_p8), %s618_s29, 79  ;;  %s250_s8 = scalar_lea.vmem (!%p242_p8), [#allocation3], %s845_s30 }
  0x18   : > { %p620_p10 = scmp.ne.s32.totalorder (!%p242_p8), %s767_s14, 0 }
  0x1b   : > { %s902_s29 = smov (!%p287_p9, %s618_s29), 79  ;;  %311 = sbr.rel (%p620_p10) target bundleno = 35 (0x23), region = 77 }
  0x1c   : > { %s619_s4 = sshll.u32 %s902_s29, 2 }
  0x1d   : > { %s850_s7 = scalar_lea.vmem %s892_s1, %s619_s4 }
  0x20   : > { %v777_v4 = vmov 0.0  }
  0x21   : > { %312 = vst [vmem:[#allocation2 + $0x10] sm:$0xff] %v777_v4  ;;  %313 = vst [vmem:[#allocation2] sm:$0xff] %v777_v4 }
  0x22   : > { %314 = vst [vmem:[#allocation2 + $0x18] sm:$0xff] %v777_v4  ;;  %315 = vst [vmem:[#allocation2 + $0x8] sm:$0xff] %v777_v4 }
  0x23 PF: > { %v727_v5 = vld [vmem:[%s850_s7 + $0x38] sm:$0xff]   ;;  %v728_v6 = vld [vmem:[%s850_s7 + $0x30] sm:$0xff]   ;;  %v729_v7 = vld [vmem:[%s850_s7 + $0x28] sm:$0xff]   ;;  %p631_p11 = scmp.ne.s32.totalorder %s767_s14, 4 }
  0x24   : > { %666 = vmatprep.subr.bf16.mxu0 %v727_v5  ;;  %v730_v8 = vld [vmem:[%s850_s7 + $0x20] sm:$0xff]   ;;  %v731_v10 = vld [vmem:[%s850_s7 + $0x18] sm:$0xff]   ;;  %v732_v11 = vld [vmem:[%s850_s7 + $0x10] sm:$0xff]  }
  0x25   : > { %667 = vmatpush3.bf16.msra.mxu0 %v727_v5  ;;  %v735_v9 = vld [vmem:[%s250_s8] sm:$0xff]   ;;  %v733_v12 = vld [vmem:[%s850_s7 + $0x8] sm:$0xff]  }
  0x26   : > { %668 = vmatprep.subr.bf16.mxu0 %v728_v6  ;;  %682 = vmatprep.mubr.bf16.mxu0 %v735_v9  ;;  %v734_v13 = vld [vmem:[%s850_s7] sm:$0xff]   ;;  %v736_v14 = vld [vmem:[%s250_s8 + $0x8] sm:$0xff]  }
  0x28   : > { %v316_v17 = vld [vmem:[#allocation2 + $0x10] sm:$0xff]  ;;  %v317_v23 = vld [vmem:[#allocation2] sm:$0xff] }
  0x29   : > { %669 = vmatpush3.bf16.msra.mxu0 %v728_v6  ;;  %v318_v15 = vld [vmem:[#allocation2 + $0x18] sm:$0xff]  ;;  %v319_v20 = vld [vmem:[#allocation2 + $0x8] sm:$0xff] }
  0x2a   : > { %670 = vmatprep.subr.bf16.mxu0 %v729_v7 }
  0x2d   : > { %671 = vmatpush3.bf16.msra.mxu0 %v729_v7 }
  0x2e   : > { %672 = vmatprep.subr.bf16.mxu0 %v730_v8 }
  0x31   : > { %673 = vmatpush3.bf16.msra.mxu0 %v730_v8 }
  0x32   : > { %674 = vmatprep.subr.bf16.mxu0 %v731_v10 }
  0x35   : > { %675 = vmatpush3.bf16.msra.mxu0 %v731_v10 }
  0x36   : > { %676 = vmatprep.subr.bf16.mxu0 %v732_v11 }
  0x39   : > { %677 = vmatpush3.bf16.msra.mxu0 %v732_v11 }
  0x3a   : > { %678 = vmatprep.subr.bf16.mxu0 %v733_v12 }
  0x3d   : > { %679 = vmatpush3.bf16.msra.mxu0 %v733_v12 }
  0x3e   : > { %680 = vmatprep.subr.bf16.mxu0 %v734_v13 }
  0x41   : > { %681 = vmatpush3.bf16.msra.mxu0 %v734_v13 }
  0x44   : > { %683 = vmatmul.mubr.bf16.vlgmr.msra.gmra.mxu0 %v736_v14 }
 0x104   : > { %v684_v16 = vpop.f32.mrf.mxu0 }
 0x105   : > { %v451_v18 = vadd.f32 %v684_v16, %v318_v15 }
 0x106   : > { %v434_v19 = vpop.f32.mrf.mxu0 }
 0x107   : > { %455 = vst [vmem:[#allocation2 + $0x18] sm:$0xff] %v451_v18  ;;  %v449_v21 = vadd.f32 %v434_v19, %v316_v17 }
 0x108   : > { %v685_v22 = vpop.f32.mrf.mxu0 }
 0x109   : > { %453 = vst [vmem:[#allocation2 + $0x10] sm:$0xff] %v449_v21  ;;  %v452_v24 = vadd.f32 %v685_v22, %v319_v20  ;;  %460 = sbr.rel (%p631_p11) target bundleno = 284 (0x11c), region = 81 }
 0x10a   : > { %v437_v25 = vpop.f32.mrf.mxu0 }
 0x10b   : > { %456 = vst [vmem:[#allocation2 + $0x8] sm:$0xff] %v452_v24  ;;  %v450_v26 = vadd.f32 %v437_v25, %v317_v23 }
 0x10d   : > { %454 = vst [vmem:[#allocation2] sm:$0xff] %v450_v26 }
 0x10e   : > { %v632_v29 = vld [vmem:[%s893_s2] ss:$0 sm:$0xff]  ;;  %v463_v32 = vld [vmem:[#allocation2 + $0x18] sm:$0xff] }
 0x10f   : > { %v474_v34 = vadd.f32 %v632_v29, %v463_v32 }
 0x110   : > { %v461_v27 = vld [vmem:[#allocation2 + $0x10] sm:$0xff] }
 0x111   : > { %v472_v30 = vadd.f32 %v632_v29, %v461_v27  ;;  %v478_v38 = vmax.f32 %v474_v34, 0.0 }
 0x112   : > { %v464_v33 = vld [vmem:[#allocation2 + $0x8] sm:$0xff] }
 0x113   : > { %v475_v35 = vadd.f32 %v632_v29, %v464_v33  ;;  %v476_v36 = vmax.f32 %v472_v30, 0.0 }
 0x114   : > { %v462_v28 = vld [vmem:[#allocation2] sm:$0xff] }
 0x115   : > { %v473_v31 = vadd.f32 %v632_v29, %v462_v28  ;;  %v479_v39 = vmax.f32 %v475_v35, 0.0 }
 0x117   : > { %v477_v37 = vmax.f32 %v473_v31, 0.0  ;;  %v653_v41 = vpack.c.bf16 %v479_v39, %v478_v38 }
 0x119   : > { %v648_v40 = vpack.c.bf16 %v477_v37, %v476_v36  ;;  %655 = vst [vmem:[%s894_s3 + $0x8] sm:$0xff] %v653_v41  }
 0x11b   : > { %649 = vst [vmem:[%s894_s3] sm:$0xff] %v648_v40  }
 0x11c PF: > { %s13_s16 = sadd.s32 1, %s775_s16   ;;  %s895_s12 = smov %s763_s13 }
 0x11d   : > { %p10_p12 = scmp.ge.s32.totalorder %s13_s16, 7   ;;  %s896_s13 = smov %s833_s20 }
 0x11e   : > { %s897_s14 = smov %s771_s15  ;;  %s898_s15 = smov %s900_s17 }
 0x11f   :  { %12 = sbr.rel (!%p10_p12) target bundleno = 3 (0x3), region = 122 }

// kernel: resnet18_forward.29
= control target key start
LH: loop header
LB: loop body
LE: loop exit
PB: predicated region body
PF: predicated region fallthrough
CT: control target
= control target key end

     0   :  { %s335_s1 = inlined_call_operand.vmem [shape: bf16[128,128], index: 1, kind: input, shape index: {}]   ;;  %s336_s0 = inlined_call_operand.vmem [shape: bf16[32,128], index: 0, kind: input, shape index: {}]   ;;  %s337_s2 = inlined_call_operand.vmem [shape: f32[1,128], index: 2, kind: input, shape index: {}]   ;;  %s338_s3 = inlined_call_operand.vmem [shape: bf16[32,128], index: 3, kind: output, shape index: {}]  }
   0x1   :  { %v266_v0 = vld [vmem:[%s335_s1 + $0x38] sm:$0xff]   ;;  %v267_v1 = vld [vmem:[%s335_s1 + $0x30] sm:$0xff]   ;;  %v268_v2 = vld [vmem:[%s335_s1 + $0x28] sm:$0xff]  }
   0x2   :  { %246 = vmatprep.subr.bf16.mxu0 %v266_v0  ;;  %v269_v3 = vld [vmem:[%s335_s1 + $0x20] sm:$0xff]   ;;  %v270_v5 = vld [vmem:[%s335_s1 + $0x18] sm:$0xff]   ;;  %v271_v6 = vld [vmem:[%s335_s1 + $0x10] sm:$0xff]  }
   0x3   :  { %247 = vmatpush3.bf16.msra.mxu0 %v266_v0  ;;  %v274_v4 = vld [vmem:[%s336_s0] sm:$0xff]   ;;  %v272_v7 = vld [vmem:[%s335_s1 + $0x8] sm:$0xff]  }
   0x4   :  { %248 = vmatprep.subr.bf16.mxu0 %v267_v1  ;;  %262 = vmatprep.mubr.bf16.mxu0 %v274_v4  ;;  %v273_v8 = vld [vmem:[%s335_s1] sm:$0xff]   ;;  %v275_v9 = vld [vmem:[%s336_s0 + $0x8] sm:$0xff]  }
   0x5   :  { %v216_v11 = vld [vmem:[%s337_s2] ss:$0 sm:$0xff] }
   0x7   :  { %249 = vmatpush3.bf16.msra.mxu0 %v267_v1 }
   0x8   :  { %250 = vmatprep.subr.bf16.mxu0 %v268_v2 }
   0xb   :  { %251 = vmatpush3.bf16.msra.mxu0 %v268_v2 }
   0xc   :  { %252 = vmatprep.subr.bf16.mxu0 %v269_v3 }
   0xf   :  { %253 = vmatpush3.bf16.msra.mxu0 %v269_v3 }
  0x10   :  { %254 = vmatprep.subr.bf16.mxu0 %v270_v5 }
  0x13   :  { %255 = vmatpush3.bf16.msra.mxu0 %v270_v5 }
  0x14   :  { %256 = vmatprep.subr.bf16.mxu0 %v271_v6 }
  0x17   :  { %257 = vmatpush3.bf16.msra.mxu0 %v271_v6 }
  0x18   :  { %258 = vmatprep.subr.bf16.mxu0 %v272_v7 }
  0x1b   :  { %259 = vmatpush3.bf16.msra.mxu0 %v272_v7 }
  0x1c   :  { %260 = vmatprep.subr.bf16.mxu0 %v273_v8 }
  0x1f   :  { %261 = vmatpush3.bf16.msra.mxu0 %v273_v8 }
  0x22   :  { %263 = vmatmul.mubr.bf16.vlgmr.msra.gmra.mxu0 %v275_v9 }
  0xe2   :  { %v264_v10 = vpop.f32.mrf.mxu0 }
  0xe3   :  { %v180_v14 = vadd.f32 %v264_v10, %v216_v11 }
  0xe4   :  { %v141_v12 = vpop.f32.mrf.mxu0 }
  0xe5   :  { %v178_v17 = vadd.f32 %v216_v11, %v141_v12 }
  0xe6   :  { %v265_v13 = vpop.f32.mrf.mxu0 }
  0xe7   :  { %v181_v15 = vadd.f32 %v265_v13, %v216_v11 }
  0xe8   :  { %v144_v16 = vpop.f32.mrf.mxu0 }
  0xe9   :  { %v233_v18 = vpack.c.bf16 %v181_v15, %v180_v14  ;;  %v179_v19 = vadd.f32 %v216_v11, %v144_v16 }
  0xeb   :  { %235 = vst [vmem:[%s338_s3 + $0x8] sm:$0xff] %v233_v18   ;;  %v228_v20 = vpack.c.bf16 %v179_v19, %v178_v17 }
  0xed   :  { %229 = vst [vmem:[%s338_s3] sm:$0xff] %v228_v20  }

// kernel: resnet18_forward.32
= control target key start
LH: loop header
LB: loop body
LE: loop exit
PB: predicated region body
PF: predicated region fallthrough
CT: control target
= control target key end

     0   :  { %s1072_s12 = smov 0   ;;  %s1074_s13 = smov 0   ;;  %s1182_s0 = inlined_call_operand.vmem [shape: bf16[32,1152], index: 0, kind: input, shape index: {}]   ;;  %s1183_s1 = inlined_call_operand.vmem [shape: bf16[1152,128], index: 1, kind: input, shape index: {}]   ;;  %s1184_s2 = inlined_call_operand.vmem [shape: f32[1,128], index: 2, kind: input, shape index: {}]   ;;  %s1185_s3 = inlined_call_operand.vmem [shape: bf16[32,128], index: 3, kind: output, shape index: {}]  }
   0x1   :  { %s1076_s14 = smov 0   ;;  %s1078_s15 = smov 0  }
   0x2   :  { %s1080_s16 = smov 0  }
   0x3 LB: > { %s25_s17 = sadd.s32 1, %s1045_s15  ;;  %p48_p1 = scmp.ne.s32.totalorder %s1037_s13, %s1033_s12  ;;  %s1049_s16 = sphi %s1080_s16, %s13_s16   ;;  %s1045_s15 = sphi %s1078_s15, %s1189_s15   ;;  %s1041_s14 = sphi %s1076_s14, %s1188_s14   ;;  %s1037_s13 = sphi %s1074_s13, %s1187_s13   ;;  %s1033_s12 = sphi %s1072_s12, %s1186_s12  }
   0x4   : > { %p26_p0 = scmp.ge.s32.totalorder %s25_s17, 3  ;;  %p49_p2 = scmp.eq.s32.totalorder %s1049_s16, 0 }
   0x5   : > { %s41_s19 = sadd.s32 1, %s1037_s13  ;;  %p809_p5 = scmp.ge.s32.totalorder %s1049_s16, 3 }
   0x6   : > { %s1191_s17 = smov (%p26_p0, %s25_s17), 0  ;;  %p50_p3 = por %p49_p2, %p48_p1 }
   0x7   : > { %s37_s18 = ssub.s32 %s1045_s15, %s1191_s17  ;;  %162 = sbr.rel (%p809_p5) target bundleno = 21 (0x15), region = 20 }
   0x8   : > { %p39_p4 = scmp.eq.s32.totalorder %s37_s18, 0 }
   0xa   : > { %s1107_s20 = scalar_select %p39_p4, %s1037_s13, %s41_s19  }
   0xc   : > { %165 = sbr.rel (!%p50_p3) target bundleno = 21 (0x15), region = 24  ;;  %s167_s21 = sand.u32 (%p50_p3), 1, %s1037_s13  }
   0xd   : > { %s862_s22 = smul.u32 (%p50_p3), 12, %s1045_s15 }
   0xe   : > { %s936_s23 = smul.u32 (%p50_p3), 48, %s167_s21 }
   0xf   : > { %s175_s26 = scalar_lea.vmem (%p50_p3), %s1182_s0, %s862_s22 }
  0x10   : > { %v190_v0 = vld [vmem:[%s175_s26] sm:$0xff] (%p50_p3)  ;;  %v194_v2 = vld [vmem:[%s175_s26 + $0x48] sm:$0xff] (%p50_p3)  ;;  %s169_s27 = scalar_lea.vmem (%p50_p3), [#allocation3], %s936_s23  ;;  %v815_v6 = vld [vmem:[%s175_s26 + $0x50] sm:$0xf] (%p50_p3) }
  0x11   : > { %v192_v1 = vld [vmem:[%s175_s26 + $0x24] sm:$0xff]  ;;  %191 = vst [vmem:[%s169_s27] sm:$0xff] %v190_v0  ;;  %195 = vst [vmem:[%s169_s27 + $0x18] sm:$0xff] %v194_v2  ;;  %v196_v3 = vld [vmem:[%s175_s26 + $0x6c] sm:$0xff] }
  0x12   : > { %193 = vst [vmem:[%s169_s27 + $0xc] sm:$0xff] %v192_v1  ;;  %v811_v4 = vld [vmem:[%s175_s26 + $0x8] sm:$0xf]  ;;  %v813_v5 = vld [vmem:[%s175_s26 + $0x2c] sm:$0xf]  ;;  %197 = vst [vmem:[%s169_s27 + $0x24] sm:$0xff] %v196_v3 }
  0x13   : > { %812 = vst [vmem:[%s169_s27 + $0x8] sm:$0xf] %v811_v4  ;;  %814 = vst [vmem:[%s169_s27 + $0x14] sm:$0xf] %v813_v5  ;;  %v817_v7 = vld [vmem:[%s175_s26 + $0x74] sm:$0xf] }
  0x14   : > { %816 = vst [vmem:[%s169_s27 + $0x20] sm:$0xf] %v815_v6  ;;  %818 = vst [vmem:[%s169_s27 + $0x2c] sm:$0xf] %v817_v7 }
  0x15 PF: > { %p819_p6 = scmp.ge.s32.totalorder %s1049_s16, 1  ;;  %p230_p7 = scmp.lt.s32.totalorder %s1049_s16, 4 }
  0x17   : > { %p231_p8 = pnand %p819_p6, %p230_p7 }
  0x18   : > { %s237_s28 = sand.u32 (!%p231_p8), 1, %s1033_s12   ;;  %s276_s29 = smul.u32 (!%p231_p8), 48, %s1041_s14 }
  0x19   : > { %234 = sbr.rel (%p231_p8) target bundleno = 299 (0x12b), region = 54  ;;  %p821_p10 = scmp.ne.s32.totalorder (!%p231_p8), %s1041_s14, 0 }
  0x1a   : > { %s937_s30 = smul.u32 (!%p231_p8), 48, %s237_s28  ;;  %p277_p9 = scmp.lt.s32.totalorder (!%p231_p8), %s276_s29, 143 }
  0x1c   : > { %s1124_s8 = scalar_lea.vmem (!%p231_p8), [#allocation3], %s937_s30 }
  0x1e   : > { %s1193_s29 = smov (!%p277_p9, %s276_s29), 143  ;;  %301 = sbr.rel (%p821_p10) target bundleno = 38 (0x26), region = 62 }
  0x1f   : > { %s820_s4 = sshll.u32 %s1193_s29, 2 }
  0x20   : > { %s1122_s7 = scalar_lea.vmem %s1183_s1, %s820_s4 }
  0x23   : > { %v1051_v8 = vmov 0.0  }
  0x24   : > { %302 = vst [vmem:[#allocation2 + $0x10] sm:$0xff] %v1051_v8  ;;  %303 = vst [vmem:[#allocation2] sm:$0xff] %v1051_v8 }
  0x25   : > { %304 = vst [vmem:[#allocation2 + $0x18] sm:$0xff] %v1051_v8  ;;  %305 = vst [vmem:[#allocation2 + $0x8] sm:$0xff] %v1051_v8 }
  0x26 PF: > { %v979_v9 = vld [vmem:[%s1122_s7 + $0x78] sm:$0xff]   ;;  %v982_v12 = vld [vmem:[%s1122_s7 + $0x70] sm:$0xff]   ;;  %v985_v15 = vld [vmem:[%s1122_s7 + $0x68] sm:$0xff]   ;;  %p852_p11 = scmp.ne.s32.totalorder %s1041_s14, 2 }
  0x27   : > { %v980_v10 = vld [vmem:[%s1122_s7 + $0x38] sm:$0xff]   ;;  %878 = vmatprep.subr.bf16.mxu0 %v979_v9  ;;  %v983_v13 = vld [vmem:[%s1122_s7 + $0x30] sm:$0xff]   ;;  %v986_v16 = vld [vmem:[%s1122_s7 + $0x28] sm:$0xff]  }
  0x28   : > { %v981_v11 = vld [vmem:[%s1122_s7 + $0xb8] sm:$0xff]   ;;  %879 = vmatpush3.bf16.msra.mxu0 %v980_v10  ;;  %v984_v14 = vld [vmem:[%s1122_s7 + $0xb0] sm:$0xff]   ;;  %v987_v17 = vld [vmem:[%s1122_s7 + $0xa8] sm:$0xff]  }
  0x29   : > { %916 = vmatprep.subr.bf16.mxu1 %v981_v11  ;;  %880 = vmatprep.subr.bf16.mxu0 %v982_v12  ;;  %v988_v18 = vld [vmem:[%s1122_s7 + $0x60] sm:$0xff]   ;;  %v991_v21 = vld [vmem:[%s1122_s7 + $0x58] sm:$0xff]   ;;  %v994_v24 = vld [vmem:[%s1122_s7 + $0x50] sm:$0xff]  }
  0x2a   : > { %917 = vmatpush3.bf16.msra.mxu1 %v981_v11  ;;  %v989_v19 = vld [vmem:[%s1122_s7 + $0x20] sm:$0xff]   ;;  %v993_v22 = vld [vmem:[%s1122_s7 + $0x98] sm:$0xff]   ;;  %v996_v25 = vld [vmem:[%s1122_s7 + $0x90] sm:$0xff]  }
  0x2b   : > { %918 = vmatprep.subr.bf16.mxu1 %v984_v14  ;;  %v990_v20 = vld [vmem:[%s1122_s7 + $0xa0] sm:$0xff]   ;;  %v992_v23 = vld [vmem:[%s1122_s7 + $0x18] sm:$0xff]   ;;  %v995_v26 = vld [vmem:[%s1122_s7 + $0x10] sm:$0xff]  }
  0x2c   : > { %881 = vmatpush3.bf16.msra.mxu0 %v983_v13  ;;  %v997_v27 = vld [vmem:[%s1122_s7 + $0x48] sm:$0xff]   ;;  %v1000_v30 = vld [vmem:[%s1122_s7 + $0x40] sm:$0xff]   ;;  %v306_v44 = vld [vmem:[#allocation2 + $0x10] sm:$0xff] }
  0x2d   : > { %882 = vmatprep.subr.bf16.mxu0 %v985_v15  ;;  %v998_v28 = vld [vmem:[%s1122_s7 + $0x8] sm:$0xff]   ;;  %v1002_v31 = vld [vmem:[%s1122_s7 + $0x80] sm:$0xff]   ;;  %v308_v58 = vld [vmem:[#allocation2 + $0x18] sm:$0xff] }
  0x2e   : > { %919 = vmatpush3.bf16.msra.mxu1 %v984_v14  ;;  %v999_v29 = vld [vmem:[%s1122_s7 + $0x88] sm:$0xff]   ;;  %v1005_v32 = vld [vmem:[%s1124_s8 + $0x4] ss:$12 sps:$4 sm:$0xff]  }
  0x2f   : > { %920 = vmatprep.subr.bf16.mxu1 %v987_v17  ;;  %v1006_v33 = vld [vmem:[%s1124_s8 + $0x8] ss:$12 sps:$4 sm:$0xff]   ;;  %574 = vmatprep.mubr.bf16.mxu0 %v1005_v32  ;;  %v1003_v35 = vld [vmem:[%s1124_s8] ss:$12 sps:$4 sm:$0xff]   ;;  %v1010_v38 = vld [vmem:[%s1124_s8 + $0x18] ss:$12 sps:$4 sm:$0xff]  }
  0x30   : > { %883 = vmatpush3.bf16.msra.mxu0 %v986_v16  ;;  %v1001_v34 = vld [vmem:[%s1122_s7] sm:$0xff]   ;;  %932 = vmatprep.mubr.bf16.mxu1 %v1006_v33  ;;  %v1008_v36 = vld [vmem:[%s1124_s8 + $0x1c] ss:$12 sps:$4 sm:$0xff]  }
  0x31   : > { %884 = vmatprep.subr.bf16.mxu0 %v988_v18  ;;  %v1007_v37 = vld [vmem:[%s1124_s8 + $0x20] ss:$12 sps:$4 sm:$0xff]  }
  0x32   : > { %921 = vmatpush3.bf16.msra.mxu1 %v987_v17  ;;  %v307_v52 = vld [vmem:[#allocation2] sm:$0xff]  ;;  %v309_v0 = vld [vmem:[#allocation2 + $0x8] sm:$0xff] }
  0x33   : > { %922 = vmatprep.subr.bf16.mxu1 %v990_v20 }
  0x34   : > { %885 = vmatpush3.bf16.msra.mxu0 %v989_v19 }
  0x35   : > { %886 = vmatprep.subr.bf16.mxu0 %v991_v21 }
  0x36   : > { %923 = vmatpush3.bf16.msra.mxu1 %v990_v20 }
  0x37   : > { %924 = vmatprep.subr.bf16.mxu1 %v993_v22 }
  0x38   : > { %887 = vmatpush3.bf16.msra.mxu0 %v992_v23 }
  0x39   : > { %888 = vmatprep.subr.bf16.mxu0 %v994_v24 }
  0x3a   : > { %925 = vmatpush3.bf16.msra.mxu1 %v993_v22 }
  0x3b   : > { %926 = vmatprep.subr.bf16.mxu1 %v996_v25 }
  0x3c   : > { %889 = vmatpush3.bf16.msra.mxu0 %v995_v26 }
  0x3d   : > { %890 = vmatprep.subr.bf16.mxu0 %v997_v27 }
  0x3e   : > { %927 = vmatpush3.bf16.msra.mxu1 %v996_v25 }
  0x3f   : > { %928 = vmatprep.subr.bf16.mxu1 %v999_v29 }
  0x40   : > { %891 = vmatpush3.bf16.msra.mxu0 %v998_v28 }
  0x41   : > { %892 = vmatprep.subr.bf16.mxu0 %v1000_v30 }
  0x42   : > { %929 = vmatpush3.bf16.msra.mxu1 %v999_v29 }
  0x43   : > { %930 = vmatprep.subr.bf16.mxu1 %v1002_v31 }
  0x44   : > { %893 = vmatpush3.bf16.msra.mxu0 %v1001_v34 }
  0x46   : > { %931 = vmatpush3.bf16.msra.mxu1 %v1002_v31 }
  0x47   : > { %575 = vmatmul.mubr.bf16.vlgmr.msra.gmra.mxu0 %v1003_v35 }
  0x48   : > { %582 = vmatprep.mubr.bf16.mxu0 %v1008_v36 }
  0x49   : > { %933 = vmatmul.mubr.bf16.vlgmr.msra.gmra.mxu1 %v1007_v37 }
  0x4f   : > { %583 = vmatmul.mubr.bf16.gmra.mxu0 %v1010_v38 }
 0x107   : > { %v894_v39 = vpop.f32.mrf.mxu0 }
 0x109   : > { %v895_v40 = vpop.f32.mrf.mxu0  ;;  %v934_v41 = vpop.f32.mrf.mxu1 }
 0x10a   : > { %v896_v42 = vadd.f32 %v895_v40, %v894_v39 }
 0x10b   : > { %v897_v43 = vpop.f32.mrf.mxu0  ;;  %v625_v45 = vpop.f32.mrf.mxu1 }
 0x10c   : > { %v626_v46 = vadd.f32 %v896_v42, %v625_v45 }
 0x10d   : > { %v898_v47 = vpop.f32.mrf.mxu0  ;;  %v935_v48 = vpop.f32.mrf.mxu1 }
 0x10e   : > { %v640_v49 = vadd.f32 %v626_v46, %v306_v44  ;;  %v899_v50 = vadd.f32 %v898_v47, %v897_v43 }
 0x10f   : > { %v900_v51 = vpop.f32.mrf.mxu0  ;;  %v628_v53 = vpop.f32.mrf.mxu1 }
 0x110   : > { %644 = vst [vmem:[#allocation2 + $0x10] sm:$0xff] %v640_v49  ;;  %v629_v54 = vadd.f32 %v899_v50, %v628_v53 }
 0x111   : > { %v901_v55 = vpop.f32.mrf.mxu0 }
 0x112   : > { %v641_v56 = vadd.f32 %v629_v54, %v307_v52  ;;  %v902_v57 = vadd.f32 %v901_v55, %v900_v51 }
 0x113   : > { %v903_v59 = vpop.f32.mrf.mxu0 }
 0x114   : > { %645 = vst [vmem:[#allocation2] sm:$0xff] %v641_v56  ;;  %v634_v60 = vadd.f32 %v934_v41, %v902_v57 }
 0x115   : > { %v904_v61 = vpop.f32.mrf.mxu0 }
 0x116   : > { %v642_v62 = vadd.f32 %v634_v60, %v308_v58  ;;  %v905_v63 = vadd.f32 %v904_v61, %v903_v59 }
 0x118   : > { %646 = vst [vmem:[#allocation2 + $0x18] sm:$0xff] %v642_v62  ;;  %v637_v1 = vadd.f32 %v935_v48, %v905_v63  ;;  %651 = sbr.rel (%p852_p11) target bundleno = 299 (0x12b), region = 66 }
 0x11a   : > { %v643_v2 = vadd.f32 %v637_v1, %v309_v0 }
 0x11c   : > { %647 = vst [vmem:[#allocation2 + $0x8] sm:$0xff] %v643_v2 }
 0x11d   : > { %v652_v3 = vld [vmem:[#allocation2 + $0x10] sm:$0xff]  ;;  %v653_v4 = vld [vmem:[#allocation2] sm:$0xff] }
 0x11e   : > { %v853_v5 = vld [vmem:[%s1184_s2] ss:$0 sm:$0xff] }
 0x11f   : > { %v663_v6 = vadd.f32 %v853_v5, %v652_v3  ;;  %v664_v7 = vadd.f32 %v853_v5, %v653_v4  ;;  %v654_v8 = vld [vmem:[#allocation2 + $0x18] sm:$0xff] }
 0x120   : > { %v665_v10 = vadd.f32 %v853_v5, %v654_v8 }
 0x121   : > { %v667_v12 = vmax.f32 %v663_v6, 0.0  ;;  %v668_v13 = vmax.f32 %v664_v7, 0.0 }
 0x122   : > { %v669_v14 = vmax.f32 %v665_v10, 0.0 }
 0x123   : > { %v655_v9 = vld [vmem:[#allocation2 + $0x8] sm:$0xff]  ;;  %v870_v16 = vpack.c.bf16 %v668_v13, %v667_v12 }
 0x124   : > { %v666_v11 = vadd.f32 %v853_v5, %v655_v9 }
 0x125   : > { %871 = vst [vmem:[%s1185_s3] sm:$0xff] %v870_v16  }
 0x126   : > { %v670_v15 = vmax.f32 %v666_v11, 0.0 }
 0x128   : > { %v875_v17 = vpack.c.bf16 %v670_v15, %v669_v14 }
 0x12a   : > { %877 = vst [vmem:[%s1185_s3 + $0x8] sm:$0xff] %v875_v17  }
 0x12b PF: > { %s13_s16 = sadd.s32 1, %s1049_s16   ;;  %s1186_s12 = smov %s1037_s13 }
 0x12c   : > { %p10_p12 = scmp.ge.s32.totalorder %s13_s16, 5   ;;  %s1187_s13 = smov %s1107_s20 }
 0x12d   : > { %s1188_s14 = smov %s1045_s15  ;;  %s1189_s15 = smov %s1191_s17 }
 0x12e   :  { %12 = sbr.rel (!%p10_p12) target bundleno = 3 (0x3), region = 113 }

// kernel: resnet18_forward.31
= control target key start
LH: loop header
LB: loop body
LE: loop exit
PB: predicated region body
PF: predicated region fallthrough
CT: control target
= control target key end

     0   :  { %s1177_s15 = smov 0   ;;  %s1179_s16 = smov 0   ;;  %s1293_s0 = inlined_call_operand.vmem [shape: bf16[32,1152], index: 0, kind: input, shape index: {}]   ;;  %s1294_s1 = inlined_call_operand.vmem [shape: bf16[1152,128], index: 1, kind: input, shape index: {}]   ;;  %s1295_s2 = inlined_call_operand.vmem [shape: f32[1,128], index: 2, kind: input, shape index: {}]   ;;  %s1296_s3 = inlined_call_operand.vmem [shape: bf16[32,128], index: 3, kind: input, shape index: {}]   ;;  %s1297_s4 = inlined_call_operand.vmem [shape: bf16[32,128], index: 4, kind: output, shape index: {}]  }
   0x1   :  { %s1181_s17 = smov 0   ;;  %s1183_s18 = smov 0  }
   0x2   :  { %s1185_s19 = smov 0  }
   0x3 LB: > { %s26_s20 = sadd.s32 1, %s1145_s18  ;;  %p49_p1 = scmp.ne.s32.totalorder %s1137_s16, %s1133_s15  ;;  %s1149_s19 = sphi %s1185_s19, %s14_s19   ;;  %s1145_s18 = sphi %s1183_s18, %s1301_s18   ;;  %s1141_s17 = sphi %s1181_s17, %s1300_s17   ;;  %s1137_s16 = sphi %s1179_s16, %s1299_s16   ;;  %s1133_s15 = sphi %s1177_s15, %s1298_s15  }
   0x4   : > { %p27_p0 = scmp.ge.s32.totalorder %s26_s20, 3  ;;  %p50_p2 = scmp.eq.s32.totalorder %s1149_s19, 0 }
   0x5   : > { %s42_s22 = sadd.s32 1, %s1137_s16  ;;  %p900_p5 = scmp.ge.s32.totalorder %s1149_s19, 3 }
   0x6   : > { %s1303_s20 = smov (%p27_p0, %s26_s20), 0  ;;  %p51_p3 = por %p50_p2, %p49_p1 }
   0x7   : > { %s38_s21 = ssub.s32 %s1145_s18, %s1303_s20  ;;  %203 = sbr.rel (%p900_p5) target bundleno = 21 (0x15), region = 24 }
   0x8   : > { %p40_p4 = scmp.eq.s32.totalorder %s38_s21, 0 }
   0xa   : > { %s1212_s23 = scalar_select %p40_p4, %s1137_s16, %s42_s22  }
   0xc   : > { %206 = sbr.rel (!%p51_p3) target bundleno = 21 (0x15), region = 28  ;;  %s208_s24 = sand.u32 (%p51_p3), 1, %s1137_s16  }
   0xd   : > { %s953_s25 = smul.u32 (%p51_p3), 12, %s1145_s18 }
   0xe   : > { %s1036_s26 = smul.u32 (%p51_p3), 48, %s208_s24 }
   0xf   : > { %s216_s29 = scalar_lea.vmem (%p51_p3), %s1293_s0, %s953_s25 }
  0x10   : > { %v231_v0 = vld [vmem:[%s216_s29] sm:$0xff] (%p51_p3)  ;;  %v235_v2 = vld [vmem:[%s216_s29 + $0x48] sm:$0xff] (%p51_p3)  ;;  %s210_s30 = scalar_lea.vmem (%p51_p3), [#allocation3], %s1036_s26  ;;  %v906_v6 = vld [vmem:[%s216_s29 + $0x50] sm:$0xf] (%p51_p3) }
  0x11   : > { %v233_v1 = vld [vmem:[%s216_s29 + $0x24] sm:$0xff]  ;;  %232 = vst [vmem:[%s210_s30] sm:$0xff] %v231_v0  ;;  %236 = vst [vmem:[%s210_s30 + $0x18] sm:$0xff] %v235_v2  ;;  %v237_v3 = vld [vmem:[%s216_s29 + $0x6c] sm:$0xff] }
  0x12   : > { %234 = vst [vmem:[%s210_s30 + $0xc] sm:$0xff] %v233_v1  ;;  %v902_v4 = vld [vmem:[%s216_s29 + $0x8] sm:$0xf]  ;;  %v904_v5 = vld [vmem:[%s216_s29 + $0x2c] sm:$0xf]  ;;  %238 = vst [vmem:[%s210_s30 + $0x24] sm:$0xff] %v237_v3 }
  0x13   : > { %903 = vst [vmem:[%s210_s30 + $0x8] sm:$0xf] %v902_v4  ;;  %905 = vst [vmem:[%s210_s30 + $0x14] sm:$0xf] %v904_v5  ;;  %v908_v7 = vld [vmem:[%s216_s29 + $0x74] sm:$0xf] }
  0x14   : > { %907 = vst [vmem:[%s210_s30 + $0x20] sm:$0xf] %v906_v6  ;;  %909 = vst [vmem:[%s210_s30 + $0x2c] sm:$0xf] %v908_v7 }
  0x15 PF: > { %p910_p6 = scmp.ge.s32.totalorder %s1149_s19, 1  ;;  %p271_p7 = scmp.lt.s32.totalorder %s1149_s19, 4 }
  0x17   : > { %p272_p8 = pnand %p910_p6, %p271_p7 }
  0x18   : > { %s278_s5 = sand.u32 (!%p272_p8), 1, %s1133_s15   ;;  %s327_s6 = smul.u32 (!%p272_p8), 48, %s1141_s17 }
  0x19   : > { %275 = sbr.rel (%p272_p8) target bundleno = 301 (0x12d), region = 58  ;;  %p912_p10 = scmp.ne.s32.totalorder (!%p272_p8), %s1141_s17, 0 }
  0x1a   : > { %s1037_s7 = smul.u32 (!%p272_p8), 48, %s278_s5  ;;  %p328_p9 = scmp.lt.s32.totalorder (!%p272_p8), %s327_s6, 143 }
  0x1c   : > { %s1229_s12 = scalar_lea.vmem (!%p272_p8), [#allocation3], %s1037_s7 }
  0x1e   : > { %s1305_s6 = smov (!%p328_p9, %s327_s6), 143  ;;  %361 = sbr.rel (%p912_p10) target bundleno = 38 (0x26), region = 66 }
  0x1f   : > { %s911_s8 = sshll.u32 %s1305_s6, 2 }
  0x20   : > { %s1227_s11 = scalar_lea.vmem %s1294_s1, %s911_s8 }
  0x23   : > { %v1151_v8 = vmov 0.0  }
  0x24   : > { %362 = vst [vmem:[#allocation2 + $0x10] sm:$0xff] %v1151_v8  ;;  %363 = vst [vmem:[#allocation2] sm:$0xff] %v1151_v8 }
  0x25   : > { %364 = vst [vmem:[#allocation2 + $0x18] sm:$0xff] %v1151_v8  ;;  %365 = vst [vmem:[#allocation2 + $0x8] sm:$0xff] %v1151_v8 }
  0x26 PF: > { %v1079_v9 = vld [vmem:[%s1227_s11 + $0x78] sm:$0xff]   ;;  %v1082_v12 = vld [vmem:[%s1227_s11 + $0x70] sm:$0xff]   ;;  %v1085_v15 = vld [vmem:[%s1227_s11 + $0x68] sm:$0xff]   ;;  %p943_p11 = scmp.ne.s32.totalorder %s1141_s17, 2 }
  0x27   : > { %v1080_v10 = vld [vmem:[%s1227_s11 + $0x38] sm:$0xff]   ;;  %978 = vmatprep.subr.bf16.mxu0 %v1079_v9  ;;  %v1083_v13 = vld [vmem:[%s1227_s11 + $0x30] sm:$0xff]   ;;  %v1086_v16 = vld [vmem:[%s1227_s11 + $0x28] sm:$0xff]  }
  0x28   : > { %v1081_v11 = vld [vmem:[%s1227_s11 + $0xb8] sm:$0xff]   ;;  %979 = vmatpush3.bf16.msra.mxu0 %v1080_v10  ;;  %v1084_v14 = vld [vmem:[%s1227_s11 + $0xb0] sm:$0xff]   ;;  %v1087_v17 = vld [vmem:[%s1227_s11 + $0xa8] sm:$0xff]  }
  0x29   : > { %1016 = vmatprep.subr.bf16.mxu1 %v1081_v11  ;;  %980 = vmatprep.subr.bf16.mxu0 %v1082_v12  ;;  %v1088_v18 = vld [vmem:[%s1227_s11 + $0x60] sm:$0xff]   ;;  %v1091_v21 = vld [vmem:[%s1227_s11 + $0x58] sm:$0xff]   ;;  %v1094_v24 = vld [vmem:[%s1227_s11 + $0x50] sm:$0xff]  }
  0x2a   : > { %1017 = vmatpush3.bf16.msra.mxu1 %v1081_v11  ;;  %v1089_v19 = vld [vmem:[%s1227_s11 + $0x20] sm:$0xff]   ;;  %v1093_v22 = vld [vmem:[%s1227_s11 + $0x98] sm:$0xff]   ;;  %v1096_v25 = vld [vmem:[%s1227_s11 + $0x90] sm:$0xff]  }
  0x2b   : > { %1018 = vmatprep.subr.bf16.mxu1 %v1084_v14  ;;  %v1090_v20 = vld [vmem:[%s1227_s11 + $0xa0] sm:$0xff]   ;;  %v1092_v23 = vld [vmem:[%s1227_s11 + $0x18] sm:$0xff]   ;;  %v1095_v26 = vld [vmem:[%s1227_s11 + $0x10] sm:$0xff]  }
  0x2c   : > { %981 = vmatpush3.bf16.msra.mxu0 %v1083_v13  ;;  %v1097_v27 = vld [vmem:[%s1227_s11 + $0x48] sm:$0xff]   ;;  %v1100_v30 = vld [vmem:[%s1227_s11 + $0x40] sm:$0xff]   ;;  %v366_v44 = vld [vmem:[#allocation2 + $0x10] sm:$0xff] }
  0x2d   : > { %982 = vmatprep.subr.bf16.mxu0 %v1085_v15  ;;  %v1098_v28 = vld [vmem:[%s1227_s11 + $0x8] sm:$0xff]   ;;  %v1102_v31 = vld [vmem:[%s1227_s11 + $0x80] sm:$0xff]   ;;  %v368_v58 = vld [vmem:[#allocation2 + $0x18] sm:$0xff] }
  0x2e   : > { %1019 = vmatpush3.bf16.msra.mxu1 %v1084_v14  ;;  %v1099_v29 = vld [vmem:[%s1227_s11 + $0x88] sm:$0xff]   ;;  %v1105_v32 = vld [vmem:[%s1229_s12 + $0x4] ss:$12 sps:$4 sm:$0xff]  }
  0x2f   : > { %1020 = vmatprep.subr.bf16.mxu1 %v1087_v17  ;;  %v1106_v33 = vld [vmem:[%s1229_s12 + $0x8] ss:$12 sps:$4 sm:$0xff]   ;;  %634 = vmatprep.mubr.bf16.mxu0 %v1105_v32  ;;  %v1103_v35 = vld [vmem:[%s1229_s12] ss:$12 sps:$4 sm:$0xff]   ;;  %v1110_v38 = vld [vmem:[%s1229_s12 + $0x18] ss:$12 sps:$4 sm:$0xff]  }
  0x30   : > { %983 = vmatpush3.bf16.msra.mxu0 %v1086_v16  ;;  %v1101_v34 = vld [vmem:[%s1227_s11] sm:$0xff]   ;;  %1032 = vmatprep.mubr.bf16.mxu1 %v1106_v33  ;;  %v1108_v36 = vld [vmem:[%s1229_s12 + $0x1c] ss:$12 sps:$4 sm:$0xff]  }
  0x31   : > { %984 = vmatprep.subr.bf16.mxu0 %v1088_v18  ;;  %v1107_v37 = vld [vmem:[%s1229_s12 + $0x20] ss:$12 sps:$4 sm:$0xff]  }
  0x32   : > { %1021 = vmatpush3.bf16.msra.mxu1 %v1087_v17  ;;  %v367_v52 = vld [vmem:[#allocation2] sm:$0xff]  ;;  %v369_v0 = vld [vmem:[#allocation2 + $0x8] sm:$0xff] }
  0x33   : > { %1022 = vmatprep.subr.bf16.mxu1 %v1090_v20 }
  0x34   : > { %985 = vmatpush3.bf16.msra.mxu0 %v1089_v19 }
  0x35   : > { %986 = vmatprep.subr.bf16.mxu0 %v1091_v21 }
  0x36   : > { %1023 = vmatpush3.bf16.msra.mxu1 %v1090_v20 }
  0x37   : > { %1024 = vmatprep.subr.bf16.mxu1 %v1093_v22 }
  0x38   : > { %987 = vmatpush3.bf16.msra.mxu0 %v1092_v23 }
  0x39   : > { %988 = vmatprep.subr.bf16.mxu0 %v1094_v24 }
  0x3a   : > { %1025 = vmatpush3.bf16.msra.mxu1 %v1093_v22 }
  0x3b   : > { %1026 = vmatprep.subr.bf16.mxu1 %v1096_v25 }
  0x3c   : > { %989 = vmatpush3.bf16.msra.mxu0 %v1095_v26 }
  0x3d   : > { %990 = vmatprep.subr.bf16.mxu0 %v1097_v27 }
  0x3e   : > { %1027 = vmatpush3.bf16.msra.mxu1 %v1096_v25 }
  0x3f   : > { %1028 = vmatprep.subr.bf16.mxu1 %v1099_v29 }
  0x40   : > { %991 = vmatpush3.bf16.msra.mxu0 %v1098_v28 }
  0x41   : > { %992 = vmatprep.subr.bf16.mxu0 %v1100_v30 }
  0x42   : > { %1029 = vmatpush3.bf16.msra.mxu1 %v1099_v29 }
  0x43   : > { %1030 = vmatprep.subr.bf16.mxu1 %v1102_v31 }
  0x44   : > { %993 = vmatpush3.bf16.msra.mxu0 %v1101_v34 }
  0x46   : > { %1031 = vmatpush3.bf16.msra.mxu1 %v1102_v31 }
  0x47   : > { %635 = vmatmul.mubr.bf16.vlgmr.msra.gmra.mxu0 %v1103_v35 }
  0x48   : > { %642 = vmatprep.mubr.bf16.mxu0 %v1108_v36 }
  0x49   : > { %1033 = vmatmul.mubr.bf16.vlgmr.msra.gmra.mxu1 %v1107_v37 }
  0x4f   : > { %643 = vmatmul.mubr.bf16.gmra.mxu0 %v1110_v38 }
 0x107   : > { %v994_v39 = vpop.f32.mrf.mxu0 }
 0x109   : > { %v995_v40 = vpop.f32.mrf.mxu0  ;;  %v1034_v41 = vpop.f32.mrf.mxu1 }
 0x10a   : > { %v996_v42 = vadd.f32 %v995_v40, %v994_v39 }
 0x10b   : > { %v997_v43 = vpop.f32.mrf.mxu0  ;;  %v685_v45 = vpop.f32.mrf.mxu1 }
 0x10c   : > { %v686_v46 = vadd.f32 %v996_v42, %v685_v45 }
 0x10d   : > { %v998_v47 = vpop.f32.mrf.mxu0  ;;  %v1035_v48 = vpop.f32.mrf.mxu1 }
 0x10e   : > { %v700_v49 = vadd.f32 %v686_v46, %v366_v44  ;;  %v999_v50 = vadd.f32 %v998_v47, %v997_v43 }
 0x10f   : > { %v1000_v51 = vpop.f32.mrf.mxu0  ;;  %v688_v53 = vpop.f32.mrf.mxu1 }
 0x110   : > { %704 = vst [vmem:[#allocation2 + $0x10] sm:$0xff] %v700_v49  ;;  %v689_v54 = vadd.f32 %v999_v50, %v688_v53 }
 0x111   : > { %v1001_v55 = vpop.f32.mrf.mxu0 }
 0x112   : > { %v701_v56 = vadd.f32 %v689_v54, %v367_v52  ;;  %v1002_v57 = vadd.f32 %v1001_v55, %v1000_v51 }
 0x113   : > { %v1003_v59 = vpop.f32.mrf.mxu0 }
 0x114   : > { %705 = vst [vmem:[#allocation2] sm:$0xff] %v701_v56  ;;  %v694_v60 = vadd.f32 %v1034_v41, %v1002_v57 }
 0x115   : > { %v1004_v61 = vpop.f32.mrf.mxu0 }
 0x116   : > { %v702_v62 = vadd.f32 %v694_v60, %v368_v58  ;;  %v1005_v63 = vadd.f32 %v1004_v61, %v1003_v59 }
 0x118   : > { %706 = vst [vmem:[#allocation2 + $0x18] sm:$0xff] %v702_v62  ;;  %v697_v1 = vadd.f32 %v1035_v48, %v1005_v63  ;;  %711 = sbr.rel (%p943_p11) target bundleno = 301 (0x12d), region = 70 }
 0x11a   : > { %v703_v2 = vadd.f32 %v697_v1, %v369_v0 }
 0x11c   : > { %707 = vst [vmem:[#allocation2 + $0x8] sm:$0xff] %v703_v2 }
 0x11d   : > { %v712_v3 = vld [vmem:[#allocation2 + $0x10] sm:$0xff]  ;;  %v713_v4 = vld [vmem:[#allocation2] sm:$0xff]  ;;  %v976_v15 = vld [vmem:[%s1296_s3 + $0x8] sm:$0xff]  }
 0x11e   : > { %v944_v5 = vld [vmem:[%s1295_s2] ss:$0 sm:$0xff]  ;;  %v964_v16 = vunpack.c.l.bf16 %v976_v15  ;;  %v965_v17 = vunpack.c.h.bf16 %v976_v15 }
 0x11f   : > { %v723_v6 = vadd.f32 %v944_v5, %v712_v3  ;;  %v724_v7 = vadd.f32 %v944_v5, %v713_v4  ;;  %v959_v8 = vld [vmem:[%s1296_s3] sm:$0xff]   ;;  %v714_v9 = vld [vmem:[#allocation2 + $0x18] sm:$0xff] }
 0x120   : > { %v960_v11 = vunpack.c.l.bf16 %v959_v8  ;;  %v961_v12 = vunpack.c.h.bf16 %v959_v8  ;;  %v725_v13 = vadd.f32 %v944_v5, %v714_v9 }
 0x122   : > { %v735_v18 = vadd.f32 %v960_v11, %v723_v6  ;;  %v736_v19 = vadd.f32 %v961_v12, %v724_v7  ;;  %v737_v20 = vadd.f32 %v964_v16, %v725_v13 }
 0x123   : > { %v715_v10 = vld [vmem:[#allocation2 + $0x8] sm:$0xff] }
 0x124   : > { %v726_v14 = vadd.f32 %v944_v5, %v715_v10  ;;  %v739_v22 = vmax.f32 %v735_v18, 0.0  ;;  %v740_v23 = vmax.f32 %v736_v19, 0.0  ;;  %v741_v24 = vmax.f32 %v737_v20, 0.0 }
 0x126   : > { %v738_v21 = vadd.f32 %v965_v17, %v726_v14  ;;  %v969_v26 = vpack.c.bf16 %v740_v23, %v739_v22 }
 0x128   : > { %v742_v25 = vmax.f32 %v738_v21, 0.0  ;;  %970 = vst [vmem:[%s1297_s4] sm:$0xff] %v969_v26  }
 0x12a   : > { %v974_v27 = vpack.c.bf16 %v742_v25, %v741_v24 }
 0x12c   : > { %977 = vst [vmem:[%s1297_s4 + $0x8] sm:$0xff] %v974_v27  }
 0x12d PF: > { %s14_s19 = sadd.s32 1, %s1149_s19   ;;  %s1298_s15 = smov %s1137_s16 }
 0x12e   : > { %p11_p12 = scmp.ge.s32.totalorder %s14_s19, 5   ;;  %s1299_s16 = smov %s1212_s23 }
 0x12f   : > { %s1300_s17 = smov %s1145_s18  ;;  %s1301_s18 = smov %s1303_s20 }
 0x130   :  { %13 = sbr.rel (!%p11_p12) target bundleno = 3 (0x3), region = 120 }

// kernel: resnet18_forward.35
= control target key start
LH: loop header
LB: loop body
LE: loop exit
PB: predicated region body
PF: predicated region fallthrough
CT: control target
= control target key end

     0   :  { %s1036_s12 = smov 0   ;;  %s1038_s13 = smov 0   ;;  %s1135_s0 = inlined_call_operand.vmem [shape: bf16[8,1152], index: 0, kind: input, shape index: {}]   ;;  %s1136_s1 = inlined_call_operand.vmem [shape: bf16[1152,256], index: 1, kind: input, shape index: {}]   ;;  %s1137_s2 = inlined_call_operand.vmem [shape: f32[1,256], index: 2, kind: input, shape index: {}]   ;;  %s1138_s3 = inlined_call_operand.vmem [shape: bf16[8,256], index: 3, kind: output, shape index: {}]  }
   0x1   :  { %s1040_s14 = smov 0  }
   0x2 LB: > { %s25_s15 = sadd.s32 1, %s1008_s13  ;;  %p825_p0 = scmp.ge.s32.totalorder %s1012_s14, 1  ;;  %s1012_s14 = sphi %s1040_s14, %s13_s14   ;;  %s1008_s13 = sphi %s1038_s13, %s1140_s13   ;;  %s1004_s12 = sphi %s1036_s12, %s1139_s12  }
   0x3   : > { %p26_p1 = scmp.ge.s32.totalorder %s25_s15, 3  ;;  %p194_p2 = scmp.lt.s32.totalorder %s1012_s14, 4 }
   0x5   : > { %s1142_s15 = smov (%p26_p1, %s25_s15), 0  ;;  %p195_p3 = pnand %p825_p0, %p194_p2 }
   0x6   : > { %s240_s16 = smul.u32 (!%p195_p3), 3, %s1004_s12  ;;  %p829_p6 = scmp.ne.s32.totalorder (!%p195_p3), %s1004_s12, 0 }
   0x7   : > { %198 = sbr.rel (%p195_p3) target bundleno = 302 (0x12e), region = 32 }
   0x8   : > { %s250_s17 = smul.u32 (!%p195_p3), 48, %s1004_s12  ;;  %p243_p4 = scmp.lt.s32.totalorder (!%p195_p3), %s240_s16, 8 }
   0xa   : > { %p252_p5 = scmp.lt.s32.totalorder (!%p195_p3), %s250_s17, 143 }
   0xc   : > { %s1144_s16 = smov (!%p243_p4, %s240_s16), 8  ;;  %s1146_s17 = smov (!%p252_p5, %s250_s17), 143 }
   0xd   : > { %s826_s18 = sshll.u32 %s1144_s16, 2  ;;  %s887_s22 = sshll.u32 %s1146_s17, 3 }
   0xe   : > { %s1061_s21 = scalar_lea.vmem %s1135_s0, %s826_s18  ;;  %s1066_s25 = scalar_lea.vmem %s1136_s1, %s887_s22 }
   0xf   : > { %281 = sbr.rel (%p829_p6) target bundleno = 22 (0x16), region = 36 }
  0x14   : > { %v1014_v0 = vmov 0.0  }
  0x15   : > { %282 = vst [vmem:[#allocation2] sm:$0xff] %v1014_v0  ;;  %283 = vst [vmem:[#allocation2 + $0x8] sm:$0xff] %v1014_v0 }
  0x16 PF: > { %v915_v1 = vld [vmem:[%s1066_s25 + $0x74] ss:$8 sps:$4 sm:$0xff]   ;;  %v917_v2 = vld [vmem:[%s1066_s25 + $0x70] ss:$8 sps:$4 sm:$0xff]   ;;  %v1015_v3 = vmov 0   ;;  %v286_v34 = vld [vmem:[%s1061_s21] sm:$0xff] }
  0x17   : > { %660 = vmatprep.mubr.bf16.mxu1 %v1015_v3  ;;  %587 = vmatprep.subr.bf16.mxu0 %v915_v1  ;;  %v918_v4 = vld [vmem:[%s1066_s25 + $0x64] ss:$8 sps:$4 sm:$0xff]   ;;  %v920_v5 = vld [vmem:[%s1066_s25 + $0x60] ss:$8 sps:$4 sm:$0xff]   ;;  %v921_v6 = vld [vmem:[%s1066_s25 + $0x54] ss:$8 sps:$4 sm:$0xff]   ;;  %v831_v36 = vcombine.high %v286_v34, %v286_v34  ;;  %v830_v53 = vcombine.low %v286_v34, %v286_v34 }
  0x18   : > { %588 = vmatpush1.bf16.msra.mxu0 %v917_v2  ;;  %v923_v7 = vld [vmem:[%s1066_s25 + $0x50] ss:$8 sps:$4 sm:$0xff]   ;;  %v924_v8 = vld [vmem:[%s1066_s25 + $0x44] ss:$8 sps:$4 sm:$0xff]   ;;  %v936_v9 = vld [vmem:[%s1066_s25 + $0x174] ss:$8 sps:$4 sm:$0xff]  }
  0x19   : > { %589 = vmatprep.subr.bf16.mxu0 %v918_v4  ;;  %v938_v10 = vld [vmem:[%s1066_s25 + $0x170] ss:$8 sps:$4 sm:$0xff]   ;;  %v926_v11 = vld [vmem:[%s1066_s25 + $0x40] ss:$8 sps:$4 sm:$0xff]   ;;  %v927_v12 = vld [vmem:[%s1066_s25 + $0x34] ss:$8 sps:$4 sm:$0xff]   ;;  %628 = vmatprep.subr.bf16.mxu1 %v936_v9 }
  0x1a   : > { %v942_v13 = vld [vmem:[%s1066_s25 + $0x164] ss:$8 sps:$4 sm:$0xff]   ;;  %629 = vmatpush1.bf16.msra.mxu1 %v938_v10  ;;  %v944_v14 = vld [vmem:[%s1066_s25 + $0x160] ss:$8 sps:$4 sm:$0xff]   ;;  %v929_v15 = vld [vmem:[%s1066_s25 + $0x30] ss:$8 sps:$4 sm:$0xff]   ;;  %619 = vmatprep.mubr.bf16.mxu0 %v831_v36 }
  0x1b   : > { %630 = vmatprep.subr.bf16.mxu1 %v942_v13  ;;  %v948_v16 = vld [vmem:[%s1066_s25 + $0x154] ss:$8 sps:$4 sm:$0xff]   ;;  %v930_v17 = vld [vmem:[%s1066_s25 + $0x24] ss:$8 sps:$4 sm:$0xff]   ;;  %v950_v18 = vld [vmem:[%s1066_s25 + $0x150] ss:$8 sps:$4 sm:$0xff]  }
  0x1c   : > { %590 = vmatpush1.bf16.msra.mxu0 %v920_v5  ;;  %v954_v19 = vld [vmem:[%s1066_s25 + $0x144] ss:$8 sps:$4 sm:$0xff]   ;;  %v932_v20 = vld [vmem:[%s1066_s25 + $0x20] ss:$8 sps:$4 sm:$0xff]   ;;  %v933_v21 = vld [vmem:[%s1066_s25 + $0x14] ss:$8 sps:$4 sm:$0xff]  }
  0x1d   : > { %591 = vmatprep.subr.bf16.mxu0 %v921_v6  ;;  %v956_v22 = vld [vmem:[%s1066_s25 + $0x140] ss:$8 sps:$4 sm:$0xff]   ;;  %v960_v23 = vld [vmem:[%s1066_s25 + $0x134] ss:$8 sps:$4 sm:$0xff]   ;;  %v935_v24 = vld [vmem:[%s1066_s25 + $0x10] ss:$8 sps:$4 sm:$0xff]  }
  0x1e   : > { %631 = vmatpush1.bf16.msra.mxu1 %v944_v14  ;;  %v939_v25 = vld [vmem:[%s1066_s25 + $0x4] ss:$8 sps:$4 sm:$0xff]   ;;  %v962_v26 = vld [vmem:[%s1066_s25 + $0x130] ss:$8 sps:$4 sm:$0xff]   ;;  %v941_v28 = vld [vmem:[%s1066_s25] ss:$8 sps:$4 sm:$0xff]  }
  0x1f   : > { %632 = vmatprep.subr.bf16.mxu1 %v948_v16  ;;  %v966_v27 = vld [vmem:[%s1066_s25 + $0x124] ss:$8 sps:$4 sm:$0xff]   ;;  %v945_v29 = vld [vmem:[%s1066_s25 + $0xf4] ss:$8 sps:$4 sm:$0xff]   ;;  %v968_v30 = vld [vmem:[%s1066_s25 + $0x120] ss:$8 sps:$4 sm:$0xff]  }
  0x20   : > { %592 = vmatpush1.bf16.msra.mxu0 %v923_v7  ;;  %v972_v31 = vld [vmem:[%s1066_s25 + $0x114] ss:$8 sps:$4 sm:$0xff]   ;;  %v947_v32 = vld [vmem:[%s1066_s25 + $0xf0] ss:$8 sps:$4 sm:$0xff]   ;;  %v951_v33 = vld [vmem:[%s1066_s25 + $0xe4] ss:$8 sps:$4 sm:$0xff]  }
  0x21   : > { %593 = vmatprep.subr.bf16.mxu0 %v924_v8  ;;  %v974_v35 = vld [vmem:[%s1066_s25 + $0x110] ss:$8 sps:$4 sm:$0xff]   ;;  %v978_v37 = vld [vmem:[%s1066_s25 + $0x104] ss:$8 sps:$4 sm:$0xff]   ;;  %v953_v38 = vld [vmem:[%s1066_s25 + $0xe0] ss:$8 sps:$4 sm:$0xff]  }
  0x22   : > { %633 = vmatpush1.bf16.msra.mxu1 %v950_v18  ;;  %v957_v39 = vld [vmem:[%s1066_s25 + $0xd4] ss:$8 sps:$4 sm:$0xff]   ;;  %v980_v40 = vld [vmem:[%s1066_s25 + $0x100] ss:$8 sps:$4 sm:$0xff]   ;;  %v959_v41 = vld [vmem:[%s1066_s25 + $0xd0] ss:$8 sps:$4 sm:$0xff]  }
  0x23   : > { %634 = vmatprep.subr.bf16.mxu1 %v954_v19  ;;  %v963_v42 = vld [vmem:[%s1066_s25 + $0xc4] ss:$8 sps:$4 sm:$0xff]   ;;  %v984_v43 = vld [vmem:[%s1061_s21 + $0x8] ss:$0 sps:$4 sm:$0xff]   ;;  %v969_v45 = vld [vmem:[%s1066_s25 + $0xb4] ss:$8 sps:$4 sm:$0xff]  }
  0x24   : > { %594 = vmatpush1.bf16.msra.mxu0 %v926_v11  ;;  %v965_v44 = vld [vmem:[%s1066_s25 + $0xc0] ss:$8 sps:$4 sm:$0xff]   ;;  %v971_v46 = vld [vmem:[%s1066_s25 + $0xb0] ss:$8 sps:$4 sm:$0xff]   ;;  %v975_v47 = vld [vmem:[%s1066_s25 + $0xa4] ss:$8 sps:$4 sm:$0xff]  }
  0x25   : > { %595 = vmatprep.subr.bf16.mxu0 %v927_v12  ;;  %v977_v48 = vld [vmem:[%s1066_s25 + $0xa0] ss:$8 sps:$4 sm:$0xff]   ;;  %v981_v49 = vld [vmem:[%s1066_s25 + $0x94] ss:$8 sps:$4 sm:$0xff]   ;;  %v983_v50 = vld [vmem:[%s1066_s25 + $0x90] ss:$8 sps:$4 sm:$0xff]  }
  0x26   : > { %635 = vmatpush1.bf16.msra.mxu1 %v956_v22  ;;  %v985_v51 = vld [vmem:[%s1066_s25 + $0x84] ss:$8 sps:$4 sm:$0xff]   ;;  %v987_v52 = vld [vmem:[%s1066_s25 + $0x80] ss:$8 sps:$4 sm:$0xff]   ;;  %p881_p7 = scmp.ne.s32.totalorder %s1004_s12, 2 }
  0x27   : > { %636 = vmatprep.subr.bf16.mxu1 %v960_v23  ;;  %v284_v58 = vld [vmem:[#allocation2] sm:$0xff]  ;;  %v285_v61 = vld [vmem:[#allocation2 + $0x8] sm:$0xff] }
  0x28   : > { %596 = vmatpush1.bf16.msra.mxu0 %v929_v15 }
  0x29   : > { %597 = vmatprep.subr.bf16.mxu0 %v930_v17 }
  0x2a   : > { %637 = vmatpush1.bf16.msra.mxu1 %v962_v26 }
  0x2b   : > { %638 = vmatprep.subr.bf16.mxu1 %v966_v27 }
  0x2c   : > { %598 = vmatpush1.bf16.msra.mxu0 %v932_v20 }
  0x2d   : > { %599 = vmatprep.subr.bf16.mxu0 %v933_v21 }
  0x2e   : > { %639 = vmatpush1.bf16.msra.mxu1 %v968_v30 }
  0x2f   : > { %640 = vmatprep.subr.bf16.mxu1 %v972_v31 }
  0x30   : > { %600 = vmatpush1.bf16.msra.mxu0 %v935_v24 }
  0x31   : > { %601 = vmatprep.subr.bf16.mxu0 %v939_v25 }
  0x32   : > { %641 = vmatpush1.bf16.msra.mxu1 %v974_v35 }
  0x33   : > { %642 = vmatprep.subr.bf16.mxu1 %v978_v37 }
  0x34   : > { %602 = vmatpush1.bf16.msra.mxu0 %v941_v28 }
  0x35   : > { %603 = vmatprep.subr.bf16.mxu0 %v945_v29 }
  0x36   : > { %643 = vmatpush1.bf16.msra.mxu1 %v980_v40 }
  0x38   : > { %604 = vmatpush2.bf16.msra.mxu0 %v947_v32 }
  0x39   : > { %605 = vmatprep.subr.bf16.mxu0 %v951_v33  ;;  %661 = vmatmul.mubr.bf16.vlgmr.msra.gmra.mxu1 %v984_v43 }
  0x3c   : > { %606 = vmatpush2.bf16.msra.mxu0 %v953_v38 }
  0x3d   : > { %607 = vmatprep.subr.bf16.mxu0 %v957_v39 }
  0x40   : > { %608 = vmatpush2.bf16.msra.mxu0 %v959_v41 }
  0x41   : > { %609 = vmatprep.subr.bf16.mxu0 %v963_v42 }
  0x44   : > { %610 = vmatpush2.bf16.msra.mxu0 %v965_v44 }
  0x45   : > { %611 = vmatprep.subr.bf16.mxu0 %v969_v45 }
  0x48   : > { %612 = vmatpush2.bf16.msra.mxu0 %v971_v46 }
  0x49   : > { %613 = vmatprep.subr.bf16.mxu0 %v975_v47 }
  0x4c   : > { %614 = vmatpush2.bf16.msra.mxu0 %v977_v48 }
  0x4d   : > { %615 = vmatprep.subr.bf16.mxu0 %v981_v49 }
  0x50   : > { %616 = vmatpush2.bf16.msra.mxu0 %v983_v50 }
  0x51   : > { %617 = vmatprep.subr.bf16.mxu0 %v985_v51 }
  0x54   : > { %618 = vmatpush2.bf16.msra.mxu0 %v987_v52 }
  0x57   : > { %620 = vmatmul.mubr.bf16.vlgmr.msra.gmra.mxu0 %v830_v53 }
  0xf9   : > { %v662_v54 = vpop.f32.mrf.mxu1 }
  0xfb   : > { %v664_v55 = vpop.f32.mrf.mxu1 }
  0xfd   : > { %v666_v56 = vpop.f32.mrf.mxu1 }
  0xff   : > { %v667_v57 = vpop.f32.mrf.mxu1 }
 0x117   : > { %v621_v59 = vpop.f32.mrf.mxu0 }
 0x118   : > { %v663_v60 = vadd.f32 %v662_v54, %v621_v59 }
 0x119   : > { %v623_v62 = vpop.f32.mrf.mxu0 }
 0x11a   : > { %v669_v63 = vadd.f32 %v663_v60, %v284_v58  ;;  %v665_v0 = vadd.f32 %v664_v55, %v623_v62  ;;  %676 = sbr.rel (%p881_p7) target bundleno = 302 (0x12e), region = 40 }
 0x11b   : > { %v625_v1 = vpop.f32.mrf.mxu0 }
 0x11c   : > { %671 = vst [vmem:[#allocation2] sm:$0xff] %v669_v63  ;;  %v670_v2 = vadd.f32 %v665_v0, %v285_v61 }
 0x11d   : > { %v626_v3 = vpop.f32.mrf.mxu0 }
 0x11e   : > { %672 = vst [vmem:[#allocation2 + $0x8] sm:$0xff] %v670_v2 }
 0x11f   : > { %v681_v4 = vlaneseq  ;;  %v679_v6 = vld [vmem:[%s1137_s2] sm:$0x3] }
 0x121   : > { %v682_v5 = vshrl.u32 %v681_v4, 7 }
 0x123   : > { %v683_v7 = vsub.s32 0, %v682_v5  ;;  %v687_v8 = vsub.s32 1, %v682_v5  ;;  %v677_v9 = vld [vmem:[#allocation2] sm:$0xff] }
 0x125   : > { %v678_v10 = vld [vmem:[#allocation2 + $0x8] sm:$0xff]  ;;  %v684_v11 = vrot.slane %v679_v6, %v683_v7  ;;  %v688_v12 = vrot.slane %v679_v6, %v687_v8 }
 0x127   : > { %v691_v13 = vadd.f32 %v684_v11, %v677_v9  ;;  %v692_v14 = vadd.f32 %v688_v12, %v678_v10 }
 0x129   : > { %v693_v15 = vmax.f32 %v691_v13, 0.0  ;;  %v694_v16 = vmax.f32 %v692_v14, 0.0 }
 0x12b   : > { %v888_v17 = vpack.c.bf16 %v694_v16, %v693_v15 }
 0x12d   : > { %703 = vst [vmem:[%s1138_s3] sm:$0xff] %v888_v17 }
 0x12e PF: > { %s13_s14 = sadd.s32 1, %s1012_s14   ;;  %s1139_s12 = smov %s1008_s13 }
 0x12f   : > { %p10_p8 = scmp.ge.s32.totalorder %s13_s14, 5   ;;  %s1140_s13 = smov %s1142_s15 }
 0x131   :  { %12 = sbr.rel (!%p10_p8) target bundleno = 2 (0x2), region = 76 }

// kernel: resnet18_forward.34
= control target key start
LH: loop header
LB: loop body
LE: loop exit
PB: predicated region body
PF: predicated region fallthrough
CT: control target
= control target key end

     0   :  { %v240_v1 = vmov 0   ;;  %v172_v18 = vlaneseq  ;;  %s318_s1 = inlined_call_operand.vmem [shape: bf16[128,256], index: 1, kind: input, shape index: {}]   ;;  %s319_s0 = inlined_call_operand.vmem [shape: bf16[8,128], index: 0, kind: input, shape index: {}]   ;;  %s320_s2 = inlined_call_operand.vmem [shape: f32[1,256], index: 2, kind: input, shape index: {}]   ;;  %s321_s3 = inlined_call_operand.vmem [shape: bf16[8,256], index: 3, kind: output, shape index: {}]  }
   0x1   :  { %v216_v0 = vld [vmem:[%s318_s1 + $0x74] ss:$8 sps:$4 sm:$0xff]   ;;  %152 = vmatprep.mubr.bf16.mxu0 %v240_v1  ;;  %v218_v2 = vld [vmem:[%s318_s1 + $0x70] ss:$8 sps:$4 sm:$0xff]   ;;  %v219_v3 = vld [vmem:[%s318_s1 + $0x64] ss:$8 sps:$4 sm:$0xff]  }
   0x2   :  { %120 = vmatprep.subr.bf16.mxu0 %v216_v0  ;;  %v221_v4 = vld [vmem:[%s318_s1 + $0x60] ss:$8 sps:$4 sm:$0xff]   ;;  %v222_v5 = vld [vmem:[%s318_s1 + $0x54] ss:$8 sps:$4 sm:$0xff]   ;;  %v224_v6 = vld [vmem:[%s318_s1 + $0x50] ss:$8 sps:$4 sm:$0xff]  }
   0x3   :  { %121 = vmatpush1.bf16.msra.mxu0 %v218_v2  ;;  %v225_v7 = vld [vmem:[%s318_s1 + $0x44] ss:$8 sps:$4 sm:$0xff]   ;;  %v227_v8 = vld [vmem:[%s318_s1 + $0x40] ss:$8 sps:$4 sm:$0xff]   ;;  %v228_v9 = vld [vmem:[%s318_s1 + $0x34] ss:$8 sps:$4 sm:$0xff]  }
   0x4   :  { %122 = vmatprep.subr.bf16.mxu0 %v219_v3  ;;  %v230_v10 = vld [vmem:[%s318_s1 + $0x30] ss:$8 sps:$4 sm:$0xff]   ;;  %v231_v11 = vld [vmem:[%s318_s1 + $0x24] ss:$8 sps:$4 sm:$0xff]   ;;  %v233_v12 = vld [vmem:[%s318_s1 + $0x20] ss:$8 sps:$4 sm:$0xff]  }
   0x5   :  { %v234_v13 = vld [vmem:[%s318_s1 + $0x14] ss:$8 sps:$4 sm:$0xff]   ;;  %v236_v14 = vld [vmem:[%s318_s1 + $0x10] ss:$8 sps:$4 sm:$0xff]   ;;  %v237_v15 = vld [vmem:[%s318_s1 + $0x4] ss:$8 sps:$4 sm:$0xff]  }
   0x6   :  { %v239_v16 = vld [vmem:[%s318_s1] ss:$8 sps:$4 sm:$0xff]   ;;  %v173_v19 = vshrl.u32 %v172_v18, 7 }
   0x7   :  { %123 = vmatpush1.bf16.msra.mxu0 %v221_v4  ;;  %v23_v17 = vld [vmem:[%s319_s0] sm:$0xf] }
   0x8   :  { %124 = vmatprep.subr.bf16.mxu0 %v222_v5  ;;  %v174_v20 = vsub.s32 0, %v173_v19  ;;  %v178_v21 = vsub.s32 1, %v173_v19  ;;  %v170_v22 = vld [vmem:[%s320_s2] sm:$0x3] }
   0xa   :  { %v175_v23 = vrot.slane %v170_v22, %v174_v20  ;;  %v179_v24 = vrot.slane %v170_v22, %v178_v21 }
   0xb   :  { %125 = vmatpush1.bf16.msra.mxu0 %v224_v6 }
   0xc   :  { %126 = vmatprep.subr.bf16.mxu0 %v225_v7 }
   0xf   :  { %127 = vmatpush1.bf16.msra.mxu0 %v227_v8 }
  0x10   :  { %128 = vmatprep.subr.bf16.mxu0 %v228_v9 }
  0x13   :  { %129 = vmatpush1.bf16.msra.mxu0 %v230_v10 }
  0x14   :  { %130 = vmatprep.subr.bf16.mxu0 %v231_v11 }
  0x17   :  { %131 = vmatpush1.bf16.msra.mxu0 %v233_v12 }
  0x18   :  { %132 = vmatprep.subr.bf16.mxu0 %v234_v13 }
  0x1b   :  { %133 = vmatpush1.bf16.msra.mxu0 %v236_v14 }
  0x1c   :  { %134 = vmatprep.subr.bf16.mxu0 %v237_v15 }
  0x1f   :  { %135 = vmatpush1.bf16.msra.mxu0 %v239_v16 }
  0x22   :  { %153 = vmatmul.mubr.bf16.vlgmr.msra.gmra.mxu0 %v23_v17 }
  0xe2   :  { %v154_v25 = vpop.f32.mrf.mxu0 }
  0xe3   :  { %v182_v27 = vadd.f32 %v175_v23, %v154_v25 }
  0xe4   :  { %v156_v26 = vpop.f32.mrf.mxu0 }
  0xe5   :  { %v183_v28 = vadd.f32 %v179_v24, %v156_v26 }
  0xe6   :  { %v158_v29 = vpop.f32.mrf.mxu0 }
  0xe7   :  { %v214_v30 = vpack.c.bf16 %v183_v28, %v182_v27 }
  0xe8   :  { %v159_v31 = vpop.f32.mrf.mxu0 }
  0xe9   :  { %192 = vst [vmem:[%s321_s3] sm:$0xff] %v214_v30 }

// kernel: resnet18_forward.36
= control target key start
LH: loop header
LB: loop body
LE: loop exit
PB: predicated region body
PF: predicated region fallthrough
CT: control target
= control target key end

     0   :  { %s1131_s15 = smov 0   ;;  %s1133_s16 = smov 0   ;;  %s1233_s0 = inlined_call_operand.vmem [shape: bf16[8,2304], index: 0, kind: input, shape index: {}]   ;;  %s1234_s1 = inlined_call_operand.vmem [shape: bf16[2304,256], index: 1, kind: input, shape index: {}]   ;;  %s1235_s2 = inlined_call_operand.vmem [shape: f32[1,256], index: 2, kind: input, shape index: {}]   ;;  %s1236_s3 = inlined_call_operand.vmem [shape: bf16[8,256], index: 3, kind: input, shape index: {}]   ;;  %s1237_s4 = inlined_call_operand.vmem [shape: bf16[8,256], index: 4, kind: output, shape index: {}]  }
   0x1   :  { %s1135_s17 = smov 0  }
   0x2 LB: > { %s26_s18 = sadd.s32 1, %s1098_s16  ;;  %p915_p0 = scmp.ge.s32.totalorder %s1102_s17, 1  ;;  %s1102_s17 = sphi %s1135_s17, %s14_s17   ;;  %s1098_s16 = sphi %s1133_s16, %s1239_s16   ;;  %s1094_s15 = sphi %s1131_s15, %s1238_s15  }
   0x3   : > { %p27_p1 = scmp.ge.s32.totalorder %s26_s18, 6  ;;  %p236_p2 = scmp.lt.s32.totalorder %s1102_s17, 7 }
   0x5   : > { %s1241_s18 = smov (%p27_p1, %s26_s18), 0  ;;  %p237_p3 = pnand %p915_p0, %p236_p2 }
   0x6   : > { %s293_s19 = smul.u32 (!%p237_p3), 3, %s1094_s15  ;;  %p919_p6 = scmp.ne.s32.totalorder (!%p237_p3), %s1094_s15, 0 }
   0x7   : > { %240 = sbr.rel (%p237_p3) target bundleno = 304 (0x130), region = 36 }
   0x8   : > { %s303_s20 = smul.u32 (!%p237_p3), 48, %s1094_s15  ;;  %p296_p4 = scmp.lt.s32.totalorder (!%p237_p3), %s293_s19, 17 }
   0xa   : > { %p305_p5 = scmp.lt.s32.totalorder (!%p237_p3), %s303_s20, 287 }
   0xc   : > { %s1243_s19 = smov (!%p296_p4, %s293_s19), 17  ;;  %s1245_s20 = smov (!%p305_p5, %s303_s20), 287 }
   0xd   : > { %s916_s21 = sshll.u32 %s1243_s19, 2  ;;  %s977_s25 = sshll.u32 %s1245_s20, 3 }
   0xe   : > { %s1156_s24 = scalar_lea.vmem %s1233_s0, %s916_s21  ;;  %s1161_s28 = scalar_lea.vmem %s1234_s1, %s977_s25 }
   0xf   : > { %344 = sbr.rel (%p919_p6) target bundleno = 22 (0x16), region = 40 }
  0x14   : > { %v1104_v0 = vmov 0.0  }
  0x15   : > { %345 = vst [vmem:[#allocation2] sm:$0xff] %v1104_v0  ;;  %346 = vst [vmem:[#allocation2 + $0x8] sm:$0xff] %v1104_v0 }
  0x16 PF: > { %v1005_v1 = vld [vmem:[%s1161_s28 + $0x74] ss:$8 sps:$4 sm:$0xff]   ;;  %v1007_v2 = vld [vmem:[%s1161_s28 + $0x70] ss:$8 sps:$4 sm:$0xff]   ;;  %v1105_v3 = vmov 0   ;;  %v349_v34 = vld [vmem:[%s1156_s24] sm:$0xff] }
  0x17   : > { %723 = vmatprep.mubr.bf16.mxu1 %v1105_v3  ;;  %650 = vmatprep.subr.bf16.mxu0 %v1005_v1  ;;  %v1008_v4 = vld [vmem:[%s1161_s28 + $0x64] ss:$8 sps:$4 sm:$0xff]   ;;  %v1010_v5 = vld [vmem:[%s1161_s28 + $0x60] ss:$8 sps:$4 sm:$0xff]   ;;  %v1011_v6 = vld [vmem:[%s1161_s28 + $0x54] ss:$8 sps:$4 sm:$0xff]   ;;  %v921_v36 = vcombine.high %v349_v34, %v349_v34  ;;  %v920_v53 = vcombine.low %v349_v34, %v349_v34 }
  0x18   : > { %651 = vmatpush1.bf16.msra.mxu0 %v1007_v2  ;;  %v1013_v7 = vld [vmem:[%s1161_s28 + $0x50] ss:$8 sps:$4 sm:$0xff]   ;;  %v1014_v8 = vld [vmem:[%s1161_s28 + $0x44] ss:$8 sps:$4 sm:$0xff]   ;;  %v1026_v9 = vld [vmem:[%s1161_s28 + $0x174] ss:$8 sps:$4 sm:$0xff]  }
  0x19   : > { %652 = vmatprep.subr.bf16.mxu0 %v1008_v4  ;;  %v1028_v10 = vld [vmem:[%s1161_s28 + $0x170] ss:$8 sps:$4 sm:$0xff]   ;;  %v1016_v11 = vld [vmem:[%s1161_s28 + $0x40] ss:$8 sps:$4 sm:$0xff]   ;;  %v1017_v12 = vld [vmem:[%s1161_s28 + $0x34] ss:$8 sps:$4 sm:$0xff]   ;;  %691 = vmatprep.subr.bf16.mxu1 %v1026_v9 }
  0x1a   : > { %v1032_v13 = vld [vmem:[%s1161_s28 + $0x164] ss:$8 sps:$4 sm:$0xff]   ;;  %692 = vmatpush1.bf16.msra.mxu1 %v1028_v10  ;;  %v1034_v14 = vld [vmem:[%s1161_s28 + $0x160] ss:$8 sps:$4 sm:$0xff]   ;;  %v1019_v15 = vld [vmem:[%s1161_s28 + $0x30] ss:$8 sps:$4 sm:$0xff]   ;;  %682 = vmatprep.mubr.bf16.mxu0 %v921_v36 }
  0x1b   : > { %693 = vmatprep.subr.bf16.mxu1 %v1032_v13  ;;  %v1038_v16 = vld [vmem:[%s1161_s28 + $0x154] ss:$8 sps:$4 sm:$0xff]   ;;  %v1020_v17 = vld [vmem:[%s1161_s28 + $0x24] ss:$8 sps:$4 sm:$0xff]   ;;  %v1040_v18 = vld [vmem:[%s1161_s28 + $0x150] ss:$8 sps:$4 sm:$0xff]  }
  0x1c   : > { %653 = vmatpush1.bf16.msra.mxu0 %v1010_v5  ;;  %v1044_v19 = vld [vmem:[%s1161_s28 + $0x144] ss:$8 sps:$4 sm:$0xff]   ;;  %v1022_v20 = vld [vmem:[%s1161_s28 + $0x20] ss:$8 sps:$4 sm:$0xff]   ;;  %v1023_v21 = vld [vmem:[%s1161_s28 + $0x14] ss:$8 sps:$4 sm:$0xff]  }
  0x1d   : > { %654 = vmatprep.subr.bf16.mxu0 %v1011_v6  ;;  %v1046_v22 = vld [vmem:[%s1161_s28 + $0x140] ss:$8 sps:$4 sm:$0xff]   ;;  %v1050_v23 = vld [vmem:[%s1161_s28 + $0x134] ss:$8 sps:$4 sm:$0xff]   ;;  %v1025_v24 = vld [vmem:[%s1161_s28 + $0x10] ss:$8 sps:$4 sm:$0xff]  }
  0x1e   : > { %694 = vmatpush1.bf16.msra.mxu1 %v1034_v14  ;;  %v1029_v25 = vld [vmem:[%s1161_s28 + $0x4] ss:$8 sps:$4 sm:$0xff]   ;;  %v1052_v26 = vld [vmem:[%s1161_s28 + $0x130] ss:$8 sps:$4 sm:$0xff]   ;;  %v1031_v28 = vld [vmem:[%s1161_s28] ss:$8 sps:$4 sm:$0xff]  }
  0x1f   : > { %695 = vmatprep.subr.bf16.mxu1 %v1038_v16  ;;  %v1056_v27 = vld [vmem:[%s1161_s28 + $0x124] ss:$8 sps:$4 sm:$0xff]   ;;  %v1035_v29 = vld [vmem:[%s1161_s28 + $0xf4] ss:$8 sps:$4 sm:$0xff]   ;;  %v1058_v30 = vld [vmem:[%s1161_s28 + $0x120] ss:$8 sps:$4 sm:$0xff]  }
  0x20   : > { %655 = vmatpush1.bf16.msra.mxu0 %v1013_v7  ;;  %v1062_v31 = vld [vmem:[%s1161_s28 + $0x114] ss:$8 sps:$4 sm:$0xff]   ;;  %v1037_v32 = vld [vmem:[%s1161_s28 + $0xf0] ss:$8 sps:$4 sm:$0xff]   ;;  %v1041_v33 = vld [vmem:[%s1161_s28 + $0xe4] ss:$8 sps:$4 sm:$0xff]  }
  0x21   : > { %656 = vmatprep.subr.bf16.mxu0 %v1014_v8  ;;  %v1064_v35 = vld [vmem:[%s1161_s28 + $0x110] ss:$8 sps:$4 sm:$0xff]   ;;  %v1068_v37 = vld [vmem:[%s1161_s28 + $0x104] ss:$8 sps:$4 sm:$0xff]   ;;  %v1043_v38 = vld [vmem:[%s1161_s28 + $0xe0] ss:$8 sps:$4 sm:$0xff]  }
  0x22   : > { %696 = vmatpush1.bf16.msra.mxu1 %v1040_v18  ;;  %v1047_v39 = vld [vmem:[%s1161_s28 + $0xd4] ss:$8 sps:$4 sm:$0xff]   ;;  %v1070_v40 = vld [vmem:[%s1161_s28 + $0x100] ss:$8 sps:$4 sm:$0xff]   ;;  %v1049_v41 = vld [vmem:[%s1161_s28 + $0xd0] ss:$8 sps:$4 sm:$0xff]  }
  0x23   : > { %697 = vmatprep.subr.bf16.mxu1 %v1044_v19  ;;  %v1053_v42 = vld [vmem:[%s1161_s28 + $0xc4] ss:$8 sps:$4 sm:$0xff]   ;;  %v1074_v43 = vld [vmem:[%s1156_s24 + $0x8] ss:$0 sps:$4 sm:$0xff]   ;;  %v1059_v45 = vld [vmem:[%s1161_s28 + $0xb4] ss:$8 sps:$4 sm:$0xff]  }
  0x24   : > { %657 = vmatpush1.bf16.msra.mxu0 %v1016_v11  ;;  %v1055_v44 = vld [vmem:[%s1161_s28 + $0xc0] ss:$8 sps:$4 sm:$0xff]   ;;  %v1061_v46 = vld [vmem:[%s1161_s28 + $0xb0] ss:$8 sps:$4 sm:$0xff]   ;;  %v1065_v47 = vld [vmem:[%s1161_s28 + $0xa4] ss:$8 sps:$4 sm:$0xff]  }
  0x25   : > { %658 = vmatprep.subr.bf16.mxu0 %v1017_v12  ;;  %v1067_v48 = vld [vmem:[%s1161_s28 + $0xa0] ss:$8 sps:$4 sm:$0xff]   ;;  %v1071_v49 = vld [vmem:[%s1161_s28 + $0x94] ss:$8 sps:$4 sm:$0xff]   ;;  %v1073_v50 = vld [vmem:[%s1161_s28 + $0x90] ss:$8 sps:$4 sm:$0xff]  }
  0x26   : > { %698 = vmatpush1.bf16.msra.mxu1 %v1046_v22  ;;  %v1075_v51 = vld [vmem:[%s1161_s28 + $0x84] ss:$8 sps:$4 sm:$0xff]   ;;  %v1077_v52 = vld [vmem:[%s1161_s28 + $0x80] ss:$8 sps:$4 sm:$0xff]   ;;  %p971_p7 = scmp.ne.s32.totalorder %s1094_s15, 5 }
  0x27   : > { %699 = vmatprep.subr.bf16.mxu1 %v1050_v23  ;;  %v347_v58 = vld [vmem:[#allocation2] sm:$0xff]  ;;  %v348_v61 = vld [vmem:[#allocation2 + $0x8] sm:$0xff] }
  0x28   : > { %659 = vmatpush1.bf16.msra.mxu0 %v1019_v15 }
  0x29   : > { %660 = vmatprep.subr.bf16.mxu0 %v1020_v17 }
  0x2a   : > { %700 = vmatpush1.bf16.msra.mxu1 %v1052_v26 }
  0x2b   : > { %701 = vmatprep.subr.bf16.mxu1 %v1056_v27 }
  0x2c   : > { %661 = vmatpush1.bf16.msra.mxu0 %v1022_v20 }
  0x2d   : > { %662 = vmatprep.subr.bf16.mxu0 %v1023_v21 }
  0x2e   : > { %702 = vmatpush1.bf16.msra.mxu1 %v1058_v30 }
  0x2f   : > { %703 = vmatprep.subr.bf16.mxu1 %v1062_v31 }
  0x30   : > { %663 = vmatpush1.bf16.msra.mxu0 %v1025_v24 }
  0x31   : > { %664 = vmatprep.subr.bf16.mxu0 %v1029_v25 }
  0x32   : > { %704 = vmatpush1.bf16.msra.mxu1 %v1064_v35 }
  0x33   : > { %705 = vmatprep.subr.bf16.mxu1 %v1068_v37 }
  0x34   : > { %665 = vmatpush1.bf16.msra.mxu0 %v1031_v28 }
  0x35   : > { %666 = vmatprep.subr.bf16.mxu0 %v1035_v29 }
  0x36   : > { %706 = vmatpush1.bf16.msra.mxu1 %v1070_v40 }
  0x38   : > { %667 = vmatpush2.bf16.msra.mxu0 %v1037_v32 }
  0x39   : > { %668 = vmatprep.subr.bf16.mxu0 %v1041_v33  ;;  %724 = vmatmul.mubr.bf16.vlgmr.msra.gmra.mxu1 %v1074_v43 }
  0x3c   : > { %669 = vmatpush2.bf16.msra.mxu0 %v1043_v38 }
  0x3d   : > { %670 = vmatprep.subr.bf16.mxu0 %v1047_v39 }
  0x40   : > { %671 = vmatpush2.bf16.msra.mxu0 %v1049_v41 }
  0x41   : > { %672 = vmatprep.subr.bf16.mxu0 %v1053_v42 }
  0x44   : > { %673 = vmatpush2.bf16.msra.mxu0 %v1055_v44 }
  0x45   : > { %674 = vmatprep.subr.bf16.mxu0 %v1059_v45 }
  0x48   : > { %675 = vmatpush2.bf16.msra.mxu0 %v1061_v46 }
  0x49   : > { %676 = vmatprep.subr.bf16.mxu0 %v1065_v47 }
  0x4c   : > { %677 = vmatpush2.bf16.msra.mxu0 %v1067_v48 }
  0x4d   : > { %678 = vmatprep.subr.bf16.mxu0 %v1071_v49 }
  0x50   : > { %679 = vmatpush2.bf16.msra.mxu0 %v1073_v50 }
  0x51   : > { %680 = vmatprep.subr.bf16.mxu0 %v1075_v51 }
  0x54   : > { %681 = vmatpush2.bf16.msra.mxu0 %v1077_v52 }
  0x57   : > { %683 = vmatmul.mubr.bf16.vlgmr.msra.gmra.mxu0 %v920_v53 }
  0xf9   : > { %v725_v54 = vpop.f32.mrf.mxu1 }
  0xfb   : > { %v727_v55 = vpop.f32.mrf.mxu1 }
  0xfd   : > { %v729_v56 = vpop.f32.mrf.mxu1 }
  0xff   : > { %v730_v57 = vpop.f32.mrf.mxu1 }
 0x117   : > { %v684_v59 = vpop.f32.mrf.mxu0 }
 0x118   : > { %v726_v60 = vadd.f32 %v725_v54, %v684_v59 }
 0x119   : > { %v686_v62 = vpop.f32.mrf.mxu0 }
 0x11a   : > { %v732_v63 = vadd.f32 %v726_v60, %v347_v58  ;;  %v728_v0 = vadd.f32 %v727_v55, %v686_v62  ;;  %739 = sbr.rel (%p971_p7) target bundleno = 304 (0x130), region = 44 }
 0x11b   : > { %v688_v1 = vpop.f32.mrf.mxu0 }
 0x11c   : > { %734 = vst [vmem:[#allocation2] sm:$0xff] %v732_v63  ;;  %v733_v2 = vadd.f32 %v728_v0, %v348_v61 }
 0x11d   : > { %v689_v3 = vpop.f32.mrf.mxu0 }
 0x11e   : > { %735 = vst [vmem:[#allocation2 + $0x8] sm:$0xff] %v733_v2 }
 0x11f   : > { %v744_v4 = vlaneseq  ;;  %v742_v6 = vld [vmem:[%s1235_s2] sm:$0x3] }
 0x120   : > { %v756_v7 = vld [vmem:[%s1236_s3] sm:$0xff] }
 0x121   : > { %v745_v5 = vshrl.u32 %v744_v4, 7  ;;  %v757_v14 = vunpack.c.l.bf16 %v756_v7  ;;  %v758_v15 = vunpack.c.h.bf16 %v756_v7 }
 0x123   : > { %v746_v8 = vsub.s32 0, %v745_v5  ;;  %v750_v9 = vsub.s32 1, %v745_v5  ;;  %v740_v10 = vld [vmem:[#allocation2] sm:$0xff] }
 0x125   : > { %v741_v11 = vld [vmem:[#allocation2 + $0x8] sm:$0xff]  ;;  %v747_v12 = vrot.slane %v742_v6, %v746_v8  ;;  %v751_v13 = vrot.slane %v742_v6, %v750_v9 }
 0x127   : > { %v754_v16 = vadd.f32 %v747_v12, %v740_v10  ;;  %v755_v17 = vadd.f32 %v751_v13, %v741_v11 }
 0x129   : > { %v759_v18 = vadd.f32 %v757_v14, %v754_v16  ;;  %v760_v19 = vadd.f32 %v758_v15, %v755_v17 }
 0x12b   : > { %v761_v20 = vmax.f32 %v759_v18, 0.0  ;;  %v762_v21 = vmax.f32 %v760_v19, 0.0 }
 0x12d   : > { %v978_v22 = vpack.c.bf16 %v762_v21, %v761_v20 }
 0x12f   : > { %771 = vst [vmem:[%s1237_s4] sm:$0xff] %v978_v22 }
 0x130 PF: > { %s14_s17 = sadd.s32 1, %s1102_s17   ;;  %s1238_s15 = smov %s1098_s16 }
 0x131   : > { %p11_p8 = scmp.ge.s32.totalorder %s14_s17, 8   ;;  %s1239_s16 = smov %s1241_s18 }
 0x133   :  { %13 = sbr.rel (!%p11_p8) target bundleno = 2 (0x2), region = 83 }

// kernel: resnet18_forward.37
= control target key start
LH: loop header
LB: loop body
LE: loop exit
PB: predicated region body
PF: predicated region fallthrough
CT: control target
= control target key end

     0   :  { %s1036_s12 = smov 0   ;;  %s1038_s13 = smov 0   ;;  %s1135_s0 = inlined_call_operand.vmem [shape: bf16[8,2304], index: 0, kind: input, shape index: {}]   ;;  %s1136_s1 = inlined_call_operand.vmem [shape: bf16[2304,256], index: 1, kind: input, shape index: {}]   ;;  %s1137_s2 = inlined_call_operand.vmem [shape: f32[1,256], index: 2, kind: input, shape index: {}]   ;;  %s1138_s3 = inlined_call_operand.vmem [shape: bf16[8,256], index: 3, kind: output, shape index: {}]  }
   0x1   :  { %s1040_s14 = smov 0  }
   0x2 LB: > { %s25_s15 = sadd.s32 1, %s1008_s13  ;;  %p825_p0 = scmp.ge.s32.totalorder %s1012_s14, 1  ;;  %s1012_s14 = sphi %s1040_s14, %s13_s14   ;;  %s1008_s13 = sphi %s1038_s13, %s1140_s13   ;;  %s1004_s12 = sphi %s1036_s12, %s1139_s12  }
   0x3   : > { %p26_p1 = scmp.ge.s32.totalorder %s25_s15, 6  ;;  %p194_p2 = scmp.lt.s32.totalorder %s1012_s14, 7 }
   0x5   : > { %s1142_s15 = smov (%p26_p1, %s25_s15), 0  ;;  %p195_p3 = pnand %p825_p0, %p194_p2 }
   0x6   : > { %s240_s16 = smul.u32 (!%p195_p3), 3, %s1004_s12  ;;  %p829_p6 = scmp.ne.s32.totalorder (!%p195_p3), %s1004_s12, 0 }
   0x7   : > { %198 = sbr.rel (%p195_p3) target bundleno = 302 (0x12e), region = 32 }
   0x8   : > { %s250_s17 = smul.u32 (!%p195_p3), 48, %s1004_s12  ;;  %p243_p4 = scmp.lt.s32.totalorder (!%p195_p3), %s240_s16, 17 }
   0xa   : > { %p252_p5 = scmp.lt.s32.totalorder (!%p195_p3), %s250_s17, 287 }
   0xc   : > { %s1144_s16 = smov (!%p243_p4, %s240_s16), 17  ;;  %s1146_s17 = smov (!%p252_p5, %s250_s17), 287 }
   0xd   : > { %s826_s18 = sshll.u32 %s1144_s16, 2  ;;  %s887_s22 = sshll.u32 %s1146_s17, 3 }
   0xe   : > { %s1061_s21 = scalar_lea.vmem %s1135_s0, %s826_s18  ;;  %s1066_s25 = scalar_lea.vmem %s1136_s1, %s887_s22 }
   0xf   : > { %281 = sbr.rel (%p829_p6) target bundleno = 22 (0x16), region = 36 }
  0x14   : > { %v1014_v0 = vmov 0.0  }
  0x15   : > { %282 = vst [vmem:[#allocation2] sm:$0xff] %v1014_v0  ;;  %283 = vst [vmem:[#allocation2 + $0x8] sm:$0xff] %v1014_v0 }
  0x16 PF: > { %v915_v1 = vld [vmem:[%s1066_s25 + $0x74] ss:$8 sps:$4 sm:$0xff]   ;;  %v917_v2 = vld [vmem:[%s1066_s25 + $0x70] ss:$8 sps:$4 sm:$0xff]   ;;  %v1015_v3 = vmov 0   ;;  %v286_v34 = vld [vmem:[%s1061_s21] sm:$0xff] }
  0x17   : > { %660 = vmatprep.mubr.bf16.mxu1 %v1015_v3  ;;  %587 = vmatprep.subr.bf16.mxu0 %v915_v1  ;;  %v918_v4 = vld [vmem:[%s1066_s25 + $0x64] ss:$8 sps:$4 sm:$0xff]   ;;  %v920_v5 = vld [vmem:[%s1066_s25 + $0x60] ss:$8 sps:$4 sm:$0xff]   ;;  %v921_v6 = vld [vmem:[%s1066_s25 + $0x54] ss:$8 sps:$4 sm:$0xff]   ;;  %v831_v36 = vcombine.high %v286_v34, %v286_v34  ;;  %v830_v53 = vcombine.low %v286_v34, %v286_v34 }
  0x18   : > { %588 = vmatpush1.bf16.msra.mxu0 %v917_v2  ;;  %v923_v7 = vld [vmem:[%s1066_s25 + $0x50] ss:$8 sps:$4 sm:$0xff]   ;;  %v924_v8 = vld [vmem:[%s1066_s25 + $0x44] ss:$8 sps:$4 sm:$0xff]   ;;  %v936_v9 = vld [vmem:[%s1066_s25 + $0x174] ss:$8 sps:$4 sm:$0xff]  }
  0x19   : > { %589 = vmatprep.subr.bf16.mxu0 %v918_v4  ;;  %v938_v10 = vld [vmem:[%s1066_s25 + $0x170] ss:$8 sps:$4 sm:$0xff]   ;;  %v926_v11 = vld [vmem:[%s1066_s25 + $0x40] ss:$8 sps:$4 sm:$0xff]   ;;  %v927_v12 = vld [vmem:[%s1066_s25 + $0x34] ss:$8 sps:$4 sm:$0xff]   ;;  %628 = vmatprep.subr.bf16.mxu1 %v936_v9 }
  0x1a   : > { %v942_v13 = vld [vmem:[%s1066_s25 + $0x164] ss:$8 sps:$4 sm:$0xff]   ;;  %629 = vmatpush1.bf16.msra.mxu1 %v938_v10  ;;  %v944_v14 = vld [vmem:[%s1066_s25 + $0x160] ss:$8 sps:$4 sm:$0xff]   ;;  %v929_v15 = vld [vmem:[%s1066_s25 + $0x30] ss:$8 sps:$4 sm:$0xff]   ;;  %619 = vmatprep.mubr.bf16.mxu0 %v831_v36 }
  0x1b   : > { %630 = vmatprep.subr.bf16.mxu1 %v942_v13  ;;  %v948_v16 = vld [vmem:[%s1066_s25 + $0x154] ss:$8 sps:$4 sm:$0xff]   ;;  %v930_v17 = vld [vmem:[%s1066_s25 + $0x24] ss:$8 sps:$4 sm:$0xff]   ;;  %v950_v18 = vld [vmem:[%s1066_s25 + $0x150] ss:$8 sps:$4 sm:$0xff]  }
  0x1c   : > { %590 = vmatpush1.bf16.msra.mxu0 %v920_v5  ;;  %v954_v19 = vld [vmem:[%s1066_s25 + $0x144] ss:$8 sps:$4 sm:$0xff]   ;;  %v932_v20 = vld [vmem:[%s1066_s25 + $0x20] ss:$8 sps:$4 sm:$0xff]   ;;  %v933_v21 = vld [vmem:[%s1066_s25 + $0x14] ss:$8 sps:$4 sm:$0xff]  }
  0x1d   : > { %591 = vmatprep.subr.bf16.mxu0 %v921_v6  ;;  %v956_v22 = vld [vmem:[%s1066_s25 + $0x140] ss:$8 sps:$4 sm:$0xff]   ;;  %v960_v23 = vld [vmem:[%s1066_s25 + $0x134] ss:$8 sps:$4 sm:$0xff]   ;;  %v935_v24 = vld [vmem:[%s1066_s25 + $0x10] ss:$8 sps:$4 sm:$0xff]  }
  0x1e   : > { %631 = vmatpush1.bf16.msra.mxu1 %v944_v14  ;;  %v939_v25 = vld [vmem:[%s1066_s25 + $0x4] ss:$8 sps:$4 sm:$0xff]   ;;  %v962_v26 = vld [vmem:[%s1066_s25 + $0x130] ss:$8 sps:$4 sm:$0xff]   ;;  %v941_v28 = vld [vmem:[%s1066_s25] ss:$8 sps:$4 sm:$0xff]  }
  0x1f   : > { %632 = vmatprep.subr.bf16.mxu1 %v948_v16  ;;  %v966_v27 = vld [vmem:[%s1066_s25 + $0x124] ss:$8 sps:$4 sm:$0xff]   ;;  %v945_v29 = vld [vmem:[%s1066_s25 + $0xf4] ss:$8 sps:$4 sm:$0xff]   ;;  %v968_v30 = vld [vmem:[%s1066_s25 + $0x120] ss:$8 sps:$4 sm:$0xff]  }
  0x20   : > { %592 = vmatpush1.bf16.msra.mxu0 %v923_v7  ;;  %v972_v31 = vld [vmem:[%s1066_s25 + $0x114] ss:$8 sps:$4 sm:$0xff]   ;;  %v947_v32 = vld [vmem:[%s1066_s25 + $0xf0] ss:$8 sps:$4 sm:$0xff]   ;;  %v951_v33 = vld [vmem:[%s1066_s25 + $0xe4] ss:$8 sps:$4 sm:$0xff]  }
  0x21   : > { %593 = vmatprep.subr.bf16.mxu0 %v924_v8  ;;  %v974_v35 = vld [vmem:[%s1066_s25 + $0x110] ss:$8 sps:$4 sm:$0xff]   ;;  %v978_v37 = vld [vmem:[%s1066_s25 + $0x104] ss:$8 sps:$4 sm:$0xff]   ;;  %v953_v38 = vld [vmem:[%s1066_s25 + $0xe0] ss:$8 sps:$4 sm:$0xff]  }
  0x22   : > { %633 = vmatpush1.bf16.msra.mxu1 %v950_v18  ;;  %v957_v39 = vld [vmem:[%s1066_s25 + $0xd4] ss:$8 sps:$4 sm:$0xff]   ;;  %v980_v40 = vld [vmem:[%s1066_s25 + $0x100] ss:$8 sps:$4 sm:$0xff]   ;;  %v959_v41 = vld [vmem:[%s1066_s25 + $0xd0] ss:$8 sps:$4 sm:$0xff]  }
  0x23   : > { %634 = vmatprep.subr.bf16.mxu1 %v954_v19  ;;  %v963_v42 = vld [vmem:[%s1066_s25 + $0xc4] ss:$8 sps:$4 sm:$0xff]   ;;  %v984_v43 = vld [vmem:[%s1061_s21 + $0x8] ss:$0 sps:$4 sm:$0xff]   ;;  %v969_v45 = vld [vmem:[%s1066_s25 + $0xb4] ss:$8 sps:$4 sm:$0xff]  }
  0x24   : > { %594 = vmatpush1.bf16.msra.mxu0 %v926_v11  ;;  %v965_v44 = vld [vmem:[%s1066_s25 + $0xc0] ss:$8 sps:$4 sm:$0xff]   ;;  %v971_v46 = vld [vmem:[%s1066_s25 + $0xb0] ss:$8 sps:$4 sm:$0xff]   ;;  %v975_v47 = vld [vmem:[%s1066_s25 + $0xa4] ss:$8 sps:$4 sm:$0xff]  }
  0x25   : > { %595 = vmatprep.subr.bf16.mxu0 %v927_v12  ;;  %v977_v48 = vld [vmem:[%s1066_s25 + $0xa0] ss:$8 sps:$4 sm:$0xff]   ;;  %v981_v49 = vld [vmem:[%s1066_s25 + $0x94] ss:$8 sps:$4 sm:$0xff]   ;;  %v983_v50 = vld [vmem:[%s1066_s25 + $0x90] ss:$8 sps:$4 sm:$0xff]  }
  0x26   : > { %635 = vmatpush1.bf16.msra.mxu1 %v956_v22  ;;  %v985_v51 = vld [vmem:[%s1066_s25 + $0x84] ss:$8 sps:$4 sm:$0xff]   ;;  %v987_v52 = vld [vmem:[%s1066_s25 + $0x80] ss:$8 sps:$4 sm:$0xff]   ;;  %p881_p7 = scmp.ne.s32.totalorder %s1004_s12, 5 }
  0x27   : > { %636 = vmatprep.subr.bf16.mxu1 %v960_v23  ;;  %v284_v58 = vld [vmem:[#allocation2] sm:$0xff]  ;;  %v285_v61 = vld [vmem:[#allocation2 + $0x8] sm:$0xff] }
  0x28   : > { %596 = vmatpush1.bf16.msra.mxu0 %v929_v15 }
  0x29   : > { %597 = vmatprep.subr.bf16.mxu0 %v930_v17 }
  0x2a   : > { %637 = vmatpush1.bf16.msra.mxu1 %v962_v26 }
  0x2b   : > { %638 = vmatprep.subr.bf16.mxu1 %v966_v27 }
  0x2c   : > { %598 = vmatpush1.bf16.msra.mxu0 %v932_v20 }
  0x2d   : > { %599 = vmatprep.subr.bf16.mxu0 %v933_v21 }
  0x2e   : > { %639 = vmatpush1.bf16.msra.mxu1 %v968_v30 }
  0x2f   : > { %640 = vmatprep.subr.bf16.mxu1 %v972_v31 }
  0x30   : > { %600 = vmatpush1.bf16.msra.mxu0 %v935_v24 }
  0x31   : > { %601 = vmatprep.subr.bf16.mxu0 %v939_v25 }
  0x32   : > { %641 = vmatpush1.bf16.msra.mxu1 %v974_v35 }
  0x33   : > { %642 = vmatprep.subr.bf16.mxu1 %v978_v37 }
  0x34   : > { %602 = vmatpush1.bf16.msra.mxu0 %v941_v28 }
  0x35   : > { %603 = vmatprep.subr.bf16.mxu0 %v945_v29 }
  0x36   : > { %643 = vmatpush1.bf16.msra.mxu1 %v980_v40 }
  0x38   : > { %604 = vmatpush2.bf16.msra.mxu0 %v947_v32 }
  0x39   : > { %605 = vmatprep.subr.bf16.mxu0 %v951_v33  ;;  %661 = vmatmul.mubr.bf16.vlgmr.msra.gmra.mxu1 %v984_v43 }
  0x3c   : > { %606 = vmatpush2.bf16.msra.mxu0 %v953_v38 }
  0x3d   : > { %607 = vmatprep.subr.bf16.mxu0 %v957_v39 }
  0x40   : > { %608 = vmatpush2.bf16.msra.mxu0 %v959_v41 }
  0x41   : > { %609 = vmatprep.subr.bf16.mxu0 %v963_v42 }
  0x44   : > { %610 = vmatpush2.bf16.msra.mxu0 %v965_v44 }
  0x45   : > { %611 = vmatprep.subr.bf16.mxu0 %v969_v45 }
  0x48   : > { %612 = vmatpush2.bf16.msra.mxu0 %v971_v46 }
  0x49   : > { %613 = vmatprep.subr.bf16.mxu0 %v975_v47 }
  0x4c   : > { %614 = vmatpush2.bf16.msra.mxu0 %v977_v48 }
  0x4d   : > { %615 = vmatprep.subr.bf16.mxu0 %v981_v49 }
  0x50   : > { %616 = vmatpush2.bf16.msra.mxu0 %v983_v50 }
  0x51   : > { %617 = vmatprep.subr.bf16.mxu0 %v985_v51 }
  0x54   : > { %618 = vmatpush2.bf16.msra.mxu0 %v987_v52 }
  0x57   : > { %620 = vmatmul.mubr.bf16.vlgmr.msra.gmra.mxu0 %v830_v53 }
  0xf9   : > { %v662_v54 = vpop.f32.mrf.mxu1 }
  0xfb   : > { %v664_v55 = vpop.f32.mrf.mxu1 }
  0xfd   : > { %v666_v56 = vpop.f32.mrf.mxu1 }
  0xff   : > { %v667_v57 = vpop.f32.mrf.mxu1 }
 0x117   : > { %v621_v59 = vpop.f32.mrf.mxu0 }
 0x118   : > { %v663_v60 = vadd.f32 %v662_v54, %v621_v59 }
 0x119   : > { %v623_v62 = vpop.f32.mrf.mxu0 }
 0x11a   : > { %v669_v63 = vadd.f32 %v663_v60, %v284_v58  ;;  %v665_v0 = vadd.f32 %v664_v55, %v623_v62  ;;  %676 = sbr.rel (%p881_p7) target bundleno = 302 (0x12e), region = 40 }
 0x11b   : > { %v625_v1 = vpop.f32.mrf.mxu0 }
 0x11c   : > { %671 = vst [vmem:[#allocation2] sm:$0xff] %v669_v63  ;;  %v670_v2 = vadd.f32 %v665_v0, %v285_v61 }
 0x11d   : > { %v626_v3 = vpop.f32.mrf.mxu0 }
 0x11e   : > { %672 = vst [vmem:[#allocation2 + $0x8] sm:$0xff] %v670_v2 }
 0x11f   : > { %v681_v4 = vlaneseq  ;;  %v679_v6 = vld [vmem:[%s1137_s2] sm:$0x3] }
 0x121   : > { %v682_v5 = vshrl.u32 %v681_v4, 7 }
 0x123   : > { %v683_v7 = vsub.s32 0, %v682_v5  ;;  %v687_v8 = vsub.s32 1, %v682_v5  ;;  %v677_v9 = vld [vmem:[#allocation2] sm:$0xff] }
 0x125   : > { %v678_v10 = vld [vmem:[#allocation2 + $0x8] sm:$0xff]  ;;  %v684_v11 = vrot.slane %v679_v6, %v683_v7  ;;  %v688_v12 = vrot.slane %v679_v6, %v687_v8 }
 0x127   : > { %v691_v13 = vadd.f32 %v684_v11, %v677_v9  ;;  %v692_v14 = vadd.f32 %v688_v12, %v678_v10 }
 0x129   : > { %v693_v15 = vmax.f32 %v691_v13, 0.0  ;;  %v694_v16 = vmax.f32 %v692_v14, 0.0 }
 0x12b   : > { %v888_v17 = vpack.c.bf16 %v694_v16, %v693_v15 }
 0x12d   : > { %703 = vst [vmem:[%s1138_s3] sm:$0xff] %v888_v17 }
 0x12e PF: > { %s13_s14 = sadd.s32 1, %s1012_s14   ;;  %s1139_s12 = smov %s1008_s13 }
 0x12f   : > { %p10_p8 = scmp.ge.s32.totalorder %s13_s14, 8   ;;  %s1140_s13 = smov %s1142_s15 }
 0x131   :  { %12 = sbr.rel (!%p10_p8) target bundleno = 2 (0x2), region = 76 }

// kernel: resnet18_forward.40
= control target key start
LH: loop header
LB: loop body
LE: loop exit
PB: predicated region body
PF: predicated region fallthrough
CT: control target
= control target key end

     0   :  { %s1320_s12 = smov 0   ;;  %s1322_s13 = smov 0   ;;  %s1583_s0 = inlined_call_operand.vmem [shape: bf16[8,2304], index: 0, kind: input, shape index: {}]   ;;  %s1584_s1 = inlined_call_operand.vmem [shape: bf16[2304,512], index: 1, kind: input, shape index: {}]   ;;  %s1585_s2 = inlined_call_operand.vmem [shape: f32[1,512], index: 2, kind: input, shape index: {}]   ;;  %s1586_s3 = inlined_call_operand.vmem [shape: bf16[8,512], index: 3, kind: output, shape index: {}]  }
   0x1   :  { %s1324_s14 = smov 0   ;;  %s1326_s15 = smov 0  }
   0x2   :  { %s1328_s16 = smov 0   ;;  %s1330_s17 = smov 0  }
   0x3   :  { %s1332_s18 = smov 0  }
   0x4 LB: > { %s25_s19 = sadd.s32 1, %s1288_s16  ;;  %s28_s20 = sadd.s32 1, %s1292_s17  ;;  %s1296_s18 = sphi %s1332_s18, %s13_s18   ;;  %s1292_s17 = sphi %s1330_s17, %s1592_s17   ;;  %s1288_s16 = sphi %s1328_s16, %s1591_s16   ;;  %s1284_s15 = sphi %s1326_s15, %s1590_s15   ;;  %s1280_s14 = sphi %s1324_s14, %s1589_s14   ;;  %s1276_s13 = sphi %s1322_s13, %s1588_s13   ;;  %s1272_s12 = sphi %s1320_s12, %s1587_s12  }
   0x5   : > { %p26_p0 = scmp.ge.s32.totalorder %s25_s19, 6  ;;  %p76_p1 = scmp.ne.s32.totalorder %s1276_s13, %s1272_s12 }
   0x6   : > { %p77_p2 = scmp.eq.s32.totalorder %s1296_s18, 0  ;;  %s69_s24 = sadd.s32 1, %s1276_s13 }
   0x7   : > { %s1594_s19 = smov (%p26_p0, %s25_s19), 0  ;;  %s1596_s20 = smov (!%p26_p0, %s28_s20), %s1292_s17 }
   0x8   : > { %p78_p3 = por %p77_p2, %p76_p1  ;;  %p30_p4 = scmp.ge.s32.totalorder %s1596_s20, 2 }
   0x9   : > { %s64_s21 = ssub.s32 %s1288_s16, %s1594_s19  ;;  %p1040_p6 = scmp.ge.s32.totalorder %s1296_s18, 12 }
   0xa   : > { %s1598_s20 = smov (%p30_p4, %s1596_s20), 0 }
   0xb   : > { %s65_s22 = ssub.s32 %s1292_s17, %s1598_s20  ;;  %156 = sbr.rel (%p1040_p6) target bundleno = 48 (0x30), region = 16 }
   0xc   : > { %s66_s23 = sor.u32 %s65_s22, %s64_s21 }
   0xd   : > { %p67_p5 = scmp.eq.s32.totalorder %s66_s23, 0 }
   0xf   : > { %s1371_s25 = scalar_select %p67_p5, %s1276_s13, %s69_s24  }
  0x10   : > { %172 = sbr.rel (!%p78_p3) target bundleno = 48 (0x30), region = 24  ;;  %s174_s26 = sand.u32 (%p78_p3), 1, %s1276_s13  }
  0x11   : > { %s1107_s27 = smul.u32 (%p78_p3), 384, %s174_s26  ;;  %s1041_s28 = sshll.u32 (%p78_p3), %s1292_s17, 1 }
  0x12   : > { %s1105_s29 = smul.u32 (%p78_p3), 192, %s1288_s16 }
  0x13   : > { %s1385_s8 = scalar_lea.vmem (%p78_p3), [#allocation3], %s1107_s27 }
  0x14   : > { %s180_s30 = sadd.s32 (%p78_p3), %s1105_s29, %s1041_s28 }
  0x15   : > { %s1043_s4 = sshll.u32 %s180_s30, 2 }
  0x16   : > { %s1380_s7 = scalar_lea.vmem %s1584_s1, %s1043_s4 }
  0x17   : > { %v305_v0 = vld [vmem:[%s1380_s7] sm:$0xff]  ;;  %v307_v1 = vld [vmem:[%s1380_s7 + $0x10] sm:$0xff] }
  0x18   : > { %v309_v2 = vld [vmem:[%s1380_s7 + $0x20] sm:$0xff]  ;;  %306 = vst [vmem:[%s1385_s8] sm:$0xff] %v305_v0  ;;  %308 = vst [vmem:[%s1385_s8 + $0x8] sm:$0xff] %v307_v1  ;;  %v311_v3 = vld [vmem:[%s1380_s7 + $0x30] sm:$0xff] }
  0x19   : > { %310 = vst [vmem:[%s1385_s8 + $0x10] sm:$0xff] %v309_v2  ;;  %v313_v4 = vld [vmem:[%s1380_s7 + $0x40] sm:$0xff]  ;;  %v315_v5 = vld [vmem:[%s1380_s7 + $0x50] sm:$0xff]  ;;  %312 = vst [vmem:[%s1385_s8 + $0x18] sm:$0xff] %v311_v3 }
  0x1a   : > { %314 = vst [vmem:[%s1385_s8 + $0x20] sm:$0xff] %v313_v4  ;;  %316 = vst [vmem:[%s1385_s8 + $0x28] sm:$0xff] %v315_v5  ;;  %v317_v6 = vld [vmem:[%s1380_s7 + $0x60] sm:$0xff]  ;;  %v319_v7 = vld [vmem:[%s1380_s7 + $0x70] sm:$0xff] }
  0x1b   : > { %v321_v8 = vld [vmem:[%s1380_s7 + $0x80] sm:$0xff]  ;;  %318 = vst [vmem:[%s1385_s8 + $0x30] sm:$0xff] %v317_v6  ;;  %320 = vst [vmem:[%s1385_s8 + $0x38] sm:$0xff] %v319_v7  ;;  %v323_v9 = vld [vmem:[%s1380_s7 + $0x90] sm:$0xff] }
  0x1c   : > { %322 = vst [vmem:[%s1385_s8 + $0x40] sm:$0xff] %v321_v8  ;;  %v325_v10 = vld [vmem:[%s1380_s7 + $0xa0] sm:$0xff]  ;;  %v327_v11 = vld [vmem:[%s1380_s7 + $0xb0] sm:$0xff]  ;;  %324 = vst [vmem:[%s1385_s8 + $0x48] sm:$0xff] %v323_v9 }
  0x1d   : > { %326 = vst [vmem:[%s1385_s8 + $0x50] sm:$0xff] %v325_v10  ;;  %328 = vst [vmem:[%s1385_s8 + $0x58] sm:$0xff] %v327_v11  ;;  %v329_v12 = vld [vmem:[%s1380_s7 + $0xc0] sm:$0xff]  ;;  %v331_v13 = vld [vmem:[%s1380_s7 + $0xd0] sm:$0xff] }
  0x1e   : > { %v333_v14 = vld [vmem:[%s1380_s7 + $0xe0] sm:$0xff]  ;;  %330 = vst [vmem:[%s1385_s8 + $0x60] sm:$0xff] %v329_v12  ;;  %332 = vst [vmem:[%s1385_s8 + $0x68] sm:$0xff] %v331_v13  ;;  %v335_v15 = vld [vmem:[%s1380_s7 + $0xf0] sm:$0xff] }
  0x1f   : > { %334 = vst [vmem:[%s1385_s8 + $0x70] sm:$0xff] %v333_v14  ;;  %v337_v16 = vld [vmem:[%s1380_s7 + $0x100] sm:$0xff]  ;;  %v339_v17 = vld [vmem:[%s1380_s7 + $0x110] sm:$0xff]  ;;  %336 = vst [vmem:[%s1385_s8 + $0x78] sm:$0xff] %v335_v15 }
  0x20   : > { %338 = vst [vmem:[%s1385_s8 + $0x80] sm:$0xff] %v337_v16  ;;  %340 = vst [vmem:[%s1385_s8 + $0x88] sm:$0xff] %v339_v17  ;;  %v341_v18 = vld [vmem:[%s1380_s7 + $0x120] sm:$0xff]  ;;  %v343_v19 = vld [vmem:[%s1380_s7 + $0x130] sm:$0xff] }
  0x21   : > { %v345_v20 = vld [vmem:[%s1380_s7 + $0x140] sm:$0xff]  ;;  %342 = vst [vmem:[%s1385_s8 + $0x90] sm:$0xff] %v341_v18  ;;  %344 = vst [vmem:[%s1385_s8 + $0x98] sm:$0xff] %v343_v19  ;;  %v347_v21 = vld [vmem:[%s1380_s7 + $0x150] sm:$0xff] }
  0x22   : > { %346 = vst [vmem:[%s1385_s8 + $0xa0] sm:$0xff] %v345_v20  ;;  %v349_v22 = vld [vmem:[%s1380_s7 + $0x160] sm:$0xff]  ;;  %v351_v23 = vld [vmem:[%s1380_s7 + $0x170] sm:$0xff]  ;;  %348 = vst [vmem:[%s1385_s8 + $0xa8] sm:$0xff] %v347_v21 }
  0x23   : > { %350 = vst [vmem:[%s1385_s8 + $0xb0] sm:$0xff] %v349_v22  ;;  %352 = vst [vmem:[%s1385_s8 + $0xb8] sm:$0xff] %v351_v23  ;;  %v353_v24 = vld [vmem:[%s1380_s7 + $0x180] sm:$0xff]  ;;  %v355_v25 = vld [vmem:[%s1380_s7 + $0x190] sm:$0xff] }
  0x24   : > { %v357_v26 = vld [vmem:[%s1380_s7 + $0x1a0] sm:$0xff]  ;;  %354 = vst [vmem:[%s1385_s8 + $0xc0] sm:$0xff] %v353_v24  ;;  %356 = vst [vmem:[%s1385_s8 + $0xc8] sm:$0xff] %v355_v25  ;;  %v359_v27 = vld [vmem:[%s1380_s7 + $0x1b0] sm:$0xff] }
  0x25   : > { %358 = vst [vmem:[%s1385_s8 + $0xd0] sm:$0xff] %v357_v26  ;;  %v361_v28 = vld [vmem:[%s1380_s7 + $0x1c0] sm:$0xff]  ;;  %v363_v29 = vld [vmem:[%s1380_s7 + $0x1d0] sm:$0xff]  ;;  %360 = vst [vmem:[%s1385_s8 + $0xd8] sm:$0xff] %v359_v27 }
  0x26   : > { %362 = vst [vmem:[%s1385_s8 + $0xe0] sm:$0xff] %v361_v28  ;;  %364 = vst [vmem:[%s1385_s8 + $0xe8] sm:$0xff] %v363_v29  ;;  %v365_v30 = vld [vmem:[%s1380_s7 + $0x1e0] sm:$0xff]  ;;  %v367_v31 = vld [vmem:[%s1380_s7 + $0x1f0] sm:$0xff] }
  0x27   : > { %v369_v32 = vld [vmem:[%s1380_s7 + $0x200] sm:$0xff]  ;;  %366 = vst [vmem:[%s1385_s8 + $0xf0] sm:$0xff] %v365_v30  ;;  %368 = vst [vmem:[%s1385_s8 + $0xf8] sm:$0xff] %v367_v31  ;;  %v371_v33 = vld [vmem:[%s1380_s7 + $0x210] sm:$0xff] }
  0x28   : > { %370 = vst [vmem:[%s1385_s8 + $0x100] sm:$0xff] %v369_v32  ;;  %v373_v34 = vld [vmem:[%s1380_s7 + $0x220] sm:$0xff]  ;;  %v375_v35 = vld [vmem:[%s1380_s7 + $0x230] sm:$0xff]  ;;  %372 = vst [vmem:[%s1385_s8 + $0x108] sm:$0xff] %v371_v33 }
  0x29   : > { %374 = vst [vmem:[%s1385_s8 + $0x110] sm:$0xff] %v373_v34  ;;  %376 = vst [vmem:[%s1385_s8 + $0x118] sm:$0xff] %v375_v35  ;;  %v377_v36 = vld [vmem:[%s1380_s7 + $0x240] sm:$0xff]  ;;  %v379_v37 = vld [vmem:[%s1380_s7 + $0x250] sm:$0xff] }
  0x2a   : > { %v381_v38 = vld [vmem:[%s1380_s7 + $0x260] sm:$0xff]  ;;  %378 = vst [vmem:[%s1385_s8 + $0x120] sm:$0xff] %v377_v36  ;;  %380 = vst [vmem:[%s1385_s8 + $0x128] sm:$0xff] %v379_v37  ;;  %v383_v39 = vld [vmem:[%s1380_s7 + $0x270] sm:$0xff] }
  0x2b   : > { %382 = vst [vmem:[%s1385_s8 + $0x130] sm:$0xff] %v381_v38  ;;  %v385_v40 = vld [vmem:[%s1380_s7 + $0x280] sm:$0xff]  ;;  %v387_v41 = vld [vmem:[%s1380_s7 + $0x290] sm:$0xff]  ;;  %384 = vst [vmem:[%s1385_s8 + $0x138] sm:$0xff] %v383_v39 }
  0x2c   : > { %386 = vst [vmem:[%s1385_s8 + $0x140] sm:$0xff] %v385_v40  ;;  %388 = vst [vmem:[%s1385_s8 + $0x148] sm:$0xff] %v387_v41  ;;  %v389_v42 = vld [vmem:[%s1380_s7 + $0x2a0] sm:$0xff]  ;;  %v391_v43 = vld [vmem:[%s1380_s7 + $0x2b0] sm:$0xff] }
  0x2d   : > { %v393_v44 = vld [vmem:[%s1380_s7 + $0x2c0] sm:$0xff]  ;;  %390 = vst [vmem:[%s1385_s8 + $0x150] sm:$0xff] %v389_v42  ;;  %392 = vst [vmem:[%s1385_s8 + $0x158] sm:$0xff] %v391_v43  ;;  %v395_v45 = vld [vmem:[%s1380_s7 + $0x2d0] sm:$0xff] }
  0x2e   : > { %394 = vst [vmem:[%s1385_s8 + $0x160] sm:$0xff] %v393_v44  ;;  %v397_v46 = vld [vmem:[%s1380_s7 + $0x2e0] sm:$0xff]  ;;  %v399_v47 = vld [vmem:[%s1380_s7 + $0x2f0] sm:$0xff]  ;;  %396 = vst [vmem:[%s1385_s8 + $0x168] sm:$0xff] %v395_v45 }
  0x2f   : > { %398 = vst [vmem:[%s1385_s8 + $0x170] sm:$0xff] %v397_v46  ;;  %400 = vst [vmem:[%s1385_s8 + $0x178] sm:$0xff] %v399_v47 }
  0x30 PF: > { %p1044_p7 = scmp.ge.s32.totalorder %s1296_s18, 1  ;;  %p413_p8 = scmp.lt.s32.totalorder %s1296_s18, 13 }
  0x32   : > { %p414_p9 = pnand %p1044_p7, %p413_p8 }
  0x33   : > { %s420_s9 = sand.u32 (!%p414_p9), 1, %s1272_s12   ;;  %s460_s10 = smul.u32 (!%p414_p9), 3, %s1280_s14 }
  0x34   : > { %417 = sbr.rel (%p414_p9) target bundleno = 347 (0x15b), region = 66  ;;  %s1046_s21 = sshll.u32 (!%p414_p9), %s1284_s15, 1 }
  0x35   : > { %s1108_s11 = smul.u32 (!%p414_p9), 384, %s420_s9  ;;  %p463_p10 = scmp.lt.s32.totalorder (!%p414_p9), %s460_s10, 17 }
  0x36   : > { %p473_p11 = scmp.lt.s32.totalorder (!%p414_p9), %s1046_s21, 3  ;;  %p1049_p12 = scmp.ne.s32.totalorder (!%p414_p9), %s1280_s14, 0 }
  0x37   : > { %s1502_s5 = scalar_lea.vmem (!%p414_p9), [#allocation3], %s1108_s11 }
  0x39   : > { %s1600_s10 = smov (!%p463_p10, %s460_s10), 17  ;;  %s1602_s21 = smov (!%p473_p11, %s1046_s21), 3 }
  0x3a   : > { %s1045_s22 = sshll.u32 %s1600_s10, 2  ;;  %s475_s12 = scalar_lea.vmem %s1585_s2, %s1602_s21 }
  0x3b   : > { %s1490_s26 = scalar_lea.vmem %s1583_s0, %s1045_s22  ;;  %s1048_s29 = sshll.u32 %s1602_s21, 2 }
  0x3c   : > { %s1500_s4 = scalar_lea.vmem %s1586_s3, %s1048_s29  ;;  %491 = sbr.rel (%p1049_p12) target bundleno = 67 (0x43), region = 74 }
  0x41   : > { %v1298_v48 = vmov 0.0  }
  0x42   : > { %492 = vst [vmem:[#allocation2] sm:$0xff] %v1298_v48  ;;  %493 = vst [vmem:[#allocation2 + $0x8] sm:$0xff] %v1298_v48 }
  0x43 PF: > { %v1167_v49 = vld [vmem:[%s1502_s5 + $0x74] ss:$8 sps:$4 sm:$0xff]   ;;  %v1169_v50 = vld [vmem:[%s1502_s5 + $0x70] ss:$8 sps:$4 sm:$0xff]   ;;  %v1299_v51 = vmov 0   ;;  %p1101_p13 = scmp.ne.s32.totalorder %s1280_s14, 5 }
  0x44   : > { %870 = vmatprep.mubr.bf16.mxu1 %v1299_v51  ;;  %797 = vmatprep.subr.bf16.mxu0 %v1167_v49  ;;  %v1170_v52 = vld [vmem:[%s1502_s5 + $0x64] ss:$8 sps:$4 sm:$0xff]   ;;  %v1172_v53 = vld [vmem:[%s1502_s5 + $0x60] ss:$8 sps:$4 sm:$0xff]   ;;  %v1173_v54 = vld [vmem:[%s1502_s5 + $0x54] ss:$8 sps:$4 sm:$0xff]  }
  0x45   : > { %798 = vmatpush1.bf16.msra.mxu0 %v1169_v50  ;;  %v1175_v55 = vld [vmem:[%s1502_s5 + $0x50] ss:$8 sps:$4 sm:$0xff]   ;;  %v1176_v56 = vld [vmem:[%s1502_s5 + $0x44] ss:$8 sps:$4 sm:$0xff]   ;;  %v1188_v57 = vld [vmem:[%s1502_s5 + $0x174] ss:$8 sps:$4 sm:$0xff]  }
  0x46   : > { %799 = vmatprep.subr.bf16.mxu0 %v1170_v52  ;;  %v1190_v58 = vld [vmem:[%s1502_s5 + $0x170] ss:$8 sps:$4 sm:$0xff]   ;;  %v1178_v59 = vld [vmem:[%s1502_s5 + $0x40] ss:$8 sps:$4 sm:$0xff]   ;;  %v1179_v60 = vld [vmem:[%s1502_s5 + $0x34] ss:$8 sps:$4 sm:$0xff]   ;;  %838 = vmatprep.subr.bf16.mxu1 %v1188_v57 }
  0x47   : > { %v1194_v61 = vld [vmem:[%s1502_s5 + $0x164] ss:$8 sps:$4 sm:$0xff]   ;;  %839 = vmatpush1.bf16.msra.mxu1 %v1190_v58  ;;  %v1196_v62 = vld [vmem:[%s1502_s5 + $0x160] ss:$8 sps:$4 sm:$0xff]   ;;  %v1181_v63 = vld [vmem:[%s1502_s5 + $0x30] ss:$8 sps:$4 sm:$0xff]  }
  0x48   : > { %840 = vmatprep.subr.bf16.mxu1 %v1194_v61  ;;  %v1200_v0 = vld [vmem:[%s1502_s5 + $0x154] ss:$8 sps:$4 sm:$0xff]   ;;  %v1182_v1 = vld [vmem:[%s1502_s5 + $0x24] ss:$8 sps:$4 sm:$0xff]   ;;  %v1202_v2 = vld [vmem:[%s1502_s5 + $0x150] ss:$8 sps:$4 sm:$0xff]  }
  0x49   : > { %800 = vmatpush1.bf16.msra.mxu0 %v1172_v53  ;;  %v1206_v3 = vld [vmem:[%s1502_s5 + $0x144] ss:$8 sps:$4 sm:$0xff]   ;;  %v1184_v4 = vld [vmem:[%s1502_s5 + $0x20] ss:$8 sps:$4 sm:$0xff]   ;;  %v1185_v5 = vld [vmem:[%s1502_s5 + $0x14] ss:$8 sps:$4 sm:$0xff]  }
  0x4a   : > { %801 = vmatprep.subr.bf16.mxu0 %v1173_v54  ;;  %v1208_v6 = vld [vmem:[%s1502_s5 + $0x140] ss:$8 sps:$4 sm:$0xff]   ;;  %v1212_v7 = vld [vmem:[%s1502_s5 + $0x134] ss:$8 sps:$4 sm:$0xff]   ;;  %v1187_v8 = vld [vmem:[%s1502_s5 + $0x10] ss:$8 sps:$4 sm:$0xff]  }
  0x4b   : > { %841 = vmatpush1.bf16.msra.mxu1 %v1196_v62  ;;  %v1191_v9 = vld [vmem:[%s1502_s5 + $0x4] ss:$8 sps:$4 sm:$0xff]   ;;  %v1214_v10 = vld [vmem:[%s1502_s5 + $0x130] ss:$8 sps:$4 sm:$0xff]   ;;  %v1193_v12 = vld [vmem:[%s1502_s5] ss:$8 sps:$4 sm:$0xff]  }
  0x4c   : > { %842 = vmatprep.subr.bf16.mxu1 %v1200_v0  ;;  %v1218_v11 = vld [vmem:[%s1502_s5 + $0x124] ss:$8 sps:$4 sm:$0xff]   ;;  %v1197_v13 = vld [vmem:[%s1502_s5 + $0xf4] ss:$8 sps:$4 sm:$0xff]   ;;  %v1220_v14 = vld [vmem:[%s1502_s5 + $0x120] ss:$8 sps:$4 sm:$0xff]  }
  0x4d   : > { %802 = vmatpush1.bf16.msra.mxu0 %v1175_v55  ;;  %v1224_v15 = vld [vmem:[%s1502_s5 + $0x114] ss:$8 sps:$4 sm:$0xff]   ;;  %v1199_v16 = vld [vmem:[%s1502_s5 + $0xf0] ss:$8 sps:$4 sm:$0xff]   ;;  %v1203_v17 = vld [vmem:[%s1502_s5 + $0xe4] ss:$8 sps:$4 sm:$0xff]  }
  0x4e   : > { %803 = vmatprep.subr.bf16.mxu0 %v1176_v56  ;;  %v496_v18 = vld [vmem:[%s1490_s26] sm:$0xff]  ;;  %v1230_v21 = vld [vmem:[%s1502_s5 + $0x104] ss:$8 sps:$4 sm:$0xff]   ;;  %v1205_v22 = vld [vmem:[%s1502_s5 + $0xe0] ss:$8 sps:$4 sm:$0xff]  }
  0x4f   : > { %843 = vmatpush1.bf16.msra.mxu1 %v1202_v2  ;;  %v1226_v19 = vld [vmem:[%s1502_s5 + $0x110] ss:$8 sps:$4 sm:$0xff]   ;;  %v1051_v20 = vcombine.high %v496_v18, %v496_v18  ;;  %v1209_v23 = vld [vmem:[%s1502_s5 + $0xd4] ss:$8 sps:$4 sm:$0xff]   ;;  %v1232_v24 = vld [vmem:[%s1502_s5 + $0x100] ss:$8 sps:$4 sm:$0xff]   ;;  %v1050_v37 = vcombine.low %v496_v18, %v496_v18 }
  0x50   : > { %844 = vmatprep.subr.bf16.mxu1 %v1206_v3  ;;  %v1211_v25 = vld [vmem:[%s1502_s5 + $0xd0] ss:$8 sps:$4 sm:$0xff]   ;;  %v1215_v26 = vld [vmem:[%s1502_s5 + $0xc4] ss:$8 sps:$4 sm:$0xff]   ;;  %v1217_v28 = vld [vmem:[%s1502_s5 + $0xc0] ss:$8 sps:$4 sm:$0xff]  }
  0x51   : > { %804 = vmatpush1.bf16.msra.mxu0 %v1178_v59  ;;  %829 = vmatprep.mubr.bf16.mxu0 %v1051_v20  ;;  %v1236_v27 = vld [vmem:[%s1490_s26 + $0x8] ss:$0 sps:$4 sm:$0xff]   ;;  %v1221_v29 = vld [vmem:[%s1502_s5 + $0xb4] ss:$8 sps:$4 sm:$0xff]   ;;  %v1227_v31 = vld [vmem:[%s1502_s5 + $0xa4] ss:$8 sps:$4 sm:$0xff]  }
  0x52   : > { %805 = vmatprep.subr.bf16.mxu0 %v1179_v60  ;;  %v1223_v30 = vld [vmem:[%s1502_s5 + $0xb0] ss:$8 sps:$4 sm:$0xff]   ;;  %v1229_v32 = vld [vmem:[%s1502_s5 + $0xa0] ss:$8 sps:$4 sm:$0xff]   ;;  %v1233_v33 = vld [vmem:[%s1502_s5 + $0x94] ss:$8 sps:$4 sm:$0xff]  }
  0x53   : > { %845 = vmatpush1.bf16.msra.mxu1 %v1208_v6  ;;  %v1235_v34 = vld [vmem:[%s1502_s5 + $0x90] ss:$8 sps:$4 sm:$0xff]   ;;  %v1237_v35 = vld [vmem:[%s1502_s5 + $0x84] ss:$8 sps:$4 sm:$0xff]   ;;  %v1239_v36 = vld [vmem:[%s1502_s5 + $0x80] ss:$8 sps:$4 sm:$0xff]  }
  0x54   : > { %846 = vmatprep.subr.bf16.mxu1 %v1212_v7  ;;  %v494_v42 = vld [vmem:[#allocation2] sm:$0xff]  ;;  %v495_v45 = vld [vmem:[#allocation2 + $0x8] sm:$0xff] }
  0x55   : > { %806 = vmatpush1.bf16.msra.mxu0 %v1181_v63 }
  0x56   : > { %807 = vmatprep.subr.bf16.mxu0 %v1182_v1 }
  0x57   : > { %847 = vmatpush1.bf16.msra.mxu1 %v1214_v10 }
  0x58   : > { %848 = vmatprep.subr.bf16.mxu1 %v1218_v11 }
  0x59   : > { %808 = vmatpush1.bf16.msra.mxu0 %v1184_v4 }
  0x5a   : > { %809 = vmatprep.subr.bf16.mxu0 %v1185_v5 }
  0x5b   : > { %849 = vmatpush1.bf16.msra.mxu1 %v1220_v14 }
  0x5c   : > { %850 = vmatprep.subr.bf16.mxu1 %v1224_v15 }
  0x5d   : > { %810 = vmatpush1.bf16.msra.mxu0 %v1187_v8 }
  0x5e   : > { %811 = vmatprep.subr.bf16.mxu0 %v1191_v9 }
  0x5f   : > { %851 = vmatpush1.bf16.msra.mxu1 %v1226_v19 }
  0x60   : > { %852 = vmatprep.subr.bf16.mxu1 %v1230_v21 }
  0x61   : > { %812 = vmatpush1.bf16.msra.mxu0 %v1193_v12 }
  0x62   : > { %813 = vmatprep.subr.bf16.mxu0 %v1197_v13 }
  0x63   : > { %853 = vmatpush1.bf16.msra.mxu1 %v1232_v24 }
  0x65   : > { %814 = vmatpush2.bf16.msra.mxu0 %v1199_v16 }
  0x66   : > { %815 = vmatprep.subr.bf16.mxu0 %v1203_v17  ;;  %871 = vmatmul.mubr.bf16.vlgmr.msra.gmra.mxu1 %v1236_v27 }
  0x69   : > { %816 = vmatpush2.bf16.msra.mxu0 %v1205_v22 }
  0x6a   : > { %817 = vmatprep.subr.bf16.mxu0 %v1209_v23 }
  0x6d   : > { %818 = vmatpush2.bf16.msra.mxu0 %v1211_v25 }
  0x6e   : > { %819 = vmatprep.subr.bf16.mxu0 %v1215_v26 }
  0x71   : > { %820 = vmatpush2.bf16.msra.mxu0 %v1217_v28 }
  0x72   : > { %821 = vmatprep.subr.bf16.mxu0 %v1221_v29 }
  0x75   : > { %822 = vmatpush2.bf16.msra.mxu0 %v1223_v30 }
  0x76   : > { %823 = vmatprep.subr.bf16.mxu0 %v1227_v31 }
  0x79   : > { %824 = vmatpush2.bf16.msra.mxu0 %v1229_v32 }
  0x7a   : > { %825 = vmatprep.subr.bf16.mxu0 %v1233_v33 }
  0x7d   : > { %826 = vmatpush2.bf16.msra.mxu0 %v1235_v34 }
  0x7e   : > { %827 = vmatprep.subr.bf16.mxu0 %v1237_v35 }
  0x81   : > { %828 = vmatpush2.bf16.msra.mxu0 %v1239_v36 }
  0x84   : > { %830 = vmatmul.mubr.bf16.vlgmr.msra.gmra.mxu0 %v1050_v37 }
 0x126   : > { %v872_v38 = vpop.f32.mrf.mxu1 }
 0x128   : > { %v874_v39 = vpop.f32.mrf.mxu1 }
 0x12a   : > { %v876_v40 = vpop.f32.mrf.mxu1 }
 0x12c   : > { %v877_v41 = vpop.f32.mrf.mxu1 }
 0x144   : > { %v831_v43 = vpop.f32.mrf.mxu0 }
 0x145   : > { %v873_v44 = vadd.f32 %v872_v38, %v831_v43 }
 0x146   : > { %v833_v46 = vpop.f32.mrf.mxu0 }
 0x147   : > { %v879_v47 = vadd.f32 %v873_v44, %v494_v42  ;;  %v875_v48 = vadd.f32 %v874_v39, %v833_v46  ;;  %886 = sbr.rel (%p1101_p13) target bundleno = 347 (0x15b), region = 78 }
 0x148   : > { %v835_v49 = vpop.f32.mrf.mxu0 }
 0x149   : > { %881 = vst [vmem:[#allocation2] sm:$0xff] %v879_v47  ;;  %v880_v50 = vadd.f32 %v875_v48, %v495_v45 }
 0x14a   : > { %v836_v51 = vpop.f32.mrf.mxu0 }
 0x14b   : > { %882 = vst [vmem:[#allocation2 + $0x8] sm:$0xff] %v880_v50 }
 0x14c   : > { %v891_v52 = vlaneseq  ;;  %v889_v54 = vld [vmem:[%s475_s12] sm:$0x3] }
 0x14e   : > { %v892_v53 = vshrl.u32 %v891_v52, 7 }
 0x150   : > { %v893_v55 = vsub.s32 0, %v892_v53  ;;  %v897_v56 = vsub.s32 1, %v892_v53  ;;  %v887_v57 = vld [vmem:[#allocation2] sm:$0xff] }
 0x152   : > { %v888_v58 = vld [vmem:[#allocation2 + $0x8] sm:$0xff]  ;;  %v894_v59 = vrot.slane %v889_v54, %v893_v55  ;;  %v898_v60 = vrot.slane %v889_v54, %v897_v56 }
 0x154   : > { %v901_v61 = vadd.f32 %v894_v59, %v887_v57  ;;  %v902_v62 = vadd.f32 %v898_v60, %v888_v58 }
 0x156   : > { %v903_v63 = vmax.f32 %v901_v61, 0.0  ;;  %v904_v0 = vmax.f32 %v902_v62, 0.0 }
 0x158   : > { %v1106_v1 = vpack.c.bf16 %v904_v0, %v903_v63 }
 0x15a   : > { %913 = vst [vmem:[%s1500_s4] sm:$0xff] %v1106_v1 }
 0x15b PF: > { %s13_s18 = sadd.s32 1, %s1296_s18   ;;  %s1587_s12 = smov %s1276_s13 }
 0x15c   : > { %p10_p0 = scmp.ge.s32.totalorder %s13_s18, 14   ;;  %s1588_s13 = smov %s1371_s25 }
 0x15d   : > { %s1589_s14 = smov %s1288_s16  ;;  %s1590_s15 = smov %s1292_s17 }
 0x15e   : > { %s1591_s16 = smov %s1594_s19  ;;  %s1592_s17 = smov %s1598_s20 }
 0x15f   :  { %12 = sbr.rel (!%p10_p0) target bundleno = 4 (0x4), region = 119 }

// kernel: resnet18_forward.39
= control target key start
LH: loop header
LB: loop body
LE: loop exit
PB: predicated region body
PF: predicated region fallthrough
CT: control target
= control target key end

     0   :  { %s1029_s12 = smov 0   ;;  %s1031_s13 = smov 0   ;;  %s1208_s0 = inlined_call_operand.vmem [shape: bf16[8,256], index: 0, kind: input, shape index: {}]   ;;  %s1209_s1 = inlined_call_operand.vmem [shape: bf16[256,512], index: 1, kind: input, shape index: {}]   ;;  %s1210_s2 = inlined_call_operand.vmem [shape: f32[1,512], index: 2, kind: input, shape index: {}]   ;;  %s1211_s3 = inlined_call_operand.vmem [shape: bf16[8,512], index: 3, kind: output, shape index: {}]  }
   0x1   :  { %s1033_s14 = smov 0   ;;  %s1035_s15 = smov 0  }
   0x2   :  { %s1037_s16 = smov 0  }
   0x3 LB: > { %s28_s17 = sadd.s32 1, %s1003_s15  ;;  %p76_p1 = scmp.ne.s32.totalorder %s995_s13, %s991_s12  ;;  %s1007_s16 = sphi %s1037_s16, %s13_s16   ;;  %s1003_s15 = sphi %s1035_s15, %s1215_s15   ;;  %s999_s14 = sphi %s1033_s14, %s1214_s14   ;;  %s995_s13 = sphi %s1031_s13, %s1213_s13   ;;  %s991_s12 = sphi %s1029_s12, %s1212_s12  }
   0x4   : > { %p30_p0 = scmp.ge.s32.totalorder %s28_s17, 2  ;;  %p77_p2 = scmp.eq.s32.totalorder %s1007_s16, 0 }
   0x5   : > { %s69_s19 = sadd.s32 1, %s995_s13  ;;  %p831_p5 = scmp.ge.s32.totalorder %s1007_s16, 2 }
   0x6   : > { %s1217_s17 = smov (%p30_p0, %s28_s17), 0  ;;  %p78_p3 = por %p77_p2, %p76_p1 }
   0x7   : > { %s65_s18 = ssub.s32 %s1003_s15, %s1217_s17  ;;  %169 = sbr.rel (%p831_p5) target bundleno = 32 (0x20), region = 20 }
   0x8   : > { %p67_p4 = scmp.eq.s32.totalorder %s65_s18, 0 }
   0xa   : > { %s1064_s20 = scalar_select %p67_p4, %s995_s13, %s69_s19  }
   0xc   : > { %172 = sbr.rel (!%p78_p3) target bundleno = 32 (0x20), region = 24  ;;  %s174_s21 = sand.u32 (%p78_p3), 1, %s995_s13  }
   0xd   : > { %s877_s22 = sshll.u32 (%p78_p3), %s1003_s15, 3  ;;  %s832_s23 = sshll.u32 (%p78_p3), %s174_s21, 8 }
   0xe   : > { %s1072_s26 = scalar_lea.vmem (%p78_p3), %s1209_s1, %s877_s22  ;;  %s1077_s27 = scalar_lea.vmem (%p78_p3), [#allocation3], %s832_s23 }
   0xf   : > { %v273_v0 = vld [vmem:[%s1072_s26] sm:$0xff] (%p78_p3)  ;;  %v275_v1 = vld [vmem:[%s1072_s26 + $0x10] sm:$0xff] (%p78_p3) }
  0x10   : > { %v277_v2 = vld [vmem:[%s1072_s26 + $0x20] sm:$0xff] (%p78_p3)  ;;  %274 = vst [vmem:[%s1077_s27] sm:$0xff] (%p78_p3), %v273_v0  ;;  %276 = vst [vmem:[%s1077_s27 + $0x8] sm:$0xff] (%p78_p3), %v275_v1  ;;  %v279_v3 = vld [vmem:[%s1072_s26 + $0x30] sm:$0xff] (%p78_p3) }
  0x11   : > { %278 = vst [vmem:[%s1077_s27 + $0x10] sm:$0xff] %v277_v2  ;;  %v281_v4 = vld [vmem:[%s1072_s26 + $0x40] sm:$0xff]  ;;  %v283_v5 = vld [vmem:[%s1072_s26 + $0x50] sm:$0xff]  ;;  %280 = vst [vmem:[%s1077_s27 + $0x18] sm:$0xff] %v279_v3 }
  0x12   : > { %282 = vst [vmem:[%s1077_s27 + $0x20] sm:$0xff] %v281_v4  ;;  %284 = vst [vmem:[%s1077_s27 + $0x28] sm:$0xff] %v283_v5  ;;  %v285_v6 = vld [vmem:[%s1072_s26 + $0x60] sm:$0xff]  ;;  %v287_v7 = vld [vmem:[%s1072_s26 + $0x70] sm:$0xff] }
  0x13   : > { %v289_v8 = vld [vmem:[%s1072_s26 + $0x80] sm:$0xff]  ;;  %286 = vst [vmem:[%s1077_s27 + $0x30] sm:$0xff] %v285_v6  ;;  %288 = vst [vmem:[%s1077_s27 + $0x38] sm:$0xff] %v287_v7  ;;  %v291_v9 = vld [vmem:[%s1072_s26 + $0x90] sm:$0xff] }
  0x14   : > { %290 = vst [vmem:[%s1077_s27 + $0x40] sm:$0xff] %v289_v8  ;;  %v293_v10 = vld [vmem:[%s1072_s26 + $0xa0] sm:$0xff]  ;;  %v295_v11 = vld [vmem:[%s1072_s26 + $0xb0] sm:$0xff]  ;;  %292 = vst [vmem:[%s1077_s27 + $0x48] sm:$0xff] %v291_v9 }
  0x15   : > { %294 = vst [vmem:[%s1077_s27 + $0x50] sm:$0xff] %v293_v10  ;;  %296 = vst [vmem:[%s1077_s27 + $0x58] sm:$0xff] %v295_v11  ;;  %v297_v12 = vld [vmem:[%s1072_s26 + $0xc0] sm:$0xff]  ;;  %v299_v13 = vld [vmem:[%s1072_s26 + $0xd0] sm:$0xff] }
  0x16   : > { %v301_v14 = vld [vmem:[%s1072_s26 + $0xe0] sm:$0xff]  ;;  %298 = vst [vmem:[%s1077_s27 + $0x60] sm:$0xff] %v297_v12  ;;  %300 = vst [vmem:[%s1077_s27 + $0x68] sm:$0xff] %v299_v13  ;;  %v303_v15 = vld [vmem:[%s1072_s26 + $0xf0] sm:$0xff] }
  0x17   : > { %302 = vst [vmem:[%s1077_s27 + $0x70] sm:$0xff] %v301_v14  ;;  %v305_v16 = vld [vmem:[%s1072_s26 + $0x100] sm:$0xff]  ;;  %v307_v17 = vld [vmem:[%s1072_s26 + $0x110] sm:$0xff]  ;;  %304 = vst [vmem:[%s1077_s27 + $0x78] sm:$0xff] %v303_v15 }
  0x18   : > { %306 = vst [vmem:[%s1077_s27 + $0x80] sm:$0xff] %v305_v16  ;;  %308 = vst [vmem:[%s1077_s27 + $0x88] sm:$0xff] %v307_v17  ;;  %v309_v18 = vld [vmem:[%s1072_s26 + $0x120] sm:$0xff]  ;;  %v311_v19 = vld [vmem:[%s1072_s26 + $0x130] sm:$0xff] }
  0x19   : > { %v313_v20 = vld [vmem:[%s1072_s26 + $0x140] sm:$0xff]  ;;  %310 = vst [vmem:[%s1077_s27 + $0x90] sm:$0xff] %v309_v18  ;;  %312 = vst [vmem:[%s1077_s27 + $0x98] sm:$0xff] %v311_v19  ;;  %v315_v21 = vld [vmem:[%s1072_s26 + $0x150] sm:$0xff] }
  0x1a   : > { %314 = vst [vmem:[%s1077_s27 + $0xa0] sm:$0xff] %v313_v20  ;;  %v317_v22 = vld [vmem:[%s1072_s26 + $0x160] sm:$0xff]  ;;  %v319_v23 = vld [vmem:[%s1072_s26 + $0x170] sm:$0xff]  ;;  %316 = vst [vmem:[%s1077_s27 + $0xa8] sm:$0xff] %v315_v21 }
  0x1b   : > { %318 = vst [vmem:[%s1077_s27 + $0xb0] sm:$0xff] %v317_v22  ;;  %320 = vst [vmem:[%s1077_s27 + $0xb8] sm:$0xff] %v319_v23  ;;  %v321_v24 = vld [vmem:[%s1072_s26 + $0x180] sm:$0xff]  ;;  %v323_v25 = vld [vmem:[%s1072_s26 + $0x190] sm:$0xff] }
  0x1c   : > { %v325_v26 = vld [vmem:[%s1072_s26 + $0x1a0] sm:$0xff]  ;;  %322 = vst [vmem:[%s1077_s27 + $0xc0] sm:$0xff] %v321_v24  ;;  %324 = vst [vmem:[%s1077_s27 + $0xc8] sm:$0xff] %v323_v25  ;;  %v327_v27 = vld [vmem:[%s1072_s26 + $0x1b0] sm:$0xff] }
  0x1d   : > { %326 = vst [vmem:[%s1077_s27 + $0xd0] sm:$0xff] %v325_v26  ;;  %v329_v28 = vld [vmem:[%s1072_s26 + $0x1c0] sm:$0xff]  ;;  %v331_v29 = vld [vmem:[%s1072_s26 + $0x1d0] sm:$0xff]  ;;  %328 = vst [vmem:[%s1077_s27 + $0xd8] sm:$0xff] %v327_v27 }
  0x1e   : > { %330 = vst [vmem:[%s1077_s27 + $0xe0] sm:$0xff] %v329_v28  ;;  %332 = vst [vmem:[%s1077_s27 + $0xe8] sm:$0xff] %v331_v29  ;;  %v333_v30 = vld [vmem:[%s1072_s26 + $0x1e0] sm:$0xff]  ;;  %v335_v31 = vld [vmem:[%s1072_s26 + $0x1f0] sm:$0xff] }
  0x1f   : > { %334 = vst [vmem:[%s1077_s27 + $0xf0] sm:$0xff] %v333_v30  ;;  %336 = vst [vmem:[%s1077_s27 + $0xf8] sm:$0xff] %v335_v31 }
  0x20 PF: > { %p835_p6 = scmp.ge.s32.totalorder %s1007_s16, 1  ;;  %p349_p7 = scmp.lt.s32.totalorder %s1007_s16, 3 }
  0x22   : > { %p350_p8 = pnand %p835_p6, %p349_p7 }
  0x23   : > { %s356_s28 = sand.u32 (!%p350_p8), 1, %s991_s12   ;;  %s837_s6 = sshll.u32 (!%p350_p8), %s999_s14, 1 }
  0x24   : > { %353 = sbr.rel (%p350_p8) target bundleno = 306 (0x132), region = 66  ;;  %s836_s4 = sshll.u32 (!%p350_p8), %s356_s28, 8 }
  0x25   : > { %s1150_s5 = scalar_lea.vmem (!%p350_p8), [#allocation3], %s836_s4  ;;  %p409_p9 = scmp.lt.s32.totalorder (!%p350_p8), %s837_s6, 3 }
  0x29   : > { %v1146_v32 = vld [vmem:[%s1208_s0] sm:$0xff]  ;;  %v919_v34 = vld [vmem:[%s1150_s5 + $0x74] ss:$8 sps:$4 sm:$0xff]   ;;  %v921_v35 = vld [vmem:[%s1150_s5 + $0x70] ss:$8 sps:$4 sm:$0xff]   ;;  %v683_v3 = vlaneseq  ;;  %s1219_s6 = smov (!%p409_p9, %s837_s6), 3 }
  0x2a   : > { %v841_v33 = vcombine.high %v1146_v32, %v1146_v32  ;;  %631 = vmatprep.subr.bf16.mxu0 %v919_v34  ;;  %v922_v36 = vld [vmem:[%s1150_s5 + $0x64] ss:$8 sps:$4 sm:$0xff]   ;;  %v924_v37 = vld [vmem:[%s1150_s5 + $0x60] ss:$8 sps:$4 sm:$0xff]   ;;  %v925_v38 = vld [vmem:[%s1150_s5 + $0x54] ss:$8 sps:$4 sm:$0xff]   ;;  %v840_v2 = vcombine.low %v1146_v32, %v1146_v32  ;;  %s411_s9 = scalar_lea.vmem %s1210_s2, %s1219_s6 }
  0x2b   : > { %632 = vmatpush1.bf16.msra.mxu0 %v921_v35  ;;  %v927_v39 = vld [vmem:[%s1150_s5 + $0x50] ss:$8 sps:$4 sm:$0xff]   ;;  %v928_v40 = vld [vmem:[%s1150_s5 + $0x44] ss:$8 sps:$4 sm:$0xff]   ;;  %v930_v41 = vld [vmem:[%s1150_s5 + $0x40] ss:$8 sps:$4 sm:$0xff]  }
  0x2c   : > { %663 = vmatprep.mubr.bf16.mxu0 %v841_v33  ;;  %633 = vmatprep.subr.bf16.mxu0 %v922_v36  ;;  %v931_v42 = vld [vmem:[%s1150_s5 + $0x34] ss:$8 sps:$4 sm:$0xff]   ;;  %v933_v43 = vld [vmem:[%s1150_s5 + $0x30] ss:$8 sps:$4 sm:$0xff]   ;;  %v934_v44 = vld [vmem:[%s1150_s5 + $0x24] ss:$8 sps:$4 sm:$0xff]  }
  0x2d   : > { %v936_v45 = vld [vmem:[%s1150_s5 + $0x20] ss:$8 sps:$4 sm:$0xff]   ;;  %v937_v46 = vld [vmem:[%s1150_s5 + $0x14] ss:$8 sps:$4 sm:$0xff]   ;;  %v939_v47 = vld [vmem:[%s1150_s5 + $0x10] ss:$8 sps:$4 sm:$0xff]  }
  0x2e   : > { %v940_v48 = vld [vmem:[%s1150_s5 + $0x4] ss:$8 sps:$4 sm:$0xff]   ;;  %v942_v49 = vld [vmem:[%s1150_s5] ss:$8 sps:$4 sm:$0xff]   ;;  %v943_v50 = vld [vmem:[%s1150_s5 + $0xf4] ss:$8 sps:$4 sm:$0xff]  }
  0x2f   : > { %634 = vmatpush1.bf16.msra.mxu0 %v924_v37  ;;  %v945_v51 = vld [vmem:[%s1150_s5 + $0xf0] ss:$8 sps:$4 sm:$0xff]   ;;  %v946_v52 = vld [vmem:[%s1150_s5 + $0xe4] ss:$8 sps:$4 sm:$0xff]   ;;  %v948_v53 = vld [vmem:[%s1150_s5 + $0xe0] ss:$8 sps:$4 sm:$0xff]  }
  0x30   : > { %635 = vmatprep.subr.bf16.mxu0 %v925_v38  ;;  %v949_v54 = vld [vmem:[%s1150_s5 + $0xd4] ss:$8 sps:$4 sm:$0xff]   ;;  %v951_v55 = vld [vmem:[%s1150_s5 + $0xd0] ss:$8 sps:$4 sm:$0xff]   ;;  %v952_v56 = vld [vmem:[%s1150_s5 + $0xc4] ss:$8 sps:$4 sm:$0xff]  }
  0x31   : > { %v954_v57 = vld [vmem:[%s1150_s5 + $0xc0] ss:$8 sps:$4 sm:$0xff]   ;;  %v955_v58 = vld [vmem:[%s1150_s5 + $0xb4] ss:$8 sps:$4 sm:$0xff]   ;;  %v957_v59 = vld [vmem:[%s1150_s5 + $0xb0] ss:$8 sps:$4 sm:$0xff]  }
  0x32   : > { %v958_v60 = vld [vmem:[%s1150_s5 + $0xa4] ss:$8 sps:$4 sm:$0xff]   ;;  %v960_v61 = vld [vmem:[%s1150_s5 + $0xa0] ss:$8 sps:$4 sm:$0xff]   ;;  %v961_v62 = vld [vmem:[%s1150_s5 + $0x94] ss:$8 sps:$4 sm:$0xff]  }
  0x33   : > { %636 = vmatpush1.bf16.msra.mxu0 %v927_v39  ;;  %v963_v63 = vld [vmem:[%s1150_s5 + $0x90] ss:$8 sps:$4 sm:$0xff]   ;;  %v964_v0 = vld [vmem:[%s1150_s5 + $0x84] ss:$8 sps:$4 sm:$0xff]   ;;  %v966_v1 = vld [vmem:[%s1150_s5 + $0x80] ss:$8 sps:$4 sm:$0xff]  }
  0x34   : > { %637 = vmatprep.subr.bf16.mxu0 %v928_v40  ;;  %v684_v4 = vshrl.u32 %v683_v3, 7  ;;  %v681_v7 = vld [vmem:[%s411_s9] sm:$0x3]  ;;  %s839_s10 = sshll.u32 %s1219_s6, 2 }
  0x35   : > { %s421_s14 = scalar_lea.vmem %s1211_s3, %s839_s10 }
  0x36   : > { %v685_v5 = vsub.s32 0, %v684_v4  ;;  %v689_v6 = vsub.s32 1, %v684_v4 }
  0x37   : > { %638 = vmatpush1.bf16.msra.mxu0 %v930_v41 }
  0x38   : > { %639 = vmatprep.subr.bf16.mxu0 %v931_v42  ;;  %v686_v8 = vrot.slane %v681_v7, %v685_v5  ;;  %v690_v9 = vrot.slane %v681_v7, %v689_v6 }
  0x3b   : > { %640 = vmatpush1.bf16.msra.mxu0 %v933_v43 }
  0x3c   : > { %641 = vmatprep.subr.bf16.mxu0 %v934_v44 }
  0x3f   : > { %642 = vmatpush1.bf16.msra.mxu0 %v936_v45 }
  0x40   : > { %643 = vmatprep.subr.bf16.mxu0 %v937_v46 }
  0x43   : > { %644 = vmatpush1.bf16.msra.mxu0 %v939_v47 }
  0x44   : > { %645 = vmatprep.subr.bf16.mxu0 %v940_v48 }
  0x47   : > { %646 = vmatpush1.bf16.msra.mxu0 %v942_v49 }
  0x48   : > { %647 = vmatprep.subr.bf16.mxu0 %v943_v50 }
  0x4b   : > { %648 = vmatpush2.bf16.msra.mxu0 %v945_v51 }
  0x4c   : > { %649 = vmatprep.subr.bf16.mxu0 %v946_v52 }
  0x4f   : > { %650 = vmatpush2.bf16.msra.mxu0 %v948_v53 }
  0x50   : > { %651 = vmatprep.subr.bf16.mxu0 %v949_v54 }
  0x53   : > { %652 = vmatpush2.bf16.msra.mxu0 %v951_v55 }
  0x54   : > { %653 = vmatprep.subr.bf16.mxu0 %v952_v56 }
  0x57   : > { %654 = vmatpush2.bf16.msra.mxu0 %v954_v57 }
  0x58   : > { %655 = vmatprep.subr.bf16.mxu0 %v955_v58 }
  0x5b   : > { %656 = vmatpush2.bf16.msra.mxu0 %v957_v59 }
  0x5c   : > { %657 = vmatprep.subr.bf16.mxu0 %v958_v60 }
  0x5f   : > { %658 = vmatpush2.bf16.msra.mxu0 %v960_v61 }
  0x60   : > { %659 = vmatprep.subr.bf16.mxu0 %v961_v62 }
  0x63   : > { %660 = vmatpush2.bf16.msra.mxu0 %v963_v63 }
  0x64   : > { %661 = vmatprep.subr.bf16.mxu0 %v964_v0 }
  0x67   : > { %662 = vmatpush2.bf16.msra.mxu0 %v966_v1 }
  0x6a   : > { %664 = vmatmul.mubr.bf16.vlgmr.msra.gmra.mxu0 %v840_v2 }
 0x12a   : > { %v665_v10 = vpop.f32.mrf.mxu0 }
 0x12b   : > { %v693_v12 = vadd.f32 %v686_v8, %v665_v10 }
 0x12c   : > { %v667_v11 = vpop.f32.mrf.mxu0 }
 0x12d   : > { %v694_v13 = vadd.f32 %v690_v9, %v667_v11 }
 0x12e   : > { %v669_v14 = vpop.f32.mrf.mxu0 }
 0x12f   : > { %v878_v15 = vpack.c.bf16 %v694_v13, %v693_v12 }
 0x130   : > { %v670_v16 = vpop.f32.mrf.mxu0 }
 0x131   : > { %703 = vst [vmem:[%s421_s14] sm:$0xff] %v878_v15 }
 0x132 PF: > { %s13_s16 = sadd.s32 1, %s1007_s16   ;;  %s1212_s12 = smov %s995_s13 }
 0x133   : > { %p10_p10 = scmp.ge.s32.totalorder %s13_s16, 4   ;;  %s1213_s13 = smov %s1064_s20 }
 0x134   : > { %s1214_s14 = smov %s1003_s15  ;;  %s1215_s15 = smov %s1217_s17 }
 0x135   :  { %12 = sbr.rel (!%p10_p10) target bundleno = 3 (0x3), region = 119 }

// kernel: resnet18_forward.41
= control target key start
LH: loop header
LB: loop body
LE: loop exit
PB: predicated region body
PF: predicated region fallthrough
CT: control target
= control target key end

     0   :  { %s1617_s15 = smov 0   ;;  %s1619_s16 = smov 0   ;;  %s1934_s0 = inlined_call_operand.vmem [shape: bf16[8,4608], index: 0, kind: input, shape index: {}]   ;;  %s1935_s1 = inlined_call_operand.vmem [shape: bf16[4608,512], index: 1, kind: input, shape index: {}]   ;;  %s1936_s2 = inlined_call_operand.vmem [shape: f32[1,512], index: 2, kind: input, shape index: {}]   ;;  %s1937_s3 = inlined_call_operand.vmem [shape: bf16[8,512], index: 3, kind: input, shape index: {}]   ;;  %s1938_s4 = inlined_call_operand.vmem [shape: bf16[8,512], index: 4, kind: output, shape index: {}]  }
   0x1   :  { %s1621_s17 = smov 0   ;;  %s1623_s18 = smov 0  }
   0x2   :  { %s1625_s19 = smov 0   ;;  %s1627_s20 = smov 0  }
   0x3   :  { %s1629_s21 = smov 0  }
   0x4 LB: > { %s26_s22 = sadd.s32 1, %s1581_s19  ;;  %s29_s23 = sadd.s32 1, %s1585_s20  ;;  %s1589_s21 = sphi %s1629_s21, %s14_s21   ;;  %s1585_s20 = sphi %s1627_s20, %s1944_s20   ;;  %s1581_s19 = sphi %s1625_s19, %s1943_s19   ;;  %s1577_s18 = sphi %s1623_s18, %s1942_s18   ;;  %s1573_s17 = sphi %s1621_s17, %s1941_s17   ;;  %s1569_s16 = sphi %s1619_s16, %s1940_s16   ;;  %s1565_s15 = sphi %s1617_s15, %s1939_s15  }
   0x5   : > { %p27_p0 = scmp.ge.s32.totalorder %s26_s22, 9  ;;  %p77_p1 = scmp.ne.s32.totalorder %s1569_s16, %s1565_s15 }
   0x6   : > { %p78_p2 = scmp.eq.s32.totalorder %s1589_s21, 0  ;;  %s70_s27 = sadd.s32 1, %s1569_s16 }
   0x7   : > { %s1946_s22 = smov (%p27_p0, %s26_s22), 0  ;;  %s1948_s23 = smov (!%p27_p0, %s29_s23), %s1585_s20 }
   0x8   : > { %p79_p3 = por %p78_p2, %p77_p1  ;;  %p31_p4 = scmp.ge.s32.totalorder %s1948_s23, 2 }
   0x9   : > { %s65_s24 = ssub.s32 %s1581_s19, %s1946_s22  ;;  %p1288_p6 = scmp.ge.s32.totalorder %s1589_s21, 18 }
   0xa   : > { %s1950_s23 = smov (%p31_p4, %s1948_s23), 0 }
   0xb   : > { %s66_s25 = ssub.s32 %s1585_s20, %s1950_s23  ;;  %185 = sbr.rel (%p1288_p6) target bundleno = 55 (0x37), region = 16 }
   0xc   : > { %s67_s26 = sor.u32 %s66_s25, %s65_s24 }
   0xd   : > { %p68_p5 = scmp.eq.s32.totalorder %s67_s26, 0 }
   0xf   : > { %s1668_s28 = scalar_select %p68_p5, %s1569_s16, %s70_s27  }
  0x10   : > { %201 = sbr.rel (!%p79_p3) target bundleno = 55 (0x37), region = 24  ;;  %s203_s29 = sand.u32 (%p79_p3), 1, %s1569_s16  }
  0x11   : > { %s1291_s30 = sshll.u32 (%p79_p3), %s1585_s20, 1  ;;  %s1289_s5 = sshll.u32 (%p79_p3), %s203_s29, 9 }
  0x12   : > { %s1376_s6 = sshll.u32 (%p79_p3), %s1581_s19, 8  ;;  %s1682_s12 = scalar_lea.vmem (%p79_p3), [#allocation3], %s1289_s5 }
  0x13   : > { %s209_s7 = sadd.s32 (%p79_p3), %s1376_s6, %s1291_s30 }
  0x14   : > { %s1293_s8 = sshll.u32 (%p79_p3), %s209_s7, 2 }
  0x15   : > { %s1677_s11 = scalar_lea.vmem %s1935_s1, %s1293_s8 }
  0x16   : > { %v366_v0 = vld [vmem:[%s1677_s11] sm:$0xff]  ;;  %v368_v1 = vld [vmem:[%s1677_s11 + $0x10] sm:$0xff] }
  0x17   : > { %v370_v2 = vld [vmem:[%s1677_s11 + $0x20] sm:$0xff]  ;;  %367 = vst [vmem:[%s1682_s12] sm:$0xff] %v366_v0  ;;  %369 = vst [vmem:[%s1682_s12 + $0x8] sm:$0xff] %v368_v1  ;;  %v372_v3 = vld [vmem:[%s1677_s11 + $0x30] sm:$0xff] }
  0x18   : > { %371 = vst [vmem:[%s1682_s12 + $0x10] sm:$0xff] %v370_v2  ;;  %v374_v4 = vld [vmem:[%s1677_s11 + $0x40] sm:$0xff]  ;;  %v376_v5 = vld [vmem:[%s1677_s11 + $0x50] sm:$0xff]  ;;  %373 = vst [vmem:[%s1682_s12 + $0x18] sm:$0xff] %v372_v3 }
  0x19   : > { %375 = vst [vmem:[%s1682_s12 + $0x20] sm:$0xff] %v374_v4  ;;  %377 = vst [vmem:[%s1682_s12 + $0x28] sm:$0xff] %v376_v5  ;;  %v378_v6 = vld [vmem:[%s1677_s11 + $0x60] sm:$0xff]  ;;  %v380_v7 = vld [vmem:[%s1677_s11 + $0x70] sm:$0xff] }
  0x1a   : > { %v382_v8 = vld [vmem:[%s1677_s11 + $0x80] sm:$0xff]  ;;  %379 = vst [vmem:[%s1682_s12 + $0x30] sm:$0xff] %v378_v6  ;;  %381 = vst [vmem:[%s1682_s12 + $0x38] sm:$0xff] %v380_v7  ;;  %v384_v9 = vld [vmem:[%s1677_s11 + $0x90] sm:$0xff] }
  0x1b   : > { %383 = vst [vmem:[%s1682_s12 + $0x40] sm:$0xff] %v382_v8  ;;  %v386_v10 = vld [vmem:[%s1677_s11 + $0xa0] sm:$0xff]  ;;  %v388_v11 = vld [vmem:[%s1677_s11 + $0xb0] sm:$0xff]  ;;  %385 = vst [vmem:[%s1682_s12 + $0x48] sm:$0xff] %v384_v9 }
  0x1c   : > { %387 = vst [vmem:[%s1682_s12 + $0x50] sm:$0xff] %v386_v10  ;;  %389 = vst [vmem:[%s1682_s12 + $0x58] sm:$0xff] %v388_v11  ;;  %v390_v12 = vld [vmem:[%s1677_s11 + $0xc0] sm:$0xff]  ;;  %v392_v13 = vld [vmem:[%s1677_s11 + $0xd0] sm:$0xff] }
  0x1d   : > { %v394_v14 = vld [vmem:[%s1677_s11 + $0xe0] sm:$0xff]  ;;  %391 = vst [vmem:[%s1682_s12 + $0x60] sm:$0xff] %v390_v12  ;;  %393 = vst [vmem:[%s1682_s12 + $0x68] sm:$0xff] %v392_v13  ;;  %v396_v15 = vld [vmem:[%s1677_s11 + $0xf0] sm:$0xff] }
  0x1e   : > { %395 = vst [vmem:[%s1682_s12 + $0x70] sm:$0xff] %v394_v14  ;;  %v398_v16 = vld [vmem:[%s1677_s11 + $0x100] sm:$0xff]  ;;  %v400_v17 = vld [vmem:[%s1677_s11 + $0x110] sm:$0xff]  ;;  %397 = vst [vmem:[%s1682_s12 + $0x78] sm:$0xff] %v396_v15 }
  0x1f   : > { %399 = vst [vmem:[%s1682_s12 + $0x80] sm:$0xff] %v398_v16  ;;  %401 = vst [vmem:[%s1682_s12 + $0x88] sm:$0xff] %v400_v17  ;;  %v402_v18 = vld [vmem:[%s1677_s11 + $0x120] sm:$0xff]  ;;  %v404_v19 = vld [vmem:[%s1677_s11 + $0x130] sm:$0xff] }
  0x20   : > { %v406_v20 = vld [vmem:[%s1677_s11 + $0x140] sm:$0xff]  ;;  %403 = vst [vmem:[%s1682_s12 + $0x90] sm:$0xff] %v402_v18  ;;  %405 = vst [vmem:[%s1682_s12 + $0x98] sm:$0xff] %v404_v19  ;;  %v408_v21 = vld [vmem:[%s1677_s11 + $0x150] sm:$0xff] }
  0x21   : > { %407 = vst [vmem:[%s1682_s12 + $0xa0] sm:$0xff] %v406_v20  ;;  %v410_v22 = vld [vmem:[%s1677_s11 + $0x160] sm:$0xff]  ;;  %v412_v23 = vld [vmem:[%s1677_s11 + $0x170] sm:$0xff]  ;;  %409 = vst [vmem:[%s1682_s12 + $0xa8] sm:$0xff] %v408_v21 }
  0x22   : > { %411 = vst [vmem:[%s1682_s12 + $0xb0] sm:$0xff] %v410_v22  ;;  %413 = vst [vmem:[%s1682_s12 + $0xb8] sm:$0xff] %v412_v23  ;;  %v414_v24 = vld [vmem:[%s1677_s11 + $0x180] sm:$0xff]  ;;  %v416_v25 = vld [vmem:[%s1677_s11 + $0x190] sm:$0xff] }
  0x23   : > { %v418_v26 = vld [vmem:[%s1677_s11 + $0x1a0] sm:$0xff]  ;;  %415 = vst [vmem:[%s1682_s12 + $0xc0] sm:$0xff] %v414_v24  ;;  %417 = vst [vmem:[%s1682_s12 + $0xc8] sm:$0xff] %v416_v25  ;;  %v420_v27 = vld [vmem:[%s1677_s11 + $0x1b0] sm:$0xff] }
  0x24   : > { %419 = vst [vmem:[%s1682_s12 + $0xd0] sm:$0xff] %v418_v26  ;;  %v422_v28 = vld [vmem:[%s1677_s11 + $0x1c0] sm:$0xff]  ;;  %v424_v29 = vld [vmem:[%s1677_s11 + $0x1d0] sm:$0xff]  ;;  %421 = vst [vmem:[%s1682_s12 + $0xd8] sm:$0xff] %v420_v27 }
  0x25   : > { %423 = vst [vmem:[%s1682_s12 + $0xe0] sm:$0xff] %v422_v28  ;;  %425 = vst [vmem:[%s1682_s12 + $0xe8] sm:$0xff] %v424_v29  ;;  %v426_v30 = vld [vmem:[%s1677_s11 + $0x1e0] sm:$0xff]  ;;  %v428_v31 = vld [vmem:[%s1677_s11 + $0x1f0] sm:$0xff] }
  0x26   : > { %v430_v32 = vld [vmem:[%s1677_s11 + $0x200] sm:$0xff]  ;;  %427 = vst [vmem:[%s1682_s12 + $0xf0] sm:$0xff] %v426_v30  ;;  %429 = vst [vmem:[%s1682_s12 + $0xf8] sm:$0xff] %v428_v31  ;;  %v432_v33 = vld [vmem:[%s1677_s11 + $0x210] sm:$0xff] }
  0x27   : > { %431 = vst [vmem:[%s1682_s12 + $0x100] sm:$0xff] %v430_v32  ;;  %v434_v34 = vld [vmem:[%s1677_s11 + $0x220] sm:$0xff]  ;;  %v436_v35 = vld [vmem:[%s1677_s11 + $0x230] sm:$0xff]  ;;  %433 = vst [vmem:[%s1682_s12 + $0x108] sm:$0xff] %v432_v33 }
  0x28   : > { %435 = vst [vmem:[%s1682_s12 + $0x110] sm:$0xff] %v434_v34  ;;  %437 = vst [vmem:[%s1682_s12 + $0x118] sm:$0xff] %v436_v35  ;;  %v438_v36 = vld [vmem:[%s1677_s11 + $0x240] sm:$0xff]  ;;  %v440_v37 = vld [vmem:[%s1677_s11 + $0x250] sm:$0xff] }
  0x29   : > { %v442_v38 = vld [vmem:[%s1677_s11 + $0x260] sm:$0xff]  ;;  %439 = vst [vmem:[%s1682_s12 + $0x120] sm:$0xff] %v438_v36  ;;  %441 = vst [vmem:[%s1682_s12 + $0x128] sm:$0xff] %v440_v37  ;;  %v444_v39 = vld [vmem:[%s1677_s11 + $0x270] sm:$0xff] }
  0x2a   : > { %443 = vst [vmem:[%s1682_s12 + $0x130] sm:$0xff] %v442_v38  ;;  %v446_v40 = vld [vmem:[%s1677_s11 + $0x280] sm:$0xff]  ;;  %v448_v41 = vld [vmem:[%s1677_s11 + $0x290] sm:$0xff]  ;;  %445 = vst [vmem:[%s1682_s12 + $0x138] sm:$0xff] %v444_v39 }
  0x2b   : > { %447 = vst [vmem:[%s1682_s12 + $0x140] sm:$0xff] %v446_v40  ;;  %449 = vst [vmem:[%s1682_s12 + $0x148] sm:$0xff] %v448_v41  ;;  %v450_v42 = vld [vmem:[%s1677_s11 + $0x2a0] sm:$0xff]  ;;  %v452_v43 = vld [vmem:[%s1677_s11 + $0x2b0] sm:$0xff] }
  0x2c   : > { %v454_v44 = vld [vmem:[%s1677_s11 + $0x2c0] sm:$0xff]  ;;  %451 = vst [vmem:[%s1682_s12 + $0x150] sm:$0xff] %v450_v42  ;;  %453 = vst [vmem:[%s1682_s12 + $0x158] sm:$0xff] %v452_v43  ;;  %v456_v45 = vld [vmem:[%s1677_s11 + $0x2d0] sm:$0xff] }
  0x2d   : > { %455 = vst [vmem:[%s1682_s12 + $0x160] sm:$0xff] %v454_v44  ;;  %v458_v46 = vld [vmem:[%s1677_s11 + $0x2e0] sm:$0xff]  ;;  %v460_v47 = vld [vmem:[%s1677_s11 + $0x2f0] sm:$0xff]  ;;  %457 = vst [vmem:[%s1682_s12 + $0x168] sm:$0xff] %v456_v45 }
  0x2e   : > { %459 = vst [vmem:[%s1682_s12 + $0x170] sm:$0xff] %v458_v46  ;;  %461 = vst [vmem:[%s1682_s12 + $0x178] sm:$0xff] %v460_v47  ;;  %v462_v48 = vld [vmem:[%s1677_s11 + $0x300] sm:$0xff]  ;;  %v464_v49 = vld [vmem:[%s1677_s11 + $0x310] sm:$0xff] }
  0x2f   : > { %v466_v50 = vld [vmem:[%s1677_s11 + $0x320] sm:$0xff]  ;;  %463 = vst [vmem:[%s1682_s12 + $0x180] sm:$0xff] %v462_v48  ;;  %465 = vst [vmem:[%s1682_s12 + $0x188] sm:$0xff] %v464_v49  ;;  %v468_v51 = vld [vmem:[%s1677_s11 + $0x330] sm:$0xff] }
  0x30   : > { %467 = vst [vmem:[%s1682_s12 + $0x190] sm:$0xff] %v466_v50  ;;  %v470_v52 = vld [vmem:[%s1677_s11 + $0x340] sm:$0xff]  ;;  %v472_v53 = vld [vmem:[%s1677_s11 + $0x350] sm:$0xff]  ;;  %469 = vst [vmem:[%s1682_s12 + $0x198] sm:$0xff] %v468_v51 }
  0x31   : > { %471 = vst [vmem:[%s1682_s12 + $0x1a0] sm:$0xff] %v470_v52  ;;  %473 = vst [vmem:[%s1682_s12 + $0x1a8] sm:$0xff] %v472_v53  ;;  %v474_v54 = vld [vmem:[%s1677_s11 + $0x360] sm:$0xff]  ;;  %v476_v55 = vld [vmem:[%s1677_s11 + $0x370] sm:$0xff] }
  0x32   : > { %v478_v56 = vld [vmem:[%s1677_s11 + $0x380] sm:$0xff]  ;;  %475 = vst [vmem:[%s1682_s12 + $0x1b0] sm:$0xff] %v474_v54  ;;  %477 = vst [vmem:[%s1682_s12 + $0x1b8] sm:$0xff] %v476_v55  ;;  %v480_v57 = vld [vmem:[%s1677_s11 + $0x390] sm:$0xff] }
  0x33   : > { %479 = vst [vmem:[%s1682_s12 + $0x1c0] sm:$0xff] %v478_v56  ;;  %v482_v58 = vld [vmem:[%s1677_s11 + $0x3a0] sm:$0xff]  ;;  %v484_v59 = vld [vmem:[%s1677_s11 + $0x3b0] sm:$0xff]  ;;  %481 = vst [vmem:[%s1682_s12 + $0x1c8] sm:$0xff] %v480_v57 }
  0x34   : > { %483 = vst [vmem:[%s1682_s12 + $0x1d0] sm:$0xff] %v482_v58  ;;  %485 = vst [vmem:[%s1682_s12 + $0x1d8] sm:$0xff] %v484_v59  ;;  %v486_v60 = vld [vmem:[%s1677_s11 + $0x3c0] sm:$0xff]  ;;  %v488_v61 = vld [vmem:[%s1677_s11 + $0x3d0] sm:$0xff] }
  0x35   : > { %v490_v62 = vld [vmem:[%s1677_s11 + $0x3e0] sm:$0xff]  ;;  %487 = vst [vmem:[%s1682_s12 + $0x1e0] sm:$0xff] %v486_v60  ;;  %489 = vst [vmem:[%s1682_s12 + $0x1e8] sm:$0xff] %v488_v61  ;;  %v492_v63 = vld [vmem:[%s1677_s11 + $0x3f0] sm:$0xff] }
  0x36   : > { %491 = vst [vmem:[%s1682_s12 + $0x1f0] sm:$0xff] %v490_v62  ;;  %493 = vst [vmem:[%s1682_s12 + $0x1f8] sm:$0xff] %v492_v63 }
  0x37 PF: > { %p1294_p7 = scmp.ge.s32.totalorder %s1589_s21, 1  ;;  %p519_p8 = scmp.lt.s32.totalorder %s1589_s21, 19 }
  0x39   : > { %p520_p9 = pnand %p1294_p7, %p519_p8 }
  0x3a   : > { %s526_s13 = sand.u32 (!%p520_p9), 1, %s1565_s15   ;;  %s1296_s14 = sshll.u32 (!%p520_p9), %s1573_s17, 2 }
  0x3b   : > { %523 = sbr.rel (%p520_p9) target bundleno = 358 (0x166), region = 70  ;;  %s1295_s24 = sshll.u32 (!%p520_p9), %s526_s13, 9 }
  0x3c   : > { %p580_p10 = scmp.lt.s32.totalorder (!%p520_p9), %s1296_s14, 35  ;;  %s1298_s25 = sshll.u32 (!%p520_p9), %s1577_s18, 1 }
  0x3d   : > { %p590_p11 = scmp.lt.s32.totalorder (!%p520_p9), %s1298_s25, 3  ;;  %s1836_s13 = scalar_lea.vmem (!%p520_p9), [#allocation3], %s1295_s24 }
  0x3e   : > { %p1303_p12 = scmp.ne.s32.totalorder (!%p520_p9), %s1573_s17, 0 }
  0x40   : > { %s1952_s14 = smov (!%p580_p10, %s1296_s14), 35  ;;  %s1954_s25 = smov (!%p590_p11, %s1298_s25), 3 }
  0x41   : > { %s1297_s26 = sshll.u32 %s1952_s14, 2  ;;  %s592_s15 = scalar_lea.vmem %s1936_s2, %s1954_s25 }
  0x42   : > { %s1817_s30 = scalar_lea.vmem %s1934_s0, %s1297_s26  ;;  %s1300_s7 = sshll.u32 %s1954_s25, 2 }
  0x43   : > { %s1829_s18 = scalar_lea.vmem %s1937_s3, %s1300_s7  ;;  %s1834_s12 = scalar_lea.vmem %s1938_s4, %s1300_s7 }
  0x44   : > { %617 = sbr.rel (%p1303_p12) target bundleno = 75 (0x4b), region = 78 }
  0x49   : > { %v1591_v0 = vmov 0.0  }
  0x4a   : > { %618 = vst [vmem:[#allocation2] sm:$0xff] %v1591_v0  ;;  %619 = vst [vmem:[#allocation2 + $0x8] sm:$0xff] %v1591_v0 }
  0x4b PF: > { %v1435_v1 = vld [vmem:[%s1836_s13 + $0x74] ss:$8 sps:$4 sm:$0xff]   ;;  %v1439_v3 = vld [vmem:[%s1836_s13 + $0x70] ss:$8 sps:$4 sm:$0xff]   ;;  %v1441_v5 = vld [vmem:[%s1836_s13 + $0x64] ss:$8 sps:$4 sm:$0xff]  }
  0x4c   : > { %v1437_v2 = vld [vmem:[%s1836_s13 + $0x174] ss:$8 sps:$4 sm:$0xff]   ;;  %1022 = vmatprep.subr.bf16.mxu0 %v1435_v1  ;;  %v1440_v4 = vld [vmem:[%s1836_s13 + $0x170] ss:$8 sps:$4 sm:$0xff]   ;;  %v1443_v6 = vld [vmem:[%s1836_s13 + $0x164] ss:$8 sps:$4 sm:$0xff]  }
  0x4d   : > { %1063 = vmatprep.subr.bf16.mxu1 %v1437_v2  ;;  %1023 = vmatpush1.bf16.msra.mxu0 %v1439_v3  ;;  %v1445_v7 = vld [vmem:[%s1836_s13 + $0x60] ss:$8 sps:$4 sm:$0xff]   ;;  %v1447_v9 = vld [vmem:[%s1836_s13 + $0x54] ss:$8 sps:$4 sm:$0xff]   ;;  %v1451_v11 = vld [vmem:[%s1836_s13 + $0x50] ss:$8 sps:$4 sm:$0xff]  }
  0x4e   : > { %1064 = vmatpush1.bf16.msra.mxu1 %v1440_v4  ;;  %1024 = vmatprep.subr.bf16.mxu0 %v1441_v5  ;;  %v1446_v8 = vld [vmem:[%s1836_s13 + $0x160] ss:$8 sps:$4 sm:$0xff]   ;;  %v1449_v10 = vld [vmem:[%s1836_s13 + $0x154] ss:$8 sps:$4 sm:$0xff]   ;;  %v1452_v12 = vld [vmem:[%s1836_s13 + $0x150] ss:$8 sps:$4 sm:$0xff]  }
  0x4f   : > { %1065 = vmatprep.subr.bf16.mxu1 %v1443_v6  ;;  %v1453_v13 = vld [vmem:[%s1836_s13 + $0x44] ss:$8 sps:$4 sm:$0xff]   ;;  %v1457_v15 = vld [vmem:[%s1836_s13 + $0x40] ss:$8 sps:$4 sm:$0xff]   ;;  %v1459_v17 = vld [vmem:[%s1836_s13 + $0x34] ss:$8 sps:$4 sm:$0xff]  }
  0x50   : > { %v1455_v14 = vld [vmem:[%s1836_s13 + $0x144] ss:$8 sps:$4 sm:$0xff]   ;;  %v1458_v16 = vld [vmem:[%s1836_s13 + $0x140] ss:$8 sps:$4 sm:$0xff]   ;;  %v1461_v18 = vld [vmem:[%s1836_s13 + $0x134] ss:$8 sps:$4 sm:$0xff]  }
  0x51   : > { %1025 = vmatpush1.bf16.msra.mxu0 %v1445_v7  ;;  %v1463_v19 = vld [vmem:[%s1836_s13 + $0x30] ss:$8 sps:$4 sm:$0xff]   ;;  %v1465_v21 = vld [vmem:[%s1836_s13 + $0x24] ss:$8 sps:$4 sm:$0xff]   ;;  %v1469_v23 = vld [vmem:[%s1836_s13 + $0x20] ss:$8 sps:$4 sm:$0xff]  }
  0x52   : > { %1066 = vmatpush1.bf16.msra.mxu1 %v1446_v8  ;;  %1026 = vmatprep.subr.bf16.mxu0 %v1447_v9  ;;  %v1464_v20 = vld [vmem:[%s1836_s13 + $0x130] ss:$8 sps:$4 sm:$0xff]   ;;  %v1467_v22 = vld [vmem:[%s1836_s13 + $0x124] ss:$8 sps:$4 sm:$0xff]   ;;  %v1470_v24 = vld [vmem:[%s1836_s13 + $0x120] ss:$8 sps:$4 sm:$0xff]  }
  0x53   : > { %1067 = vmatprep.subr.bf16.mxu1 %v1449_v10  ;;  %v1471_v25 = vld [vmem:[%s1836_s13 + $0x14] ss:$8 sps:$4 sm:$0xff]   ;;  %v1475_v27 = vld [vmem:[%s1836_s13 + $0x10] ss:$8 sps:$4 sm:$0xff]   ;;  %v1477_v29 = vld [vmem:[%s1836_s13 + $0x4] ss:$8 sps:$4 sm:$0xff]  }
  0x54   : > { %v1473_v26 = vld [vmem:[%s1836_s13 + $0x114] ss:$8 sps:$4 sm:$0xff]   ;;  %v1476_v28 = vld [vmem:[%s1836_s13 + $0x110] ss:$8 sps:$4 sm:$0xff]   ;;  %v1479_v30 = vld [vmem:[%s1836_s13 + $0x104] ss:$8 sps:$4 sm:$0xff]  }
  0x55   : > { %1027 = vmatpush1.bf16.msra.mxu0 %v1451_v11  ;;  %v1481_v31 = vld [vmem:[%s1836_s13] ss:$8 sps:$4 sm:$0xff]   ;;  %v1483_v33 = vld [vmem:[%s1836_s13 + $0xf4] ss:$8 sps:$4 sm:$0xff]   ;;  %v1487_v35 = vld [vmem:[%s1836_s13 + $0xf0] ss:$8 sps:$4 sm:$0xff]  }
  0x56   : > { %1068 = vmatpush1.bf16.msra.mxu1 %v1452_v12  ;;  %1028 = vmatprep.subr.bf16.mxu0 %v1453_v13  ;;  %v1482_v32 = vld [vmem:[%s1836_s13 + $0x100] ss:$8 sps:$4 sm:$0xff]   ;;  %v1485_v34 = vld [vmem:[%s1836_s13 + $0x1f4] ss:$8 sps:$4 sm:$0xff]   ;;  %v1488_v36 = vld [vmem:[%s1836_s13 + $0x1f0] ss:$8 sps:$4 sm:$0xff]  }
  0x57   : > { %1069 = vmatprep.subr.bf16.mxu1 %v1455_v14  ;;  %v1489_v37 = vld [vmem:[%s1836_s13 + $0xe4] ss:$8 sps:$4 sm:$0xff]   ;;  %v1493_v39 = vld [vmem:[%s1836_s13 + $0xe0] ss:$8 sps:$4 sm:$0xff]   ;;  %v1495_v41 = vld [vmem:[%s1836_s13 + $0xd4] ss:$8 sps:$4 sm:$0xff]  }
  0x58   : > { %v1491_v38 = vld [vmem:[%s1836_s13 + $0x1e4] ss:$8 sps:$4 sm:$0xff]   ;;  %v1494_v40 = vld [vmem:[%s1836_s13 + $0x1e0] ss:$8 sps:$4 sm:$0xff]   ;;  %v1497_v42 = vld [vmem:[%s1836_s13 + $0x1d4] ss:$8 sps:$4 sm:$0xff]  }
  0x59   : > { %1029 = vmatpush1.bf16.msra.mxu0 %v1457_v15  ;;  %v1499_v43 = vld [vmem:[%s1836_s13 + $0xd0] ss:$8 sps:$4 sm:$0xff]   ;;  %v1501_v45 = vld [vmem:[%s1836_s13 + $0xc4] ss:$8 sps:$4 sm:$0xff]   ;;  %v1505_v50 = vld [vmem:[%s1836_s13 + $0xc0] ss:$8 sps:$4 sm:$0xff]  }
  0x5a   : > { %1070 = vmatpush1.bf16.msra.mxu1 %v1458_v16  ;;  %1030 = vmatprep.subr.bf16.mxu0 %v1459_v17  ;;  %v1500_v44 = vld [vmem:[%s1836_s13 + $0x1d0] ss:$8 sps:$4 sm:$0xff]   ;;  %v1503_v46 = vld [vmem:[%s1836_s13 + $0x1c4] ss:$8 sps:$4 sm:$0xff]   ;;  %v1506_v51 = vld [vmem:[%s1836_s13 + $0x1c0] ss:$8 sps:$4 sm:$0xff]  }
  0x5b   : > { %1071 = vmatprep.subr.bf16.mxu1 %v1461_v18  ;;  %v622_v47 = vld [vmem:[%s1817_s30] sm:$0xff]  ;;  %v623_v49 = vld [vmem:[%s1817_s30 + $0x8] sm:$0xff]  ;;  %v1513_v57 = vld [vmem:[%s1836_s13 + $0xa4] ss:$8 sps:$4 sm:$0xff]   ;;  %p1372_p13 = scmp.ne.s32.totalorder %s1573_s17, 8 }
  0x5c   : > { %v1305_v48 = vcombine.high %v622_v47, %v622_v47  ;;  %v1307_v52 = vcombine.high %v623_v49, %v623_v49  ;;  %v1507_v53 = vld [vmem:[%s1836_s13 + $0xb4] ss:$8 sps:$4 sm:$0xff]   ;;  %v1511_v55 = vld [vmem:[%s1836_s13 + $0xb0] ss:$8 sps:$4 sm:$0xff]   ;;  %v1515_v58 = vld [vmem:[%s1836_s13 + $0x1a4] ss:$8 sps:$4 sm:$0xff]   ;;  %v1304_v5 = vcombine.low %v622_v47, %v622_v47  ;;  %v1306_v6 = vcombine.low %v623_v49, %v623_v49 }
  0x5d   : > { %1031 = vmatpush1.bf16.msra.mxu0 %v1463_v19  ;;  %v1509_v54 = vld [vmem:[%s1836_s13 + $0x1b4] ss:$8 sps:$4 sm:$0xff]   ;;  %v1512_v56 = vld [vmem:[%s1836_s13 + $0x1b0] ss:$8 sps:$4 sm:$0xff]   ;;  %v1517_v59 = vld [vmem:[%s1836_s13 + $0xa0] ss:$8 sps:$4 sm:$0xff]  }
  0x5e   : > { %1072 = vmatpush1.bf16.msra.mxu1 %v1464_v20  ;;  %1032 = vmatprep.subr.bf16.mxu0 %v1465_v21  ;;  %v1518_v60 = vld [vmem:[%s1836_s13 + $0x1a0] ss:$8 sps:$4 sm:$0xff]   ;;  %v1519_v61 = vld [vmem:[%s1836_s13 + $0x94] ss:$8 sps:$4 sm:$0xff]   ;;  %v1523_v63 = vld [vmem:[%s1836_s13 + $0x90] ss:$8 sps:$4 sm:$0xff]  }
  0x5f   : > { %1073 = vmatprep.subr.bf16.mxu1 %v1467_v22  ;;  %1054 = vmatprep.mubr.bf16.mxu0 %v1305_v48  ;;  %v1521_v62 = vld [vmem:[%s1836_s13 + $0x194] ss:$8 sps:$4 sm:$0xff]   ;;  %v1524_v0 = vld [vmem:[%s1836_s13 + $0x190] ss:$8 sps:$4 sm:$0xff]   ;;  %v1525_v1 = vld [vmem:[%s1836_s13 + $0x84] ss:$8 sps:$4 sm:$0xff]  }
  0x60   : > { %1095 = vmatprep.mubr.bf16.mxu1 %v1307_v52  ;;  %v1527_v2 = vld [vmem:[%s1836_s13 + $0x184] ss:$8 sps:$4 sm:$0xff]   ;;  %v1529_v3 = vld [vmem:[%s1836_s13 + $0x80] ss:$8 sps:$4 sm:$0xff]   ;;  %v620_v8 = vld [vmem:[#allocation2] sm:$0xff] }
  0x61   : > { %1033 = vmatpush1.bf16.msra.mxu0 %v1469_v23  ;;  %v1530_v4 = vld [vmem:[%s1836_s13 + $0x180] ss:$8 sps:$4 sm:$0xff]   ;;  %v621_v12 = vld [vmem:[#allocation2 + $0x8] sm:$0xff] }
  0x62   : > { %1074 = vmatpush1.bf16.msra.mxu1 %v1470_v24  ;;  %1034 = vmatprep.subr.bf16.mxu0 %v1471_v25 }
  0x63   : > { %1075 = vmatprep.subr.bf16.mxu1 %v1473_v26 }
  0x65   : > { %1035 = vmatpush1.bf16.msra.mxu0 %v1475_v27 }
  0x66   : > { %1076 = vmatpush1.bf16.msra.mxu1 %v1476_v28  ;;  %1036 = vmatprep.subr.bf16.mxu0 %v1477_v29 }
  0x67   : > { %1077 = vmatprep.subr.bf16.mxu1 %v1479_v30 }
  0x69   : > { %1037 = vmatpush1.bf16.msra.mxu0 %v1481_v31 }
  0x6a   : > { %1078 = vmatpush1.bf16.msra.mxu1 %v1482_v32  ;;  %1038 = vmatprep.subr.bf16.mxu0 %v1483_v33 }
  0x6b   : > { %1079 = vmatprep.subr.bf16.mxu1 %v1485_v34 }
  0x6d   : > { %1039 = vmatpush2.bf16.msra.mxu0 %v1487_v35 }
  0x6e   : > { %1080 = vmatpush2.bf16.msra.mxu1 %v1488_v36  ;;  %1040 = vmatprep.subr.bf16.mxu0 %v1489_v37 }
  0x6f   : > { %1081 = vmatprep.subr.bf16.mxu1 %v1491_v38 }
  0x71   : > { %1041 = vmatpush2.bf16.msra.mxu0 %v1493_v39 }
  0x72   : > { %1082 = vmatpush2.bf16.msra.mxu1 %v1494_v40  ;;  %1042 = vmatprep.subr.bf16.mxu0 %v1495_v41 }
  0x73   : > { %1083 = vmatprep.subr.bf16.mxu1 %v1497_v42 }
  0x75   : > { %1043 = vmatpush2.bf16.msra.mxu0 %v1499_v43 }
  0x76   : > { %1084 = vmatpush2.bf16.msra.mxu1 %v1500_v44  ;;  %1044 = vmatprep.subr.bf16.mxu0 %v1501_v45 }
  0x77   : > { %1085 = vmatprep.subr.bf16.mxu1 %v1503_v46 }
  0x79   : > { %1045 = vmatpush2.bf16.msra.mxu0 %v1505_v50 }
  0x7a   : > { %1086 = vmatpush2.bf16.msra.mxu1 %v1506_v51  ;;  %1046 = vmatprep.subr.bf16.mxu0 %v1507_v53 }
  0x7b   : > { %1087 = vmatprep.subr.bf16.mxu1 %v1509_v54 }
  0x7d   : > { %1047 = vmatpush2.bf16.msra.mxu0 %v1511_v55 }
  0x7e   : > { %1088 = vmatpush2.bf16.msra.mxu1 %v1512_v56  ;;  %1048 = vmatprep.subr.bf16.mxu0 %v1513_v57 }
  0x7f   : > { %1089 = vmatprep.subr.bf16.mxu1 %v1515_v58 }
  0x81   : > { %1049 = vmatpush2.bf16.msra.mxu0 %v1517_v59 }
  0x82   : > { %1090 = vmatpush2.bf16.msra.mxu1 %v1518_v60  ;;  %1050 = vmatprep.subr.bf16.mxu0 %v1519_v61 }
  0x83   : > { %1091 = vmatprep.subr.bf16.mxu1 %v1521_v62 }
  0x85   : > { %1051 = vmatpush2.bf16.msra.mxu0 %v1523_v63 }
  0x86   : > { %1092 = vmatpush2.bf16.msra.mxu1 %v1524_v0  ;;  %1052 = vmatprep.subr.bf16.mxu0 %v1525_v1 }
  0x87   : > { %1093 = vmatprep.subr.bf16.mxu1 %v1527_v2 }
  0x89   : > { %1053 = vmatpush2.bf16.msra.mxu0 %v1529_v3 }
  0x8a   : > { %1094 = vmatpush2.bf16.msra.mxu1 %v1530_v4 }
  0x8c   : > { %1055 = vmatmul.mubr.bf16.vlgmr.msra.gmra.mxu0 %v1304_v5 }
  0x8d   : > { %1096 = vmatmul.mubr.bf16.vlgmr.msra.gmra.mxu1 %v1306_v6 }
 0x14c   : > { %v1056_v7 = vpop.f32.mrf.mxu0 }
 0x14d   : > { %v1097_v9 = vpop.f32.mrf.mxu1 }
 0x14e   : > { %v1098_v10 = vadd.f32 %v1097_v9, %v1056_v7  ;;  %v1058_v11 = vpop.f32.mrf.mxu0 }
 0x14f   : > { %v1099_v13 = vpop.f32.mrf.mxu1 }
 0x150   : > { %v1104_v14 = vadd.f32 %v1098_v10, %v620_v8  ;;  %v1100_v15 = vadd.f32 %v1099_v13, %v1058_v11  ;;  %v1060_v16 = vpop.f32.mrf.mxu0  ;;  %1111 = sbr.rel (%p1372_p13) target bundleno = 358 (0x166), region = 82 }
 0x151   : > { %v1101_v17 = vpop.f32.mrf.mxu1 }
 0x152   : > { %1106 = vst [vmem:[#allocation2] sm:$0xff] %v1104_v14  ;;  %v1105_v18 = vadd.f32 %v1100_v15, %v621_v12  ;;  %v1061_v19 = vpop.f32.mrf.mxu0 }
 0x153   : > { %v1102_v20 = vpop.f32.mrf.mxu1 }
 0x154   : > { %1107 = vst [vmem:[#allocation2 + $0x8] sm:$0xff] %v1105_v18 }
 0x155   : > { %v1116_v21 = vlaneseq  ;;  %v1114_v23 = vld [vmem:[%s592_s15] sm:$0x3] }
 0x156   : > { %v1128_v24 = vld [vmem:[%s1829_s18] sm:$0xff] }
 0x157   : > { %v1117_v22 = vshrl.u32 %v1116_v21, 7  ;;  %v1129_v31 = vunpack.c.l.bf16 %v1128_v24  ;;  %v1130_v32 = vunpack.c.h.bf16 %v1128_v24 }
 0x159   : > { %v1118_v25 = vsub.s32 0, %v1117_v22  ;;  %v1122_v26 = vsub.s32 1, %v1117_v22  ;;  %v1112_v27 = vld [vmem:[#allocation2] sm:$0xff] }
 0x15b   : > { %v1113_v28 = vld [vmem:[#allocation2 + $0x8] sm:$0xff]  ;;  %v1119_v29 = vrot.slane %v1114_v23, %v1118_v25  ;;  %v1123_v30 = vrot.slane %v1114_v23, %v1122_v26 }
 0x15d   : > { %v1126_v33 = vadd.f32 %v1119_v29, %v1112_v27  ;;  %v1127_v34 = vadd.f32 %v1123_v30, %v1113_v28 }
 0x15f   : > { %v1131_v35 = vadd.f32 %v1129_v31, %v1126_v33  ;;  %v1132_v36 = vadd.f32 %v1130_v32, %v1127_v34 }
 0x161   : > { %v1133_v37 = vmax.f32 %v1131_v35, 0.0  ;;  %v1134_v38 = vmax.f32 %v1132_v36, 0.0 }
 0x163   : > { %v1377_v39 = vpack.c.bf16 %v1134_v38, %v1133_v37 }
 0x165   : > { %1143 = vst [vmem:[%s1834_s12] sm:$0xff] %v1377_v39 }
 0x166 PF: > { %s14_s21 = sadd.s32 1, %s1589_s21   ;;  %s1939_s15 = smov %s1569_s16 }
 0x167   : > { %p11_p0 = scmp.ge.s32.totalorder %s14_s21, 20   ;;  %s1940_s16 = smov %s1668_s28 }
 0x168   : > { %s1941_s17 = smov %s1581_s19  ;;  %s1942_s18 = smov %s1585_s20 }
 0x169   : > { %s1943_s19 = smov %s1946_s22  ;;  %s1944_s20 = smov %s1950_s23 }
 0x16a   :  { %13 = sbr.rel (!%p11_p0) target bundleno = 4 (0x4), region = 126 }

// kernel: resnet18_forward.44
= control target key start
LH: loop header
LB: loop body
LE: loop exit
PB: predicated region body
PF: predicated region fallthrough
CT: control target
= control target key end

     0   :  { %v40_v0 = vlaneseq  ;;  %vm168_vm0 = vcmask 1041409   ;;  %vm170_vm1 = vcmask 1042434   ;;  %vm172_vm2 = vcmask 1043459   ;;  %s344_s0 = inlined_call_operand.vmem [shape: bf16[8,1,512], index: 0, kind: input, shape index: {}]   ;;  %s345_s1 = inlined_call_operand.vmem [shape: f32[8,512], index: 1, kind: output, shape index: {}]  }
   0x1   :  { %v216_v1 = vld [vmem:[%s344_s0] sm:$0xff]   ;;  %v231_v2 = vld [vmem:[%s344_s0 + $0x8] sm:$0xff]   ;;  %v232_v3 = vld [vmem:[%s344_s0 + $0x10] sm:$0xff]   ;;  %vm174_vm3 = vcmask 1044484   ;;  %vm176_vm4 = vcmask 1045509   ;;  %vm178_vm5 = vcmask 1046534  }
   0x2   :  { %v233_v4 = vld [vmem:[%s344_s0 + $0x18] sm:$0xff]   ;;  %v256_v5 = vunpack.c.l.bf16 %v216_v1  ;;  %v258_v6 = vunpack.c.h.bf16 %v216_v1  ;;  %v260_v7 = vunpack.c.l.bf16 %v231_v2  ;;  %v262_v8 = vunpack.c.h.bf16 %v231_v2 }
   0x3   :  { %v41_v9 = vshrl.u32 %v40_v0, 7  ;;  %v264_v10 = vunpack.c.l.bf16 %v232_v3  ;;  %v266_v11 = vunpack.c.h.bf16 %v232_v3  ;;  %v268_v12 = vunpack.c.l.bf16 %v233_v4 }
   0x4   :  { %v270_v15 = vunpack.c.h.bf16 %v233_v4  ;;  %vm180_vm6 = vcmask 1047559  }
   0x5   :  { %v42_v13 = vsub.s32 0, %v41_v9  ;;  %v46_v14 = vsub.s32 2, %v41_v9  ;;  %v50_v16 = vsub.s32 4, %v41_v9  ;;  %v54_v24 = vsub.s32 6, %v41_v9 }
   0x7   :  { %v43_v17 = vrot.slane %v256_v5, %v42_v13  ;;  %v59_v18 = vrot.slane %v258_v6, %v42_v13  ;;  %v75_v19 = vrot.slane %v260_v7, %v42_v13  ;;  %v91_v20 = vrot.slane %v262_v8, %v42_v13 }
   0x8   :  { %v107_v21 = vrot.slane %v264_v10, %v42_v13  ;;  %v123_v22 = vrot.slane %v266_v11, %v42_v13  ;;  %v139_v23 = vrot.slane %v268_v12, %v42_v13  ;;  %v47_v26 = vrot.slane %v256_v5, %v46_v14 }
   0x9   :  { %v169_v25 = vsel %vm168_vm0, %v59_v18, %v43_v17  ;;  %v63_v27 = vrot.slane %v258_v6, %v46_v14  ;;  %v79_v28 = vrot.slane %v260_v7, %v46_v14  ;;  %v155_v29 = vrot.slane %v270_v15, %v42_v13 }
   0xa   :  { %v171_v30 = vsel %vm170_vm1, %v75_v19, %v169_v25  ;;  %v95_v31 = vrot.slane %v262_v8, %v46_v14  ;;  %v111_v32 = vrot.slane %v264_v10, %v46_v14  ;;  %v127_v34 = vrot.slane %v266_v11, %v46_v14 }
   0xb   :  { %v173_v33 = vsel %vm172_vm2, %v91_v20, %v171_v30  ;;  %v143_v35 = vrot.slane %v268_v12, %v46_v14  ;;  %v182_v36 = vsel %vm168_vm0, %v63_v27, %v47_v26  ;;  %v51_v39 = vrot.slane %v256_v5, %v50_v16 }
   0xc   :  { %v175_v37 = vsel %vm174_vm3, %v107_v21, %v173_v33  ;;  %v183_v38 = vsel %vm170_vm1, %v79_v28, %v182_v36  ;;  %v67_v40 = vrot.slane %v258_v6, %v50_v16  ;;  %v159_v42 = vrot.slane %v270_v15, %v46_v14 }
   0xd   :  { %v177_v41 = vsel %vm176_vm4, %v123_v22, %v175_v37  ;;  %v184_v43 = vsel %vm172_vm2, %v95_v31, %v183_v38  ;;  %v83_v44 = vrot.slane %v260_v7, %v50_v16  ;;  %v99_v47 = vrot.slane %v262_v8, %v50_v16 }
   0xe   :  { %v179_v45 = vsel %vm178_vm5, %v139_v23, %v177_v41  ;;  %v185_v46 = vsel %vm174_vm3, %v111_v32, %v184_v43  ;;  %v115_v48 = vrot.slane %v264_v10, %v50_v16  ;;  %v131_v51 = vrot.slane %v266_v11, %v50_v16 }
   0xf   :  { %v181_v49 = vsel %vm180_vm6, %v155_v29, %v179_v45  ;;  %v186_v50 = vsel %vm176_vm4, %v127_v34, %v185_v46  ;;  %v147_v52 = vrot.slane %v268_v12, %v50_v16  ;;  %v189_v54 = vsel %vm168_vm0, %v67_v40, %v51_v39 }
  0x10   :  { %207 = vst [vmem:[%s345_s1] sm:$0xff] %v181_v49  ;;  %v187_v53 = vsel %vm178_vm5, %v143_v35, %v186_v50  ;;  %v55_v55 = vrot.slane %v256_v5, %v54_v24  ;;  %v71_v56 = vrot.slane %v258_v6, %v54_v24  ;;  %v190_v58 = vsel %vm170_vm1, %v83_v44, %v189_v54 }
  0x11   :  { %v188_v57 = vsel %vm180_vm6, %v159_v42, %v187_v53  ;;  %v87_v59 = vrot.slane %v260_v7, %v54_v24  ;;  %v103_v60 = vrot.slane %v262_v8, %v54_v24  ;;  %v163_v61 = vrot.slane %v270_v15, %v50_v16 }
  0x12   :  { %208 = vst [vmem:[%s345_s1 + $0x8] sm:$0xff] %v188_v57  ;;  %v191_v62 = vsel %vm172_vm2, %v99_v47, %v190_v58  ;;  %v119_v63 = vrot.slane %v264_v10, %v54_v24  ;;  %v135_v1 = vrot.slane %v266_v11, %v54_v24  ;;  %v196_v2 = vsel %vm168_vm0, %v71_v56, %v55_v55 }
  0x13   :  { %v192_v0 = vsel %vm174_vm3, %v115_v48, %v191_v62  ;;  %v151_v4 = vrot.slane %v268_v12, %v54_v24  ;;  %v197_v5 = vsel %vm170_vm1, %v87_v59, %v196_v2  ;;  %v167_v7 = vrot.slane %v270_v15, %v54_v24 }
  0x14   :  { %v193_v3 = vsel %vm176_vm4, %v131_v51, %v192_v0  ;;  %v198_v8 = vsel %vm172_vm2, %v103_v60, %v197_v5 }
  0x15   :  { %v194_v6 = vsel %vm178_vm5, %v147_v52, %v193_v3  ;;  %v199_v10 = vsel %vm174_vm3, %v119_v63, %v198_v8 }
  0x16   :  { %v195_v9 = vsel %vm180_vm6, %v163_v61, %v194_v6  ;;  %v200_v11 = vsel %vm176_vm4, %v135_v1, %v199_v10 }
  0x17   :  { %209 = vst [vmem:[%s345_s1 + $0x10] sm:$0xff] %v195_v9  ;;  %v201_v12 = vsel %vm178_vm5, %v151_v4, %v200_v11 }
  0x18   :  { %v202_v13 = vsel %vm180_vm6, %v167_v7, %v201_v12 }
  0x19   :  { %210 = vst [vmem:[%s345_s1 + $0x18] sm:$0xff] %v202_v13 }

// kernel: resnet18_forward.42
= control target key start
LH: loop header
LB: loop body
LE: loop exit
PB: predicated region body
PF: predicated region fallthrough
CT: control target
= control target key end

     0   :  { %s1524_s12 = smov 0   ;;  %s1526_s13 = smov 0   ;;  %s1835_s0 = inlined_call_operand.vmem [shape: bf16[8,4608], index: 0, kind: input, shape index: {}]   ;;  %s1836_s1 = inlined_call_operand.vmem [shape: bf16[4608,512], index: 1, kind: input, shape index: {}]   ;;  %s1837_s2 = inlined_call_operand.vmem [shape: f32[1,512], index: 2, kind: input, shape index: {}]   ;;  %s1838_s3 = inlined_call_operand.vmem [shape: bf16[8,512], index: 3, kind: output, shape index: {}]  }
   0x1   :  { %s1528_s14 = smov 0   ;;  %s1530_s15 = smov 0  }
   0x2   :  { %s1532_s16 = smov 0   ;;  %s1534_s17 = smov 0  }
   0x3   :  { %s1536_s18 = smov 0  }
   0x4 LB: > { %s25_s19 = sadd.s32 1, %s1493_s16  ;;  %s28_s20 = sadd.s32 1, %s1497_s17  ;;  %s1501_s18 = sphi %s1536_s18, %s13_s18   ;;  %s1497_s17 = sphi %s1534_s17, %s1844_s17   ;;  %s1493_s16 = sphi %s1532_s16, %s1843_s16   ;;  %s1489_s15 = sphi %s1530_s15, %s1842_s15   ;;  %s1485_s14 = sphi %s1528_s14, %s1841_s14   ;;  %s1481_s13 = sphi %s1526_s13, %s1840_s13   ;;  %s1477_s12 = sphi %s1524_s12, %s1839_s12  }
   0x5   : > { %p26_p0 = scmp.ge.s32.totalorder %s25_s19, 9  ;;  %p76_p1 = scmp.ne.s32.totalorder %s1481_s13, %s1477_s12 }
   0x6   : > { %p77_p2 = scmp.eq.s32.totalorder %s1501_s18, 0  ;;  %s69_s24 = sadd.s32 1, %s1481_s13 }
   0x7   : > { %s1846_s19 = smov (%p26_p0, %s25_s19), 0  ;;  %s1848_s20 = smov (!%p26_p0, %s28_s20), %s1497_s17 }
   0x8   : > { %p78_p3 = por %p77_p2, %p76_p1  ;;  %p30_p4 = scmp.ge.s32.totalorder %s1848_s20, 2 }
   0x9   : > { %s64_s21 = ssub.s32 %s1493_s16, %s1846_s19  ;;  %p1202_p6 = scmp.ge.s32.totalorder %s1501_s18, 18 }
   0xa   : > { %s1850_s20 = smov (%p30_p4, %s1848_s20), 0 }
   0xb   : > { %s65_s22 = ssub.s32 %s1497_s17, %s1850_s20  ;;  %156 = sbr.rel (%p1202_p6) target bundleno = 55 (0x37), region = 16 }
   0xc   : > { %s66_s23 = sor.u32 %s65_s22, %s64_s21 }
   0xd   : > { %p67_p5 = scmp.eq.s32.totalorder %s66_s23, 0 }
   0xf   : > { %s1575_s25 = scalar_select %p67_p5, %s1481_s13, %s69_s24  }
  0x10   : > { %172 = sbr.rel (!%p78_p3) target bundleno = 55 (0x37), region = 24  ;;  %s174_s26 = sand.u32 (%p78_p3), 1, %s1481_s13  }
  0x11   : > { %s1205_s27 = sshll.u32 (%p78_p3), %s1497_s17, 1  ;;  %s1203_s28 = sshll.u32 (%p78_p3), %s174_s26, 9 }
  0x12   : > { %s1288_s29 = sshll.u32 (%p78_p3), %s1493_s16, 8  ;;  %s1589_s8 = scalar_lea.vmem (%p78_p3), [#allocation3], %s1203_s28 }
  0x13   : > { %s180_s30 = sadd.s32 (%p78_p3), %s1288_s29, %s1205_s27 }
  0x14   : > { %s1207_s4 = sshll.u32 (%p78_p3), %s180_s30, 2 }
  0x15   : > { %s1584_s7 = scalar_lea.vmem %s1836_s1, %s1207_s4 }
  0x16   : > { %v337_v0 = vld [vmem:[%s1584_s7] sm:$0xff]  ;;  %v339_v1 = vld [vmem:[%s1584_s7 + $0x10] sm:$0xff] }
  0x17   : > { %v341_v2 = vld [vmem:[%s1584_s7 + $0x20] sm:$0xff]  ;;  %338 = vst [vmem:[%s1589_s8] sm:$0xff] %v337_v0  ;;  %340 = vst [vmem:[%s1589_s8 + $0x8] sm:$0xff] %v339_v1  ;;  %v343_v3 = vld [vmem:[%s1584_s7 + $0x30] sm:$0xff] }
  0x18   : > { %342 = vst [vmem:[%s1589_s8 + $0x10] sm:$0xff] %v341_v2  ;;  %v345_v4 = vld [vmem:[%s1584_s7 + $0x40] sm:$0xff]  ;;  %v347_v5 = vld [vmem:[%s1584_s7 + $0x50] sm:$0xff]  ;;  %344 = vst [vmem:[%s1589_s8 + $0x18] sm:$0xff] %v343_v3 }
  0x19   : > { %346 = vst [vmem:[%s1589_s8 + $0x20] sm:$0xff] %v345_v4  ;;  %348 = vst [vmem:[%s1589_s8 + $0x28] sm:$0xff] %v347_v5  ;;  %v349_v6 = vld [vmem:[%s1584_s7 + $0x60] sm:$0xff]  ;;  %v351_v7 = vld [vmem:[%s1584_s7 + $0x70] sm:$0xff] }
  0x1a   : > { %v353_v8 = vld [vmem:[%s1584_s7 + $0x80] sm:$0xff]  ;;  %350 = vst [vmem:[%s1589_s8 + $0x30] sm:$0xff] %v349_v6  ;;  %352 = vst [vmem:[%s1589_s8 + $0x38] sm:$0xff] %v351_v7  ;;  %v355_v9 = vld [vmem:[%s1584_s7 + $0x90] sm:$0xff] }
  0x1b   : > { %354 = vst [vmem:[%s1589_s8 + $0x40] sm:$0xff] %v353_v8  ;;  %v357_v10 = vld [vmem:[%s1584_s7 + $0xa0] sm:$0xff]  ;;  %v359_v11 = vld [vmem:[%s1584_s7 + $0xb0] sm:$0xff]  ;;  %356 = vst [vmem:[%s1589_s8 + $0x48] sm:$0xff] %v355_v9 }
  0x1c   : > { %358 = vst [vmem:[%s1589_s8 + $0x50] sm:$0xff] %v357_v10  ;;  %360 = vst [vmem:[%s1589_s8 + $0x58] sm:$0xff] %v359_v11  ;;  %v361_v12 = vld [vmem:[%s1584_s7 + $0xc0] sm:$0xff]  ;;  %v363_v13 = vld [vmem:[%s1584_s7 + $0xd0] sm:$0xff] }
  0x1d   : > { %v365_v14 = vld [vmem:[%s1584_s7 + $0xe0] sm:$0xff]  ;;  %362 = vst [vmem:[%s1589_s8 + $0x60] sm:$0xff] %v361_v12  ;;  %364 = vst [vmem:[%s1589_s8 + $0x68] sm:$0xff] %v363_v13  ;;  %v367_v15 = vld [vmem:[%s1584_s7 + $0xf0] sm:$0xff] }
  0x1e   : > { %366 = vst [vmem:[%s1589_s8 + $0x70] sm:$0xff] %v365_v14  ;;  %v369_v16 = vld [vmem:[%s1584_s7 + $0x100] sm:$0xff]  ;;  %v371_v17 = vld [vmem:[%s1584_s7 + $0x110] sm:$0xff]  ;;  %368 = vst [vmem:[%s1589_s8 + $0x78] sm:$0xff] %v367_v15 }
  0x1f   : > { %370 = vst [vmem:[%s1589_s8 + $0x80] sm:$0xff] %v369_v16  ;;  %372 = vst [vmem:[%s1589_s8 + $0x88] sm:$0xff] %v371_v17  ;;  %v373_v18 = vld [vmem:[%s1584_s7 + $0x120] sm:$0xff]  ;;  %v375_v19 = vld [vmem:[%s1584_s7 + $0x130] sm:$0xff] }
  0x20   : > { %v377_v20 = vld [vmem:[%s1584_s7 + $0x140] sm:$0xff]  ;;  %374 = vst [vmem:[%s1589_s8 + $0x90] sm:$0xff] %v373_v18  ;;  %376 = vst [vmem:[%s1589_s8 + $0x98] sm:$0xff] %v375_v19  ;;  %v379_v21 = vld [vmem:[%s1584_s7 + $0x150] sm:$0xff] }
  0x21   : > { %378 = vst [vmem:[%s1589_s8 + $0xa0] sm:$0xff] %v377_v20  ;;  %v381_v22 = vld [vmem:[%s1584_s7 + $0x160] sm:$0xff]  ;;  %v383_v23 = vld [vmem:[%s1584_s7 + $0x170] sm:$0xff]  ;;  %380 = vst [vmem:[%s1589_s8 + $0xa8] sm:$0xff] %v379_v21 }
  0x22   : > { %382 = vst [vmem:[%s1589_s8 + $0xb0] sm:$0xff] %v381_v22  ;;  %384 = vst [vmem:[%s1589_s8 + $0xb8] sm:$0xff] %v383_v23  ;;  %v385_v24 = vld [vmem:[%s1584_s7 + $0x180] sm:$0xff]  ;;  %v387_v25 = vld [vmem:[%s1584_s7 + $0x190] sm:$0xff] }
  0x23   : > { %v389_v26 = vld [vmem:[%s1584_s7 + $0x1a0] sm:$0xff]  ;;  %386 = vst [vmem:[%s1589_s8 + $0xc0] sm:$0xff] %v385_v24  ;;  %388 = vst [vmem:[%s1589_s8 + $0xc8] sm:$0xff] %v387_v25  ;;  %v391_v27 = vld [vmem:[%s1584_s7 + $0x1b0] sm:$0xff] }
  0x24   : > { %390 = vst [vmem:[%s1589_s8 + $0xd0] sm:$0xff] %v389_v26  ;;  %v393_v28 = vld [vmem:[%s1584_s7 + $0x1c0] sm:$0xff]  ;;  %v395_v29 = vld [vmem:[%s1584_s7 + $0x1d0] sm:$0xff]  ;;  %392 = vst [vmem:[%s1589_s8 + $0xd8] sm:$0xff] %v391_v27 }
  0x25   : > { %394 = vst [vmem:[%s1589_s8 + $0xe0] sm:$0xff] %v393_v28  ;;  %396 = vst [vmem:[%s1589_s8 + $0xe8] sm:$0xff] %v395_v29  ;;  %v397_v30 = vld [vmem:[%s1584_s7 + $0x1e0] sm:$0xff]  ;;  %v399_v31 = vld [vmem:[%s1584_s7 + $0x1f0] sm:$0xff] }
  0x26   : > { %v401_v32 = vld [vmem:[%s1584_s7 + $0x200] sm:$0xff]  ;;  %398 = vst [vmem:[%s1589_s8 + $0xf0] sm:$0xff] %v397_v30  ;;  %400 = vst [vmem:[%s1589_s8 + $0xf8] sm:$0xff] %v399_v31  ;;  %v403_v33 = vld [vmem:[%s1584_s7 + $0x210] sm:$0xff] }
  0x27   : > { %402 = vst [vmem:[%s1589_s8 + $0x100] sm:$0xff] %v401_v32  ;;  %v405_v34 = vld [vmem:[%s1584_s7 + $0x220] sm:$0xff]  ;;  %v407_v35 = vld [vmem:[%s1584_s7 + $0x230] sm:$0xff]  ;;  %404 = vst [vmem:[%s1589_s8 + $0x108] sm:$0xff] %v403_v33 }
  0x28   : > { %406 = vst [vmem:[%s1589_s8 + $0x110] sm:$0xff] %v405_v34  ;;  %408 = vst [vmem:[%s1589_s8 + $0x118] sm:$0xff] %v407_v35  ;;  %v409_v36 = vld [vmem:[%s1584_s7 + $0x240] sm:$0xff]  ;;  %v411_v37 = vld [vmem:[%s1584_s7 + $0x250] sm:$0xff] }
  0x29   : > { %v413_v38 = vld [vmem:[%s1584_s7 + $0x260] sm:$0xff]  ;;  %410 = vst [vmem:[%s1589_s8 + $0x120] sm:$0xff] %v409_v36  ;;  %412 = vst [vmem:[%s1589_s8 + $0x128] sm:$0xff] %v411_v37  ;;  %v415_v39 = vld [vmem:[%s1584_s7 + $0x270] sm:$0xff] }
  0x2a   : > { %414 = vst [vmem:[%s1589_s8 + $0x130] sm:$0xff] %v413_v38  ;;  %v417_v40 = vld [vmem:[%s1584_s7 + $0x280] sm:$0xff]  ;;  %v419_v41 = vld [vmem:[%s1584_s7 + $0x290] sm:$0xff]  ;;  %416 = vst [vmem:[%s1589_s8 + $0x138] sm:$0xff] %v415_v39 }
  0x2b   : > { %418 = vst [vmem:[%s1589_s8 + $0x140] sm:$0xff] %v417_v40  ;;  %420 = vst [vmem:[%s1589_s8 + $0x148] sm:$0xff] %v419_v41  ;;  %v421_v42 = vld [vmem:[%s1584_s7 + $0x2a0] sm:$0xff]  ;;  %v423_v43 = vld [vmem:[%s1584_s7 + $0x2b0] sm:$0xff] }
  0x2c   : > { %v425_v44 = vld [vmem:[%s1584_s7 + $0x2c0] sm:$0xff]  ;;  %422 = vst [vmem:[%s1589_s8 + $0x150] sm:$0xff] %v421_v42  ;;  %424 = vst [vmem:[%s1589_s8 + $0x158] sm:$0xff] %v423_v43  ;;  %v427_v45 = vld [vmem:[%s1584_s7 + $0x2d0] sm:$0xff] }
  0x2d   : > { %426 = vst [vmem:[%s1589_s8 + $0x160] sm:$0xff] %v425_v44  ;;  %v429_v46 = vld [vmem:[%s1584_s7 + $0x2e0] sm:$0xff]  ;;  %v431_v47 = vld [vmem:[%s1584_s7 + $0x2f0] sm:$0xff]  ;;  %428 = vst [vmem:[%s1589_s8 + $0x168] sm:$0xff] %v427_v45 }
  0x2e   : > { %430 = vst [vmem:[%s1589_s8 + $0x170] sm:$0xff] %v429_v46  ;;  %432 = vst [vmem:[%s1589_s8 + $0x178] sm:$0xff] %v431_v47  ;;  %v433_v48 = vld [vmem:[%s1584_s7 + $0x300] sm:$0xff]  ;;  %v435_v49 = vld [vmem:[%s1584_s7 + $0x310] sm:$0xff] }
  0x2f   : > { %v437_v50 = vld [vmem:[%s1584_s7 + $0x320] sm:$0xff]  ;;  %434 = vst [vmem:[%s1589_s8 + $0x180] sm:$0xff] %v433_v48  ;;  %436 = vst [vmem:[%s1589_s8 + $0x188] sm:$0xff] %v435_v49  ;;  %v439_v51 = vld [vmem:[%s1584_s7 + $0x330] sm:$0xff] }
  0x30   : > { %438 = vst [vmem:[%s1589_s8 + $0x190] sm:$0xff] %v437_v50  ;;  %v441_v52 = vld [vmem:[%s1584_s7 + $0x340] sm:$0xff]  ;;  %v443_v53 = vld [vmem:[%s1584_s7 + $0x350] sm:$0xff]  ;;  %440 = vst [vmem:[%s1589_s8 + $0x198] sm:$0xff] %v439_v51 }
  0x31   : > { %442 = vst [vmem:[%s1589_s8 + $0x1a0] sm:$0xff] %v441_v52  ;;  %444 = vst [vmem:[%s1589_s8 + $0x1a8] sm:$0xff] %v443_v53  ;;  %v445_v54 = vld [vmem:[%s1584_s7 + $0x360] sm:$0xff]  ;;  %v447_v55 = vld [vmem:[%s1584_s7 + $0x370] sm:$0xff] }
  0x32   : > { %v449_v56 = vld [vmem:[%s1584_s7 + $0x380] sm:$0xff]  ;;  %446 = vst [vmem:[%s1589_s8 + $0x1b0] sm:$0xff] %v445_v54  ;;  %448 = vst [vmem:[%s1589_s8 + $0x1b8] sm:$0xff] %v447_v55  ;;  %v451_v57 = vld [vmem:[%s1584_s7 + $0x390] sm:$0xff] }
  0x33   : > { %450 = vst [vmem:[%s1589_s8 + $0x1c0] sm:$0xff] %v449_v56  ;;  %v453_v58 = vld [vmem:[%s1584_s7 + $0x3a0] sm:$0xff]  ;;  %v455_v59 = vld [vmem:[%s1584_s7 + $0x3b0] sm:$0xff]  ;;  %452 = vst [vmem:[%s1589_s8 + $0x1c8] sm:$0xff] %v451_v57 }
  0x34   : > { %454 = vst [vmem:[%s1589_s8 + $0x1d0] sm:$0xff] %v453_v58  ;;  %456 = vst [vmem:[%s1589_s8 + $0x1d8] sm:$0xff] %v455_v59  ;;  %v457_v60 = vld [vmem:[%s1584_s7 + $0x3c0] sm:$0xff]  ;;  %v459_v61 = vld [vmem:[%s1584_s7 + $0x3d0] sm:$0xff] }
  0x35   : > { %v461_v62 = vld [vmem:[%s1584_s7 + $0x3e0] sm:$0xff]  ;;  %458 = vst [vmem:[%s1589_s8 + $0x1e0] sm:$0xff] %v457_v60  ;;  %460 = vst [vmem:[%s1589_s8 + $0x1e8] sm:$0xff] %v459_v61  ;;  %v463_v63 = vld [vmem:[%s1584_s7 + $0x3f0] sm:$0xff] }
  0x36   : > { %462 = vst [vmem:[%s1589_s8 + $0x1f0] sm:$0xff] %v461_v62  ;;  %464 = vst [vmem:[%s1589_s8 + $0x1f8] sm:$0xff] %v463_v63 }
  0x37 PF: > { %p1208_p7 = scmp.ge.s32.totalorder %s1501_s18, 1  ;;  %p477_p8 = scmp.lt.s32.totalorder %s1501_s18, 19 }
  0x39   : > { %p478_p9 = pnand %p1208_p7, %p477_p8 }
  0x3a   : > { %s484_s9 = sand.u32 (!%p478_p9), 1, %s1477_s12   ;;  %s1210_s10 = sshll.u32 (!%p478_p9), %s1485_s14, 2 }
  0x3b   : > { %481 = sbr.rel (%p478_p9) target bundleno = 355 (0x163), region = 66  ;;  %s1209_s11 = sshll.u32 (!%p478_p9), %s484_s9, 9 }
  0x3c   : > { %p527_p10 = scmp.lt.s32.totalorder (!%p478_p9), %s1210_s10, 35  ;;  %s1212_s21 = sshll.u32 (!%p478_p9), %s1489_s15, 1 }
  0x3d   : > { %p537_p11 = scmp.lt.s32.totalorder (!%p478_p9), %s1212_s21, 3  ;;  %s1738_s5 = scalar_lea.vmem (!%p478_p9), [#allocation3], %s1209_s11 }
  0x3e   : > { %p1215_p12 = scmp.ne.s32.totalorder (!%p478_p9), %s1485_s14, 0 }
  0x40   : > { %s1852_s10 = smov (!%p527_p10, %s1210_s10), 35  ;;  %s1854_s21 = smov (!%p537_p11, %s1212_s21), 3 }
  0x41   : > { %s1211_s22 = sshll.u32 %s1852_s10, 2  ;;  %s539_s12 = scalar_lea.vmem %s1837_s2, %s1854_s21 }
  0x42   : > { %s1724_s26 = scalar_lea.vmem %s1835_s0, %s1211_s22  ;;  %s1214_s29 = sshll.u32 %s1854_s21, 2 }
  0x43   : > { %s1736_s15 = scalar_lea.vmem %s1838_s3, %s1214_s29  ;;  %554 = sbr.rel (%p1215_p12) target bundleno = 74 (0x4a), region = 74 }
  0x48   : > { %v1503_v0 = vmov 0.0  }
  0x49   : > { %555 = vst [vmem:[#allocation2] sm:$0xff] %v1503_v0  ;;  %556 = vst [vmem:[#allocation2 + $0x8] sm:$0xff] %v1503_v0 }
  0x4a PF: > { %v1347_v1 = vld [vmem:[%s1738_s5 + $0x74] ss:$8 sps:$4 sm:$0xff]   ;;  %v1351_v3 = vld [vmem:[%s1738_s5 + $0x70] ss:$8 sps:$4 sm:$0xff]   ;;  %v1353_v5 = vld [vmem:[%s1738_s5 + $0x64] ss:$8 sps:$4 sm:$0xff]  }
  0x4b   : > { %v1349_v2 = vld [vmem:[%s1738_s5 + $0x174] ss:$8 sps:$4 sm:$0xff]   ;;  %959 = vmatprep.subr.bf16.mxu0 %v1347_v1  ;;  %v1352_v4 = vld [vmem:[%s1738_s5 + $0x170] ss:$8 sps:$4 sm:$0xff]   ;;  %v1355_v6 = vld [vmem:[%s1738_s5 + $0x164] ss:$8 sps:$4 sm:$0xff]  }
  0x4c   : > { %1000 = vmatprep.subr.bf16.mxu1 %v1349_v2  ;;  %960 = vmatpush1.bf16.msra.mxu0 %v1351_v3  ;;  %v1357_v7 = vld [vmem:[%s1738_s5 + $0x60] ss:$8 sps:$4 sm:$0xff]   ;;  %v1359_v9 = vld [vmem:[%s1738_s5 + $0x54] ss:$8 sps:$4 sm:$0xff]   ;;  %v1363_v11 = vld [vmem:[%s1738_s5 + $0x50] ss:$8 sps:$4 sm:$0xff]  }
  0x4d   : > { %1001 = vmatpush1.bf16.msra.mxu1 %v1352_v4  ;;  %961 = vmatprep.subr.bf16.mxu0 %v1353_v5  ;;  %v1358_v8 = vld [vmem:[%s1738_s5 + $0x160] ss:$8 sps:$4 sm:$0xff]   ;;  %v1361_v10 = vld [vmem:[%s1738_s5 + $0x154] ss:$8 sps:$4 sm:$0xff]   ;;  %v1364_v12 = vld [vmem:[%s1738_s5 + $0x150] ss:$8 sps:$4 sm:$0xff]  }
  0x4e   : > { %1002 = vmatprep.subr.bf16.mxu1 %v1355_v6  ;;  %v1365_v13 = vld [vmem:[%s1738_s5 + $0x44] ss:$8 sps:$4 sm:$0xff]   ;;  %v1369_v15 = vld [vmem:[%s1738_s5 + $0x40] ss:$8 sps:$4 sm:$0xff]   ;;  %v1371_v17 = vld [vmem:[%s1738_s5 + $0x34] ss:$8 sps:$4 sm:$0xff]  }
  0x4f   : > { %v1367_v14 = vld [vmem:[%s1738_s5 + $0x144] ss:$8 sps:$4 sm:$0xff]   ;;  %v1370_v16 = vld [vmem:[%s1738_s5 + $0x140] ss:$8 sps:$4 sm:$0xff]   ;;  %v1373_v18 = vld [vmem:[%s1738_s5 + $0x134] ss:$8 sps:$4 sm:$0xff]  }
  0x50   : > { %962 = vmatpush1.bf16.msra.mxu0 %v1357_v7  ;;  %v1375_v19 = vld [vmem:[%s1738_s5 + $0x30] ss:$8 sps:$4 sm:$0xff]   ;;  %v1377_v21 = vld [vmem:[%s1738_s5 + $0x24] ss:$8 sps:$4 sm:$0xff]   ;;  %v1381_v23 = vld [vmem:[%s1738_s5 + $0x20] ss:$8 sps:$4 sm:$0xff]  }
  0x51   : > { %1003 = vmatpush1.bf16.msra.mxu1 %v1358_v8  ;;  %963 = vmatprep.subr.bf16.mxu0 %v1359_v9  ;;  %v1376_v20 = vld [vmem:[%s1738_s5 + $0x130] ss:$8 sps:$4 sm:$0xff]   ;;  %v1379_v22 = vld [vmem:[%s1738_s5 + $0x124] ss:$8 sps:$4 sm:$0xff]   ;;  %v1382_v24 = vld [vmem:[%s1738_s5 + $0x120] ss:$8 sps:$4 sm:$0xff]  }
  0x52   : > { %1004 = vmatprep.subr.bf16.mxu1 %v1361_v10  ;;  %v1383_v25 = vld [vmem:[%s1738_s5 + $0x14] ss:$8 sps:$4 sm:$0xff]   ;;  %v1387_v27 = vld [vmem:[%s1738_s5 + $0x10] ss:$8 sps:$4 sm:$0xff]   ;;  %v1389_v29 = vld [vmem:[%s1738_s5 + $0x4] ss:$8 sps:$4 sm:$0xff]  }
  0x53   : > { %v1385_v26 = vld [vmem:[%s1738_s5 + $0x114] ss:$8 sps:$4 sm:$0xff]   ;;  %v1388_v28 = vld [vmem:[%s1738_s5 + $0x110] ss:$8 sps:$4 sm:$0xff]   ;;  %v1391_v30 = vld [vmem:[%s1738_s5 + $0x104] ss:$8 sps:$4 sm:$0xff]  }
  0x54   : > { %964 = vmatpush1.bf16.msra.mxu0 %v1363_v11  ;;  %v1393_v31 = vld [vmem:[%s1738_s5] ss:$8 sps:$4 sm:$0xff]   ;;  %v1395_v33 = vld [vmem:[%s1738_s5 + $0xf4] ss:$8 sps:$4 sm:$0xff]   ;;  %v1399_v35 = vld [vmem:[%s1738_s5 + $0xf0] ss:$8 sps:$4 sm:$0xff]  }
  0x55   : > { %1005 = vmatpush1.bf16.msra.mxu1 %v1364_v12  ;;  %965 = vmatprep.subr.bf16.mxu0 %v1365_v13  ;;  %v1394_v32 = vld [vmem:[%s1738_s5 + $0x100] ss:$8 sps:$4 sm:$0xff]   ;;  %v1397_v34 = vld [vmem:[%s1738_s5 + $0x1f4] ss:$8 sps:$4 sm:$0xff]   ;;  %v1400_v36 = vld [vmem:[%s1738_s5 + $0x1f0] ss:$8 sps:$4 sm:$0xff]  }
  0x56   : > { %1006 = vmatprep.subr.bf16.mxu1 %v1367_v14  ;;  %v1401_v37 = vld [vmem:[%s1738_s5 + $0xe4] ss:$8 sps:$4 sm:$0xff]   ;;  %v1405_v39 = vld [vmem:[%s1738_s5 + $0xe0] ss:$8 sps:$4 sm:$0xff]   ;;  %v1407_v41 = vld [vmem:[%s1738_s5 + $0xd4] ss:$8 sps:$4 sm:$0xff]  }
  0x57   : > { %v1403_v38 = vld [vmem:[%s1738_s5 + $0x1e4] ss:$8 sps:$4 sm:$0xff]   ;;  %v1406_v40 = vld [vmem:[%s1738_s5 + $0x1e0] ss:$8 sps:$4 sm:$0xff]   ;;  %v1409_v42 = vld [vmem:[%s1738_s5 + $0x1d4] ss:$8 sps:$4 sm:$0xff]  }
  0x58   : > { %966 = vmatpush1.bf16.msra.mxu0 %v1369_v15  ;;  %v1411_v43 = vld [vmem:[%s1738_s5 + $0xd0] ss:$8 sps:$4 sm:$0xff]   ;;  %v1413_v45 = vld [vmem:[%s1738_s5 + $0xc4] ss:$8 sps:$4 sm:$0xff]   ;;  %v1417_v50 = vld [vmem:[%s1738_s5 + $0xc0] ss:$8 sps:$4 sm:$0xff]  }
  0x59   : > { %1007 = vmatpush1.bf16.msra.mxu1 %v1370_v16  ;;  %967 = vmatprep.subr.bf16.mxu0 %v1371_v17  ;;  %v1412_v44 = vld [vmem:[%s1738_s5 + $0x1d0] ss:$8 sps:$4 sm:$0xff]   ;;  %v1415_v46 = vld [vmem:[%s1738_s5 + $0x1c4] ss:$8 sps:$4 sm:$0xff]   ;;  %v1418_v51 = vld [vmem:[%s1738_s5 + $0x1c0] ss:$8 sps:$4 sm:$0xff]  }
  0x5a   : > { %1008 = vmatprep.subr.bf16.mxu1 %v1373_v18  ;;  %v559_v47 = vld [vmem:[%s1724_s26] sm:$0xff]  ;;  %v560_v49 = vld [vmem:[%s1724_s26 + $0x8] sm:$0xff]  ;;  %v1425_v57 = vld [vmem:[%s1738_s5 + $0xa4] ss:$8 sps:$4 sm:$0xff]   ;;  %p1284_p13 = scmp.ne.s32.totalorder %s1485_s14, 8 }
  0x5b   : > { %v1217_v48 = vcombine.high %v559_v47, %v559_v47  ;;  %v1219_v52 = vcombine.high %v560_v49, %v560_v49  ;;  %v1419_v53 = vld [vmem:[%s1738_s5 + $0xb4] ss:$8 sps:$4 sm:$0xff]   ;;  %v1423_v55 = vld [vmem:[%s1738_s5 + $0xb0] ss:$8 sps:$4 sm:$0xff]   ;;  %v1427_v58 = vld [vmem:[%s1738_s5 + $0x1a4] ss:$8 sps:$4 sm:$0xff]   ;;  %v1216_v5 = vcombine.low %v559_v47, %v559_v47  ;;  %v1218_v6 = vcombine.low %v560_v49, %v560_v49 }
  0x5c   : > { %968 = vmatpush1.bf16.msra.mxu0 %v1375_v19  ;;  %v1421_v54 = vld [vmem:[%s1738_s5 + $0x1b4] ss:$8 sps:$4 sm:$0xff]   ;;  %v1424_v56 = vld [vmem:[%s1738_s5 + $0x1b0] ss:$8 sps:$4 sm:$0xff]   ;;  %v1429_v59 = vld [vmem:[%s1738_s5 + $0xa0] ss:$8 sps:$4 sm:$0xff]  }
  0x5d   : > { %1009 = vmatpush1.bf16.msra.mxu1 %v1376_v20  ;;  %969 = vmatprep.subr.bf16.mxu0 %v1377_v21  ;;  %v1430_v60 = vld [vmem:[%s1738_s5 + $0x1a0] ss:$8 sps:$4 sm:$0xff]   ;;  %v1431_v61 = vld [vmem:[%s1738_s5 + $0x94] ss:$8 sps:$4 sm:$0xff]   ;;  %v1435_v63 = vld [vmem:[%s1738_s5 + $0x90] ss:$8 sps:$4 sm:$0xff]  }
  0x5e   : > { %1010 = vmatprep.subr.bf16.mxu1 %v1379_v22  ;;  %991 = vmatprep.mubr.bf16.mxu0 %v1217_v48  ;;  %v1433_v62 = vld [vmem:[%s1738_s5 + $0x194] ss:$8 sps:$4 sm:$0xff]   ;;  %v1436_v0 = vld [vmem:[%s1738_s5 + $0x190] ss:$8 sps:$4 sm:$0xff]   ;;  %v1437_v1 = vld [vmem:[%s1738_s5 + $0x84] ss:$8 sps:$4 sm:$0xff]  }
  0x5f   : > { %1032 = vmatprep.mubr.bf16.mxu1 %v1219_v52  ;;  %v1439_v2 = vld [vmem:[%s1738_s5 + $0x184] ss:$8 sps:$4 sm:$0xff]   ;;  %v1441_v3 = vld [vmem:[%s1738_s5 + $0x80] ss:$8 sps:$4 sm:$0xff]   ;;  %v557_v8 = vld [vmem:[#allocation2] sm:$0xff] }
  0x60   : > { %970 = vmatpush1.bf16.msra.mxu0 %v1381_v23  ;;  %v1442_v4 = vld [vmem:[%s1738_s5 + $0x180] ss:$8 sps:$4 sm:$0xff]   ;;  %v558_v12 = vld [vmem:[#allocation2 + $0x8] sm:$0xff] }
  0x61   : > { %1011 = vmatpush1.bf16.msra.mxu1 %v1382_v24  ;;  %971 = vmatprep.subr.bf16.mxu0 %v1383_v25 }
  0x62   : > { %1012 = vmatprep.subr.bf16.mxu1 %v1385_v26 }
  0x64   : > { %972 = vmatpush1.bf16.msra.mxu0 %v1387_v27 }
  0x65   : > { %1013 = vmatpush1.bf16.msra.mxu1 %v1388_v28  ;;  %973 = vmatprep.subr.bf16.mxu0 %v1389_v29 }
  0x66   : > { %1014 = vmatprep.subr.bf16.mxu1 %v1391_v30 }
  0x68   : > { %974 = vmatpush1.bf16.msra.mxu0 %v1393_v31 }
  0x69   : > { %1015 = vmatpush1.bf16.msra.mxu1 %v1394_v32  ;;  %975 = vmatprep.subr.bf16.mxu0 %v1395_v33 }
  0x6a   : > { %1016 = vmatprep.subr.bf16.mxu1 %v1397_v34 }
  0x6c   : > { %976 = vmatpush2.bf16.msra.mxu0 %v1399_v35 }
  0x6d   : > { %1017 = vmatpush2.bf16.msra.mxu1 %v1400_v36  ;;  %977 = vmatprep.subr.bf16.mxu0 %v1401_v37 }
  0x6e   : > { %1018 = vmatprep.subr.bf16.mxu1 %v1403_v38 }
  0x70   : > { %978 = vmatpush2.bf16.msra.mxu0 %v1405_v39 }
  0x71   : > { %1019 = vmatpush2.bf16.msra.mxu1 %v1406_v40  ;;  %979 = vmatprep.subr.bf16.mxu0 %v1407_v41 }
  0x72   : > { %1020 = vmatprep.subr.bf16.mxu1 %v1409_v42 }
  0x74   : > { %980 = vmatpush2.bf16.msra.mxu0 %v1411_v43 }
  0x75   : > { %1021 = vmatpush2.bf16.msra.mxu1 %v1412_v44  ;;  %981 = vmatprep.subr.bf16.mxu0 %v1413_v45 }
  0x76   : > { %1022 = vmatprep.subr.bf16.mxu1 %v1415_v46 }
  0x78   : > { %982 = vmatpush2.bf16.msra.mxu0 %v1417_v50 }
  0x79   : > { %1023 = vmatpush2.bf16.msra.mxu1 %v1418_v51  ;;  %983 = vmatprep.subr.bf16.mxu0 %v1419_v53 }
  0x7a   : > { %1024 = vmatprep.subr.bf16.mxu1 %v1421_v54 }
  0x7c   : > { %984 = vmatpush2.bf16.msra.mxu0 %v1423_v55 }
  0x7d   : > { %1025 = vmatpush2.bf16.msra.mxu1 %v1424_v56  ;;  %985 = vmatprep.subr.bf16.mxu0 %v1425_v57 }
  0x7e   : > { %1026 = vmatprep.subr.bf16.mxu1 %v1427_v58 }
  0x80   : > { %986 = vmatpush2.bf16.msra.mxu0 %v1429_v59 }
  0x81   : > { %1027 = vmatpush2.bf16.msra.mxu1 %v1430_v60  ;;  %987 = vmatprep.subr.bf16.mxu0 %v1431_v61 }
  0x82   : > { %1028 = vmatprep.subr.bf16.mxu1 %v1433_v62 }
  0x84   : > { %988 = vmatpush2.bf16.msra.mxu0 %v1435_v63 }
  0x85   : > { %1029 = vmatpush2.bf16.msra.mxu1 %v1436_v0  ;;  %989 = vmatprep.subr.bf16.mxu0 %v1437_v1 }
  0x86   : > { %1030 = vmatprep.subr.bf16.mxu1 %v1439_v2 }
  0x88   : > { %990 = vmatpush2.bf16.msra.mxu0 %v1441_v3 }
  0x89   : > { %1031 = vmatpush2.bf16.msra.mxu1 %v1442_v4 }
  0x8b   : > { %992 = vmatmul.mubr.bf16.vlgmr.msra.gmra.mxu0 %v1216_v5 }
  0x8c   : > { %1033 = vmatmul.mubr.bf16.vlgmr.msra.gmra.mxu1 %v1218_v6 }
 0x14b   : > { %v993_v7 = vpop.f32.mrf.mxu0 }
 0x14c   : > { %v1034_v9 = vpop.f32.mrf.mxu1 }
 0x14d   : > { %v1035_v10 = vadd.f32 %v1034_v9, %v993_v7  ;;  %v995_v11 = vpop.f32.mrf.mxu0 }
 0x14e   : > { %v1036_v13 = vpop.f32.mrf.mxu1 }
 0x14f   : > { %v1041_v14 = vadd.f32 %v1035_v10, %v557_v8  ;;  %v1037_v15 = vadd.f32 %v1036_v13, %v995_v11  ;;  %v997_v16 = vpop.f32.mrf.mxu0  ;;  %1048 = sbr.rel (%p1284_p13) target bundleno = 355 (0x163), region = 78 }
 0x150   : > { %v1038_v17 = vpop.f32.mrf.mxu1 }
 0x151   : > { %1043 = vst [vmem:[#allocation2] sm:$0xff] %v1041_v14  ;;  %v1042_v18 = vadd.f32 %v1037_v15, %v558_v12  ;;  %v998_v19 = vpop.f32.mrf.mxu0 }
 0x152   : > { %v1039_v20 = vpop.f32.mrf.mxu1 }
 0x153   : > { %1044 = vst [vmem:[#allocation2 + $0x8] sm:$0xff] %v1042_v18 }
 0x154   : > { %v1053_v21 = vlaneseq  ;;  %v1051_v23 = vld [vmem:[%s539_s12] sm:$0x3] }
 0x156   : > { %v1054_v22 = vshrl.u32 %v1053_v21, 7 }
 0x158   : > { %v1055_v24 = vsub.s32 0, %v1054_v22  ;;  %v1059_v25 = vsub.s32 1, %v1054_v22  ;;  %v1049_v26 = vld [vmem:[#allocation2] sm:$0xff] }
 0x15a   : > { %v1050_v27 = vld [vmem:[#allocation2 + $0x8] sm:$0xff]  ;;  %v1056_v28 = vrot.slane %v1051_v23, %v1055_v24  ;;  %v1060_v29 = vrot.slane %v1051_v23, %v1059_v25 }
 0x15c   : > { %v1063_v30 = vadd.f32 %v1056_v28, %v1049_v26  ;;  %v1064_v31 = vadd.f32 %v1060_v29, %v1050_v27 }
 0x15e   : > { %v1065_v32 = vmax.f32 %v1063_v30, 0.0  ;;  %v1066_v33 = vmax.f32 %v1064_v31, 0.0 }
 0x160   : > { %v1289_v34 = vpack.c.bf16 %v1066_v33, %v1065_v32 }
 0x162   : > { %1075 = vst [vmem:[%s1736_s15] sm:$0xff] %v1289_v34 }
 0x163 PF: > { %s13_s18 = sadd.s32 1, %s1501_s18   ;;  %s1839_s12 = smov %s1481_s13 }
 0x164   : > { %p10_p0 = scmp.ge.s32.totalorder %s13_s18, 20   ;;  %s1840_s13 = smov %s1575_s25 }
 0x165   : > { %s1841_s14 = smov %s1493_s16  ;;  %s1842_s15 = smov %s1497_s17 }
 0x166   : > { %s1843_s16 = smov %s1846_s19  ;;  %s1844_s17 = smov %s1850_s20 }
 0x167   :  { %12 = sbr.rel (!%p10_p0) target bundleno = 4 (0x4), region = 119 }

// kernel: resnet18_forward.45
= control target key start
LH: loop header
LB: loop body
LE: loop exit
PB: predicated region body
PF: predicated region fallthrough
CT: control target
= control target key end

     0   :  { %s637_s1 = inlined_call_operand.vmem [shape: bf16[512,128], index: 1, kind: input, shape index: {}]   ;;  %s638_s0 = inlined_call_operand.vmem [shape: bf16[8,512], index: 0, kind: input, shape index: {}]   ;;  %s639_s2 = inlined_call_operand.vmem [shape: f32[1,128], index: 2, kind: input, shape index: {}]   ;;  %s640_s3 = inlined_call_operand.vmem [shape: f32[8,128], index: 3, kind: output, shape index: {}]  }
   0x1   :  { %v473_v0 = vld [vmem:[%s637_s1 + $0x78] sm:$0xff]   ;;  %v477_v4 = vld [vmem:[%s637_s1 + $0x70] sm:$0xff]   ;;  %v481_v8 = vld [vmem:[%s637_s1 + $0x68] sm:$0xff]  }
   0x2   :  { %v474_v1 = vld [vmem:[%s637_s1 + $0xf8] sm:$0xff]   ;;  %429 = vmatprep.subr.bf16.mxu0 %v473_v0  ;;  %v478_v5 = vld [vmem:[%s637_s1 + $0xf0] sm:$0xff]   ;;  %v482_v9 = vld [vmem:[%s637_s1 + $0xe8] sm:$0xff]  }
   0x3   :  { %v475_v2 = vld [vmem:[%s637_s1 + $0x38] sm:$0xff]   ;;  %451 = vmatprep.subr.bf16.mxu1 %v474_v1  ;;  %v479_v6 = vld [vmem:[%s637_s1 + $0x30] sm:$0xff]   ;;  %v483_v10 = vld [vmem:[%s637_s1 + $0x28] sm:$0xff]  }
   0x4   :  { %v476_v3 = vld [vmem:[%s637_s1 + $0xb8] sm:$0xff]   ;;  %430 = vmatpush3.bf16.msra.mxu0 %v475_v2  ;;  %v480_v7 = vld [vmem:[%s637_s1 + $0xb0] sm:$0xff]   ;;  %v484_v11 = vld [vmem:[%s637_s1 + $0xa8] sm:$0xff]  }
   0x5   :  { %452 = vmatpush3.bf16.msra.mxu1 %v476_v3  ;;  %431 = vmatprep.subr.bf16.mxu0 %v477_v4  ;;  %v485_v12 = vld [vmem:[%s637_s1 + $0x60] sm:$0xff]   ;;  %v489_v16 = vld [vmem:[%s637_s1 + $0x58] sm:$0xff]   ;;  %v493_v20 = vld [vmem:[%s637_s1 + $0x50] sm:$0xff]  }
   0x6   :  { %453 = vmatprep.subr.bf16.mxu1 %v478_v5  ;;  %v486_v13 = vld [vmem:[%s637_s1 + $0xe0] sm:$0xff]   ;;  %v490_v17 = vld [vmem:[%s637_s1 + $0xd8] sm:$0xff]   ;;  %v494_v21 = vld [vmem:[%s637_s1 + $0xd0] sm:$0xff]  }
   0x7   :  { %v487_v14 = vld [vmem:[%s637_s1 + $0x20] sm:$0xff]   ;;  %v491_v18 = vld [vmem:[%s637_s1 + $0x18] sm:$0xff]   ;;  %v495_v22 = vld [vmem:[%s637_s1 + $0x10] sm:$0xff]  }
   0x8   :  { %432 = vmatpush3.bf16.msra.mxu0 %v479_v6  ;;  %v488_v15 = vld [vmem:[%s637_s1 + $0xa0] sm:$0xff]   ;;  %v492_v19 = vld [vmem:[%s637_s1 + $0x98] sm:$0xff]   ;;  %v496_v23 = vld [vmem:[%s637_s1 + $0x90] sm:$0xff]  }
   0x9   :  { %454 = vmatpush3.bf16.msra.mxu1 %v480_v7  ;;  %433 = vmatprep.subr.bf16.mxu0 %v481_v8  ;;  %v497_v24 = vld [vmem:[%s637_s1 + $0x48] sm:$0xff]   ;;  %v501_v28 = vld [vmem:[%s637_s1 + $0x40] sm:$0xff]  }
   0xa   :  { %455 = vmatprep.subr.bf16.mxu1 %v482_v9  ;;  %v498_v25 = vld [vmem:[%s637_s1 + $0xc8] sm:$0xff]   ;;  %v502_v29 = vld [vmem:[%s637_s1 + $0xc0] sm:$0xff]  }
   0xb   :  { %v499_v26 = vld [vmem:[%s637_s1 + $0x8] sm:$0xff]   ;;  %v503_v30 = vld [vmem:[%s637_s1] sm:$0xff]  }
   0xc   :  { %434 = vmatpush3.bf16.msra.mxu0 %v483_v10  ;;  %v500_v27 = vld [vmem:[%s637_s1 + $0x88] sm:$0xff]   ;;  %v504_v31 = vld [vmem:[%s637_s1 + $0x80] sm:$0xff]  }
   0xd   :  { %456 = vmatpush3.bf16.msra.mxu1 %v484_v11  ;;  %435 = vmatprep.subr.bf16.mxu0 %v485_v12  ;;  %v21_v32 = vld [vmem:[%s638_s0] sm:$0xff]  ;;  %v22_v33 = vld [vmem:[%s638_s0 + $0x8] sm:$0xff] }
   0xe   :  { %457 = vmatprep.subr.bf16.mxu1 %v486_v13  ;;  %v392_v34 = vcombine.low %v21_v32, %v21_v32  ;;  %v393_v35 = vcombine.high %v21_v32, %v21_v32  ;;  %v394_v36 = vcombine.low %v22_v33, %v22_v33  ;;  %v395_v37 = vcombine.high %v22_v33, %v22_v33  ;;  %v428_v44 = vld [vmem:[%s639_s2] ss:$0 sm:$0xff] }
  0x10   :  { %436 = vmatpush3.bf16.msra.mxu0 %v487_v14  ;;  %325 = vmatprep.mubr.bf16.mxu0 %v393_v35 }
  0x11   :  { %458 = vmatpush3.bf16.msra.mxu1 %v488_v15  ;;  %437 = vmatprep.subr.bf16.mxu0 %v489_v16 }
  0x12   :  { %459 = vmatprep.subr.bf16.mxu1 %v490_v17  ;;  %365 = vmatprep.mubr.bf16.mxu1 %v395_v37 }
  0x14   :  { %438 = vmatpush3.bf16.msra.mxu0 %v491_v18 }
  0x15   :  { %460 = vmatpush3.bf16.msra.mxu1 %v492_v19  ;;  %439 = vmatprep.subr.bf16.mxu0 %v493_v20 }
  0x16   :  { %461 = vmatprep.subr.bf16.mxu1 %v494_v21 }
  0x18   :  { %440 = vmatpush3.bf16.msra.mxu0 %v495_v22 }
  0x19   :  { %462 = vmatpush3.bf16.msra.mxu1 %v496_v23  ;;  %441 = vmatprep.subr.bf16.mxu0 %v497_v24 }
  0x1a   :  { %463 = vmatprep.subr.bf16.mxu1 %v498_v25 }
  0x1c   :  { %442 = vmatpush3.bf16.msra.mxu0 %v499_v26 }
  0x1d   :  { %464 = vmatpush3.bf16.msra.mxu1 %v500_v27  ;;  %443 = vmatprep.subr.bf16.mxu0 %v501_v28 }
  0x1e   :  { %465 = vmatprep.subr.bf16.mxu1 %v502_v29 }
  0x20   :  { %444 = vmatpush3.bf16.msra.mxu0 %v503_v30 }
  0x21   :  { %466 = vmatpush3.bf16.msra.mxu1 %v504_v31 }
  0x23   :  { %326 = vmatmul.mubr.bf16.vlgmr.msra.gmra.mxu0 %v392_v34 }
  0x24   :  { %366 = vmatmul.mubr.bf16.vlgmr.msra.gmra.mxu1 %v394_v36 }
  0xe3   :  { %v445_v38 = vpop.f32.mrf.mxu0 }
  0xe4   :  { %v467_v39 = vpop.f32.mrf.mxu1 }
  0xe5   :  { %v446_v40 = vpop.f32.mrf.mxu0 }
  0xe6   :  { %v468_v41 = vpop.f32.mrf.mxu1  ;;  %v447_v42 = vadd.f32 %v446_v40, %v445_v38 }
  0xe7   :  { %v469_v43 = vadd.f32 %v468_v41, %v467_v39  ;;  %v448_v45 = vpop.f32.mrf.mxu0 }
  0xe8   :  { %v470_v46 = vpop.f32.mrf.mxu1 }
  0xe9   :  { %v368_v47 = vadd.f32 %v469_v43, %v447_v42  ;;  %v449_v48 = vpop.f32.mrf.mxu0 }
  0xea   :  { %v471_v49 = vpop.f32.mrf.mxu1 }
  0xeb   :  { %v386_v50 = vadd.f32 %v428_v44, %v368_v47 }
  0xed   :  { %387 = vst [vmem:[%s640_s3] sm:$0xff] %v386_v50 }

</bundles_post_ra>
